<compile_context>
chip_gen: v6e
topology: v6e:2x2x1
jax: 0.10.0
libtpu: 0.0.40
codegen_flags: <defaults>
</compile_context>

<pallas_src>
import jax
import jax.numpy as jnp
from jax.experimental import pallas as pl
from jax.experimental.pallas import tpu as pltpu

MATMUL_DTYPE = jnp.bfloat16     # MXU input dtype; accumulation is always f32
LANE = 128                      # conv Cout / fc3 N are zero-padded to this
CONV1_COUT = 16
CONV2_COUT = 32
FC1_K = CONV2_COUT * 5 * 5      # 800 real fc1 features
FC1_K_PAD = 1024                # padded contraction dim (4 x 256 MXU passes)
VMEM_LIMIT = 32 * 1024 * 1024   # explicit scoped-VMEM budget (see header)


def _round_up(x, m):
    return (x + m - 1) // m * m


def _choose_tile(m, target, align=16):
    """Row-tile size: multiple of `align`, capped at `target`, and (when m is
    large enough) no bigger than ~m/2 so the grid has >= 2 blocks and v7x's
    second TensorCore gets work."""
    half = _round_up(max((m + 1) // 2, 1), align)
    return max(align, min(target, half))


def _resident_spec(shape):
    """BlockSpec for a grid-invariant operand (weights / biases): always block
    (0, ..., 0); single-buffered when this jax exposes pipeline_mode."""
    index_map = lambda i: (0,) * len(shape)
    try:
        return pl.BlockSpec(shape, index_map, pipeline_mode=pl.Buffered(1))
    except TypeError:            # older jax without BlockSpec.pipeline_mode
        return pl.BlockSpec(shape, index_map)


# ---------------------------------------------------------------------------
# Pallas kernels
# ---------------------------------------------------------------------------
def _conv_pool_kernel(p_ref, w_ref, b_ref, o_ref):
    """Fused valid-conv + bias + relu + 2x2/2 maxpool for one M-tile.

    p_ref: (4, TM, K) bf16 -- im2col patch matrices for the 4 pool taps.
    w_ref: (K, 128) bf16 (Cout zero-padded to a full lane); b_ref: (1, 128) f32.
    maxpool(relu(conv + b)) == relu(max_t(p_t @ W) + b).
    """
    w = w_ref[...]
    acc = jnp.dot(p_ref[0], w, preferred_element_type=jnp.float32)
    acc = jnp.maximum(acc, jnp.dot(p_ref[1], w, preferred_element_type=jnp.float32))
    acc = jnp.maximum(acc, jnp.dot(p_ref[2], w, preferred_element_type=jnp.float32))
    acc = jnp.maximum(acc, jnp.dot(p_ref[3], w, preferred_element_type=jnp.float32))
    o_ref[...] = jnp.maximum(acc + b_ref[...], 0.0).astype(o_ref.dtype)


def _fc_fused_kernel(x_ref, w1_ref, b1_ref, w2_ref, b2_ref, w3_ref, b3_ref,
                     o_ref):
    """fc1+relu -> fc2 -> fc3, all on-chip.

    x: (TB, 1024) bf16 (800 real features + zero pad); w1: (1024, 1024);
    w2: (1024, 1024); w3: (1024, 128) (N padded to 128, zero cols past col 0);
    biases (1, N) f32.  No activation after fc2 / fc3 (matches reference).
    """
    h = jnp.dot(x_ref[...], w1_ref[...], preferred_element_type=jnp.float32)
    h = jnp.maximum(h + b1_ref[...], 0.0)                              # fc1
    h = jnp.dot(h.astype(w2_ref.dtype), w2_ref[...],
                preferred_element_type=jnp.float32) + b2_ref[...]      # fc2
    o = jnp.dot(h.astype(w3_ref.dtype), w3_ref[...],
                preferred_element_type=jnp.float32) + b3_ref[...]      # fc3
    o_ref[...] = o.astype(o_ref.dtype)


# ---------------------------------------------------------------------------
# Pallas wrappers
# ---------------------------------------------------------------------------
def conv_relu_pool(x, w_col, b_row, *, kh=3, kw=3, tm=2048):
    """x: (B, H, W, Cin) NHWC bf16; w_col: (kh*kw*Cin, 128) bf16 with Cout
    zero-padded to 128 lanes; b_row: (1, 128) f32.
    Returns pooled activation (B, Hp, Wp, 128) bf16 (real channels first)."""
    B, H, W, Cin = x.shape
    K, Cp = w_col.shape
    assert K == kh * kw * Cin and Cp % LANE == 0
    Ho, Wo = H - kh + 1, W - kw + 1
    Hp, Wp = Ho // 2, Wo // 2            # floor-mode 2x2 pool, stride 2
    Mp = B * Hp * Wp

    # im2col tap matrices (XLA glue), stacked on a leading tap axis so each
    # grid step fetches one (4, TM, K) block.  Columns ordered (ki, kj, cin)
    # to match w_col's row order.
    taps = []
    for dh in (0, 1):
        for dw in (0, 1):
            cols = []
            for ki in range(kh):
                for kj in range(kw):
                    r0, c0 = dh + ki, dw + kj
                    cols.append(x[:, r0:r0 + 2 * Hp - 1:2,
                                  c0:c0 + 2 * Wp - 1:2, :])
            taps.append(jnp.concatenate(cols, axis=-1).reshape(Mp, K))
    lhs = jnp.stack(taps, axis=0)                         # (4, Mp, K)

    tm_eff = _choose_tile(Mp, tm)
    mp_pad = _round_up(Mp, tm_eff)
    if mp_pad != Mp:
        lhs = jnp.pad(lhs, ((0, 0), (0, mp_pad - Mp), (0, 0)))
    grid = (mp_pad // tm_eff,)

    out = pl.pallas_call(
        _conv_pool_kernel,
        out_shape=jax.ShapeDtypeStruct((mp_pad, Cp), x.dtype),
        grid=grid,
        in_specs=[
            pl.BlockSpec((4, tm_eff, K), lambda i: (0, i, 0)),
            _resident_spec((K, Cp)),          # weight, grid-invariant
            _resident_spec((1, Cp)),          # bias,   grid-invariant
        ],
        out_specs=pl.BlockSpec((tm_eff, Cp), lambda i: (i, 0)),
        compiler_params=pltpu.CompilerParams(
            dimension_semantics=("parallel",),
            vmem_limit_bytes=VMEM_LIMIT),
    )(lhs, w_col, b_row)
    return out[:Mp].reshape(B, Hp, Wp, Cp)


def fc_head(x, w1, b1, w2, b2, w3p, b3p, *, tb=512):
    """Fused fc1(relu)+fc2+fc3.  x: (B, 1024) bf16 (zero-padded K).
    Returns (B, 128) f32; the true fc3 output is column 0."""
    B, K1 = x.shape
    N1, N2, N3 = w1.shape[1], w2.shape[1], w3p.shape[1]

    tb_eff = _choose_tile(B, tb)
    b_pad = _round_up(B, tb_eff)
    if b_pad != B:
        x = jnp.pad(x, ((0, b_pad - B), (0, 0)))
    grid = (b_pad // tb_eff,)

    out = pl.pallas_call(
        _fc_fused_kernel,
        out_shape=jax.ShapeDtypeStruct((b_pad, N3), jnp.float32),
        grid=grid,
        in_specs=[
            pl.BlockSpec((tb_eff, K1), lambda i: (i, 0)),
            _resident_spec((K1, N1)), _resident_spec((1, N1)),
            _resident_spec((N1, N2)), _resident_spec((1, N2)),
            _resident_spec((N2, N3)), _resident_spec((1, N3)),
        ],
        out_specs=pl.BlockSpec((tb_eff, N3), lambda i: (i, 0)),
        compiler_params=pltpu.CompilerParams(
            dimension_semantics=("parallel",),
            vmem_limit_bytes=VMEM_LIMIT),
    )(x, w1, b1, w2, b2, w3p, b3p)
    return out[:B]


# ---------------------------------------------------------------------------
# Full network forward
# ---------------------------------------------------------------------------
def regression_net(x_nchw, params):
    x = jnp.transpose(x_nchw, (0, 2, 3, 1)).astype(MATMUL_DTYPE)   # NCHW->NHWC
    x = conv_relu_pool(x, params["w1"], params["b1"])               # (B,13,13,128)
    x = conv_relu_pool(x[..., :CONV1_COUT],
                       params["w2"], params["b2"])                  # (B, 5, 5,128)
    B = x.shape[0]
    feat = x[..., :CONV2_COUT].reshape(B, -1)                       # (B, 800) HWC
    feat = jnp.pad(feat, ((0, 0), (0, FC1_K_PAD - feat.shape[1])))  # (B,1024)
    out = fc_head(feat, params["wfc1"], params["bfc1"],
                  params["wfc2"], params["bfc2"],
                  params["wfc3"], params["bfc3"])                   # (B, 128)
    return out[:, :1]                                               # fc3 N=1


# ---------------------------------------------------------------------------
# Parameters (torch-layout init, one-time layout/dtype prep off the hot path)
# ---------------------------------------------------------------------------
def init_params(key):
    """Random params in PyTorch layouts (Conv2d OIHW, Linear (out, in))."""
    ks = jax.random.split(key, 10)
    s = 0.05
    n = jax.random.normal
    return {
        "conv1_w": s * n(ks[0], (16, 3, 3, 3), jnp.float32),
        "conv1_b": s * n(ks[1], (16,), jnp.float32),
        "conv2_w": s * n(ks[2], (32, 16, 3, 3), jnp.float32),
        "conv2_b": s * n(ks[3], (32,), jnp.float32),
        "fc1_w": s * n(ks[4], (1024, 32 * 5 * 5), jnp.float32),  # cols in CHW
        "fc1_b": s * n(ks[5], (1024,), jnp.float32),
        "fc2_w": s * n(ks[6], (1024, 1024), jnp.float32),
        "fc2_b": s * n(ks[7], (1024,), jnp.float32),
        "fc3_w": s * n(ks[8], (1, 1024), jnp.float32),
        "fc3_b": s * n(ks[9], (1,), jnp.float32),
    }


def prepare_params(p):
    """One-time prep: conv OIHW -> (K, 128) column matrices with Cout lane-
    padded; conv biases padded to 128 lanes; fc weights to (in, out); fc1 rows
    permuted CHW->HWC and K padded 800->1024; fc3 padded N=1 -> N=128 for a
    lane-dense store.  Matmul inputs bf16, biases kept f32."""
    def conv_w(w):  # (O, I, kh, kw) -> (kh*kw*I, 128), rows ordered (kh,kw,I)
        o = w.shape[0]
        wc = jnp.transpose(w, (2, 3, 1, 0)).reshape(-1, o)
        return jnp.pad(wc, ((0, 0), (0, LANE - o))).astype(MATMUL_DTYPE)

    def conv_b(b):
        return jnp.pad(b, (0, LANE - b.shape[0])).reshape(1, -1).astype(jnp.float32)

    o1 = p["fc1_w"].shape[0]
    w1 = p["fc1_w"].reshape(o1, CONV2_COUT, 5, 5).transpose(0, 2, 3, 1)
    w1 = jnp.transpose(w1.reshape(o1, -1))                         # (800, 1024)
    w1 = jnp.pad(w1, ((0, FC1_K_PAD - FC1_K), (0, 0))).astype(MATMUL_DTYPE)
    w2 = jnp.transpose(p["fc2_w"]).astype(MATMUL_DTYPE)            # (1024,1024)
    w3 = jnp.pad(jnp.transpose(p["fc3_w"]),
                 ((0, 0), (0, LANE - 1))).astype(MATMUL_DTYPE)     # (1024, 128)
    b3 = jnp.pad(p["fc3_b"], (0, LANE - 1))

    f32row = lambda b: b.reshape(1, -1).astype(jnp.float32)
    return {
        "w1": conv_w(p["conv1_w"]), "b1": conv_b(p["conv1_b"]),
        "w2": conv_w(p["conv2_w"]), "b2": conv_b(p["conv2_b"]),
        "wfc1": w1, "bfc1": f32row(p["fc1_b"]),
        "wfc2": w2, "bfc2": f32row(p["fc2_b"]),
        "wfc3": w3, "bfc3": f32row(b3),
    }


if __name__ == "__main__":
    key = jax.random.PRNGKey(0)
    kx, kp = jax.random.split(key)
    # fc1's view(-1, 32*5*5) implies a 28x28 spatial input; small batch of 2.
    x = jax.random.normal(kx, (2, 3, 28, 28), dtype=jnp.float32)
    params = prepare_params(init_params(kp))

    out = jax.jit(regression_net)(x, params)
    out = jax.block_until_ready(out)
    assert out.shape == (2, 1), out.shape
    assert bool(jnp.all(jnp.isfinite(out)))
    print("KERNEL_OK")
</pallas_src>

<mosaic_0001>
module attributes {stable_mosaic.version = 11 : i64} {
  func.func @_conv_pool_kernel(%arg0: i32, %arg1: memref<4x176x27xbf16, #tpu.memory_space<vmem>>, %arg2: memref<27x128xbf16, #tpu.memory_space<vmem>>, %arg3: memref<1x128xf32, #tpu.memory_space<vmem>>, %arg4: memref<176x128xbf16, #tpu.memory_space<vmem>>) attributes {dimension_semantics = [#tpu.dimension_semantics<parallel>], iteration_bounds = array<i64: 2>, scalar_prefetch = 0 : i64, scratch_operands = 0 : i64, tpu.core_type = #tpu.core_type<tc>, window_params = [{transform_indices = @transform_0, window_bounds = array<i64: 4, 176, 27>}, {pipeline_mode = #tpu.pipeline_mode<synchronous>, transform_indices = @transform_1, window_bounds = array<i64: 27, 128>}, {pipeline_mode = #tpu.pipeline_mode<synchronous>, transform_indices = @transform_2, window_bounds = array<i64: 1, 128>}, {transform_indices = @transform_3, window_bounds = array<i64: 176, 128>}]} {
    %c0 = arith.constant 0 : index
    %c0_0 = arith.constant 0 : index
    %0 = vector.load %arg2[%c0, %c0_0] : memref<27x128xbf16, #tpu.memory_space<vmem>>, vector<27x128xbf16>
    %c0_1 = arith.constant 0 : index
    %c0_2 = arith.constant 0 : index
    %c0_3 = arith.constant 0 : index
    %1 = vector.load %arg1[%c0_1, %c0_2, %c0_3] : memref<4x176x27xbf16, #tpu.memory_space<vmem>>, vector<1x176x27xbf16>
    %2 = vector.shape_cast %1 : vector<1x176x27xbf16> to vector<176x27xbf16>
    %cst = arith.constant dense<0.000000e+00> : vector<176x128xf32>
    %3 = tpu.matmul %2, %0, %cst {dimension_numbers = #tpu.dot_dimension_numbers<[1], [0], [0], [1], [0, 0, 1, 1], [], []>} : vector<176x27xbf16>, vector<27x128xbf16>, vector<176x128xf32> -> vector<176x128xf32>
    %c1 = arith.constant 1 : index
    %c0_4 = arith.constant 0 : index
    %c0_5 = arith.constant 0 : index
    %4 = vector.load %arg1[%c1, %c0_4, %c0_5] : memref<4x176x27xbf16, #tpu.memory_space<vmem>>, vector<1x176x27xbf16>
    %5 = vector.shape_cast %4 : vector<1x176x27xbf16> to vector<176x27xbf16>
    %cst_6 = arith.constant dense<0.000000e+00> : vector<176x128xf32>
    %6 = tpu.matmul %5, %0, %cst_6 {dimension_numbers = #tpu.dot_dimension_numbers<[1], [0], [0], [1], [0, 0, 1, 1], [], []>} : vector<176x27xbf16>, vector<27x128xbf16>, vector<176x128xf32> -> vector<176x128xf32>
    %7 = arith.maximumf %3, %6 : vector<176x128xf32>
    %c2 = arith.constant 2 : index
    %c0_7 = arith.constant 0 : index
    %c0_8 = arith.constant 0 : index
    %8 = vector.load %arg1[%c2, %c0_7, %c0_8] : memref<4x176x27xbf16, #tpu.memory_space<vmem>>, vector<1x176x27xbf16>
    %9 = vector.shape_cast %8 : vector<1x176x27xbf16> to vector<176x27xbf16>
    %cst_9 = arith.constant dense<0.000000e+00> : vector<176x128xf32>
    %10 = tpu.matmul %9, %0, %cst_9 {dimension_numbers = #tpu.dot_dimension_numbers<[1], [0], [0], [1], [0, 0, 1, 1], [], []>} : vector<176x27xbf16>, vector<27x128xbf16>, vector<176x128xf32> -> vector<176x128xf32>
    %11 = arith.maximumf %7, %10 : vector<176x128xf32>
    %c3 = arith.constant 3 : index
    %c0_10 = arith.constant 0 : index
    %c0_11 = arith.constant 0 : index
    %12 = vector.load %arg1[%c3, %c0_10, %c0_11] : memref<4x176x27xbf16, #tpu.memory_space<vmem>>, vector<1x176x27xbf16>
    %13 = vector.shape_cast %12 : vector<1x176x27xbf16> to vector<176x27xbf16>
    %cst_12 = arith.constant dense<0.000000e+00> : vector<176x128xf32>
    %14 = tpu.matmul %13, %0, %cst_12 {dimension_numbers = #tpu.dot_dimension_numbers<[1], [0], [0], [1], [0, 0, 1, 1], [], []>} : vector<176x27xbf16>, vector<27x128xbf16>, vector<176x128xf32> -> vector<176x128xf32>
    %15 = arith.maximumf %11, %14 : vector<176x128xf32>
    %c0_13 = arith.constant 0 : index
    %c0_14 = arith.constant 0 : index
    %16 = vector.load %arg3[%c0_13, %c0_14] : memref<1x128xf32, #tpu.memory_space<vmem>>, vector<1x128xf32>
    %17 = vector.broadcast %16 : vector<1x128xf32> to vector<176x128xf32>
    %18 = arith.addf %15, %17 : vector<176x128xf32>
    %cst_15 = arith.constant 0.000000e+00 : f32
    %19 = vector.broadcast %cst_15 : f32 to vector<176x128xf32>
    %20 = arith.maximumf %18, %19 : vector<176x128xf32>
    %21 = arith.truncf %20 : vector<176x128xf32> to vector<176x128xbf16>
    %c0_16 = arith.constant 0 : index
    %c0_17 = arith.constant 0 : index
    %22 = vector.load %arg4[%c0_16, %c0_17] : memref<176x128xbf16, #tpu.memory_space<vmem>>, vector<176x128xbf16>
    tpu.vector_store %arg4[%c0_16, %c0_17], %21 {strides = array<i32>} : memref<176x128xbf16, #tpu.memory_space<vmem>>, vector<176x128xbf16>,
    return
  }
  func.func @transform_0(%arg0: i32) -> (i32, i32, i32) {
    %c0_i32 = arith.constant 0 : i32
    %c0_i32_0 = arith.constant 0 : i32
    %c0_i32_1 = arith.constant 0 : i32
    return %c0_i32, %arg0, %c0_i32_0 : i32, i32, i32
  }
  func.func @transform_1(%arg0: i32) -> (i32, i32) {
    %c0_i32 = arith.constant 0 : i32
    %c0_i32_0 = arith.constant 0 : i32
    %c0_i32_1 = arith.constant 0 : i32
    return %c0_i32, %c0_i32_0 : i32, i32
  }
  func.func @transform_2(%arg0: i32) -> (i32, i32) {
    %c0_i32 = arith.constant 0 : i32
    %c0_i32_0 = arith.constant 0 : i32
    %c0_i32_1 = arith.constant 0 : i32
    return %c0_i32, %c0_i32_0 : i32, i32
  }
  func.func @transform_3(%arg0: i32) -> (i32, i32) {
    %c0_i32 = arith.constant 0 : i32
    %c0_i32_0 = arith.constant 0 : i32
    return %arg0, %c0_i32 : i32, i32
  }
}

module attributes {stable_mosaic.version = 11 : i64} {
  func.func @_conv_pool_kernel(%arg0: i32, %arg1: memref<4x32x144xbf16, #tpu.memory_space<vmem>>, %arg2: memref<144x128xbf16, #tpu.memory_space<vmem>>, %arg3: memref<1x128xf32, #tpu.memory_space<vmem>>, %arg4: memref<32x128xbf16, #tpu.memory_space<vmem>>) attributes {dimension_semantics = [#tpu.dimension_semantics<parallel>], iteration_bounds = array<i64: 2>, scalar_prefetch = 0 : i64, scratch_operands = 0 : i64, tpu.core_type = #tpu.core_type<tc>, window_params = [{transform_indices = @transform_0, window_bounds = array<i64: 4, 32, 144>}, {pipeline_mode = #tpu.pipeline_mode<synchronous>, transform_indices = @transform_1, window_bounds = array<i64: 144, 128>}, {pipeline_mode = #tpu.pipeline_mode<synchronous>, transform_indices = @transform_2, window_bounds = array<i64: 1, 128>}, {transform_indices = @transform_3, window_bounds = array<i64: 32, 128>}]} {
    %c0 = arith.constant 0 : index
    %c0_0 = arith.constant 0 : index
    %0 = vector.load %arg2[%c0, %c0_0] : memref<144x128xbf16, #tpu.memory_space<vmem>>, vector<144x128xbf16>
    %c0_1 = arith.constant 0 : index
    %c0_2 = arith.constant 0 : index
    %c0_3 = arith.constant 0 : index
    %1 = vector.load %arg1[%c0_1, %c0_2, %c0_3] : memref<4x32x144xbf16, #tpu.memory_space<vmem>>, vector<1x32x144xbf16>
    %2 = vector.shape_cast %1 : vector<1x32x144xbf16> to vector<32x144xbf16>
    %cst = arith.constant dense<0.000000e+00> : vector<32x128xf32>
    %3 = tpu.matmul %2, %0, %cst {dimension_numbers = #tpu.dot_dimension_numbers<[1], [0], [0], [1], [0, 0, 1, 1], [], []>} : vector<32x144xbf16>, vector<144x128xbf16>, vector<32x128xf32> -> vector<32x128xf32>
    %c1 = arith.constant 1 : index
    %c0_4 = arith.constant 0 : index
    %c0_5 = arith.constant 0 : index
    %4 = vector.load %arg1[%c1, %c0_4, %c0_5] : memref<4x32x144xbf16, #tpu.memory_space<vmem>>, vector<1x32x144xbf16>
    %5 = vector.shape_cast %4 : vector<1x32x144xbf16> to vector<32x144xbf16>
    %cst_6 = arith.constant dense<0.000000e+00> : vector<32x128xf32>
    %6 = tpu.matmul %5, %0, %cst_6 {dimension_numbers = #tpu.dot_dimension_numbers<[1], [0], [0], [1], [0, 0, 1, 1], [], []>} : vector<32x144xbf16>, vector<144x128xbf16>, vector<32x128xf32> -> vector<32x128xf32>
    %7 = arith.maximumf %3, %6 : vector<32x128xf32>
    %c2 = arith.constant 2 : index
    %c0_7 = arith.constant 0 : index
    %c0_8 = arith.constant 0 : index
    %8 = vector.load %arg1[%c2, %c0_7, %c0_8] : memref<4x32x144xbf16, #tpu.memory_space<vmem>>, vector<1x32x144xbf16>
    %9 = vector.shape_cast %8 : vector<1x32x144xbf16> to vector<32x144xbf16>
    %cst_9 = arith.constant dense<0.000000e+00> : vector<32x128xf32>
    %10 = tpu.matmul %9, %0, %cst_9 {dimension_numbers = #tpu.dot_dimension_numbers<[1], [0], [0], [1], [0, 0, 1, 1], [], []>} : vector<32x144xbf16>, vector<144x128xbf16>, vector<32x128xf32> -> vector<32x128xf32>
    %11 = arith.maximumf %7, %10 : vector<32x128xf32>
    %c3 = arith.constant 3 : index
    %c0_10 = arith.constant 0 : index
    %c0_11 = arith.constant 0 : index
    %12 = vector.load %arg1[%c3, %c0_10, %c0_11] : memref<4x32x144xbf16, #tpu.memory_space<vmem>>, vector<1x32x144xbf16>
    %13 = vector.shape_cast %12 : vector<1x32x144xbf16> to vector<32x144xbf16>
    %cst_12 = arith.constant dense<0.000000e+00> : vector<32x128xf32>
    %14 = tpu.matmul %13, %0, %cst_12 {dimension_numbers = #tpu.dot_dimension_numbers<[1], [0], [0], [1], [0, 0, 1, 1], [], []>} : vector<32x144xbf16>, vector<144x128xbf16>, vector<32x128xf32> -> vector<32x128xf32>
    %15 = arith.maximumf %11, %14 : vector<32x128xf32>
    %c0_13 = arith.constant 0 : index
    %c0_14 = arith.constant 0 : index
    %16 = vector.load %arg3[%c0_13, %c0_14] : memref<1x128xf32, #tpu.memory_space<vmem>>, vector<1x128xf32>
    %17 = vector.broadcast %16 : vector<1x128xf32> to vector<32x128xf32>
    %18 = arith.addf %15, %17 : vector<32x128xf32>
    %cst_15 = arith.constant 0.000000e+00 : f32
    %19 = vector.broadcast %cst_15 : f32 to vector<32x128xf32>
    %20 = arith.maximumf %18, %19 : vector<32x128xf32>
    %21 = arith.truncf %20 : vector<32x128xf32> to vector<32x128xbf16>
    %c0_16 = arith.constant 0 : index
    %c0_17 = arith.constant 0 : index
    %22 = vector.load %arg4[%c0_16, %c0_17] : memref<32x128xbf16, #tpu.memory_space<vmem>>, vector<32x128xbf16>
    tpu.vector_store %arg4[%c0_16, %c0_17], %21 {strides = array<i32>} : memref<32x128xbf16, #tpu.memory_space<vmem>>, vector<32x128xbf16>,
    return
  }
  func.func @transform_0(%arg0: i32) -> (i32, i32, i32) {
    %c0_i32 = arith.constant 0 : i32
    %c0_i32_0 = arith.constant 0 : i32
    %c0_i32_1 = arith.constant 0 : i32
    return %c0_i32, %arg0, %c0_i32_0 : i32, i32, i32
  }
  func.func @transform_1(%arg0: i32) -> (i32, i32) {
    %c0_i32 = arith.constant 0 : i32
    %c0_i32_0 = arith.constant 0 : i32
    %c0_i32_1 = arith.constant 0 : i32
    return %c0_i32, %c0_i32_0 : i32, i32
  }
  func.func @transform_2(%arg0: i32) -> (i32, i32) {
    %c0_i32 = arith.constant 0 : i32
    %c0_i32_0 = arith.constant 0 : i32
    %c0_i32_1 = arith.constant 0 : i32
    return %c0_i32, %c0_i32_0 : i32, i32
  }
  func.func @transform_3(%arg0: i32) -> (i32, i32) {
    %c0_i32 = arith.constant 0 : i32
    %c0_i32_0 = arith.constant 0 : i32
    return %arg0, %c0_i32 : i32, i32
  }
}

module attributes {stable_mosaic.version = 11 : i64} {
  func.func @_fc_fused_kernel(%arg0: i32, %arg1: memref<16x1024xbf16, #tpu.memory_space<vmem>>, %arg2: memref<1024x1024xbf16, #tpu.memory_space<vmem>>, %arg3: memref<1x1024xf32, #tpu.memory_space<vmem>>, %arg4: memref<1024x1024xbf16, #tpu.memory_space<vmem>>, %arg5: memref<1x1024xf32, #tpu.memory_space<vmem>>, %arg6: memref<1024x128xbf16, #tpu.memory_space<vmem>>, %arg7: memref<1x128xf32, #tpu.memory_space<vmem>>, %arg8: memref<16x128xf32, #tpu.memory_space<vmem>>) attributes {dimension_semantics = [#tpu.dimension_semantics<parallel>], iteration_bounds = array<i64: 1>, scalar_prefetch = 0 : i64, scratch_operands = 0 : i64, tpu.core_type = #tpu.core_type<tc>, window_params = [{transform_indices = @transform_0, window_bounds = array<i64: 16, 1024>}, {pipeline_mode = #tpu.pipeline_mode<synchronous>, transform_indices = @transform_1, window_bounds = array<i64: 1024, 1024>}, {pipeline_mode = #tpu.pipeline_mode<synchronous>, transform_indices = @transform_2, window_bounds = array<i64: 1, 1024>}, {pipeline_mode = #tpu.pipeline_mode<synchronous>, transform_indices = @transform_3, window_bounds = array<i64: 1024, 1024>}, {pipeline_mode = #tpu.pipeline_mode<synchronous>, transform_indices = @transform_4, window_bounds = array<i64: 1, 1024>}, {pipeline_mode = #tpu.pipeline_mode<synchronous>, transform_indices = @transform_5, window_bounds = array<i64: 1024, 128>}, {pipeline_mode = #tpu.pipeline_mode<synchronous>, transform_indices = @transform_6, window_bounds = array<i64: 1, 128>}, {transform_indices = @transform_7, window_bounds = array<i64: 16, 128>}]} {
    %c0 = arith.constant 0 : index
    %c0_0 = arith.constant 0 : index
    %0 = vector.load %arg1[%c0, %c0_0] : memref<16x1024xbf16, #tpu.memory_space<vmem>>, vector<16x1024xbf16>
    %c0_1 = arith.constant 0 : index
    %c0_2 = arith.constant 0 : index
    %1 = vector.load %arg2[%c0_1, %c0_2] : memref<1024x1024xbf16, #tpu.memory_space<vmem>>, vector<1024x1024xbf16>
    %cst = arith.constant dense<0.000000e+00> : vector<16x1024xf32>
    %2 = tpu.matmul %0, %1, %cst {dimension_numbers = #tpu.dot_dimension_numbers<[1], [0], [0], [1], [0, 0, 1, 1], [], []>} : vector<16x1024xbf16>, vector<1024x1024xbf16>, vector<16x1024xf32> -> vector<16x1024xf32>
    %c0_3 = arith.constant 0 : index
    %c0_4 = arith.constant 0 : index
    %3 = vector.load %arg3[%c0_3, %c0_4] : memref<1x1024xf32, #tpu.memory_space<vmem>>, vector<1x1024xf32>
    %4 = vector.broadcast %3 : vector<1x1024xf32> to vector<16x1024xf32>
    %5 = arith.addf %2, %4 : vector<16x1024xf32>
    %cst_5 = arith.constant 0.000000e+00 : f32
    %6 = vector.broadcast %cst_5 : f32 to vector<16x1024xf32>
    %7 = arith.maximumf %5, %6 : vector<16x1024xf32>
    %8 = arith.truncf %7 : vector<16x1024xf32> to vector<16x1024xbf16>
    %c0_6 = arith.constant 0 : index
    %c0_7 = arith.constant 0 : index
    %9 = vector.load %arg4[%c0_6, %c0_7] : memref<1024x1024xbf16, #tpu.memory_space<vmem>>, vector<1024x1024xbf16>
    %cst_8 = arith.constant dense<0.000000e+00> : vector<16x1024xf32>
    %10 = tpu.matmul %8, %9, %cst_8 {dimension_numbers = #tpu.dot_dimension_numbers<[1], [0], [0], [1], [0, 0, 1, 1], [], []>} : vector<16x1024xbf16>, vector<1024x1024xbf16>, vector<16x1024xf32> -> vector<16x1024xf32>
    %c0_9 = arith.constant 0 : index
    %c0_10 = arith.constant 0 : index
    %11 = vector.load %arg5[%c0_9, %c0_10] : memref<1x1024xf32, #tpu.memory_space<vmem>>, vector<1x1024xf32>
    %12 = vector.broadcast %11 : vector<1x1024xf32> to vector<16x1024xf32>
    %13 = arith.addf %10, %12 : vector<16x1024xf32>
    %14 = arith.truncf %13 : vector<16x1024xf32> to vector<16x1024xbf16>
    %c0_11 = arith.constant 0 : index
    %c0_12 = arith.constant 0 : index
    %15 = vector.load %arg6[%c0_11, %c0_12] : memref<1024x128xbf16, #tpu.memory_space<vmem>>, vector<1024x128xbf16>
    %cst_13 = arith.constant dense<0.000000e+00> : vector<16x128xf32>
    %16 = tpu.matmul %14, %15, %cst_13 {dimension_numbers = #tpu.dot_dimension_numbers<[1], [0], [0], [1], [0, 0, 1, 1], [], []>} : vector<16x1024xbf16>, vector<1024x128xbf16>, vector<16x128xf32> -> vector<16x128xf32>
    %c0_14 = arith.constant 0 : index
    %c0_15 = arith.constant 0 : index
    %17 = vector.load %arg7[%c0_14, %c0_15] : memref<1x128xf32, #tpu.memory_space<vmem>>, vector<1x128xf32>
    %18 = vector.broadcast %17 : vector<1x128xf32> to vector<16x128xf32>
    %19 = arith.addf %16, %18 : vector<16x128xf32>
    %c0_16 = arith.constant 0 : index
    %c0_17 = arith.constant 0 : index
    %20 = vector.load %arg8[%c0_16, %c0_17] : memref<16x128xf32, #tpu.memory_space<vmem>>, vector<16x128xf32>
    tpu.vector_store %arg8[%c0_16, %c0_17], %19 {strides = array<i32>} : memref<16x128xf32, #tpu.memory_space<vmem>>, vector<16x128xf32>,
    return
  }
  func.func @transform_0(%arg0: i32) -> (i32, i32) {
    %c0_i32 = arith.constant 0 : i32
    %c0_i32_0 = arith.constant 0 : i32
    return %arg0, %c0_i32 : i32, i32
  }
  func.func @transform_1(%arg0: i32) -> (i32, i32) {
    %c0_i32 = arith.constant 0 : i32
    %c0_i32_0 = arith.constant 0 : i32
    %c0_i32_1 = arith.constant 0 : i32
    return %c0_i32, %c0_i32_0 : i32, i32
  }
  func.func @transform_2(%arg0: i32) -> (i32, i32) {
    %c0_i32 = arith.constant 0 : i32
    %c0_i32_0 = arith.constant 0 : i32
    %c0_i32_1 = arith.constant 0 : i32
    return %c0_i32, %c0_i32_0 : i32, i32
  }
  func.func @transform_3(%arg0: i32) -> (i32, i32) {
    %c0_i32 = arith.constant 0 : i32
    %c0_i32_0 = arith.constant 0 : i32
    %c0_i32_1 = arith.constant 0 : i32
    return %c0_i32, %c0_i32_0 : i32, i32
  }
  func.func @transform_4(%arg0: i32) -> (i32, i32) {
    %c0_i32 = arith.constant 0 : i32
    %c0_i32_0 = arith.constant 0 : i32
    %c0_i32_1 = arith.constant 0 : i32
    return %c0_i32, %c0_i32_0 : i32, i32
  }
  func.func @transform_5(%arg0: i32) -> (i32, i32) {
    %c0_i32 = arith.constant 0 : i32
    %c0_i32_0 = arith.constant 0 : i32
    %c0_i32_1 = arith.constant 0 : i32
    return %c0_i32, %c0_i32_0 : i32, i32
  }
  func.func @transform_6(%arg0: i32) -> (i32, i32) {
    %c0_i32 = arith.constant 0 : i32
    %c0_i32_0 = arith.constant 0 : i32
    %c0_i32_1 = arith.constant 0 : i32
    return %c0_i32, %c0_i32_0 : i32, i32
  }
  func.func @transform_7(%arg0: i32) -> (i32, i32) {
    %c0_i32 = arith.constant 0 : i32
    %c0_i32_0 = arith.constant 0 : i32
    return %arg0, %c0_i32 : i32, i32
  }
}

</mosaic_0001>

<bundles_post_ra>
// kernel: regression_net.3
= control target key start
LH: loop header
LB: loop body
LE: loop exit
PB: predicated region body
PF: predicated region fallthrough
CT: control target
= control target key end

     0   :  { %s2447_s12 = smov 0   ;;  %s2449_s13 = smov 0   ;;  %s3021_s0 = inlined_call_operand.vmem [shape: bf16[4,352,27], index: 0, kind: input, shape index: {}]   ;;  %s3022_s1 = inlined_call_operand.vmem [shape: bf16[27,128], index: 1, kind: input, shape index: {}]   ;;  %s3023_s2 = inlined_call_operand.vmem [shape: f32[1,128], index: 2, kind: input, shape index: {}]   ;;  %s3024_s3 = inlined_call_operand.vmem [shape: bf16[352,128], index: 3, kind: output, shape index: {}]  }
   0x1   :  { %s2451_s14 = smov 0  }
   0x2 LB: > { %s1805_s15 = sadd.s32 4294967295, %s2422_s14   ;;  %s2464_s16 = sadd.s32 1, %s2422_s14   ;;  %s2422_s14 = sphi %s2451_s14, %s3042_s14   ;;  %s2418_s13 = sphi %s2449_s13, %s3041_s13   ;;  %s2414_s12 = sphi %s2447_s12, %s3040_s12  }
   0x3   : > { %s17_s17 = ssub.s32 %s2422_s14, %s2464_s16  ;;  %s20_s18 = sadd.s32 1, %s2418_s13 }
   0x4   : > { %p18_p0 = scmp.eq.s32.totalorder %s17_s17, 0  ;;  %p27_p1 = scmp.ne.s32.totalorder %s2418_s13, %s2414_s12 }
   0x5   : > { %p28_p2 = scmp.eq.s32.totalorder %s2422_s14, 0  ;;  %p1808_p4 = scmp.ge.s32.totalorder %s2422_s14, 2 }
   0x6   : > { %s2473_s19 = scalar_select %p18_p0, %s2418_s13, %s20_s18  }
   0x7   : > { %p29_p3 = por %p28_p2, %p27_p1  ;;  %127 = sbr.rel (%p1808_p4) target bundleno = 39 (0x27), region = 24 }
   0xc   : > { %130 = sbr.rel (!%p29_p3) target bundleno = 39 (0x27), region = 28  ;;  %s132_s20 = sand.u32 (%p29_p3), 1, %s2418_s13  }
   0xd   : > { %s1993_s21 = smul.u32 (%p29_p3), 88, %s2422_s14 }
   0xe   : > { %s2325_s22 = smul.u32 (%p29_p3), 352, %s132_s20 }
   0xf   : > { %s2481_s25 = scalar_lea.vmem (%p29_p3), %s3021_s0, %s1993_s21 }
  0x10   : > { %v154_v0 = vld [vmem:[%s2481_s25] sm:$0xff] (%p29_p3)   ;;  %v158_v1 = vld [vmem:[%s2481_s25 + $0x8] sm:$0xff] (%p29_p3)   ;;  %v162_v2 = vld [vmem:[%s2481_s25 + $0x10] sm:$0xff] (%p29_p3)   ;;  %s2486_s26 = scalar_lea.vmem (%p29_p3), [#allocation2], %s2325_s22 }
  0x11   : > { %155 = vst [vmem:[%s2486_s26] sm:$0xff] %v154_v0   ;;  %159 = vst [vmem:[%s2486_s26 + $0x8] sm:$0xff] %v158_v1   ;;  %v166_v3 = vld [vmem:[%s2481_s25 + $0x18] sm:$0xff]   ;;  %v170_v4 = vld [vmem:[%s2481_s25 + $0x20] sm:$0xff]  }
  0x12   : > { %163 = vst [vmem:[%s2486_s26 + $0x10] sm:$0xff] %v162_v2   ;;  %v174_v5 = vld [vmem:[%s2481_s25 + $0x28] sm:$0xff]   ;;  %167 = vst [vmem:[%s2486_s26 + $0x18] sm:$0xff] %v166_v3   ;;  %v178_v6 = vld [vmem:[%s2481_s25 + $0x30] sm:$0xff]  }
  0x13   : > { %171 = vst [vmem:[%s2486_s26 + $0x20] sm:$0xff] %v170_v4   ;;  %175 = vst [vmem:[%s2486_s26 + $0x28] sm:$0xff] %v174_v5   ;;  %v182_v7 = vld [vmem:[%s2481_s25 + $0x38] sm:$0xff]   ;;  %v186_v8 = vld [vmem:[%s2481_s25 + $0x40] sm:$0xff]  }
  0x14   : > { %179 = vst [vmem:[%s2486_s26 + $0x30] sm:$0xff] %v178_v6   ;;  %183 = vst [vmem:[%s2486_s26 + $0x38] sm:$0xff] %v182_v7   ;;  %v190_v9 = vld [vmem:[%s2481_s25 + $0x48] sm:$0xff]   ;;  %v194_v10 = vld [vmem:[%s2481_s25 + $0x50] sm:$0xff]  }
  0x15   : > { %187 = vst [vmem:[%s2486_s26 + $0x40] sm:$0xff] %v186_v8   ;;  %v198_v11 = vld [vmem:[%s2481_s25 + $0xb0] sm:$0xff]   ;;  %191 = vst [vmem:[%s2486_s26 + $0x48] sm:$0xff] %v190_v9   ;;  %v202_v12 = vld [vmem:[%s2481_s25 + $0xb8] sm:$0xff]  }
  0x16   : > { %195 = vst [vmem:[%s2486_s26 + $0x50] sm:$0xff] %v194_v10   ;;  %199 = vst [vmem:[%s2486_s26 + $0x58] sm:$0xff] %v198_v11   ;;  %v206_v13 = vld [vmem:[%s2481_s25 + $0xc0] sm:$0xff]   ;;  %v210_v14 = vld [vmem:[%s2481_s25 + $0xc8] sm:$0xff]  }
  0x17   : > { %203 = vst [vmem:[%s2486_s26 + $0x60] sm:$0xff] %v202_v12   ;;  %207 = vst [vmem:[%s2486_s26 + $0x68] sm:$0xff] %v206_v13   ;;  %v214_v15 = vld [vmem:[%s2481_s25 + $0xd0] sm:$0xff]   ;;  %v218_v16 = vld [vmem:[%s2481_s25 + $0xd8] sm:$0xff]  }
  0x18   : > { %211 = vst [vmem:[%s2486_s26 + $0x70] sm:$0xff] %v210_v14   ;;  %v222_v17 = vld [vmem:[%s2481_s25 + $0xe0] sm:$0xff]   ;;  %215 = vst [vmem:[%s2486_s26 + $0x78] sm:$0xff] %v214_v15   ;;  %v226_v18 = vld [vmem:[%s2481_s25 + $0xe8] sm:$0xff]  }
  0x19   : > { %219 = vst [vmem:[%s2486_s26 + $0x80] sm:$0xff] %v218_v16   ;;  %223 = vst [vmem:[%s2486_s26 + $0x88] sm:$0xff] %v222_v17   ;;  %v230_v19 = vld [vmem:[%s2481_s25 + $0xf0] sm:$0xff]   ;;  %v234_v20 = vld [vmem:[%s2481_s25 + $0xf8] sm:$0xff]  }
  0x1a   : > { %227 = vst [vmem:[%s2486_s26 + $0x90] sm:$0xff] %v226_v18   ;;  %231 = vst [vmem:[%s2486_s26 + $0x98] sm:$0xff] %v230_v19   ;;  %v238_v21 = vld [vmem:[%s2481_s25 + $0x100] sm:$0xff]   ;;  %v246_v23 = vld [vmem:[%s2481_s25 + $0x168] sm:$0xff]  }
  0x1b   : > { %235 = vst [vmem:[%s2486_s26 + $0xa0] sm:$0xff] %v234_v20   ;;  %v242_v22 = vld [vmem:[%s2481_s25 + $0x160] sm:$0xff]   ;;  %239 = vst [vmem:[%s2486_s26 + $0xa8] sm:$0xff] %v238_v21   ;;  %v250_v24 = vld [vmem:[%s2481_s25 + $0x170] sm:$0xff]  }
  0x1c   : > { %243 = vst [vmem:[%s2486_s26 + $0xb0] sm:$0xff] %v242_v22   ;;  %247 = vst [vmem:[%s2486_s26 + $0xb8] sm:$0xff] %v246_v23   ;;  %v254_v25 = vld [vmem:[%s2481_s25 + $0x178] sm:$0xff]   ;;  %v258_v26 = vld [vmem:[%s2481_s25 + $0x180] sm:$0xff]  }
  0x1d   : > { %251 = vst [vmem:[%s2486_s26 + $0xc0] sm:$0xff] %v250_v24   ;;  %255 = vst [vmem:[%s2486_s26 + $0xc8] sm:$0xff] %v254_v25   ;;  %v262_v27 = vld [vmem:[%s2481_s25 + $0x188] sm:$0xff]   ;;  %v266_v28 = vld [vmem:[%s2481_s25 + $0x190] sm:$0xff]  }
  0x1e   : > { %259 = vst [vmem:[%s2486_s26 + $0xd0] sm:$0xff] %v258_v26   ;;  %v270_v29 = vld [vmem:[%s2481_s25 + $0x198] sm:$0xff]   ;;  %263 = vst [vmem:[%s2486_s26 + $0xd8] sm:$0xff] %v262_v27   ;;  %v274_v30 = vld [vmem:[%s2481_s25 + $0x1a0] sm:$0xff]  }
  0x1f   : > { %267 = vst [vmem:[%s2486_s26 + $0xe0] sm:$0xff] %v266_v28   ;;  %271 = vst [vmem:[%s2486_s26 + $0xe8] sm:$0xff] %v270_v29   ;;  %v278_v31 = vld [vmem:[%s2481_s25 + $0x1a8] sm:$0xff]   ;;  %v282_v32 = vld [vmem:[%s2481_s25 + $0x1b0] sm:$0xff]  }
  0x20   : > { %275 = vst [vmem:[%s2486_s26 + $0xf0] sm:$0xff] %v274_v30   ;;  %279 = vst [vmem:[%s2486_s26 + $0xf8] sm:$0xff] %v278_v31   ;;  %v286_v33 = vld [vmem:[%s2481_s25 + $0x210] sm:$0xff]   ;;  %v290_v34 = vld [vmem:[%s2481_s25 + $0x218] sm:$0xff]  }
  0x21   : > { %283 = vst [vmem:[%s2486_s26 + $0x100] sm:$0xff] %v282_v32   ;;  %v294_v35 = vld [vmem:[%s2481_s25 + $0x220] sm:$0xff]   ;;  %287 = vst [vmem:[%s2486_s26 + $0x108] sm:$0xff] %v286_v33   ;;  %v298_v36 = vld [vmem:[%s2481_s25 + $0x228] sm:$0xff]  }
  0x22   : > { %291 = vst [vmem:[%s2486_s26 + $0x110] sm:$0xff] %v290_v34   ;;  %295 = vst [vmem:[%s2486_s26 + $0x118] sm:$0xff] %v294_v35   ;;  %v302_v37 = vld [vmem:[%s2481_s25 + $0x230] sm:$0xff]   ;;  %v306_v38 = vld [vmem:[%s2481_s25 + $0x238] sm:$0xff]  }
  0x23   : > { %299 = vst [vmem:[%s2486_s26 + $0x120] sm:$0xff] %v298_v36   ;;  %303 = vst [vmem:[%s2486_s26 + $0x128] sm:$0xff] %v302_v37   ;;  %v310_v39 = vld [vmem:[%s2481_s25 + $0x240] sm:$0xff]   ;;  %v314_v40 = vld [vmem:[%s2481_s25 + $0x248] sm:$0xff]  }
  0x24   : > { %307 = vst [vmem:[%s2486_s26 + $0x130] sm:$0xff] %v306_v38   ;;  %v318_v41 = vld [vmem:[%s2481_s25 + $0x250] sm:$0xff]   ;;  %311 = vst [vmem:[%s2486_s26 + $0x138] sm:$0xff] %v310_v39   ;;  %v322_v42 = vld [vmem:[%s2481_s25 + $0x258] sm:$0xff]  }
  0x25   : > { %315 = vst [vmem:[%s2486_s26 + $0x140] sm:$0xff] %v314_v40   ;;  %319 = vst [vmem:[%s2486_s26 + $0x148] sm:$0xff] %v318_v41   ;;  %v326_v43 = vld [vmem:[%s2481_s25 + $0x260] sm:$0xff]  }
  0x26   : > { %323 = vst [vmem:[%s2486_s26 + $0x150] sm:$0xff] %v322_v42   ;;  %327 = vst [vmem:[%s2486_s26 + $0x158] sm:$0xff] %v326_v43  }
  0x27 PF: > { %p1810_p5 = scmp.ge.s32.totalorder %s2422_s14, 1  ;;  %p528_p6 = scmp.lt.s32.totalorder %s2422_s14, 3 }
  0x29   : > { %p529_p7 = pnand %p1810_p5, %p528_p6 }
  0x2a   : > { %s535_s29 = sand.u32 (!%p529_p7), 1, %s2414_s12   ;;  %s559_s7 = smul.u32 (!%p529_p7), 22, %s1805_s15 }
  0x2b   : > { %532 = sbr.rel (%p529_p7) target bundleno = 436 (0x1b4), region = 69 }
  0x2c   : > { %s2326_s30 = smul.u32 (!%p529_p7), 352, %s535_s29  ;;  %p560_p8 = scmp.lt.s32.totalorder (!%p529_p7), %s559_s7, 43 }
  0x2e   : > { %s2588_s6 = scalar_lea.vmem (!%p529_p7), [#allocation2], %s2326_s30 }
  0x30   : > { %vm692_vm0 = vcmask 1044480   ;;  %v2424_v44 = vmov 0.0   ;;  %v2354_v45 = vld [vmem:[%s3022_s1 + $0x8] sm:$0x3f]   ;;  %vm693_vm1 = vcmask 1045504   ;;  %v2425_v46 = vmov 65535  }
  0x31   : > { %2133 = vmatprep.subr.bf16.mxu0 %v2424_v44  ;;  %2181 = vmatprep.subr.bf16.mxu1 %v2424_v44  ;;  %v694_v47 = vsel %vm692_vm0, 4294967295, %v2425_v46  ;;  %vm2426_vm2 = vmmov 0   ;;  %v2355_v50 = vld [vmem:[%s3022_s1] sm:$0xff]   ;;  %v2357_v52 = vld [vmem:[%s2588_s6 + $0x58] sm:$0xff]   ;;  %vm658_vm3 = vcmask 220160   ;;  %v2358_v53 = vld [vmem:[%s2588_s6 + $0x8] sm:$0xff]  }
  0x32   : > { %v695_v48 = vsel %vm693_vm1, %v694_v47, 0  ;;  %2137 = vmatprep.mubr.msk.bf16.mxu0 %vm2426_vm2, %v2424_v44  ;;  %2185 = vmatprep.mubr.msk.bf16.mxu1 %vm2426_vm2, %v2424_v44  ;;  %v2356_v51 = vld [vmem:[%s2588_s6] sm:$0xff]   ;;  %v2360_v55 = vld [vmem:[%s2588_s6 + $0x10] sm:$0xff]   ;;  %v2361_v56 = vld [vmem:[%s2588_s6 + $0x68] sm:$0xff]   ;;  %s3044_s7 = smov (!%p560_p8, %s559_s7), 43 }
  0x33   : > { %v697_v49 = vand.u32 %v2354_v45, %v695_v48  ;;  %v2359_v54 = vld [vmem:[%s2588_s6 + $0x60] sm:$0xff]   ;;  %v2362_v57 = vld [vmem:[%s2588_s6 + $0x18] sm:$0xff]   ;;  %v2363_v58 = vld [vmem:[%s2588_s6 + $0x70] sm:$0xff]   ;;  %s1811_s10 = sshll.u32 %s3044_s7, 2 }
  0x34   : > { %v2364_v59 = vld [vmem:[%s2588_s6 + $0x20] sm:$0xff]   ;;  %v2365_v60 = vld [vmem:[%s2588_s6 + $0x78] sm:$0xff]   ;;  %v2366_v61 = vld [vmem:[%s2588_s6 + $0x28] sm:$0xff]   ;;  %s2921_s14 = scalar_lea.vmem %s3024_s3, %s1811_s10 }
  0x35   : > { %2134 = vmatpush3.bf16.msra.mxu0 %v697_v49  ;;  %2182 = vmatpush3.bf16.msra.mxu1 %v697_v49  ;;  %v2367_v62 = vld [vmem:[%s2588_s6 + $0x80] sm:$0xff]   ;;  %v2368_v63 = vld [vmem:[%s2588_s6 + $0x30] sm:$0xff]   ;;  %v2369_v0 = vld [vmem:[%s2588_s6 + $0x88] sm:$0xff]  }
  0x36   : > { %2135 = vmatprep.subr.bf16.mxu0 %v2424_v44  ;;  %2183 = vmatprep.subr.bf16.mxu1 %v2424_v44  ;;  %v2370_v1 = vld [vmem:[%s2588_s6 + $0x38] sm:$0xff]   ;;  %v2371_v2 = vld [vmem:[%s2588_s6 + $0x90] sm:$0xff]   ;;  %v2372_v3 = vld [vmem:[%s2588_s6 + $0x40] sm:$0xff]  }
  0x37   : > { %v2373_v4 = vld [vmem:[%s2588_s6 + $0x98] sm:$0xff]   ;;  %v2374_v5 = vld [vmem:[%s2588_s6 + $0x48] sm:$0xff]   ;;  %v2375_v6 = vld [vmem:[%s2588_s6 + $0xa0] sm:$0xff]  }
  0x38   : > { %v2376_v7 = vld [vmem:[%s2588_s6 + $0x50] sm:$0xff]   ;;  %v2377_v8 = vld [vmem:[%s2588_s6 + $0xa8] sm:$0xff]   ;;  %v2380_v11 = vld [vmem:[%s2588_s6 + $0xb8] sm:$0xff]  }
  0x39   : > { %2136 = vmatpush3.bf16.msra.mxu0 %v2355_v50  ;;  %2184 = vmatpush3.bf16.msra.mxu1 %v2355_v50  ;;  %v2378_v9 = vld [vmem:[%s2588_s6 + $0xb0] sm:$0xff]   ;;  %v2379_v10 = vld [vmem:[%s2588_s6 + $0x108] sm:$0xff]   ;;  %v2382_v13 = vld [vmem:[%s2588_s6 + $0xc0] sm:$0xff]  }
  0x3a   : > { %2229 = vmatprep.subr.bf16.mxu0 %v2424_v44  ;;  %2277 = vmatprep.subr.bf16.mxu1 %v2424_v44  ;;  %v2381_v12 = vld [vmem:[%s2588_s6 + $0x110] sm:$0xff]   ;;  %v2383_v14 = vld [vmem:[%s2588_s6 + $0x118] sm:$0xff]   ;;  %v2384_v15 = vld [vmem:[%s2588_s6 + $0xc8] sm:$0xff]  }
  0x3b   : > { %v2385_v16 = vld [vmem:[%s2588_s6 + $0x120] sm:$0xff]   ;;  %v2386_v17 = vld [vmem:[%s2588_s6 + $0xd0] sm:$0xff]   ;;  %v2387_v18 = vld [vmem:[%s2588_s6 + $0x128] sm:$0xff]  }
  0x3c   : > { %2138 = vmatmul.mubr.msk.bf16.vlgmr.msra.gmra.mxu0 %vm658_vm3, %v2356_v51  ;;  %2186 = vmatmul.mubr.msk.bf16.vlgmr.msra.gmra.mxu1 %vm658_vm3, %v2357_v52  ;;  %v2388_v19 = vld [vmem:[%s2588_s6 + $0xd8] sm:$0xff]   ;;  %v2389_v20 = vld [vmem:[%s2588_s6 + $0x130] sm:$0xff]   ;;  %v2390_v21 = vld [vmem:[%s2588_s6 + $0xe0] sm:$0xff]  }
  0x3d   : > { %2230 = vmatpush3.bf16.msra.mxu0 %v697_v49  ;;  %2278 = vmatpush3.bf16.msra.mxu1 %v697_v49  ;;  %v2391_v22 = vld [vmem:[%s2588_s6 + $0x138] sm:$0xff]   ;;  %v2392_v23 = vld [vmem:[%s2588_s6 + $0xe8] sm:$0xff]   ;;  %v2393_v24 = vld [vmem:[%s2588_s6 + $0x140] sm:$0xff]  }
  0x3e   : > { %2141 = vmatprep.mubr.msk.bf16.mxu0 %vm2426_vm2, %v2424_v44  ;;  %2189 = vmatprep.mubr.msk.bf16.mxu1 %vm2426_vm2, %v2424_v44  ;;  %v2394_v25 = vld [vmem:[%s2588_s6 + $0xf0] sm:$0xff]   ;;  %v2395_v26 = vld [vmem:[%s2588_s6 + $0x148] sm:$0xff]   ;;  %v2396_v27 = vld [vmem:[%s2588_s6 + $0xf8] sm:$0xff]  }
  0x3f   : > { %2231 = vmatprep.subr.bf16.mxu0 %v2424_v44  ;;  %2279 = vmatprep.subr.bf16.mxu1 %v2424_v44  ;;  %v2397_v28 = vld [vmem:[%s2588_s6 + $0x150] sm:$0xff]   ;;  %v2398_v29 = vld [vmem:[%s2588_s6 + $0x100] sm:$0xff]   ;;  %v2399_v30 = vld [vmem:[%s2588_s6 + $0x158] sm:$0xff]  }
  0x41   : > { %2232 = vmatpush3.bf16.msra.mxu0 %v2355_v50  ;;  %2280 = vmatpush3.bf16.msra.mxu1 %v2355_v50 }
  0x44   : > { %2142 = vmatmul.mubr.msk.bf16.gmra.mxu0 %vm658_vm3, %v2358_v53  ;;  %2190 = vmatmul.mubr.msk.bf16.gmra.mxu1 %vm658_vm3, %v2359_v54 }
  0x45   : > { %2145 = vmatprep.mubr.msk.bf16.mxu0 %vm2426_vm2, %v2424_v44  ;;  %2193 = vmatprep.mubr.msk.bf16.mxu1 %vm2426_vm2, %v2424_v44 }
  0x4c   : > { %2146 = vmatmul.mubr.msk.bf16.gmra.mxu0 %vm658_vm3, %v2360_v55  ;;  %2194 = vmatmul.mubr.msk.bf16.gmra.mxu1 %vm658_vm3, %v2361_v56 }
  0x4d   : > { %2149 = vmatprep.mubr.msk.bf16.mxu0 %vm2426_vm2, %v2424_v44  ;;  %2197 = vmatprep.mubr.msk.bf16.mxu1 %vm2426_vm2, %v2424_v44 }
  0x54   : > { %2150 = vmatmul.mubr.msk.bf16.gmra.mxu0 %vm658_vm3, %v2362_v57  ;;  %2198 = vmatmul.mubr.msk.bf16.gmra.mxu1 %vm658_vm3, %v2363_v58 }
  0x55   : > { %2153 = vmatprep.mubr.msk.bf16.mxu0 %vm2426_vm2, %v2424_v44  ;;  %2201 = vmatprep.mubr.msk.bf16.mxu1 %vm2426_vm2, %v2424_v44 }
  0x5c   : > { %2154 = vmatmul.mubr.msk.bf16.gmra.mxu0 %vm658_vm3, %v2364_v59  ;;  %2202 = vmatmul.mubr.msk.bf16.gmra.mxu1 %vm658_vm3, %v2365_v60 }
  0x5d   : > { %2157 = vmatprep.mubr.msk.bf16.mxu0 %vm2426_vm2, %v2424_v44  ;;  %2205 = vmatprep.mubr.msk.bf16.mxu1 %vm2426_vm2, %v2424_v44 }
  0x64   : > { %2158 = vmatmul.mubr.msk.bf16.gmra.mxu0 %vm658_vm3, %v2366_v61  ;;  %2206 = vmatmul.mubr.msk.bf16.gmra.mxu1 %vm658_vm3, %v2367_v62 }
  0x65   : > { %2161 = vmatprep.mubr.msk.bf16.mxu0 %vm2426_vm2, %v2424_v44  ;;  %2209 = vmatprep.mubr.msk.bf16.mxu1 %vm2426_vm2, %v2424_v44 }
  0x6c   : > { %2162 = vmatmul.mubr.msk.bf16.gmra.mxu0 %vm658_vm3, %v2368_v63  ;;  %2210 = vmatmul.mubr.msk.bf16.gmra.mxu1 %vm658_vm3, %v2369_v0 }
  0x6d   : > { %2165 = vmatprep.mubr.msk.bf16.mxu0 %vm2426_vm2, %v2424_v44  ;;  %2213 = vmatprep.mubr.msk.bf16.mxu1 %vm2426_vm2, %v2424_v44 }
  0x74   : > { %2166 = vmatmul.mubr.msk.bf16.gmra.mxu0 %vm658_vm3, %v2370_v1  ;;  %2214 = vmatmul.mubr.msk.bf16.gmra.mxu1 %vm658_vm3, %v2371_v2 }
  0x75   : > { %2169 = vmatprep.mubr.msk.bf16.mxu0 %vm2426_vm2, %v2424_v44  ;;  %2217 = vmatprep.mubr.msk.bf16.mxu1 %vm2426_vm2, %v2424_v44 }
  0x7c   : > { %2170 = vmatmul.mubr.msk.bf16.gmra.mxu0 %vm658_vm3, %v2372_v3  ;;  %2218 = vmatmul.mubr.msk.bf16.gmra.mxu1 %vm658_vm3, %v2373_v4 }
  0x7d   : > { %2173 = vmatprep.mubr.msk.bf16.mxu0 %vm2426_vm2, %v2424_v44  ;;  %2221 = vmatprep.mubr.msk.bf16.mxu1 %vm2426_vm2, %v2424_v44 }
  0x84   : > { %2174 = vmatmul.mubr.msk.bf16.gmra.mxu0 %vm658_vm3, %v2374_v5  ;;  %2222 = vmatmul.mubr.msk.bf16.gmra.mxu1 %vm658_vm3, %v2375_v6 }
  0x85   : > { %2177 = vmatprep.mubr.msk.bf16.mxu0 %vm2426_vm2, %v2424_v44  ;;  %2225 = vmatprep.mubr.msk.bf16.mxu1 %vm2426_vm2, %v2424_v44 }
  0x8c   : > { %2178 = vmatmul.mubr.msk.bf16.gmra.mxu0 %vm658_vm3, %v2376_v7  ;;  %2226 = vmatmul.mubr.msk.bf16.gmra.mxu1 %vm658_vm3, %v2377_v8 }
  0x8d   : > { %2233 = vmatprep.mubr.msk.bf16.mxu0 %vm2426_vm2, %v2424_v44  ;;  %2281 = vmatprep.mubr.msk.bf16.mxu1 %vm2426_vm2, %v2424_v44 }
  0x94   : > { %2234 = vmatmul.mubr.msk.bf16.vlgmr.msra.gmra.mxu0 %vm658_vm3, %v2378_v9  ;;  %2282 = vmatmul.mubr.msk.bf16.vlgmr.msra.gmra.mxu1 %vm658_vm3, %v2379_v10 }
  0x95   : > { %2237 = vmatprep.mubr.msk.bf16.mxu0 %vm2426_vm2, %v2424_v44  ;;  %2285 = vmatprep.mubr.msk.bf16.mxu1 %vm2426_vm2, %v2424_v44 }
  0x9c   : > { %2238 = vmatmul.mubr.msk.bf16.gmra.mxu0 %vm658_vm3, %v2380_v11  ;;  %2286 = vmatmul.mubr.msk.bf16.gmra.mxu1 %vm658_vm3, %v2381_v12 }
  0x9d   : > { %2241 = vmatprep.mubr.msk.bf16.mxu0 %vm2426_vm2, %v2424_v44  ;;  %2289 = vmatprep.mubr.msk.bf16.mxu1 %vm2426_vm2, %v2424_v44 }
  0xa4   : > { %2242 = vmatmul.mubr.msk.bf16.gmra.mxu0 %vm658_vm3, %v2382_v13  ;;  %2290 = vmatmul.mubr.msk.bf16.gmra.mxu1 %vm658_vm3, %v2383_v14 }
  0xa5   : > { %2245 = vmatprep.mubr.msk.bf16.mxu0 %vm2426_vm2, %v2424_v44  ;;  %2293 = vmatprep.mubr.msk.bf16.mxu1 %vm2426_vm2, %v2424_v44 }
  0xac   : > { %2246 = vmatmul.mubr.msk.bf16.gmra.mxu0 %vm658_vm3, %v2384_v15  ;;  %2294 = vmatmul.mubr.msk.bf16.gmra.mxu1 %vm658_vm3, %v2385_v16 }
  0xad   : > { %2249 = vmatprep.mubr.msk.bf16.mxu0 %vm2426_vm2, %v2424_v44  ;;  %2297 = vmatprep.mubr.msk.bf16.mxu1 %vm2426_vm2, %v2424_v44 }
  0xb4   : > { %2250 = vmatmul.mubr.msk.bf16.gmra.mxu0 %vm658_vm3, %v2386_v17  ;;  %2298 = vmatmul.mubr.msk.bf16.gmra.mxu1 %vm658_vm3, %v2387_v18 }
  0xb5   : > { %2253 = vmatprep.mubr.msk.bf16.mxu0 %vm2426_vm2, %v2424_v44  ;;  %2301 = vmatprep.mubr.msk.bf16.mxu1 %vm2426_vm2, %v2424_v44 }
  0xbc   : > { %2254 = vmatmul.mubr.msk.bf16.gmra.mxu0 %vm658_vm3, %v2388_v19  ;;  %2302 = vmatmul.mubr.msk.bf16.gmra.mxu1 %vm658_vm3, %v2389_v20  ;;  %v2908_v19 = vld [vmem:[%s3023_s2] ss:$0 sm:$0xff] }
  0xbd   : > { %2257 = vmatprep.mubr.msk.bf16.mxu0 %vm2426_vm2, %v2424_v44  ;;  %2305 = vmatprep.mubr.msk.bf16.mxu1 %vm2426_vm2, %v2424_v44 }
  0xc4   : > { %2258 = vmatmul.mubr.msk.bf16.gmra.mxu0 %vm658_vm3, %v2390_v21  ;;  %2306 = vmatmul.mubr.msk.bf16.gmra.mxu1 %vm658_vm3, %v2391_v22 }
  0xc5   : > { %2261 = vmatprep.mubr.msk.bf16.mxu0 %vm2426_vm2, %v2424_v44  ;;  %2309 = vmatprep.mubr.msk.bf16.mxu1 %vm2426_vm2, %v2424_v44 }
  0xcc   : > { %2262 = vmatmul.mubr.msk.bf16.gmra.mxu0 %vm658_vm3, %v2392_v23  ;;  %2310 = vmatmul.mubr.msk.bf16.gmra.mxu1 %vm658_vm3, %v2393_v24 }
  0xcd   : > { %2265 = vmatprep.mubr.msk.bf16.mxu0 %vm2426_vm2, %v2424_v44  ;;  %2313 = vmatprep.mubr.msk.bf16.mxu1 %vm2426_vm2, %v2424_v44 }
  0xd4   : > { %2266 = vmatmul.mubr.msk.bf16.gmra.mxu0 %vm658_vm3, %v2394_v25  ;;  %2314 = vmatmul.mubr.msk.bf16.gmra.mxu1 %vm658_vm3, %v2395_v26 }
  0xd5   : > { %2269 = vmatprep.mubr.msk.bf16.mxu0 %vm2426_vm2, %v2424_v44  ;;  %2317 = vmatprep.mubr.msk.bf16.mxu1 %vm2426_vm2, %v2424_v44 }
  0xdc   : > { %2270 = vmatmul.mubr.msk.bf16.gmra.mxu0 %vm658_vm3, %v2396_v27  ;;  %2318 = vmatmul.mubr.msk.bf16.gmra.mxu1 %vm658_vm3, %v2397_v28 }
  0xdd   : > { %2273 = vmatprep.mubr.msk.bf16.mxu0 %vm2426_vm2, %v2424_v44  ;;  %2321 = vmatprep.mubr.msk.bf16.mxu1 %vm2426_vm2, %v2424_v44 }
  0xe4   : > { %2274 = vmatmul.mubr.msk.bf16.gmra.mxu0 %vm658_vm3, %v2398_v29  ;;  %2322 = vmatmul.mubr.msk.bf16.gmra.mxu1 %vm658_vm3, %v2399_v30 }
  0xfc   : > { %v2768_v31 = vpop.f32.mrf.mxu0  ;;  %v2770_v32 = vpop.f32.mrf.mxu1 }
  0xfd   : > { %v1052_v33 = vmax.f32 %v2768_v31, %v2770_v32 }
  0xfe   : > { %v2139_v34 = vpop.f32.mrf.mxu0  ;;  %v2187_v35 = vpop.f32.mrf.mxu1 }
 0x100   : > { %v2774_v36 = vpop.f32.mrf.mxu0  ;;  %v2776_v37 = vpop.f32.mrf.mxu1 }
 0x101   : > { %v1053_v38 = vmax.f32 %v2774_v36, %v2776_v37 }
 0x102   : > { %v2140_v39 = vpop.f32.mrf.mxu0  ;;  %v2188_v40 = vpop.f32.mrf.mxu1 }
 0x104   : > { %v2780_v41 = vpop.f32.mrf.mxu0  ;;  %v2782_v42 = vpop.f32.mrf.mxu1 }
 0x105   : > { %v1054_v43 = vmax.f32 %v2780_v41, %v2782_v42 }
 0x106   : > { %v2143_v44 = vpop.f32.mrf.mxu0  ;;  %v2191_v45 = vpop.f32.mrf.mxu1 }
 0x108   : > { %v2786_v46 = vpop.f32.mrf.mxu0  ;;  %v2788_v47 = vpop.f32.mrf.mxu1 }
 0x109   : > { %v1055_v48 = vmax.f32 %v2786_v46, %v2788_v47 }
 0x10a   : > { %v2144_v49 = vpop.f32.mrf.mxu0  ;;  %v2192_v50 = vpop.f32.mrf.mxu1 }
 0x10c   : > { %v2792_v51 = vpop.f32.mrf.mxu0  ;;  %v2794_v52 = vpop.f32.mrf.mxu1 }
 0x10d   : > { %v1056_v53 = vmax.f32 %v2792_v51, %v2794_v52 }
 0x10e   : > { %v2147_v54 = vpop.f32.mrf.mxu0  ;;  %v2195_v55 = vpop.f32.mrf.mxu1 }
 0x110   : > { %v2798_v56 = vpop.f32.mrf.mxu0  ;;  %v2800_v57 = vpop.f32.mrf.mxu1 }
 0x111   : > { %v1057_v58 = vmax.f32 %v2798_v56, %v2800_v57 }
 0x112   : > { %v2148_v59 = vpop.f32.mrf.mxu0  ;;  %v2196_v60 = vpop.f32.mrf.mxu1 }
 0x114   : > { %v2804_v61 = vpop.f32.mrf.mxu0  ;;  %v2806_v62 = vpop.f32.mrf.mxu1 }
 0x115   : > { %v1058_v63 = vmax.f32 %v2804_v61, %v2806_v62 }
 0x116   : > { %v2151_v0 = vpop.f32.mrf.mxu0  ;;  %v2199_v1 = vpop.f32.mrf.mxu1 }
 0x118   : > { %v2810_v2 = vpop.f32.mrf.mxu0  ;;  %v2812_v3 = vpop.f32.mrf.mxu1 }
 0x11a   : > { %v2152_v5 = vpop.f32.mrf.mxu0  ;;  %v2200_v6 = vpop.f32.mrf.mxu1 }
 0x11c   : > { %v2816_v7 = vpop.f32.mrf.mxu0  ;;  %v2818_v8 = vpop.f32.mrf.mxu1 }
 0x11e   : > { %v2155_v10 = vpop.f32.mrf.mxu0  ;;  %v2203_v11 = vpop.f32.mrf.mxu1 }
 0x120   : > { %v2822_v12 = vpop.f32.mrf.mxu0  ;;  %v2824_v13 = vpop.f32.mrf.mxu1 }
 0x122   : > { %v2156_v15 = vpop.f32.mrf.mxu0  ;;  %v2204_v16 = vpop.f32.mrf.mxu1 }
 0x124   : > { %v2828_v17 = vpop.f32.mrf.mxu0  ;;  %v2830_v18 = vpop.f32.mrf.mxu1 }
 0x126   : > { %v2159_v20 = vpop.f32.mrf.mxu0  ;;  %v2207_v21 = vpop.f32.mrf.mxu1 }
 0x128   : > { %v2834_v22 = vpop.f32.mrf.mxu0  ;;  %v2836_v23 = vpop.f32.mrf.mxu1 }
 0x12a   : > { %v2160_v25 = vpop.f32.mrf.mxu0  ;;  %v2208_v26 = vpop.f32.mrf.mxu1 }
 0x12c   : > { %v2840_v27 = vpop.f32.mrf.mxu0  ;;  %v2842_v28 = vpop.f32.mrf.mxu1 }
 0x12e   : > { %v2163_v30 = vpop.f32.mrf.mxu0  ;;  %v2211_v34 = vpop.f32.mrf.mxu1 }
 0x130   : > { %v2846_v35 = vpop.f32.mrf.mxu0  ;;  %v2848_v39 = vpop.f32.mrf.mxu1 }
 0x132   : > { %v2164_v44 = vpop.f32.mrf.mxu0  ;;  %v2212_v45 = vpop.f32.mrf.mxu1 }
 0x134   : > { %v2852_v49 = vpop.f32.mrf.mxu0  ;;  %v2854_v50 = vpop.f32.mrf.mxu1 }
 0x136   : > { %v2167_v55 = vpop.f32.mrf.mxu0  ;;  %v2215_v59 = vpop.f32.mrf.mxu1 }
 0x138   : > { %v2858_v60 = vpop.f32.mrf.mxu0  ;;  %v2860_v0 = vpop.f32.mrf.mxu1 }
 0x13a   : > { %v2168_v5 = vpop.f32.mrf.mxu0  ;;  %v2216_v6 = vpop.f32.mrf.mxu1 }
 0x13c   : > { %v2864_v10 = vpop.f32.mrf.mxu0  ;;  %v2866_v11 = vpop.f32.mrf.mxu1 }
 0x13e   : > { %v2171_v16 = vpop.f32.mrf.mxu0  ;;  %v2219_v20 = vpop.f32.mrf.mxu1 }
 0x140   : > { %v2870_v21 = vpop.f32.mrf.mxu0  ;;  %v2872_v25 = vpop.f32.mrf.mxu1 }
 0x142   : > { %v2172_v30 = vpop.f32.mrf.mxu0  ;;  %v2220_v34 = vpop.f32.mrf.mxu1 }
 0x144   : > { %v2876_v44 = vpop.f32.mrf.mxu0  ;;  %v2878_v45 = vpop.f32.mrf.mxu1 }
 0x146   : > { %v2175_v59 = vpop.f32.mrf.mxu0  ;;  %v2223_v5 = vpop.f32.mrf.mxu1 }
 0x148   : > { %v2882_v6 = vpop.f32.mrf.mxu0  ;;  %v2884_v16 = vpop.f32.mrf.mxu1 }
 0x14a   : > { %v2176_v26 = vpop.f32.mrf.mxu0  ;;  %v2224_v30 = vpop.f32.mrf.mxu1 }
 0x14c   : > { %v2888_v34 = vpop.f32.mrf.mxu0  ;;  %v2890_v15 = vpop.f32.mrf.mxu1 }
 0x14e   : > { %v2179_v55 = vpop.f32.mrf.mxu0  ;;  %v2227_v54 = vpop.f32.mrf.mxu1 }
 0x150   : > { %v2894_v59 = vpop.f32.mrf.mxu0  ;;  %v2896_v5 = vpop.f32.mrf.mxu1 }
 0x152   : > { %v2180_v26 = vpop.f32.mrf.mxu0  ;;  %v2228_v30 = vpop.f32.mrf.mxu1 }
 0x154   : > { %v1219_v20 = vpop.f32.mrf.mxu0  ;;  %v1473_v29 = vpop.f32.mrf.mxu1 }
 0x155   : > { %v1306_v24 = vmax.f32 %v1052_v33, %v1219_v20 }
 0x156   : > { %v2235_v55 = vpop.f32.mrf.mxu0  ;;  %v2283_v54 = vpop.f32.mrf.mxu1 }
 0x157   : > { %v1560_v1 = vmax.f32 %v1306_v24, %v1473_v29 }
 0x158   : > { %v1222_v40 = vpop.f32.mrf.mxu0  ;;  %v1476_v14 = vpop.f32.mrf.mxu1 }
 0x159   : > { %v1307_v26 = vmax.f32 %v1053_v38, %v1222_v40  ;;  %v1589_v31 = vadd.f32 %v2908_v19, %v1560_v1 }
 0x15a   : > { %v2236_v30 = vpop.f32.mrf.mxu0  ;;  %v2284_v9 = vpop.f32.mrf.mxu1 }
 0x15b   : > { %v1561_v32 = vmax.f32 %v1307_v26, %v1476_v14  ;;  %v1611_v4 = vmax.f32 %v1589_v31, 0.0 }
 0x15c   : > { %v1227_v33 = vpop.f32.mrf.mxu0  ;;  %v1481_v20 = vpop.f32.mrf.mxu1 }
 0x15d   : > { %v1590_v24 = vadd.f32 %v2908_v19, %v1561_v32  ;;  %v1308_v29 = vmax.f32 %v1054_v43, %v1227_v33 }
 0x15e   : > { %v2239_v55 = vpop.f32.mrf.mxu0  ;;  %v2287_v54 = vpop.f32.mrf.mxu1 }
 0x15f   : > { %v1612_v36 = vmax.f32 %v1590_v24, 0.0  ;;  %v1562_v37 = vmax.f32 %v1308_v29, %v1481_v20 }
 0x160   : > { %v1230_v38 = vpop.f32.mrf.mxu0  ;;  %v1484_v9 = vpop.f32.mrf.mxu1 }
 0x161   : > { %v2019_v14 = vpack.c.bf16 %v1612_v36, %v1611_v4  ;;  %v1309_v40 = vmax.f32 %v1055_v48, %v1230_v38  ;;  %v1591_v43 = vadd.f32 %v2908_v19, %v1562_v37 }
 0x162   : > { %v2240_v41 = vpop.f32.mrf.mxu0  ;;  %v2288_v42 = vpop.f32.mrf.mxu1 }
 0x163   : > { %2020 = vst [vmem:[%s2921_s14] sm:$0xff] %v2019_v14   ;;  %v1563_v1 = vmax.f32 %v1309_v40, %v1484_v9  ;;  %v1613_v20 = vmax.f32 %v1591_v43, 0.0 }
 0x164   : > { %v1235_v26 = vpop.f32.mrf.mxu0  ;;  %v1489_v30 = vpop.f32.mrf.mxu1 }
 0x165   : > { %v1592_v31 = vadd.f32 %v2908_v19, %v1563_v1  ;;  %v1310_v32 = vmax.f32 %v1056_v53, %v1235_v26  ;;  %v3025_v1 = vmax.f32 %v2810_v2, %v2812_v3 }
 0x166   : > { %v2243_v4 = vpop.f32.mrf.mxu0  ;;  %v2291_v33 = vpop.f32.mrf.mxu1 }
 0x167   : > { %v1614_v46 = vmax.f32 %v1592_v31, 0.0  ;;  %v1564_v47 = vmax.f32 %v1310_v32, %v1489_v30  ;;  %v3026_v33 = vmax.f32 %v2816_v7, %v2818_v8 }
 0x168   : > { %v1238_v48 = vpop.f32.mrf.mxu0  ;;  %v1492_v24 = vpop.f32.mrf.mxu1 }
 0x169   : > { %v2024_v29 = vpack.c.bf16 %v1614_v46, %v1613_v20  ;;  %v1311_v55 = vmax.f32 %v1057_v58, %v1238_v48  ;;  %v1593_v37 = vadd.f32 %v2908_v19, %v1564_v47 }
 0x16a   : > { %v2244_v54 = vpop.f32.mrf.mxu0  ;;  %v2292_v36 = vpop.f32.mrf.mxu1 }
 0x16b   : > { %2071 = vst [vmem:[%s2921_s14 + $0x8] sm:$0xff] %v2024_v29   ;;  %v1565_v38 = vmax.f32 %v1311_v55, %v1492_v24  ;;  %v1615_v41 = vmax.f32 %v1593_v37, 0.0  ;;  %v3027_v54 = vmax.f32 %v2822_v12, %v2824_v13 }
 0x16c   : > { %v1243_v51 = vpop.f32.mrf.mxu0  ;;  %v1497_v52 = vpop.f32.mrf.mxu1 }
 0x16d   : > { %v1594_v53 = vadd.f32 %v2908_v19, %v1565_v38  ;;  %v1312_v9 = vmax.f32 %v1058_v63, %v1243_v51 }
 0x16e   : > { %v2247_v14 = vpop.f32.mrf.mxu0  ;;  %v2295_v40 = vpop.f32.mrf.mxu1 }
 0x16f   : > { %v1616_v56 = vmax.f32 %v1594_v53, 0.0  ;;  %v1566_v57 = vmax.f32 %v1312_v9, %v1497_v52  ;;  %v3028_v9 = vmax.f32 %v2828_v17, %v2830_v18 }
 0x170   : > { %v1246_v58 = vpop.f32.mrf.mxu0  ;;  %v1500_v42 = vpop.f32.mrf.mxu1 }
 0x171   : > { %v2029_v43 = vpack.c.bf16 %v1616_v56, %v1615_v41  ;;  %v1313_v26 = vmax.f32 %v3025_v1, %v1246_v58  ;;  %v1595_v32 = vadd.f32 %v2908_v19, %v1566_v57 }
 0x172   : > { %v2248_v30 = vpop.f32.mrf.mxu0  ;;  %v2296_v31 = vpop.f32.mrf.mxu1 }
 0x173   : > { %2072 = vst [vmem:[%s2921_s14 + $0x10] sm:$0xff] %v2029_v43   ;;  %v1567_v4 = vmax.f32 %v1313_v26, %v1500_v42  ;;  %v1617_v48 = vmax.f32 %v1595_v32, 0.0  ;;  %v3029_v43 = vmax.f32 %v2834_v22, %v2836_v23 }
 0x174   : > { %v1251_v61 = vpop.f32.mrf.mxu0  ;;  %v1505_v62 = vpop.f32.mrf.mxu1 }
 0x175   : > { %v1596_v63 = vadd.f32 %v2908_v19, %v1567_v4  ;;  %v1314_v20 = vmax.f32 %v3026_v33, %v1251_v61  ;;  %v3030_v61 = vmax.f32 %v2840_v27, %v2842_v28 }
 0x176   : > { %v2251_v46 = vpop.f32.mrf.mxu0  ;;  %v2299_v47 = vpop.f32.mrf.mxu1 }
 0x177   : > { %v1618_v2 = vmax.f32 %v1596_v63, 0.0  ;;  %v1568_v3 = vmax.f32 %v1314_v20, %v1505_v62 }
 0x178   : > { %v1254_v24 = vpop.f32.mrf.mxu0  ;;  %v1508_v29 = vpop.f32.mrf.mxu1 }
 0x179   : > { %v2034_v55 = vpack.c.bf16 %v1618_v2, %v1617_v48  ;;  %v1315_v36 = vmax.f32 %v3027_v54, %v1254_v24  ;;  %v1597_v51 = vadd.f32 %v2908_v19, %v1568_v3  ;;  %v3031_v2 = vmax.f32 %v2846_v35, %v2848_v39 }
 0x17a   : > { %v2252_v37 = vpop.f32.mrf.mxu0  ;;  %v2300_v38 = vpop.f32.mrf.mxu1 }
 0x17b   : > { %2073 = vst [vmem:[%s2921_s14 + $0x18] sm:$0xff] %v2034_v55   ;;  %v1569_v52 = vmax.f32 %v1315_v36, %v1508_v29  ;;  %v1619_v56 = vmax.f32 %v1597_v51, 0.0  ;;  %v3032_v37 = vmax.f32 %v2852_v49, %v2854_v50 }
 0x17c   : > { %v1259_v7 = vpop.f32.mrf.mxu0  ;;  %v1513_v8 = vpop.f32.mrf.mxu1 }
 0x17d   : > { %v1598_v53 = vadd.f32 %v2908_v19, %v1569_v52  ;;  %v1316_v14 = vmax.f32 %v3028_v9, %v1259_v7 }
 0x17e   : > { %v2255_v40 = vpop.f32.mrf.mxu0  ;;  %v2303_v41 = vpop.f32.mrf.mxu1 }
 0x17f   : > { %v1620_v12 = vmax.f32 %v1598_v53, 0.0  ;;  %v1570_v13 = vmax.f32 %v1316_v14, %v1513_v8  ;;  %v3033_v14 = vmax.f32 %v2858_v60, %v2860_v0 }
 0x180   : > { %v1262_v57 = vpop.f32.mrf.mxu0  ;;  %v1516_v58 = vpop.f32.mrf.mxu1 }
 0x181   : > { %v2039_v42 = vpack.c.bf16 %v1620_v12, %v1619_v56  ;;  %v1317_v1 = vmax.f32 %v3029_v43, %v1262_v57  ;;  %v1599_v31 = vadd.f32 %v2908_v19, %v1570_v13 }
 0x182   : > { %v2256_v26 = vpop.f32.mrf.mxu0  ;;  %v2304_v30 = vpop.f32.mrf.mxu1 }
 0x183   : > { %2074 = vst [vmem:[%s2921_s14 + $0x20] sm:$0xff] %v2039_v42   ;;  %v1571_v32 = vmax.f32 %v1317_v1, %v1516_v58  ;;  %v1621_v20 = vmax.f32 %v1599_v31, 0.0  ;;  %v3034_v58 = vmax.f32 %v2864_v10, %v2866_v11 }
 0x184   : > { %v1267_v17 = vpop.f32.mrf.mxu0  ;;  %v1521_v18 = vpop.f32.mrf.mxu1 }
 0x185   : > { %v1600_v4 = vadd.f32 %v2908_v19, %v1571_v32  ;;  %v1318_v62 = vmax.f32 %v3030_v61, %v1267_v17  ;;  %v3035_v17 = vmax.f32 %v2870_v21, %v2872_v25 }
 0x186   : > { %v2259_v63 = vpop.f32.mrf.mxu0  ;;  %v2307_v33 = vpop.f32.mrf.mxu1 }
 0x187   : > { %v1622_v22 = vmax.f32 %v1600_v4, 0.0  ;;  %v1572_v23 = vmax.f32 %v1318_v62, %v1521_v18 }
 0x188   : > { %v1270_v46 = vpop.f32.mrf.mxu0  ;;  %v1524_v47 = vpop.f32.mrf.mxu1 }
 0x189   : > { %v2044_v48 = vpack.c.bf16 %v1622_v22, %v1621_v20  ;;  %v1319_v3 = vmax.f32 %v3031_v2, %v1270_v46  ;;  %v1601_v55 = vadd.f32 %v2908_v19, %v1572_v23  ;;  %v3036_v20 = vmax.f32 %v2876_v44, %v2878_v45 }
 0x18a   : > { %v2260_v24 = vpop.f32.mrf.mxu0  ;;  %v2308_v29 = vpop.f32.mrf.mxu1 }
 0x18b   : > { %2075 = vst [vmem:[%s2921_s14 + $0x28] sm:$0xff] %v2044_v48   ;;  %v1573_v54 = vmax.f32 %v1319_v3, %v1524_v47  ;;  %v1623_v7 = vmax.f32 %v1601_v55, 0.0  ;;  %v3037_v24 = vmax.f32 %v2882_v6, %v2884_v16 }
 0x18c   : > { %v1275_v27 = vpop.f32.mrf.mxu0  ;;  %v1529_v28 = vpop.f32.mrf.mxu1 }
 0x18d   : > { %v1602_v36 = vadd.f32 %v2908_v19, %v1573_v54  ;;  %v1320_v38 = vmax.f32 %v3032_v37, %v1275_v27  ;;  %v3038_v37 = vmax.f32 %v2888_v34, %v2890_v15 }
 0x18e   : > { %v2263_v51 = vpop.f32.mrf.mxu0  ;;  %v2311_v52 = vpop.f32.mrf.mxu1 }
 0x18f   : > { %v1624_v35 = vmax.f32 %v1602_v36, 0.0  ;;  %v1574_v39 = vmax.f32 %v1320_v38, %v1529_v28 }
 0x190   : > { %v1278_v8 = vpop.f32.mrf.mxu0  ;;  %v1532_v53 = vpop.f32.mrf.mxu1 }
 0x191   : > { %v2049_v9 = vpack.c.bf16 %v1624_v35, %v1623_v7  ;;  %v1321_v40 = vmax.f32 %v3033_v14, %v1278_v8  ;;  %v1603_v12 = vadd.f32 %v2908_v19, %v1574_v39 }
 0x192   : > { %v2264_v41 = vpop.f32.mrf.mxu0  ;;  %v2312_v56 = vpop.f32.mrf.mxu1 }
 0x193   : > { %2076 = vst [vmem:[%s2921_s14 + $0x30] sm:$0xff] %v2049_v9   ;;  %v1575_v13 = vmax.f32 %v1321_v40, %v1532_v53  ;;  %v1625_v26 = vmax.f32 %v1603_v12, 0.0  ;;  %v3039_v53 = vmax.f32 %v2894_v59, %v2896_v5 }
 0x194   : > { %v1283_v49 = vpop.f32.mrf.mxu0  ;;  %v1537_v50 = vpop.f32.mrf.mxu1 }
 0x195   : > { %v1604_v57 = vadd.f32 %v2908_v19, %v1575_v13  ;;  %v1322_v42 = vmax.f32 %v3034_v58, %v1283_v49 }
 0x196   : > { %v2267_v43 = vpop.f32.mrf.mxu0  ;;  %v2315_v1 = vpop.f32.mrf.mxu1 }
 0x197   : > { %v1626_v60 = vmax.f32 %v1604_v57, 0.0  ;;  %v1576_v0 = vmax.f32 %v1322_v42, %v1537_v50 }
 0x198   : > { %v1286_v30 = vpop.f32.mrf.mxu0  ;;  %v1540_v31 = vpop.f32.mrf.mxu1 }
 0x199   : > { %v2054_v32 = vpack.c.bf16 %v1626_v60, %v1625_v26  ;;  %v1323_v18 = vmax.f32 %v3035_v17, %v1286_v30  ;;  %v1605_v62 = vadd.f32 %v2908_v19, %v1576_v0 }
 0x19a   : > { %v2268_v4 = vpop.f32.mrf.mxu0  ;;  %v2316_v61 = vpop.f32.mrf.mxu1 }
 0x19b   : > { %2077 = vst [vmem:[%s2921_s14 + $0x38] sm:$0xff] %v2054_v32   ;;  %v1577_v63 = vmax.f32 %v1323_v18, %v1540_v31  ;;  %v1627_v47 = vmax.f32 %v1605_v62, 0.0 }
 0x19c   : > { %v1291_v10 = vpop.f32.mrf.mxu0  ;;  %v1545_v11 = vpop.f32.mrf.mxu1 }
 0x19d   : > { %v1606_v33 = vadd.f32 %v2908_v19, %v1577_v63  ;;  %v1324_v22 = vmax.f32 %v3036_v20, %v1291_v10 }
 0x19e   : > { %v2271_v23 = vpop.f32.mrf.mxu0  ;;  %v2319_v46 = vpop.f32.mrf.mxu1 }
 0x19f   : > { %v1628_v21 = vmax.f32 %v1606_v33, 0.0  ;;  %v1578_v25 = vmax.f32 %v1324_v22, %v1545_v11 }
 0x1a0   : > { %v1294_v48 = vpop.f32.mrf.mxu0  ;;  %v1548_v2 = vpop.f32.mrf.mxu1 }
 0x1a1   : > { %v2059_v3 = vpack.c.bf16 %v1628_v21, %v1627_v47  ;;  %v1325_v29 = vmax.f32 %v3037_v24, %v1294_v48  ;;  %v1607_v27 = vadd.f32 %v2908_v19, %v1578_v25 }
 0x1a2   : > { %v2272_v55 = vpop.f32.mrf.mxu0  ;;  %v2320_v54 = vpop.f32.mrf.mxu1 }
 0x1a3   : > { %2078 = vst [vmem:[%s2921_s14 + $0x40] sm:$0xff] %v2059_v3   ;;  %v1579_v28 = vmax.f32 %v1325_v29, %v1548_v2  ;;  %v1629_v7 = vmax.f32 %v1607_v27, 0.0 }
 0x1a4   : > { %v1299_v44 = vpop.f32.mrf.mxu0  ;;  %v1553_v45 = vpop.f32.mrf.mxu1 }
 0x1a5   : > { %v1608_v36 = vadd.f32 %v2908_v19, %v1579_v28  ;;  %v1326_v38 = vmax.f32 %v3038_v37, %v1299_v44 }
 0x1a6   : > { %v2275_v51 = vpop.f32.mrf.mxu0  ;;  %v2323_v52 = vpop.f32.mrf.mxu1 }
 0x1a7   : > { %v1630_v6 = vmax.f32 %v1608_v36, 0.0  ;;  %v1580_v16 = vmax.f32 %v1326_v38, %v1553_v45 }
 0x1a8   : > { %v1302_v35 = vpop.f32.mrf.mxu0  ;;  %v1556_v39 = vpop.f32.mrf.mxu1 }
 0x1a9   : > { %v2064_v8 = vpack.c.bf16 %v1630_v6, %v1629_v7  ;;  %v1327_v9 = vmax.f32 %v3039_v53, %v1302_v35  ;;  %v1609_v41 = vadd.f32 %v2908_v19, %v1580_v16 }
 0x1aa   : > { %v2276_v14 = vpop.f32.mrf.mxu0  ;;  %v2324_v40 = vpop.f32.mrf.mxu1 }
 0x1ab   : > { %2079 = vst [vmem:[%s2921_s14 + $0x48] sm:$0xff] %v2064_v8   ;;  %v1581_v15 = vmax.f32 %v1327_v9, %v1556_v39  ;;  %v1631_v56 = vmax.f32 %v1609_v41, 0.0 }
 0x1ad   : > { %v1610_v34 = vadd.f32 %v2908_v19, %v1581_v15 }
 0x1af   : > { %v1632_v12 = vmax.f32 %v1610_v34, 0.0 }
 0x1b1   : > { %v2069_v13 = vpack.c.bf16 %v1632_v12, %v1631_v56 }
 0x1b3   : > { %2080 = vst [vmem:[%s2921_s14 + $0x50] sm:$0xff] %v2069_v13  }
 0x1b4 PF: > { %p10_p9 = scmp.ge.s32.totalorder %s2464_s16, 4   ;;  %s3040_s12 = smov %s2418_s13 }
 0x1b5   : > { %s3041_s13 = smov %s2473_s19  ;;  %s3042_s14 = smov %s2464_s16 }
 0x1b6   :  { %12 = sbr.rel (!%p10_p9) target bundleno = 2 (0x2), region = 111 }

// kernel: regression_net.4
= control target key start
LH: loop header
LB: loop body
LE: loop exit
PB: predicated region body
PF: predicated region fallthrough
CT: control target
= control target key end

     0   :  { %s948_s12 = smov 0   ;;  %s950_s13 = smov 0   ;;  %s1128_s0 = inlined_call_operand.vmem [shape: bf16[4,64,144], index: 0, kind: input, shape index: {}]   ;;  %s1129_s1 = inlined_call_operand.vmem [shape: bf16[144,128], index: 1, kind: input, shape index: {}]   ;;  %s1130_s2 = inlined_call_operand.vmem [shape: f32[1,128], index: 2, kind: input, shape index: {}]   ;;  %s1131_s3 = inlined_call_operand.vmem [shape: bf16[64,128], index: 3, kind: output, shape index: {}]  }
   0x1   :  { %s952_s14 = smov 0  }
   0x2 LB: > { %s764_s15 = sadd.s32 4294967295, %s925_s14   ;;  %s965_s16 = sadd.s32 1, %s925_s14   ;;  %s925_s14 = sphi %s952_s14, %s1134_s14   ;;  %s921_s13 = sphi %s950_s13, %s1133_s13   ;;  %s917_s12 = sphi %s948_s12, %s1132_s12  }
   0x3   : > { %s17_s17 = ssub.s32 %s925_s14, %s965_s16  ;;  %s20_s18 = sadd.s32 1, %s921_s13 }
   0x4   : > { %p18_p0 = scmp.eq.s32.totalorder %s17_s17, 0  ;;  %p27_p1 = scmp.ne.s32.totalorder %s921_s13, %s917_s12 }
   0x5   : > { %p28_p2 = scmp.eq.s32.totalorder %s925_s14, 0  ;;  %p767_p4 = scmp.ge.s32.totalorder %s925_s14, 2 }
   0x6   : > { %s974_s19 = scalar_select %p18_p0, %s921_s13, %s20_s18  }
   0x7   : > { %p29_p3 = por %p28_p2, %p27_p1  ;;  %127 = sbr.rel (%p767_p4) target bundleno = 24 (0x18), region = 24 }
   0xc   : > { %130 = sbr.rel (!%p29_p3) target bundleno = 24 (0x18), region = 28  ;;  %s132_s20 = sand.u32 (%p29_p3), 1, %s921_s13  }
   0xd   : > { %s829_s21 = sshll.u32 (%p29_p3), %s925_s14, 5  ;;  %s768_s22 = sshll.u32 (%p29_p3), %s132_s20, 7 }
   0xe   : > { %s982_s25 = scalar_lea.vmem (%p29_p3), %s1128_s0, %s829_s21  ;;  %s134_s26 = scalar_lea.vmem (%p29_p3), [#allocation2], %s768_s22 }
   0xf   : > { %v197_v0 = vld [vmem:[%s982_s25] sm:$0xff] (%p29_p3)  ;;  %v199_v1 = vld [vmem:[%s982_s25 + $0x8] sm:$0xff] (%p29_p3)  ;;  %v201_v2 = vld [vmem:[%s982_s25 + $0x10] sm:$0xff] (%p29_p3) }
  0x10   : > { %198 = vst [vmem:[%s134_s26] sm:$0xff] (%p29_p3), %v197_v0  ;;  %200 = vst [vmem:[%s134_s26 + $0x8] sm:$0xff] (%p29_p3), %v199_v1  ;;  %v203_v3 = vld [vmem:[%s982_s25 + $0x18] sm:$0xff] (%p29_p3)  ;;  %v205_v4 = vld [vmem:[%s982_s25 + $0x40] sm:$0xff] (%p29_p3) }
  0x11   : > { %202 = vst [vmem:[%s134_s26 + $0x10] sm:$0xff] %v201_v2  ;;  %v207_v5 = vld [vmem:[%s982_s25 + $0x48] sm:$0xff]  ;;  %204 = vst [vmem:[%s134_s26 + $0x18] sm:$0xff] %v203_v3  ;;  %v209_v6 = vld [vmem:[%s982_s25 + $0x50] sm:$0xff] }
  0x12   : > { %206 = vst [vmem:[%s134_s26 + $0x20] sm:$0xff] %v205_v4  ;;  %208 = vst [vmem:[%s134_s26 + $0x28] sm:$0xff] %v207_v5  ;;  %v211_v7 = vld [vmem:[%s982_s25 + $0x58] sm:$0xff]  ;;  %v213_v8 = vld [vmem:[%s982_s25 + $0x80] sm:$0xff] }
  0x13   : > { %210 = vst [vmem:[%s134_s26 + $0x30] sm:$0xff] %v209_v6  ;;  %212 = vst [vmem:[%s134_s26 + $0x38] sm:$0xff] %v211_v7  ;;  %v215_v9 = vld [vmem:[%s982_s25 + $0x88] sm:$0xff]  ;;  %v217_v10 = vld [vmem:[%s982_s25 + $0x90] sm:$0xff] }
  0x14   : > { %214 = vst [vmem:[%s134_s26 + $0x40] sm:$0xff] %v213_v8  ;;  %v219_v11 = vld [vmem:[%s982_s25 + $0x98] sm:$0xff]  ;;  %216 = vst [vmem:[%s134_s26 + $0x48] sm:$0xff] %v215_v9  ;;  %v221_v12 = vld [vmem:[%s982_s25 + $0xc0] sm:$0xff] }
  0x15   : > { %218 = vst [vmem:[%s134_s26 + $0x50] sm:$0xff] %v217_v10  ;;  %220 = vst [vmem:[%s134_s26 + $0x58] sm:$0xff] %v219_v11  ;;  %v223_v13 = vld [vmem:[%s982_s25 + $0xc8] sm:$0xff]  ;;  %v225_v14 = vld [vmem:[%s982_s25 + $0xd0] sm:$0xff] }
  0x16   : > { %222 = vst [vmem:[%s134_s26 + $0x60] sm:$0xff] %v221_v12  ;;  %224 = vst [vmem:[%s134_s26 + $0x68] sm:$0xff] %v223_v13  ;;  %v227_v15 = vld [vmem:[%s982_s25 + $0xd8] sm:$0xff] }
  0x17   : > { %226 = vst [vmem:[%s134_s26 + $0x70] sm:$0xff] %v225_v14  ;;  %228 = vst [vmem:[%s134_s26 + $0x78] sm:$0xff] %v227_v15 }
  0x18 PF: > { %p772_p5 = scmp.ge.s32.totalorder %s925_s14, 1  ;;  %p233_p6 = scmp.lt.s32.totalorder %s925_s14, 3 }
  0x1a   : > { %p234_p7 = pnand %p772_p5, %p233_p6 }
  0x1b   : > { %s240_s29 = sand.u32 (!%p234_p7), 1, %s917_s12   ;;  %s774_s26 = sshll.u32 (!%p234_p7), %s764_s15, 2 }
  0x1c   : > { %237 = sbr.rel (%p234_p7) target bundleno = 322 (0x142), region = 66  ;;  %s773_s5 = sshll.u32 (!%p234_p7), %s240_s29, 7 }
  0x1d   : > { %s1029_s10 = scalar_lea.vmem (!%p234_p7), [#allocation2], %s773_s5  ;;  %p265_p8 = scmp.lt.s32.totalorder (!%p234_p7), %s774_s26, 7 }
  0x21   : > { %v870_v16 = vld [vmem:[%s1129_s1 + $0x38] sm:$0xff]   ;;  %v927_v17 = vmov 0   ;;  %v1011_v18 = vld [vmem:[%s1129_s1 + $0x30] sm:$0xff]   ;;  %v1020_v19 = vld [vmem:[%s1129_s1 + $0x28] sm:$0xff]   ;;  %vm365_vm0 = vcmask 130048   ;;  %s1136_s26 = smov (!%p265_p8, %s774_s26), 7 }
  0x22   : > { %372 = vmatprep.subr.bf16.mxu0 %v927_v17  ;;  %450 = vmatprep.subr.bf16.mxu1 %v927_v17  ;;  %v1027_v20 = vld [vmem:[%s1129_s1 + $0x20] sm:$0xff]   ;;  %v874_v23 = vld [vmem:[%s1129_s1 + $0x18] sm:$0xff]   ;;  %v875_v24 = vld [vmem:[%s1129_s1 + $0x10] sm:$0xff]   ;;  %s775_s14 = sshll.u32 %s1136_s26, 2 }
  0x23   : > { %373 = vmatpush1.bf16.msra.mxu0 %v870_v16  ;;  %451 = vmatpush1.bf16.msra.mxu1 %v870_v16  ;;  %v881_v21 = vld [vmem:[%s1029_s10 + $0x4] ss:$8 sps:$4 sm:$0xff]   ;;  %v879_v28 = vld [vmem:[%s1029_s10] ss:$8 sps:$4 sm:$0xff]   ;;  %v885_v30 = vld [vmem:[%s1029_s10 + $0x14] ss:$8 sps:$4 sm:$0xff]   ;;  %s268_s30 = scalar_lea.vmem %s1131_s3, %s775_s14 }
  0x24   : > { %374 = vmatprep.subr.bf16.mxu0 %v927_v17  ;;  %452 = vmatprep.subr.bf16.mxu1 %v927_v17  ;;  %v884_v22 = vld [vmem:[%s1029_s10 + $0x24] ss:$8 sps:$4 sm:$0xff]   ;;  %v882_v29 = vld [vmem:[%s1029_s10 + $0x20] ss:$8 sps:$4 sm:$0xff]   ;;  %v888_v31 = vld [vmem:[%s1029_s10 + $0x34] ss:$8 sps:$4 sm:$0xff]  }
  0x25   : > { %789 = vmatprep.mubr.msk.bf16.mxu0 %vm365_vm0, %v881_v21  ;;  %799 = vmatprep.mubr.msk.bf16.mxu1 %vm365_vm0, %v884_v22  ;;  %v876_v25 = vld [vmem:[%s1129_s1 + $0x8] sm:$0xff]   ;;  %v877_v26 = vld [vmem:[%s1129_s1] sm:$0xff]   ;;  %v887_v32 = vld [vmem:[%s1029_s10 + $0x10] ss:$8 sps:$4 sm:$0xff]  }
  0x26   : > { %v878_v27 = vld [vmem:[%s1129_s1 + $0x40] sm:$0xff]   ;;  %v890_v33 = vld [vmem:[%s1029_s10 + $0x30] ss:$8 sps:$4 sm:$0xff]   ;;  %v897_v38 = vld [vmem:[%s1029_s10 + $0x54] ss:$8 sps:$4 sm:$0xff]  }
  0x27   : > { %375 = vmatpush1.bf16.msra.mxu0 %v1011_v18  ;;  %453 = vmatpush1.bf16.msra.mxu1 %v1011_v18  ;;  %v893_v34 = vld [vmem:[%s1029_s10 + $0x44] ss:$8 sps:$4 sm:$0xff]   ;;  %v891_v36 = vld [vmem:[%s1029_s10 + $0x40] ss:$8 sps:$4 sm:$0xff]   ;;  %v899_v39 = vld [vmem:[%s1029_s10 + $0x74] ss:$8 sps:$4 sm:$0xff]  }
  0x28   : > { %376 = vmatprep.subr.bf16.mxu0 %v927_v17  ;;  %454 = vmatprep.subr.bf16.mxu1 %v927_v17  ;;  %v896_v35 = vld [vmem:[%s1029_s10 + $0x64] ss:$8 sps:$4 sm:$0xff]   ;;  %v894_v37 = vld [vmem:[%s1029_s10 + $0x60] ss:$8 sps:$4 sm:$0xff]   ;;  %v901_v40 = vld [vmem:[%s1029_s10 + $0x50] ss:$8 sps:$4 sm:$0xff]  }
  0x29   : > { %v902_v41 = vld [vmem:[%s1029_s10 + $0x70] ss:$8 sps:$4 sm:$0xff]   ;;  %v821_v2 = vld [vmem:[%s1130_s2] ss:$0 sm:$0xff] }
  0x2b   : > { %377 = vmatpush1.bf16.msra.mxu0 %v1020_v19  ;;  %455 = vmatpush1.bf16.msra.mxu1 %v1020_v19 }
  0x2c   : > { %378 = vmatprep.subr.bf16.mxu0 %v927_v17  ;;  %456 = vmatprep.subr.bf16.mxu1 %v927_v17 }
  0x2f   : > { %379 = vmatpush1.bf16.msra.mxu0 %v1027_v20  ;;  %457 = vmatpush1.bf16.msra.mxu1 %v1027_v20 }
  0x30   : > { %380 = vmatprep.subr.bf16.mxu0 %v927_v17  ;;  %458 = vmatprep.subr.bf16.mxu1 %v927_v17 }
  0x33   : > { %381 = vmatpush1.bf16.msra.mxu0 %v874_v23  ;;  %459 = vmatpush1.bf16.msra.mxu1 %v874_v23 }
  0x34   : > { %382 = vmatprep.subr.bf16.mxu0 %v927_v17  ;;  %460 = vmatprep.subr.bf16.mxu1 %v927_v17 }
  0x37   : > { %383 = vmatpush1.bf16.msra.mxu0 %v875_v24  ;;  %461 = vmatpush1.bf16.msra.mxu1 %v875_v24 }
  0x38   : > { %384 = vmatprep.subr.bf16.mxu0 %v927_v17  ;;  %462 = vmatprep.subr.bf16.mxu1 %v927_v17 }
  0x3b   : > { %385 = vmatpush1.bf16.msra.mxu0 %v876_v25  ;;  %463 = vmatpush1.bf16.msra.mxu1 %v876_v25 }
  0x3c   : > { %386 = vmatprep.subr.bf16.mxu0 %v927_v17  ;;  %464 = vmatprep.subr.bf16.mxu1 %v927_v17 }
  0x3f   : > { %387 = vmatpush1.bf16.msra.mxu0 %v877_v26  ;;  %465 = vmatpush1.bf16.msra.mxu1 %v877_v26 }
  0x40   : > { %402 = vmatprep.subr.bf16.mxu0 %v927_v17  ;;  %480 = vmatprep.subr.bf16.mxu1 %v927_v17 }
  0x43   : > { %403 = vmatpush2.bf16.msra.mxu0 %v878_v27  ;;  %481 = vmatpush2.bf16.msra.mxu1 %v878_v27 }
  0x44   : > { %532 = vmatprep.subr.bf16.mxu0 %v927_v17  ;;  %614 = vmatprep.subr.bf16.mxu1 %v927_v17 }
  0x46   : > { %405 = vmatmul.mubr.bf16.vlgmr.msra.gmra.mxu0 %v879_v28  ;;  %483 = vmatmul.mubr.bf16.vlgmr.msra.gmra.mxu1 %v882_v29 }
  0x47   : > { %533 = vmatpush1.bf16.msra.mxu0 %v870_v16  ;;  %615 = vmatpush1.bf16.msra.mxu1 %v870_v16 }
  0x48   : > { %534 = vmatprep.subr.bf16.mxu0 %v927_v17  ;;  %616 = vmatprep.subr.bf16.mxu1 %v927_v17 }
  0x49   : > { %790 = vmatprep.mubr.msk.bf16.mxu0 %vm365_vm0, %v885_v30  ;;  %800 = vmatprep.mubr.msk.bf16.mxu1 %vm365_vm0, %v888_v31 }
  0x4b   : > { %535 = vmatpush1.bf16.msra.mxu0 %v1011_v18  ;;  %617 = vmatpush1.bf16.msra.mxu1 %v1011_v18 }
  0x4c   : > { %536 = vmatprep.subr.bf16.mxu0 %v927_v17  ;;  %618 = vmatprep.subr.bf16.mxu1 %v927_v17 }
  0x4e   : > { %413 = vmatmul.mubr.bf16.gmra.mxu0 %v887_v32  ;;  %491 = vmatmul.mubr.bf16.gmra.mxu1 %v890_v33 }
  0x4f   : > { %537 = vmatpush1.bf16.msra.mxu0 %v1020_v19  ;;  %619 = vmatpush1.bf16.msra.mxu1 %v1020_v19 }
  0x50   : > { %538 = vmatprep.subr.bf16.mxu0 %v927_v17  ;;  %620 = vmatprep.subr.bf16.mxu1 %v927_v17 }
  0x51   : > { %809 = vmatprep.mubr.msk.bf16.mxu0 %vm365_vm0, %v893_v34  ;;  %819 = vmatprep.mubr.msk.bf16.mxu1 %vm365_vm0, %v896_v35 }
  0x53   : > { %539 = vmatpush1.bf16.msra.mxu0 %v1027_v20  ;;  %621 = vmatpush1.bf16.msra.mxu1 %v1027_v20 }
  0x54   : > { %540 = vmatprep.subr.bf16.mxu0 %v927_v17  ;;  %622 = vmatprep.subr.bf16.mxu1 %v927_v17 }
  0x57   : > { %541 = vmatpush1.bf16.msra.mxu0 %v874_v23  ;;  %623 = vmatpush1.bf16.msra.mxu1 %v874_v23 }
  0x58   : > { %542 = vmatprep.subr.bf16.mxu0 %v927_v17  ;;  %624 = vmatprep.subr.bf16.mxu1 %v927_v17 }
  0x5b   : > { %543 = vmatpush1.bf16.msra.mxu0 %v875_v24  ;;  %625 = vmatpush1.bf16.msra.mxu1 %v875_v24 }
  0x5c   : > { %544 = vmatprep.subr.bf16.mxu0 %v927_v17  ;;  %626 = vmatprep.subr.bf16.mxu1 %v927_v17 }
  0x5f   : > { %545 = vmatpush1.bf16.msra.mxu0 %v876_v25  ;;  %627 = vmatpush1.bf16.msra.mxu1 %v876_v25 }
  0x60   : > { %546 = vmatprep.subr.bf16.mxu0 %v927_v17  ;;  %628 = vmatprep.subr.bf16.mxu1 %v927_v17 }
  0x63   : > { %547 = vmatpush1.bf16.msra.mxu0 %v877_v26  ;;  %629 = vmatpush1.bf16.msra.mxu1 %v877_v26 }
  0x64   : > { %562 = vmatprep.subr.bf16.mxu0 %v927_v17  ;;  %644 = vmatprep.subr.bf16.mxu1 %v927_v17 }
  0x67   : > { %563 = vmatpush2.bf16.msra.mxu0 %v878_v27  ;;  %645 = vmatpush2.bf16.msra.mxu1 %v878_v27 }
  0x6a   : > { %565 = vmatmul.mubr.bf16.vlgmr.msra.gmra.mxu0 %v891_v36  ;;  %647 = vmatmul.mubr.bf16.vlgmr.msra.gmra.mxu1 %v894_v37 }
  0x6b   : > { %810 = vmatprep.mubr.msk.bf16.mxu0 %vm365_vm0, %v897_v38  ;;  %820 = vmatprep.mubr.msk.bf16.mxu1 %vm365_vm0, %v899_v39 }
  0x72   : > { %573 = vmatmul.mubr.bf16.gmra.mxu0 %v901_v40  ;;  %655 = vmatmul.mubr.bf16.gmra.mxu1 %v902_v41 }
 0x106   : > { %v406_v42 = vpop.f32.mrf.mxu0  ;;  %v484_v43 = vpop.f32.mrf.mxu1 }
 0x107   : > { %v499_v58 = vmax.f32 %v406_v42, %v484_v43 }
 0x108   : > { %v408_v44 = vpop.f32.mrf.mxu0  ;;  %v486_v45 = vpop.f32.mrf.mxu1 }
 0x10a   : > { %v409_v46 = vpop.f32.mrf.mxu0  ;;  %v487_v47 = vpop.f32.mrf.mxu1 }
 0x10b   : > { %v500_v0 = vmax.f32 %v409_v46, %v487_v47 }
 0x10c   : > { %v411_v48 = vpop.f32.mrf.mxu0  ;;  %v489_v49 = vpop.f32.mrf.mxu1 }
 0x10e   : > { %v414_v50 = vpop.f32.mrf.mxu0  ;;  %v492_v51 = vpop.f32.mrf.mxu1 }
 0x10f   : > { %v501_v8 = vmax.f32 %v414_v50, %v492_v51 }
 0x110   : > { %v416_v52 = vpop.f32.mrf.mxu0  ;;  %v494_v53 = vpop.f32.mrf.mxu1 }
 0x112   : > { %v417_v54 = vpop.f32.mrf.mxu0  ;;  %v495_v55 = vpop.f32.mrf.mxu1 }
 0x113   : > { %v502_v17 = vmax.f32 %v417_v54, %v495_v55 }
 0x114   : > { %v419_v56 = vpop.f32.mrf.mxu0  ;;  %v497_v57 = vpop.f32.mrf.mxu1 }
 0x12a   : > { %v566_v59 = vpop.f32.mrf.mxu0  ;;  %v648_v60 = vpop.f32.mrf.mxu1 }
 0x12b   : > { %v581_v61 = vmax.f32 %v499_v58, %v566_v59 }
 0x12c   : > { %v568_v62 = vpop.f32.mrf.mxu0  ;;  %v650_v63 = vpop.f32.mrf.mxu1 }
 0x12d   : > { %v663_v1 = vmax.f32 %v581_v61, %v648_v60 }
 0x12e   : > { %v569_v3 = vpop.f32.mrf.mxu0  ;;  %v651_v4 = vpop.f32.mrf.mxu1 }
 0x12f   : > { %v582_v5 = vmax.f32 %v500_v0, %v569_v3  ;;  %v674_v9 = vadd.f32 %v821_v2, %v663_v1 }
 0x130   : > { %v571_v6 = vpop.f32.mrf.mxu0  ;;  %v653_v7 = vpop.f32.mrf.mxu1 }
 0x131   : > { %v664_v10 = vmax.f32 %v582_v5, %v651_v4  ;;  %v678_v18 = vmax.f32 %v674_v9, 0.0 }
 0x132   : > { %v574_v11 = vpop.f32.mrf.mxu0  ;;  %v656_v12 = vpop.f32.mrf.mxu1 }
 0x133   : > { %v675_v13 = vadd.f32 %v821_v2, %v664_v10  ;;  %v583_v14 = vmax.f32 %v501_v8, %v574_v11 }
 0x134   : > { %v576_v15 = vpop.f32.mrf.mxu0  ;;  %v658_v16 = vpop.f32.mrf.mxu1 }
 0x135   : > { %v679_v19 = vmax.f32 %v675_v13, 0.0  ;;  %v665_v20 = vmax.f32 %v583_v14, %v656_v12 }
 0x136   : > { %v577_v21 = vpop.f32.mrf.mxu0  ;;  %v659_v22 = vpop.f32.mrf.mxu1 }
 0x137   : > { %v837_v23 = vpack.c.bf16 %v679_v19, %v678_v18  ;;  %v584_v24 = vmax.f32 %v502_v17, %v577_v21  ;;  %v676_v27 = vadd.f32 %v821_v2, %v665_v20 }
 0x138   : > { %v579_v25 = vpop.f32.mrf.mxu0  ;;  %v661_v26 = vpop.f32.mrf.mxu1 }
 0x139   : > { %838 = vst [vmem:[%s268_s30] sm:$0xff] %v837_v23   ;;  %v666_v28 = vmax.f32 %v584_v24, %v659_v22  ;;  %v680_v30 = vmax.f32 %v676_v27, 0.0 }
 0x13b   : > { %v677_v29 = vadd.f32 %v821_v2, %v666_v28 }
 0x13d   : > { %v681_v31 = vmax.f32 %v677_v29, 0.0 }
 0x13f   : > { %v842_v32 = vpack.c.bf16 %v681_v31, %v680_v30 }
 0x141   : > { %844 = vst [vmem:[%s268_s30 + $0x8] sm:$0xff] %v842_v32  }
 0x142 PF: > { %p10_p9 = scmp.ge.s32.totalorder %s965_s16, 4   ;;  %s1132_s12 = smov %s921_s13 }
 0x143   : > { %s1133_s13 = smov %s974_s19  ;;  %s1134_s14 = smov %s965_s16 }
 0x144   :  { %12 = sbr.rel (!%p10_p9) target bundleno = 2 (0x2), region = 108 }

// kernel: regression_net.5
= control target key start
LH: loop header
LB: loop body
LE: loop exit
PB: predicated region body
PF: predicated region fallthrough
CT: control target
= control target key end

     0   :  { %s13327_s1 = inlined_call_operand.vmem [shape: bf16[1024,1024], index: 1, kind: input, shape index: {}]   ;;  %s13328_s0 = inlined_call_operand.vmem [shape: bf16[16,1024], index: 0, kind: input, shape index: {}]   ;;  %s13329_s2 = inlined_call_operand.vmem [shape: f32[1,1024], index: 2, kind: input, shape index: {}]   ;;  %s13330_s3 = inlined_call_operand.vmem [shape: bf16[1024,1024], index: 3, kind: input, shape index: {}]   ;;  %s13331_s5 = inlined_call_operand.vmem [shape: bf16[1024,128], index: 5, kind: input, shape index: {}]   ;;  %s13332_s4 = inlined_call_operand.vmem [shape: f32[1,1024], index: 4, kind: input, shape index: {}]   ;;  %s13333_s6 = inlined_call_operand.vmem [shape: f32[1,128], index: 6, kind: input, shape index: {}]   ;;  %s13334_s7 = inlined_call_operand.vmem [shape: f32[16,128], index: 7, kind: output, shape index: {}]  }
   0x1   :  { %v91_v0 = vld [vmem:[%s13327_s1 + $0x1c0] sm:$0xff]  ;;  %v9798_v59 = vld [vmem:[%s13328_s0 + $0x8] sm:$0xff] }
   0x2   :  { %v95_v1 = vld [vmem:[%s13327_s1 + $0x1e0] sm:$0xff]  ;;  %v9803_v60 = vld [vmem:[%s13328_s0 + $0x28] sm:$0xff] }
   0x3   :  { %v219_v2 = vld [vmem:[%s13327_s1 + $0x5c0] sm:$0xff]  ;;  %v8465_v3 = vcombine.high %v91_v0, %v95_v1  ;;  %v8464_v5 = vcombine.low %v91_v0, %v95_v1  ;;  %v9813_v63 = vcombine.high %v9798_v59, %v9803_v60 }
   0x4   :  { %v223_v4 = vld [vmem:[%s13327_s1 + $0x5e0] sm:$0xff] }
   0x5   :  { %v83_v6 = vld [vmem:[%s13327_s1 + $0x180] sm:$0xff]  ;;  %v8593_v8 = vcombine.high %v219_v2, %v223_v4  ;;  %v8592_v9 = vcombine.low %v219_v2, %v223_v4  ;;  %3189 = vmatprep.subr.bf16.mxu0 %v8465_v3  ;;  %3264 = vmatprep.mubr.bf16.mxu1 %v9813_v63 }
   0x6   :  { %v87_v7 = vld [vmem:[%s13327_s1 + $0x1a0] sm:$0xff]  ;;  %3190 = vmatpush1.bf16.msra.mxu0 %v8464_v5 }
   0x7   :  { %v8457_v10 = vcombine.high %v83_v6, %v87_v7  ;;  %v211_v11 = vld [vmem:[%s13327_s1 + $0x580] sm:$0xff]  ;;  %3232 = vmatprep.subr.bf16.mxu1 %v8593_v8  ;;  %v8456_v18 = vcombine.low %v83_v6, %v87_v7 }
   0x8   :  { %v215_v12 = vld [vmem:[%s13327_s1 + $0x5a0] sm:$0xff]  ;;  %3233 = vmatpush1.bf16.msra.mxu1 %v8592_v9 }
   0x9   :  { %v75_v13 = vld [vmem:[%s13327_s1 + $0x140] sm:$0xff]  ;;  %v8585_v14 = vcombine.high %v211_v11, %v215_v12  ;;  %3191 = vmatprep.subr.bf16.mxu0 %v8457_v10  ;;  %v8584_v19 = vcombine.low %v211_v11, %v215_v12 }
   0xa   :  { %v79_v15 = vld [vmem:[%s13327_s1 + $0x160] sm:$0xff]  ;;  %3192 = vmatpush1.bf16.msra.mxu0 %v8456_v18 }
   0xb   :  { %v203_v16 = vld [vmem:[%s13327_s1 + $0x540] sm:$0xff]  ;;  %v8449_v20 = vcombine.high %v75_v13, %v79_v15  ;;  %3234 = vmatprep.subr.bf16.mxu1 %v8585_v14  ;;  %v8448_v26 = vcombine.low %v75_v13, %v79_v15 }
   0xc   :  { %v207_v17 = vld [vmem:[%s13327_s1 + $0x560] sm:$0xff]  ;;  %3235 = vmatpush1.bf16.msra.mxu1 %v8584_v19 }
   0xd   :  { %v8577_v21 = vcombine.high %v203_v16, %v207_v17  ;;  %v67_v22 = vld [vmem:[%s13327_s1 + $0x100] sm:$0xff]  ;;  %3193 = vmatprep.subr.bf16.mxu0 %v8449_v20  ;;  %v8576_v27 = vcombine.low %v203_v16, %v207_v17 }
   0xe   :  { %v71_v23 = vld [vmem:[%s13327_s1 + $0x120] sm:$0xff]  ;;  %3194 = vmatpush1.bf16.msra.mxu0 %v8448_v26 }
   0xf   :  { %v195_v24 = vld [vmem:[%s13327_s1 + $0x500] sm:$0xff]  ;;  %v8441_v28 = vcombine.high %v67_v22, %v71_v23  ;;  %3236 = vmatprep.subr.bf16.mxu1 %v8577_v21  ;;  %v8440_v34 = vcombine.low %v67_v22, %v71_v23 }
  0x10   :  { %v199_v25 = vld [vmem:[%s13327_s1 + $0x520] sm:$0xff]  ;;  %3237 = vmatpush1.bf16.msra.mxu1 %v8576_v27 }
  0x11   :  { %v8569_v29 = vcombine.high %v195_v24, %v199_v25  ;;  %v59_v30 = vld [vmem:[%s13327_s1 + $0xc0] sm:$0xff]  ;;  %3195 = vmatprep.subr.bf16.mxu0 %v8441_v28  ;;  %v8568_v35 = vcombine.low %v195_v24, %v199_v25 }
  0x12   :  { %v63_v31 = vld [vmem:[%s13327_s1 + $0xe0] sm:$0xff]  ;;  %3196 = vmatpush1.bf16.msra.mxu0 %v8440_v34 }
  0x13   :  { %v187_v32 = vld [vmem:[%s13327_s1 + $0x4c0] sm:$0xff]  ;;  %v8433_v36 = vcombine.high %v59_v30, %v63_v31  ;;  %3238 = vmatprep.subr.bf16.mxu1 %v8569_v29  ;;  %v8432_v42 = vcombine.low %v59_v30, %v63_v31 }
  0x14   :  { %v191_v33 = vld [vmem:[%s13327_s1 + $0x4e0] sm:$0xff]  ;;  %3239 = vmatpush1.bf16.msra.mxu1 %v8568_v35 }
  0x15   :  { %v8561_v37 = vcombine.high %v187_v32, %v191_v33  ;;  %v51_v38 = vld [vmem:[%s13327_s1 + $0x80] sm:$0xff]  ;;  %3197 = vmatprep.subr.bf16.mxu0 %v8433_v36  ;;  %v8560_v43 = vcombine.low %v187_v32, %v191_v33 }
  0x16   :  { %v55_v39 = vld [vmem:[%s13327_s1 + $0xa0] sm:$0xff]  ;;  %3198 = vmatpush1.bf16.msra.mxu0 %v8432_v42 }
  0x17   :  { %v179_v40 = vld [vmem:[%s13327_s1 + $0x480] sm:$0xff]  ;;  %v8425_v44 = vcombine.high %v51_v38, %v55_v39  ;;  %3240 = vmatprep.subr.bf16.mxu1 %v8561_v37  ;;  %v8424_v50 = vcombine.low %v51_v38, %v55_v39 }
  0x18   :  { %v183_v41 = vld [vmem:[%s13327_s1 + $0x4a0] sm:$0xff]  ;;  %3241 = vmatpush1.bf16.msra.mxu1 %v8560_v43 }
  0x19   :  { %v8553_v45 = vcombine.high %v179_v40, %v183_v41  ;;  %v43_v46 = vld [vmem:[%s13327_s1 + $0x40] sm:$0xff]  ;;  %3199 = vmatprep.subr.bf16.mxu0 %v8425_v44  ;;  %v8552_v51 = vcombine.low %v179_v40, %v183_v41 }
  0x1a   :  { %v47_v47 = vld [vmem:[%s13327_s1 + $0x60] sm:$0xff]  ;;  %3200 = vmatpush1.bf16.msra.mxu0 %v8424_v50 }
  0x1b   :  { %v171_v48 = vld [vmem:[%s13327_s1 + $0x440] sm:$0xff]  ;;  %v8417_v52 = vcombine.high %v43_v46, %v47_v47  ;;  %3242 = vmatprep.subr.bf16.mxu1 %v8553_v45  ;;  %v8416_v0 = vcombine.low %v43_v46, %v47_v47 }
  0x1c   :  { %v175_v49 = vld [vmem:[%s13327_s1 + $0x460] sm:$0xff]  ;;  %3243 = vmatpush1.bf16.msra.mxu1 %v8552_v51 }
  0x1d   :  { %v35_v53 = vld [vmem:[%s13327_s1] sm:$0xff]  ;;  %v8545_v56 = vcombine.high %v171_v48, %v175_v49  ;;  %3201 = vmatprep.subr.bf16.mxu0 %v8417_v52  ;;  %v8544_v1 = vcombine.low %v171_v48, %v175_v49 }
  0x1e   :  { %v9781_v54 = vld [vmem:[%s13328_s0] sm:$0xff]  ;;  %3202 = vmatpush1.bf16.msra.mxu0 %v8416_v0 }
  0x1f   :  { %v9786_v55 = vld [vmem:[%s13328_s0 + $0x20] sm:$0xff]  ;;  %3244 = vmatprep.subr.bf16.mxu1 %v8545_v56 }
  0x20   :  { %v39_v57 = vld [vmem:[%s13327_s1 + $0x20] sm:$0xff]  ;;  %v9793_v58 = vcombine.high %v9781_v54, %v9786_v55  ;;  %3245 = vmatpush1.bf16.msra.mxu1 %v8544_v1 }
  0x21   :  { %v163_v61 = vld [vmem:[%s13327_s1 + $0x400] sm:$0xff]  ;;  %v8409_v2 = vcombine.high %v35_v53, %v39_v57  ;;  %v8408_v8 = vcombine.low %v35_v53, %v39_v57 }
  0x22   :  { %v167_v62 = vld [vmem:[%s13327_s1 + $0x420] sm:$0xff]  ;;  %3221 = vmatprep.mubr.bf16.mxu0 %v9793_v58 }
  0x23   :  { %v8537_v3 = vcombine.high %v163_v61, %v167_v62  ;;  %v155_v4 = vld [vmem:[%s13327_s1 + $0x3c0] sm:$0xff]  ;;  %3203 = vmatprep.subr.bf16.mxu0 %v8409_v2  ;;  %v8536_v9 = vcombine.low %v163_v61, %v167_v62 }
  0x24   :  { %v159_v5 = vld [vmem:[%s13327_s1 + $0x3e0] sm:$0xff]  ;;  %3204 = vmatpush1.bf16.msra.mxu0 %v8408_v8 }
  0x25   :  { %v283_v6 = vld [vmem:[%s13327_s1 + $0x7c0] sm:$0xff]  ;;  %v8529_v10 = vcombine.high %v155_v4, %v159_v5  ;;  %3246 = vmatprep.subr.bf16.mxu1 %v8537_v3  ;;  %v8528_v16 = vcombine.low %v155_v4, %v159_v5 }
  0x26   :  { %v287_v7 = vld [vmem:[%s13327_s1 + $0x7e0] sm:$0xff]  ;;  %3247 = vmatpush1.bf16.msra.mxu1 %v8536_v9 }
  0x27   :  { %v8657_v11 = vcombine.high %v283_v6, %v287_v7  ;;  %v147_v12 = vld [vmem:[%s13327_s1 + $0x380] sm:$0xff]  ;;  %3205 = vmatprep.subr.bf16.mxu0 %v8529_v10  ;;  %v8656_v17 = vcombine.low %v283_v6, %v287_v7 }
  0x28   :  { %v151_v13 = vld [vmem:[%s13327_s1 + $0x3a0] sm:$0xff]  ;;  %3206 = vmatpush2.bf16.msra.mxu0 %v8528_v16 }
  0x29   :  { %v275_v14 = vld [vmem:[%s13327_s1 + $0x780] sm:$0xff]  ;;  %v8521_v18 = vcombine.high %v147_v12, %v151_v13  ;;  %3248 = vmatprep.subr.bf16.mxu1 %v8657_v11  ;;  %v8520_v24 = vcombine.low %v147_v12, %v151_v13 }
  0x2a   :  { %v279_v15 = vld [vmem:[%s13327_s1 + $0x7a0] sm:$0xff]  ;;  %3249 = vmatpush2.bf16.msra.mxu1 %v8656_v17 }
  0x2b   :  { %v8649_v19 = vcombine.high %v275_v14, %v279_v15  ;;  %v139_v20 = vld [vmem:[%s13327_s1 + $0x340] sm:$0xff]  ;;  %3207 = vmatprep.subr.bf16.mxu0 %v8521_v18  ;;  %v8648_v25 = vcombine.low %v275_v14, %v279_v15 }
  0x2c   :  { %v143_v21 = vld [vmem:[%s13327_s1 + $0x360] sm:$0xff]  ;;  %3208 = vmatpush2.bf16.msra.mxu0 %v8520_v24  ;;  %v9949_v24 = vld [vmem:[%s13328_s0 + $0x30] sm:$0xff] }
  0x2d   :  { %v267_v22 = vld [vmem:[%s13327_s1 + $0x740] sm:$0xff]  ;;  %v8513_v26 = vcombine.high %v139_v20, %v143_v21  ;;  %3250 = vmatprep.subr.bf16.mxu1 %v8649_v19  ;;  %v8512_v32 = vcombine.low %v139_v20, %v143_v21  ;;  %v9936_v21 = vcombine.low %v9781_v54, %v9786_v55  ;;  %v9958_v55 = vld [vmem:[%s13328_s0 + $0x18] sm:$0xff] }
  0x2e   :  { %v271_v23 = vld [vmem:[%s13327_s1 + $0x760] sm:$0xff]  ;;  %3251 = vmatpush2.bf16.msra.mxu1 %v8648_v25  ;;  %v9953_v25 = vcombine.low %v9798_v59, %v9803_v60 }
  0x2f   :  { %v8641_v27 = vcombine.high %v267_v22, %v271_v23  ;;  %v131_v28 = vld [vmem:[%s13327_s1 + $0x300] sm:$0xff]  ;;  %3209 = vmatprep.subr.bf16.mxu0 %v8513_v26  ;;  %v8640_v33 = vcombine.low %v267_v22, %v271_v23  ;;  %v9944_v23 = vld [vmem:[%s13328_s0 + $0x10] sm:$0xff]  ;;  %v9963_v26 = vld [vmem:[%s13328_s0 + $0x38] sm:$0xff] }
  0x30   :  { %v135_v29 = vld [vmem:[%s13327_s1 + $0x320] sm:$0xff]  ;;  %3210 = vmatpush2.bf16.msra.mxu0 %v8512_v32 }
  0x31   :  { %v259_v30 = vld [vmem:[%s13327_s1 + $0x700] sm:$0xff]  ;;  %v8505_v34 = vcombine.high %v131_v28, %v135_v29  ;;  %3252 = vmatprep.subr.bf16.mxu1 %v8641_v27  ;;  %v8504_v40 = vcombine.low %v131_v28, %v135_v29 }
  0x32   :  { %v263_v31 = vld [vmem:[%s13327_s1 + $0x720] sm:$0xff]  ;;  %3253 = vmatpush2.bf16.msra.mxu1 %v8640_v33  ;;  %v9984_v33 = vcombine.high %v9958_v55, %v9963_v26 }
  0x33   :  { %v8633_v35 = vcombine.high %v259_v30, %v263_v31  ;;  %v123_v36 = vld [vmem:[%s13327_s1 + $0x2c0] sm:$0xff]  ;;  %3211 = vmatprep.subr.bf16.mxu0 %v8505_v34  ;;  %v8632_v41 = vcombine.low %v259_v30, %v263_v31  ;;  %v9973_v30 = vcombine.high %v9944_v23, %v9949_v24 }
  0x34   :  { %v127_v37 = vld [vmem:[%s13327_s1 + $0x2e0] sm:$0xff]  ;;  %3212 = vmatpush2.bf16.msra.mxu0 %v8504_v40 }
  0x35   :  { %v251_v38 = vld [vmem:[%s13327_s1 + $0x6c0] sm:$0xff]  ;;  %v8497_v42 = vcombine.high %v123_v36, %v127_v37  ;;  %3254 = vmatprep.subr.bf16.mxu1 %v8633_v35  ;;  %v8496_v48 = vcombine.low %v123_v36, %v127_v37 }
  0x36   :  { %v255_v39 = vld [vmem:[%s13327_s1 + $0x6e0] sm:$0xff]  ;;  %3255 = vmatpush2.bf16.msra.mxu1 %v8632_v41 }
  0x37   :  { %v8625_v43 = vcombine.high %v251_v38, %v255_v39  ;;  %v115_v44 = vld [vmem:[%s13327_s1 + $0x280] sm:$0xff]  ;;  %3213 = vmatprep.subr.bf16.mxu0 %v8497_v42  ;;  %v8624_v49 = vcombine.low %v251_v38, %v255_v39 }
  0x38   :  { %v119_v45 = vld [vmem:[%s13327_s1 + $0x2a0] sm:$0xff]  ;;  %3214 = vmatpush2.bf16.msra.mxu0 %v8496_v48 }
  0x39   :  { %v243_v46 = vld [vmem:[%s13327_s1 + $0x680] sm:$0xff]  ;;  %v8489_v50 = vcombine.high %v115_v44, %v119_v45  ;;  %3256 = vmatprep.subr.bf16.mxu1 %v8625_v43  ;;  %v8488_v61 = vcombine.low %v115_v44, %v119_v45 }
  0x3a   :  { %v247_v47 = vld [vmem:[%s13327_s1 + $0x6a0] sm:$0xff]  ;;  %3257 = vmatpush2.bf16.msra.mxu1 %v8624_v49 }
  0x3b   :  { %v8617_v51 = vcombine.high %v243_v46, %v247_v47  ;;  %v107_v52 = vld [vmem:[%s13327_s1 + $0x240] sm:$0xff]  ;;  %3215 = vmatprep.subr.bf16.mxu0 %v8489_v50  ;;  %v8616_v62 = vcombine.low %v243_v46, %v247_v47 }
  0x3c   :  { %v111_v53 = vld [vmem:[%s13327_s1 + $0x260] sm:$0xff]  ;;  %3216 = vmatpush2.bf16.msra.mxu0 %v8488_v61 }
  0x3d   :  { %v235_v56 = vld [vmem:[%s13327_s1 + $0x640] sm:$0xff]  ;;  %v8481_v0 = vcombine.high %v107_v52, %v111_v53  ;;  %3258 = vmatprep.subr.bf16.mxu1 %v8617_v51  ;;  %v8480_v6 = vcombine.low %v107_v52, %v111_v53 }
  0x3e   :  { %v239_v57 = vld [vmem:[%s13327_s1 + $0x660] sm:$0xff]  ;;  %3259 = vmatpush2.bf16.msra.mxu1 %v8616_v62 }
  0x3f   :  { %v8609_v1 = vcombine.high %v235_v56, %v239_v57  ;;  %v99_v2 = vld [vmem:[%s13327_s1 + $0x200] sm:$0xff]  ;;  %3217 = vmatprep.subr.bf16.mxu0 %v8481_v0  ;;  %v8608_v7 = vcombine.low %v235_v56, %v239_v57 }
  0x40   :  { %v103_v3 = vld [vmem:[%s13327_s1 + $0x220] sm:$0xff]  ;;  %3218 = vmatpush2.bf16.msra.mxu0 %v8480_v6 }
  0x41   :  { %v227_v4 = vld [vmem:[%s13327_s1 + $0x600] sm:$0xff]  ;;  %v8473_v8 = vcombine.high %v99_v2, %v103_v3  ;;  %3260 = vmatprep.subr.bf16.mxu1 %v8609_v1  ;;  %v8472_v14 = vcombine.low %v99_v2, %v103_v3 }
  0x42   :  { %v231_v5 = vld [vmem:[%s13327_s1 + $0x620] sm:$0xff]  ;;  %3261 = vmatpush2.bf16.msra.mxu1 %v8608_v7 }
  0x43   :  { %v8601_v9 = vcombine.high %v227_v4, %v231_v5  ;;  %v347_v10 = vld [vmem:[%s13327_s1 + $0x9c0] sm:$0xff]  ;;  %3219 = vmatprep.subr.bf16.mxu0 %v8473_v8  ;;  %v8600_v15 = vcombine.low %v227_v4, %v231_v5 }
  0x44   :  { %v351_v11 = vld [vmem:[%s13327_s1 + $0x9e0] sm:$0xff]  ;;  %3220 = vmatpush2.bf16.msra.mxu0 %v8472_v14 }
  0x45   :  { %v475_v12 = vld [vmem:[%s13327_s1 + $0xdc0] sm:$0xff]  ;;  %v8721_v16 = vcombine.high %v347_v10, %v351_v11  ;;  %3262 = vmatprep.subr.bf16.mxu1 %v8601_v9  ;;  %v8720_v54 = vcombine.low %v347_v10, %v351_v11 }
  0x46   :  { %v479_v13 = vld [vmem:[%s13327_s1 + $0xde0] sm:$0xff]  ;;  %3263 = vmatpush2.bf16.msra.mxu1 %v8600_v15 }
  0x47   :  { %v8849_v17 = vcombine.high %v475_v12, %v479_v13  ;;  %v339_v18 = vld [vmem:[%s13327_s1 + $0x980] sm:$0xff]  ;;  %3275 = vmatprep.subr.bf16.mxu0 %v8721_v16  ;;  %v8848_v27 = vcombine.low %v475_v12, %v479_v13  ;;  %3222 = vmatmul.mubr.bf16.vlgmr.msra.gmra.mxu0 %v9936_v21 }
  0x48   :  { %v343_v19 = vld [vmem:[%s13327_s1 + $0x9a0] sm:$0xff]  ;;  %3276 = vmatpush1.bf16.msra.mxu0 %v8720_v54  ;;  %3307 = vmatprep.mubr.bf16.mxu0 %v9973_v30 }
  0x49   :  { %v467_v20 = vld [vmem:[%s13327_s1 + $0xd80] sm:$0xff]  ;;  %v8713_v28 = vcombine.high %v339_v18, %v343_v19  ;;  %3318 = vmatprep.subr.bf16.mxu1 %v8849_v17  ;;  %3265 = vmatmul.mubr.bf16.vlgmr.msra.gmra.mxu1 %v9953_v25  ;;  %v8712_v34 = vcombine.low %v339_v18, %v343_v19 }
  0x4a   :  { %v471_v22 = vld [vmem:[%s13327_s1 + $0xda0] sm:$0xff]  ;;  %3319 = vmatpush1.bf16.msra.mxu1 %v8848_v27  ;;  %3350 = vmatprep.mubr.bf16.mxu1 %v9984_v33 }
  0x4b   :  { %v8841_v29 = vcombine.high %v467_v20, %v471_v22  ;;  %v331_v59 = vld [vmem:[%s13327_s1 + $0x940] sm:$0xff]  ;;  %3277 = vmatprep.subr.bf16.mxu0 %v8713_v28  ;;  %v8840_v35 = vcombine.low %v467_v20, %v471_v22 }
  0x4c   :  { %v335_v60 = vld [vmem:[%s13327_s1 + $0x960] sm:$0xff]  ;;  %3278 = vmatpush1.bf16.msra.mxu0 %v8712_v34 }
  0x4d   :  { %v459_v31 = vld [vmem:[%s13327_s1 + $0xd40] sm:$0xff]  ;;  %v8705_v36 = vcombine.high %v331_v59, %v335_v60  ;;  %3320 = vmatprep.subr.bf16.mxu1 %v8841_v29  ;;  %v8704_v42 = vcombine.low %v331_v59, %v335_v60 }
  0x4e   :  { %v463_v32 = vld [vmem:[%s13327_s1 + $0xd60] sm:$0xff]  ;;  %3321 = vmatpush1.bf16.msra.mxu1 %v8840_v35 }
  0x4f   :  { %v8833_v37 = vcombine.high %v459_v31, %v463_v32  ;;  %v323_v38 = vld [vmem:[%s13327_s1 + $0x900] sm:$0xff]  ;;  %3279 = vmatprep.subr.bf16.mxu0 %v8705_v36  ;;  %v8832_v43 = vcombine.low %v459_v31, %v463_v32 }
  0x50   :  { %v327_v39 = vld [vmem:[%s13327_s1 + $0x920] sm:$0xff]  ;;  %3280 = vmatpush1.bf16.msra.mxu0 %v8704_v42 }
  0x51   :  { %v451_v40 = vld [vmem:[%s13327_s1 + $0xd00] sm:$0xff]  ;;  %v8697_v44 = vcombine.high %v323_v38, %v327_v39  ;;  %3322 = vmatprep.subr.bf16.mxu1 %v8833_v37  ;;  %v8696_v50 = vcombine.low %v323_v38, %v327_v39 }
  0x52   :  { %v455_v41 = vld [vmem:[%s13327_s1 + $0xd20] sm:$0xff]  ;;  %3323 = vmatpush1.bf16.msra.mxu1 %v8832_v43 }
  0x53   :  { %v8825_v45 = vcombine.high %v451_v40, %v455_v41  ;;  %v315_v46 = vld [vmem:[%s13327_s1 + $0x8c0] sm:$0xff]  ;;  %3281 = vmatprep.subr.bf16.mxu0 %v8697_v44  ;;  %v8824_v51 = vcombine.low %v451_v40, %v455_v41 }
  0x54   :  { %v319_v47 = vld [vmem:[%s13327_s1 + $0x8e0] sm:$0xff]  ;;  %3282 = vmatpush1.bf16.msra.mxu0 %v8696_v50 }
  0x55   :  { %v443_v48 = vld [vmem:[%s13327_s1 + $0xcc0] sm:$0xff]  ;;  %v8689_v52 = vcombine.high %v315_v46, %v319_v47  ;;  %3324 = vmatprep.subr.bf16.mxu1 %v8825_v45  ;;  %v8688_v0 = vcombine.low %v315_v46, %v319_v47 }
  0x56   :  { %v447_v49 = vld [vmem:[%s13327_s1 + $0xce0] sm:$0xff]  ;;  %3325 = vmatpush1.bf16.msra.mxu1 %v8824_v51 }
  0x57   :  { %v8817_v53 = vcombine.high %v443_v48, %v447_v49  ;;  %v307_v56 = vld [vmem:[%s13327_s1 + $0x880] sm:$0xff]  ;;  %3283 = vmatprep.subr.bf16.mxu0 %v8689_v52  ;;  %v8816_v1 = vcombine.low %v443_v48, %v447_v49 }
  0x58   :  { %v311_v57 = vld [vmem:[%s13327_s1 + $0x8a0] sm:$0xff]  ;;  %3284 = vmatpush1.bf16.msra.mxu0 %v8688_v0 }
  0x59   :  { %v435_v61 = vld [vmem:[%s13327_s1 + $0xc80] sm:$0xff]  ;;  %v8681_v2 = vcombine.high %v307_v56, %v311_v57  ;;  %3326 = vmatprep.subr.bf16.mxu1 %v8817_v53  ;;  %v8680_v8 = vcombine.low %v307_v56, %v311_v57 }
  0x5a   :  { %v439_v62 = vld [vmem:[%s13327_s1 + $0xca0] sm:$0xff]  ;;  %3327 = vmatpush1.bf16.msra.mxu1 %v8816_v1 }
  0x5b   :  { %v8809_v3 = vcombine.high %v435_v61, %v439_v62  ;;  %v299_v4 = vld [vmem:[%s13327_s1 + $0x840] sm:$0xff]  ;;  %3285 = vmatprep.subr.bf16.mxu0 %v8681_v2  ;;  %v8808_v9 = vcombine.low %v435_v61, %v439_v62 }
  0x5c   :  { %v303_v5 = vld [vmem:[%s13327_s1 + $0x860] sm:$0xff]  ;;  %3286 = vmatpush1.bf16.msra.mxu0 %v8680_v8 }
  0x5d   :  { %v427_v6 = vld [vmem:[%s13327_s1 + $0xc40] sm:$0xff]  ;;  %v8673_v10 = vcombine.high %v299_v4, %v303_v5  ;;  %3328 = vmatprep.subr.bf16.mxu1 %v8809_v3  ;;  %v8672_v16 = vcombine.low %v299_v4, %v303_v5 }
  0x5e   :  { %v431_v7 = vld [vmem:[%s13327_s1 + $0xc60] sm:$0xff]  ;;  %3329 = vmatpush1.bf16.msra.mxu1 %v8808_v9 }
  0x5f   :  { %v8801_v11 = vcombine.high %v427_v6, %v431_v7  ;;  %v291_v12 = vld [vmem:[%s13327_s1 + $0x800] sm:$0xff]  ;;  %3287 = vmatprep.subr.bf16.mxu0 %v8673_v10  ;;  %v8800_v17 = vcombine.low %v427_v6, %v431_v7 }
  0x60   :  { %v295_v13 = vld [vmem:[%s13327_s1 + $0x820] sm:$0xff]  ;;  %3288 = vmatpush1.bf16.msra.mxu0 %v8672_v16 }
  0x61   :  { %v419_v14 = vld [vmem:[%s13327_s1 + $0xc00] sm:$0xff]  ;;  %v8665_v18 = vcombine.high %v291_v12, %v295_v13  ;;  %3330 = vmatprep.subr.bf16.mxu1 %v8801_v11  ;;  %v8664_v28 = vcombine.low %v291_v12, %v295_v13 }
  0x62   :  { %v423_v15 = vld [vmem:[%s13327_s1 + $0xc20] sm:$0xff]  ;;  %3331 = vmatpush1.bf16.msra.mxu1 %v8800_v17 }
  0x63   :  { %v8793_v19 = vcombine.high %v419_v14, %v423_v15  ;;  %v411_v20 = vld [vmem:[%s13327_s1 + $0xbc0] sm:$0xff]  ;;  %3289 = vmatprep.subr.bf16.mxu0 %v8665_v18  ;;  %v8792_v29 = vcombine.low %v419_v14, %v423_v15 }
  0x64   :  { %v415_v22 = vld [vmem:[%s13327_s1 + $0xbe0] sm:$0xff]  ;;  %3290 = vmatpush1.bf16.msra.mxu0 %v8664_v28 }
  0x65   :  { %v539_v54 = vld [vmem:[%s13327_s1 + $0xfc0] sm:$0xff]  ;;  %v8785_v59 = vcombine.high %v411_v20, %v415_v22  ;;  %3332 = vmatprep.subr.bf16.mxu1 %v8793_v19  ;;  %v8784_v36 = vcombine.low %v411_v20, %v415_v22 }
  0x66   :  { %v543_v27 = vld [vmem:[%s13327_s1 + $0xfe0] sm:$0xff]  ;;  %3333 = vmatpush1.bf16.msra.mxu1 %v8792_v29 }
  0x67   :  { %v8913_v60 = vcombine.high %v539_v54, %v543_v27  ;;  %v403_v31 = vld [vmem:[%s13327_s1 + $0xb80] sm:$0xff]  ;;  %3291 = vmatprep.subr.bf16.mxu0 %v8785_v59  ;;  %v8912_v37 = vcombine.low %v539_v54, %v543_v27 }
  0x68   :  { %v407_v32 = vld [vmem:[%s13327_s1 + $0xba0] sm:$0xff]  ;;  %3292 = vmatpush2.bf16.msra.mxu0 %v8784_v36  ;;  %v220_v36 = vld [vmem:[%s13327_s1 + $0x5c8] sm:$0xff] }
  0x69   :  { %v531_v34 = vld [vmem:[%s13327_s1 + $0xf80] sm:$0xff]  ;;  %v8777_v38 = vcombine.high %v403_v31, %v407_v32  ;;  %3334 = vmatprep.subr.bf16.mxu1 %v8913_v60  ;;  %v8776_v44 = vcombine.low %v403_v31, %v407_v32 }
  0x6a   :  { %v535_v35 = vld [vmem:[%s13327_s1 + $0xfa0] sm:$0xff]  ;;  %3335 = vmatpush2.bf16.msra.mxu1 %v8912_v37  ;;  %v224_v37 = vld [vmem:[%s13327_s1 + $0x5e8] sm:$0xff] }
  0x6b   :  { %v8905_v39 = vcombine.high %v531_v34, %v535_v35  ;;  %v395_v40 = vld [vmem:[%s13327_s1 + $0xb40] sm:$0xff]  ;;  %3293 = vmatprep.subr.bf16.mxu0 %v8777_v38  ;;  %v8904_v45 = vcombine.low %v531_v34, %v535_v35  ;;  %v92_v34 = vld [vmem:[%s13327_s1 + $0x1c8] sm:$0xff] }
  0x6c   :  { %v399_v41 = vld [vmem:[%s13327_s1 + $0xb60] sm:$0xff]  ;;  %3294 = vmatpush2.bf16.msra.mxu0 %v8776_v44  ;;  %v96_v35 = vld [vmem:[%s13327_s1 + $0x1e8] sm:$0xff]  ;;  %v10165_v44 = vcombine.low %v9944_v23, %v9949_v24 }
  0x6d   :  { %v523_v42 = vld [vmem:[%s13327_s1 + $0xf40] sm:$0xff]  ;;  %v8769_v46 = vcombine.high %v395_v40, %v399_v41  ;;  %3336 = vmatprep.subr.bf16.mxu1 %v8905_v39  ;;  %v8768_v52 = vcombine.low %v395_v40, %v399_v41  ;;  %v8467_v40 = vcombine.high %v92_v34, %v96_v35  ;;  %v8595_v41 = vcombine.high %v220_v36, %v224_v37  ;;  %v76_v24 = vld [vmem:[%s13327_s1 + $0x148] sm:$0xff] }
  0x6e   :  { %v527_v43 = vld [vmem:[%s13327_s1 + $0xf60] sm:$0xff]  ;;  %3337 = vmatpush2.bf16.msra.mxu1 %v8904_v45  ;;  %v212_v45 = vld [vmem:[%s13327_s1 + $0x588] sm:$0xff] }
  0x6f   :  { %v8897_v47 = vcombine.high %v523_v42, %v527_v43  ;;  %v387_v48 = vld [vmem:[%s13327_s1 + $0xb00] sm:$0xff]  ;;  %3295 = vmatprep.subr.bf16.mxu0 %v8769_v46  ;;  %v8896_v53 = vcombine.low %v523_v42, %v527_v43  ;;  %v84_v42 = vld [vmem:[%s13327_s1 + $0x188] sm:$0xff] }
  0x70   :  { %v391_v49 = vld [vmem:[%s13327_s1 + $0xb20] sm:$0xff]  ;;  %3296 = vmatpush2.bf16.msra.mxu0 %v8768_v52  ;;  %v88_v43 = vld [vmem:[%s13327_s1 + $0x1a8] sm:$0xff] }
  0x71   :  { %v515_v50 = vld [vmem:[%s13327_s1 + $0xf00] sm:$0xff]  ;;  %v8761_v56 = vcombine.high %v387_v48, %v391_v49  ;;  %3338 = vmatprep.subr.bf16.mxu1 %v8897_v47  ;;  %v8760_v2 = vcombine.low %v387_v48, %v391_v49  ;;  %v216_v46 = vld [vmem:[%s13327_s1 + $0x5a8] sm:$0xff]  ;;  %v10175_v47 = vcombine.low %v9958_v55, %v9963_v26  ;;  %v8466_v48 = vcombine.low %v92_v34, %v96_v35 }
  0x72   :  { %v519_v51 = vld [vmem:[%s13327_s1 + $0xf20] sm:$0xff]  ;;  %3339 = vmatpush2.bf16.msra.mxu1 %v8896_v53  ;;  %v8594_v49 = vcombine.low %v220_v36, %v224_v37  ;;  %v8587_v23 = vcombine.high %v212_v45, %v216_v46  ;;  %v204_v55 = vld [vmem:[%s13327_s1 + $0x548] sm:$0xff]  ;;  %v8458_v52 = vcombine.low %v84_v42, %v88_v43  ;;  %v8586_v53 = vcombine.low %v212_v45, %v216_v46 }
  0x73   :  { %v8889_v57 = vcombine.high %v515_v50, %v519_v51  ;;  %v379_v61 = vld [vmem:[%s13327_s1 + $0xac0] sm:$0xff]  ;;  %3297 = vmatprep.subr.bf16.mxu0 %v8761_v56  ;;  %v8888_v3 = vcombine.low %v515_v50, %v519_v51  ;;  %v8459_v50 = vcombine.high %v84_v42, %v88_v43  ;;  %v80_v51 = vld [vmem:[%s13327_s1 + $0x168] sm:$0xff] }
  0x74   :  { %v383_v62 = vld [vmem:[%s13327_s1 + $0xae0] sm:$0xff]  ;;  %3298 = vmatpush2.bf16.msra.mxu0 %v8760_v2  ;;  %v208_v26 = vld [vmem:[%s13327_s1 + $0x568] sm:$0xff]  ;;  %v8451_v56 = vcombine.high %v76_v24, %v80_v51  ;;  %v8450_v2 = vcombine.low %v76_v24, %v80_v51 }
  0x75   :  { %v507_v0 = vld [vmem:[%s13327_s1 + $0xec0] sm:$0xff]  ;;  %v8753_v4 = vcombine.high %v379_v61, %v383_v62  ;;  %3340 = vmatprep.subr.bf16.mxu1 %v8889_v57  ;;  %v8752_v10 = vcombine.low %v379_v61, %v383_v62  ;;  %v8579_v57 = vcombine.high %v204_v55, %v208_v26  ;;  %v68_v61 = vld [vmem:[%s13327_s1 + $0x108] sm:$0xff] }
  0x76   :  { %v511_v1 = vld [vmem:[%s13327_s1 + $0xee0] sm:$0xff]  ;;  %3341 = vmatpush2.bf16.msra.mxu1 %v8888_v3  ;;  %v72_v62 = vld [vmem:[%s13327_s1 + $0x128] sm:$0xff]  ;;  %v8578_v3 = vcombine.low %v204_v55, %v208_v26 }
  0x77   :  { %v8881_v5 = vcombine.high %v507_v0, %v511_v1  ;;  %v371_v6 = vld [vmem:[%s13327_s1 + $0xa80] sm:$0xff]  ;;  %3299 = vmatprep.subr.bf16.mxu0 %v8753_v4  ;;  %v8880_v11 = vcombine.low %v507_v0, %v511_v1  ;;  %v196_v0 = vld [vmem:[%s13327_s1 + $0x508] sm:$0xff]  ;;  %v8443_v4 = vcombine.high %v68_v61, %v72_v62 }
  0x78   :  { %v375_v7 = vld [vmem:[%s13327_s1 + $0xaa0] sm:$0xff]  ;;  %3300 = vmatpush2.bf16.msra.mxu0 %v8752_v10  ;;  %v200_v1 = vld [vmem:[%s13327_s1 + $0x528] sm:$0xff]  ;;  %v8442_v10 = vcombine.low %v68_v61, %v72_v62 }
  0x79   :  { %v499_v8 = vld [vmem:[%s13327_s1 + $0xe80] sm:$0xff]  ;;  %v8745_v12 = vcombine.high %v371_v6, %v375_v7  ;;  %3342 = vmatprep.subr.bf16.mxu1 %v8881_v5  ;;  %v8744_v18 = vcombine.low %v371_v6, %v375_v7  ;;  %v8571_v5 = vcombine.high %v196_v0, %v200_v1  ;;  %v60_v6 = vld [vmem:[%s13327_s1 + $0xc8] sm:$0xff] }
  0x7a   :  { %v503_v9 = vld [vmem:[%s13327_s1 + $0xea0] sm:$0xff]  ;;  %3343 = vmatpush2.bf16.msra.mxu1 %v8880_v11  ;;  %v64_v7 = vld [vmem:[%s13327_s1 + $0xe8] sm:$0xff]  ;;  %v8570_v11 = vcombine.low %v196_v0, %v200_v1 }
  0x7b   :  { %v8873_v13 = vcombine.high %v499_v8, %v503_v9  ;;  %v363_v14 = vld [vmem:[%s13327_s1 + $0xa40] sm:$0xff]  ;;  %3301 = vmatprep.subr.bf16.mxu0 %v8745_v12  ;;  %v8872_v19 = vcombine.low %v499_v8, %v503_v9  ;;  %v188_v8 = vld [vmem:[%s13327_s1 + $0x4c8] sm:$0xff]  ;;  %v8435_v12 = vcombine.high %v60_v6, %v64_v7 }
  0x7c   :  { %v367_v15 = vld [vmem:[%s13327_s1 + $0xa60] sm:$0xff]  ;;  %3302 = vmatpush2.bf16.msra.mxu0 %v8744_v18  ;;  %v192_v9 = vld [vmem:[%s13327_s1 + $0x4e8] sm:$0xff]  ;;  %v8434_v18 = vcombine.low %v60_v6, %v64_v7 }
  0x7d   :  { %v491_v16 = vld [vmem:[%s13327_s1 + $0xe40] sm:$0xff]  ;;  %v8737_v20 = vcombine.high %v363_v14, %v367_v15  ;;  %3344 = vmatprep.subr.bf16.mxu1 %v8873_v13  ;;  %v8736_v59 = vcombine.low %v363_v14, %v367_v15  ;;  %v8563_v13 = vcombine.high %v188_v8, %v192_v9  ;;  %v52_v14 = vld [vmem:[%s13327_s1 + $0x88] sm:$0xff] }
  0x7e   :  { %v495_v17 = vld [vmem:[%s13327_s1 + $0xe60] sm:$0xff]  ;;  %3345 = vmatpush2.bf16.msra.mxu1 %v8872_v19  ;;  %v56_v15 = vld [vmem:[%s13327_s1 + $0xa8] sm:$0xff]  ;;  %v8562_v19 = vcombine.low %v188_v8, %v192_v9 }
  0x7f   :  { %v8865_v22 = vcombine.high %v491_v16, %v495_v17  ;;  %v355_v54 = vld [vmem:[%s13327_s1 + $0xa00] sm:$0xff]  ;;  %3303 = vmatprep.subr.bf16.mxu0 %v8737_v20  ;;  %v8864_v60 = vcombine.low %v491_v16, %v495_v17  ;;  %v180_v16 = vld [vmem:[%s13327_s1 + $0x488] sm:$0xff]  ;;  %v8427_v20 = vcombine.high %v52_v14, %v56_v15 }
  0x80   :  { %v359_v27 = vld [vmem:[%s13327_s1 + $0xa20] sm:$0xff]  ;;  %3304 = vmatpush2.bf16.msra.mxu0 %v8736_v59  ;;  %v184_v17 = vld [vmem:[%s13327_s1 + $0x4a8] sm:$0xff]  ;;  %v8426_v59 = vcombine.low %v52_v14, %v56_v15 }
  0x81   :  { %v483_v28 = vld [vmem:[%s13327_s1 + $0xe00] sm:$0xff]  ;;  %v8729_v31 = vcombine.high %v355_v54, %v359_v27  ;;  %3346 = vmatprep.subr.bf16.mxu1 %v8865_v22  ;;  %v8728_v38 = vcombine.low %v355_v54, %v359_v27  ;;  %v8555_v22 = vcombine.high %v180_v16, %v184_v17  ;;  %v44_v54 = vld [vmem:[%s13327_s1 + $0x48] sm:$0xff] }
  0x82   :  { %v487_v29 = vld [vmem:[%s13327_s1 + $0xe20] sm:$0xff]  ;;  %3347 = vmatpush2.bf16.msra.mxu1 %v8864_v60  ;;  %v48_v27 = vld [vmem:[%s13327_s1 + $0x68] sm:$0xff]  ;;  %v8554_v60 = vcombine.low %v180_v16, %v184_v17 }
  0x83   :  { %v8857_v32 = vcombine.high %v483_v28, %v487_v29  ;;  %3305 = vmatprep.subr.bf16.mxu0 %v8729_v31  ;;  %v8856_v39 = vcombine.low %v483_v28, %v487_v29  ;;  %v172_v28 = vld [vmem:[%s13327_s1 + $0x448] sm:$0xff]  ;;  %v8419_v31 = vcombine.high %v44_v54, %v48_v27 }
  0x84   :  { %3306 = vmatpush2.bf16.msra.mxu0 %v8728_v38  ;;  %v176_v29 = vld [vmem:[%s13327_s1 + $0x468] sm:$0xff]  ;;  %v8418_v38 = vcombine.low %v44_v54, %v48_v27 }
  0x85   :  { %3348 = vmatprep.subr.bf16.mxu1 %v8857_v32  ;;  %3361 = vmatprep.subr.bf16.mxu0 %v8467_v40  ;;  %v8547_v32 = vcombine.high %v172_v28, %v176_v29  ;;  %v36_v34 = vld [vmem:[%s13327_s1 + $0x8] sm:$0xff] }
  0x86   :  { %3349 = vmatpush2.bf16.msra.mxu1 %v8856_v39  ;;  %v40_v35 = vld [vmem:[%s13327_s1 + $0x28] sm:$0xff]  ;;  %v8546_v39 = vcombine.low %v172_v28, %v176_v29 }
  0x87   :  { %3404 = vmatprep.subr.bf16.mxu1 %v8595_v41  ;;  %3308 = vmatmul.mubr.bf16.vlgmr.msra.gmra.mxu0 %v10165_v44  ;;  %v164_v36 = vld [vmem:[%s13327_s1 + $0x408] sm:$0xff]  ;;  %v8411_v40 = vcombine.high %v36_v34, %v40_v35 }
  0x88   :  { %3362 = vmatpush1.bf16.msra.mxu0 %v8466_v48  ;;  %3393 = vmatprep.mubr.bf16.mxu0 %v9793_v58  ;;  %v168_v37 = vld [vmem:[%s13327_s1 + $0x428] sm:$0xff]  ;;  %v8410_v48 = vcombine.low %v36_v34, %v40_v35 }
  0x89   :  { %3351 = vmatmul.mubr.bf16.vlgmr.msra.gmra.mxu1 %v10175_v47  ;;  %3363 = vmatprep.subr.bf16.mxu0 %v8459_v50  ;;  %v8539_v41 = vcombine.high %v164_v36, %v168_v37  ;;  %v156_v42 = vld [vmem:[%s13327_s1 + $0x3c8] sm:$0xff] }
  0x8a   :  { %3405 = vmatpush1.bf16.msra.mxu1 %v8594_v49  ;;  %3436 = vmatprep.mubr.bf16.mxu1 %v9813_v63  ;;  %v160_v43 = vld [vmem:[%s13327_s1 + $0x3e8] sm:$0xff]  ;;  %v8538_v49 = vcombine.low %v164_v36, %v168_v37 }
  0x8b   :  { %3406 = vmatprep.subr.bf16.mxu1 %v8587_v23  ;;  %v284_v45 = vld [vmem:[%s13327_s1 + $0x7c8] sm:$0xff]  ;;  %v8531_v50 = vcombine.high %v156_v42, %v160_v43 }
  0x8c   :  { %3364 = vmatpush1.bf16.msra.mxu0 %v8458_v52  ;;  %v288_v46 = vld [vmem:[%s13327_s1 + $0x7e8] sm:$0xff]  ;;  %v8530_v52 = vcombine.low %v156_v42, %v160_v43 }
  0x8d   :  { %3365 = vmatprep.subr.bf16.mxu0 %v8451_v56  ;;  %v8659_v23 = vcombine.high %v284_v45, %v288_v46  ;;  %v148_v24 = vld [vmem:[%s13327_s1 + $0x388] sm:$0xff] }
  0x8e   :  { %3407 = vmatpush1.bf16.msra.mxu1 %v8586_v53  ;;  %v152_v51 = vld [vmem:[%s13327_s1 + $0x3a8] sm:$0xff]  ;;  %v8658_v53 = vcombine.low %v284_v45, %v288_v46 }
  0x8f   :  { %3408 = vmatprep.subr.bf16.mxu1 %v8579_v57  ;;  %v276_v55 = vld [vmem:[%s13327_s1 + $0x788] sm:$0xff]  ;;  %v8523_v56 = vcombine.high %v148_v24, %v152_v51 }
  0x90   :  { %3366 = vmatpush1.bf16.msra.mxu0 %v8450_v2  ;;  %v280_v26 = vld [vmem:[%s13327_s1 + $0x7a8] sm:$0xff]  ;;  %v8522_v2 = vcombine.low %v148_v24, %v152_v51 }
  0x91   :  { %3367 = vmatprep.subr.bf16.mxu0 %v8443_v4  ;;  %v8651_v57 = vcombine.high %v276_v55, %v280_v26  ;;  %v140_v61 = vld [vmem:[%s13327_s1 + $0x348] sm:$0xff] }
  0x92   :  { %3409 = vmatpush1.bf16.msra.mxu1 %v8578_v3  ;;  %v144_v62 = vld [vmem:[%s13327_s1 + $0x368] sm:$0xff]  ;;  %v8650_v3 = vcombine.low %v276_v55, %v280_v26 }
  0x93   :  { %3410 = vmatprep.subr.bf16.mxu1 %v8571_v5  ;;  %v268_v0 = vld [vmem:[%s13327_s1 + $0x748] sm:$0xff]  ;;  %v8515_v4 = vcombine.high %v140_v61, %v144_v62 }
  0x94   :  { %3368 = vmatpush1.bf16.msra.mxu0 %v8442_v10  ;;  %v272_v1 = vld [vmem:[%s13327_s1 + $0x768] sm:$0xff]  ;;  %v8514_v10 = vcombine.low %v140_v61, %v144_v62 }
  0x95   :  { %3369 = vmatprep.subr.bf16.mxu0 %v8435_v12  ;;  %v8643_v5 = vcombine.high %v268_v0, %v272_v1  ;;  %v132_v6 = vld [vmem:[%s13327_s1 + $0x308] sm:$0xff] }
  0x96   :  { %3411 = vmatpush1.bf16.msra.mxu1 %v8570_v11  ;;  %v136_v7 = vld [vmem:[%s13327_s1 + $0x328] sm:$0xff]  ;;  %v8642_v11 = vcombine.low %v268_v0, %v272_v1 }
  0x97   :  { %3412 = vmatprep.subr.bf16.mxu1 %v8563_v13  ;;  %v260_v8 = vld [vmem:[%s13327_s1 + $0x708] sm:$0xff]  ;;  %v8507_v12 = vcombine.high %v132_v6, %v136_v7 }
  0x98   :  { %3370 = vmatpush1.bf16.msra.mxu0 %v8434_v18  ;;  %v264_v9 = vld [vmem:[%s13327_s1 + $0x728] sm:$0xff]  ;;  %v8506_v18 = vcombine.low %v132_v6, %v136_v7 }
  0x99   :  { %3371 = vmatprep.subr.bf16.mxu0 %v8427_v20  ;;  %v8635_v13 = vcombine.high %v260_v8, %v264_v9  ;;  %v124_v14 = vld [vmem:[%s13327_s1 + $0x2c8] sm:$0xff] }
  0x9a   :  { %3413 = vmatpush1.bf16.msra.mxu1 %v8562_v19  ;;  %v128_v15 = vld [vmem:[%s13327_s1 + $0x2e8] sm:$0xff]  ;;  %v8634_v19 = vcombine.low %v260_v8, %v264_v9 }
  0x9b   :  { %3414 = vmatprep.subr.bf16.mxu1 %v8555_v22  ;;  %v252_v16 = vld [vmem:[%s13327_s1 + $0x6c8] sm:$0xff]  ;;  %v8499_v20 = vcombine.high %v124_v14, %v128_v15 }
  0x9c   :  { %3372 = vmatpush1.bf16.msra.mxu0 %v8426_v59  ;;  %v256_v17 = vld [vmem:[%s13327_s1 + $0x6e8] sm:$0xff]  ;;  %v8498_v59 = vcombine.low %v124_v14, %v128_v15 }
  0x9d   :  { %3373 = vmatprep.subr.bf16.mxu0 %v8419_v31  ;;  %v8627_v22 = vcombine.high %v252_v16, %v256_v17  ;;  %v116_v54 = vld [vmem:[%s13327_s1 + $0x288] sm:$0xff] }
  0x9e   :  { %3415 = vmatpush1.bf16.msra.mxu1 %v8554_v60  ;;  %v120_v27 = vld [vmem:[%s13327_s1 + $0x2a8] sm:$0xff]  ;;  %v8626_v60 = vcombine.low %v252_v16, %v256_v17 }
  0x9f   :  { %3416 = vmatprep.subr.bf16.mxu1 %v8547_v32  ;;  %v244_v28 = vld [vmem:[%s13327_s1 + $0x688] sm:$0xff]  ;;  %v8491_v31 = vcombine.high %v116_v54, %v120_v27 }
  0xa0   :  { %3374 = vmatpush1.bf16.msra.mxu0 %v8418_v38  ;;  %v248_v29 = vld [vmem:[%s13327_s1 + $0x6a8] sm:$0xff]  ;;  %v8490_v38 = vcombine.low %v116_v54, %v120_v27 }
  0xa1   :  { %3375 = vmatprep.subr.bf16.mxu0 %v8411_v40  ;;  %v8619_v32 = vcombine.high %v244_v28, %v248_v29  ;;  %v108_v34 = vld [vmem:[%s13327_s1 + $0x248] sm:$0xff] }
  0xa2   :  { %3417 = vmatpush1.bf16.msra.mxu1 %v8546_v39  ;;  %v112_v35 = vld [vmem:[%s13327_s1 + $0x268] sm:$0xff]  ;;  %v8618_v39 = vcombine.low %v244_v28, %v248_v29 }
  0xa3   :  { %3418 = vmatprep.subr.bf16.mxu1 %v8539_v41  ;;  %v236_v36 = vld [vmem:[%s13327_s1 + $0x648] sm:$0xff]  ;;  %v8483_v40 = vcombine.high %v108_v34, %v112_v35 }
  0xa4   :  { %3376 = vmatpush1.bf16.msra.mxu0 %v8410_v48  ;;  %v240_v37 = vld [vmem:[%s13327_s1 + $0x668] sm:$0xff]  ;;  %v8482_v48 = vcombine.low %v108_v34, %v112_v35 }
  0xa5   :  { %3377 = vmatprep.subr.bf16.mxu0 %v8531_v50  ;;  %v8611_v41 = vcombine.high %v236_v36, %v240_v37  ;;  %v100_v42 = vld [vmem:[%s13327_s1 + $0x208] sm:$0xff] }
  0xa6   :  { %3419 = vmatpush1.bf16.msra.mxu1 %v8538_v49  ;;  %v104_v43 = vld [vmem:[%s13327_s1 + $0x228] sm:$0xff]  ;;  %v8610_v49 = vcombine.low %v236_v36, %v240_v37 }
  0xa7   :  { %3420 = vmatprep.subr.bf16.mxu1 %v8659_v23  ;;  %v228_v45 = vld [vmem:[%s13327_s1 + $0x608] sm:$0xff]  ;;  %v8475_v50 = vcombine.high %v100_v42, %v104_v43 }
  0xa8   :  { %3378 = vmatpush2.bf16.msra.mxu0 %v8530_v52  ;;  %v232_v46 = vld [vmem:[%s13327_s1 + $0x628] sm:$0xff]  ;;  %v8474_v52 = vcombine.low %v100_v42, %v104_v43 }
  0xa9   :  { %3379 = vmatprep.subr.bf16.mxu0 %v8523_v56  ;;  %v8603_v23 = vcombine.high %v228_v45, %v232_v46  ;;  %v348_v24 = vld [vmem:[%s13327_s1 + $0x9c8] sm:$0xff] }
  0xaa   :  { %3421 = vmatpush2.bf16.msra.mxu1 %v8658_v53  ;;  %v352_v51 = vld [vmem:[%s13327_s1 + $0x9e8] sm:$0xff]  ;;  %v8602_v53 = vcombine.low %v228_v45, %v232_v46 }
  0xab   :  { %3422 = vmatprep.subr.bf16.mxu1 %v8651_v57  ;;  %v476_v55 = vld [vmem:[%s13327_s1 + $0xdc8] sm:$0xff]  ;;  %v8723_v56 = vcombine.high %v348_v24, %v352_v51 }
  0xac   :  { %3380 = vmatpush2.bf16.msra.mxu0 %v8522_v2  ;;  %v480_v26 = vld [vmem:[%s13327_s1 + $0xde8] sm:$0xff]  ;;  %v8722_v2 = vcombine.low %v348_v24, %v352_v51 }
  0xad   :  { %3381 = vmatprep.subr.bf16.mxu0 %v8515_v4  ;;  %v8851_v57 = vcombine.high %v476_v55, %v480_v26  ;;  %v340_v61 = vld [vmem:[%s13327_s1 + $0x988] sm:$0xff] }
  0xae   :  { %3423 = vmatpush2.bf16.msra.mxu1 %v8650_v3  ;;  %v344_v62 = vld [vmem:[%s13327_s1 + $0x9a8] sm:$0xff]  ;;  %v8850_v3 = vcombine.low %v476_v55, %v480_v26 }
  0xaf   :  { %3424 = vmatprep.subr.bf16.mxu1 %v8643_v5  ;;  %v468_v0 = vld [vmem:[%s13327_s1 + $0xd88] sm:$0xff]  ;;  %v8715_v4 = vcombine.high %v340_v61, %v344_v62 }
  0xb0   :  { %3382 = vmatpush2.bf16.msra.mxu0 %v8514_v10  ;;  %v472_v1 = vld [vmem:[%s13327_s1 + $0xda8] sm:$0xff]  ;;  %v8714_v10 = vcombine.low %v340_v61, %v344_v62 }
  0xb1   :  { %3383 = vmatprep.subr.bf16.mxu0 %v8507_v12  ;;  %v8843_v5 = vcombine.high %v468_v0, %v472_v1  ;;  %v332_v6 = vld [vmem:[%s13327_s1 + $0x948] sm:$0xff] }
  0xb2   :  { %3425 = vmatpush2.bf16.msra.mxu1 %v8642_v11  ;;  %v336_v7 = vld [vmem:[%s13327_s1 + $0x968] sm:$0xff]  ;;  %v8842_v11 = vcombine.low %v468_v0, %v472_v1 }
  0xb3   :  { %3426 = vmatprep.subr.bf16.mxu1 %v8635_v13  ;;  %v460_v8 = vld [vmem:[%s13327_s1 + $0xd48] sm:$0xff]  ;;  %v8707_v12 = vcombine.high %v332_v6, %v336_v7 }
  0xb4   :  { %3384 = vmatpush2.bf16.msra.mxu0 %v8506_v18  ;;  %v464_v9 = vld [vmem:[%s13327_s1 + $0xd68] sm:$0xff]  ;;  %v8706_v18 = vcombine.low %v332_v6, %v336_v7 }
  0xb5   :  { %3385 = vmatprep.subr.bf16.mxu0 %v8499_v20  ;;  %v8835_v13 = vcombine.high %v460_v8, %v464_v9  ;;  %v324_v14 = vld [vmem:[%s13327_s1 + $0x908] sm:$0xff] }
  0xb6   :  { %3427 = vmatpush2.bf16.msra.mxu1 %v8634_v19  ;;  %v328_v15 = vld [vmem:[%s13327_s1 + $0x928] sm:$0xff]  ;;  %v8834_v19 = vcombine.low %v460_v8, %v464_v9 }
  0xb7   :  { %3428 = vmatprep.subr.bf16.mxu1 %v8627_v22  ;;  %v452_v16 = vld [vmem:[%s13327_s1 + $0xd08] sm:$0xff]  ;;  %v8699_v20 = vcombine.high %v324_v14, %v328_v15 }
  0xb8   :  { %3386 = vmatpush2.bf16.msra.mxu0 %v8498_v59  ;;  %v456_v17 = vld [vmem:[%s13327_s1 + $0xd28] sm:$0xff]  ;;  %v8698_v59 = vcombine.low %v324_v14, %v328_v15 }
  0xb9   :  { %3387 = vmatprep.subr.bf16.mxu0 %v8491_v31  ;;  %v8827_v22 = vcombine.high %v452_v16, %v456_v17  ;;  %v316_v54 = vld [vmem:[%s13327_s1 + $0x8c8] sm:$0xff] }
  0xba   :  { %3429 = vmatpush2.bf16.msra.mxu1 %v8626_v60  ;;  %v320_v27 = vld [vmem:[%s13327_s1 + $0x8e8] sm:$0xff]  ;;  %v8826_v60 = vcombine.low %v452_v16, %v456_v17 }
  0xbb   :  { %3430 = vmatprep.subr.bf16.mxu1 %v8619_v32  ;;  %v444_v28 = vld [vmem:[%s13327_s1 + $0xcc8] sm:$0xff]  ;;  %v8691_v31 = vcombine.high %v316_v54, %v320_v27 }
  0xbc   :  { %3388 = vmatpush2.bf16.msra.mxu0 %v8490_v38  ;;  %v448_v29 = vld [vmem:[%s13327_s1 + $0xce8] sm:$0xff]  ;;  %v8690_v38 = vcombine.low %v316_v54, %v320_v27 }
  0xbd   :  { %3389 = vmatprep.subr.bf16.mxu0 %v8483_v40  ;;  %v8819_v32 = vcombine.high %v444_v28, %v448_v29  ;;  %v308_v34 = vld [vmem:[%s13327_s1 + $0x888] sm:$0xff] }
  0xbe   :  { %3431 = vmatpush2.bf16.msra.mxu1 %v8618_v39  ;;  %v312_v35 = vld [vmem:[%s13327_s1 + $0x8a8] sm:$0xff]  ;;  %v8818_v39 = vcombine.low %v444_v28, %v448_v29 }
  0xbf   :  { %3432 = vmatprep.subr.bf16.mxu1 %v8611_v41  ;;  %v436_v36 = vld [vmem:[%s13327_s1 + $0xc88] sm:$0xff]  ;;  %v8683_v40 = vcombine.high %v308_v34, %v312_v35 }
  0xc0   :  { %3390 = vmatpush2.bf16.msra.mxu0 %v8482_v48  ;;  %v440_v37 = vld [vmem:[%s13327_s1 + $0xca8] sm:$0xff]  ;;  %v8682_v48 = vcombine.low %v308_v34, %v312_v35 }
  0xc1   :  { %3391 = vmatprep.subr.bf16.mxu0 %v8475_v50  ;;  %v8811_v41 = vcombine.high %v436_v36, %v440_v37  ;;  %v300_v42 = vld [vmem:[%s13327_s1 + $0x848] sm:$0xff] }
  0xc2   :  { %3433 = vmatpush2.bf16.msra.mxu1 %v8610_v49  ;;  %v304_v43 = vld [vmem:[%s13327_s1 + $0x868] sm:$0xff]  ;;  %v8810_v49 = vcombine.low %v436_v36, %v440_v37 }
  0xc3   :  { %3434 = vmatprep.subr.bf16.mxu1 %v8603_v23  ;;  %v428_v45 = vld [vmem:[%s13327_s1 + $0xc48] sm:$0xff]  ;;  %v8675_v50 = vcombine.high %v300_v42, %v304_v43 }
  0xc4   :  { %3392 = vmatpush2.bf16.msra.mxu0 %v8474_v52  ;;  %v432_v46 = vld [vmem:[%s13327_s1 + $0xc68] sm:$0xff]  ;;  %v8674_v52 = vcombine.low %v300_v42, %v304_v43 }
  0xc5   :  { %3447 = vmatprep.subr.bf16.mxu0 %v8723_v56  ;;  %v8803_v23 = vcombine.high %v428_v45, %v432_v46  ;;  %v292_v24 = vld [vmem:[%s13327_s1 + $0x808] sm:$0xff] }
  0xc6   :  { %3435 = vmatpush2.bf16.msra.mxu1 %v8602_v53  ;;  %v296_v51 = vld [vmem:[%s13327_s1 + $0x828] sm:$0xff]  ;;  %v8802_v53 = vcombine.low %v428_v45, %v432_v46 }
  0xc7   :  { %3490 = vmatprep.subr.bf16.mxu1 %v8851_v57  ;;  %3394 = vmatmul.mubr.bf16.vlgmr.msra.gmra.mxu0 %v9936_v21  ;;  %v420_v55 = vld [vmem:[%s13327_s1 + $0xc08] sm:$0xff]  ;;  %v8667_v56 = vcombine.high %v292_v24, %v296_v51 }
  0xc8   :  { %3448 = vmatpush1.bf16.msra.mxu0 %v8722_v2  ;;  %3479 = vmatprep.mubr.bf16.mxu0 %v9973_v30  ;;  %v424_v26 = vld [vmem:[%s13327_s1 + $0xc28] sm:$0xff]  ;;  %v8666_v2 = vcombine.low %v292_v24, %v296_v51 }
  0xc9   :  { %3437 = vmatmul.mubr.bf16.vlgmr.msra.gmra.mxu1 %v9953_v25  ;;  %3449 = vmatprep.subr.bf16.mxu0 %v8715_v4  ;;  %v8795_v57 = vcombine.high %v420_v55, %v424_v26  ;;  %v412_v61 = vld [vmem:[%s13327_s1 + $0xbc8] sm:$0xff] }
  0xca   :  { %3491 = vmatpush1.bf16.msra.mxu1 %v8850_v3  ;;  %3522 = vmatprep.mubr.bf16.mxu1 %v9984_v33  ;;  %v416_v62 = vld [vmem:[%s13327_s1 + $0xbe8] sm:$0xff]  ;;  %v8794_v3 = vcombine.low %v420_v55, %v424_v26 }
  0xcb   :  { %3492 = vmatprep.subr.bf16.mxu1 %v8843_v5  ;;  %v540_v0 = vld [vmem:[%s13327_s1 + $0xfc8] sm:$0xff]  ;;  %v8787_v4 = vcombine.high %v412_v61, %v416_v62 }
  0xcc   :  { %3450 = vmatpush1.bf16.msra.mxu0 %v8714_v10  ;;  %v544_v1 = vld [vmem:[%s13327_s1 + $0xfe8] sm:$0xff]  ;;  %v8786_v10 = vcombine.low %v412_v61, %v416_v62 }
  0xcd   :  { %3451 = vmatprep.subr.bf16.mxu0 %v8707_v12  ;;  %v8915_v5 = vcombine.high %v540_v0, %v544_v1  ;;  %v404_v6 = vld [vmem:[%s13327_s1 + $0xb88] sm:$0xff] }
  0xce   :  { %3493 = vmatpush1.bf16.msra.mxu1 %v8842_v11  ;;  %v408_v7 = vld [vmem:[%s13327_s1 + $0xba8] sm:$0xff]  ;;  %v8914_v11 = vcombine.low %v540_v0, %v544_v1 }
  0xcf   :  { %3494 = vmatprep.subr.bf16.mxu1 %v8835_v13  ;;  %v532_v8 = vld [vmem:[%s13327_s1 + $0xf88] sm:$0xff]  ;;  %v8779_v12 = vcombine.high %v404_v6, %v408_v7 }
  0xd0   :  { %3452 = vmatpush1.bf16.msra.mxu0 %v8706_v18  ;;  %v536_v9 = vld [vmem:[%s13327_s1 + $0xfa8] sm:$0xff]  ;;  %v8778_v18 = vcombine.low %v404_v6, %v408_v7 }
  0xd1   :  { %3453 = vmatprep.subr.bf16.mxu0 %v8699_v20  ;;  %v8907_v13 = vcombine.high %v532_v8, %v536_v9  ;;  %v396_v14 = vld [vmem:[%s13327_s1 + $0xb48] sm:$0xff] }
  0xd2   :  { %3495 = vmatpush1.bf16.msra.mxu1 %v8834_v19  ;;  %v400_v15 = vld [vmem:[%s13327_s1 + $0xb68] sm:$0xff]  ;;  %v8906_v19 = vcombine.low %v532_v8, %v536_v9  ;;  %v93_v8 = vld [vmem:[%s13327_s1 + $0x1d0] sm:$0xff] }
  0xd3   :  { %3496 = vmatprep.subr.bf16.mxu1 %v8827_v22  ;;  %v524_v16 = vld [vmem:[%s13327_s1 + $0xf48] sm:$0xff]  ;;  %v8771_v20 = vcombine.high %v396_v14, %v400_v15  ;;  %v97_v9 = vld [vmem:[%s13327_s1 + $0x1f0] sm:$0xff] }
  0xd4   :  { %3454 = vmatpush1.bf16.msra.mxu0 %v8698_v59  ;;  %v528_v17 = vld [vmem:[%s13327_s1 + $0xf68] sm:$0xff]  ;;  %v8770_v59 = vcombine.low %v396_v14, %v400_v15  ;;  %v10563_v15 = vld [vmem:[%s13329_s2] sm:$0xff] }
  0xd5   :  { %3455 = vmatprep.subr.bf16.mxu0 %v8691_v31  ;;  %v8899_v22 = vcombine.high %v524_v16, %v528_v17  ;;  %v388_v54 = vld [vmem:[%s13327_s1 + $0xb08] sm:$0xff] }
  0xd6   :  { %3497 = vmatpush1.bf16.msra.mxu1 %v8826_v60  ;;  %v392_v27 = vld [vmem:[%s13327_s1 + $0xb28] sm:$0xff]  ;;  %v8898_v60 = vcombine.low %v524_v16, %v528_v17  ;;  %v8469_v16 = vcombine.high %v93_v8, %v97_v9 }
  0xd7   :  { %3498 = vmatprep.subr.bf16.mxu1 %v8819_v32  ;;  %v516_v28 = vld [vmem:[%s13327_s1 + $0xf08] sm:$0xff]  ;;  %v8763_v31 = vcombine.high %v388_v54, %v392_v27 }
  0xd8   :  { %3456 = vmatpush1.bf16.msra.mxu0 %v8690_v38  ;;  %v520_v29 = vld [vmem:[%s13327_s1 + $0xf28] sm:$0xff]  ;;  %v8762_v38 = vcombine.low %v388_v54, %v392_v27  ;;  %v8468_v27 = vcombine.low %v93_v8, %v97_v9  ;;  %v181_v8 = vld [vmem:[%s13327_s1 + $0x490] sm:$0xff] }
  0xd9   :  { %3457 = vmatprep.subr.bf16.mxu0 %v8683_v40  ;;  %v8891_v32 = vcombine.high %v516_v28, %v520_v29  ;;  %v380_v34 = vld [vmem:[%s13327_s1 + $0xac8] sm:$0xff]  ;;  %v185_v9 = vld [vmem:[%s13327_s1 + $0x4b0] sm:$0xff] }
  0xda   :  { %3499 = vmatpush1.bf16.msra.mxu1 %v8818_v39  ;;  %v384_v35 = vld [vmem:[%s13327_s1 + $0xae8] sm:$0xff]  ;;  %v8890_v39 = vcombine.low %v516_v28, %v520_v29 }
  0xdb   :  { %3500 = vmatprep.subr.bf16.mxu1 %v8811_v41  ;;  %v508_v36 = vld [vmem:[%s13327_s1 + $0xec8] sm:$0xff]  ;;  %v8755_v40 = vcombine.high %v380_v34, %v384_v35 }
  0xdc   :  { %3458 = vmatpush1.bf16.msra.mxu0 %v8682_v48  ;;  %v512_v37 = vld [vmem:[%s13327_s1 + $0xee8] sm:$0xff]  ;;  %v8754_v48 = vcombine.low %v380_v34, %v384_v35  ;;  %v205_v34 = vld [vmem:[%s13327_s1 + $0x550] sm:$0xff] }
  0xdd   :  { %3459 = vmatprep.subr.bf16.mxu0 %v8675_v50  ;;  %v8883_v41 = vcombine.high %v508_v36, %v512_v37  ;;  %v372_v42 = vld [vmem:[%s13327_s1 + $0xa88] sm:$0xff]  ;;  %v209_v35 = vld [vmem:[%s13327_s1 + $0x570] sm:$0xff] }
  0xde   :  { %3501 = vmatpush1.bf16.msra.mxu1 %v8810_v49  ;;  %v376_v43 = vld [vmem:[%s13327_s1 + $0xaa8] sm:$0xff]  ;;  %v8882_v49 = vcombine.low %v508_v36, %v512_v37 }
  0xdf   :  { %3502 = vmatprep.subr.bf16.mxu1 %v8803_v23  ;;  %v500_v45 = vld [vmem:[%s13327_s1 + $0xe88] sm:$0xff]  ;;  %v8747_v50 = vcombine.high %v372_v42, %v376_v43 }
  0xe0   :  { %3460 = vmatpush1.bf16.msra.mxu0 %v8674_v52  ;;  %v504_v46 = vld [vmem:[%s13327_s1 + $0xea8] sm:$0xff]  ;;  %v8746_v52 = vcombine.low %v372_v42, %v376_v43 }
  0xe1   :  { %3461 = vmatprep.subr.bf16.mxu0 %v8667_v56  ;;  %v8875_v23 = vcombine.high %v500_v45, %v504_v46  ;;  %v364_v24 = vld [vmem:[%s13327_s1 + $0xa48] sm:$0xff]  ;;  %v8874_v56 = vcombine.low %v500_v45, %v504_v46  ;;  %v8581_v45 = vcombine.high %v205_v34, %v209_v35  ;;  %v69_v46 = vld [vmem:[%s13327_s1 + $0x110] sm:$0xff] }
  0xe2   :  { %3503 = vmatpush1.bf16.msra.mxu1 %v8802_v53  ;;  %v368_v51 = vld [vmem:[%s13327_s1 + $0xa68] sm:$0xff]  ;;  %v549_v53 = vlaneseq }
  0xe3   :  { %3504 = vmatprep.subr.bf16.mxu1 %v8795_v57  ;;  %v492_v55 = vld [vmem:[%s13327_s1 + $0xe48] sm:$0xff]  ;;  %v8739_v57 = vcombine.high %v364_v24, %v368_v51 }
  0xe4   :  { %3462 = vmatpush1.bf16.msra.mxu0 %v8666_v2  ;;  %v496_v26 = vld [vmem:[%s13327_s1 + $0xe68] sm:$0xff] }
  0xe5   :  { %3463 = vmatprep.subr.bf16.mxu0 %v8787_v4  ;;  %v8867_v61 = vcombine.high %v492_v55, %v496_v26  ;;  %v356_v62 = vld [vmem:[%s13327_s1 + $0xa08] sm:$0xff]  ;;  %v10545_v4 = vshrl.u32 %v549_v53, 7 }
  0xe6   :  { %3505 = vmatpush1.bf16.msra.mxu1 %v8794_v3  ;;  %v360_v0 = vld [vmem:[%s13327_s1 + $0xa28] sm:$0xff]  ;;  %v8738_v3 = vcombine.low %v364_v24, %v368_v51 }
  0xe7   :  { %3506 = vmatprep.subr.bf16.mxu1 %v8915_v5  ;;  %v484_v1 = vld [vmem:[%s13327_s1 + $0xe08] sm:$0xff]  ;;  %v8866_v5 = vcombine.low %v492_v55, %v496_v26  ;;  %v8731_v6 = vcombine.high %v356_v62, %v360_v0  ;;  %v8580_v26 = vcombine.low %v205_v34, %v209_v35 }
  0xe8   :  { %3464 = vmatpush2.bf16.msra.mxu0 %v8786_v10  ;;  %v488_v2 = vld [vmem:[%s13327_s1 + $0xe28] sm:$0xff]  ;;  %v221_v10 = vld [vmem:[%s13327_s1 + $0x5d0] sm:$0xff] }
  0xe9   :  { %3465 = vmatprep.subr.bf16.mxu0 %v8779_v12  ;;  %v8859_v7 = vcombine.high %v484_v1, %v488_v2  ;;  %v8730_v12 = vcombine.low %v356_v62, %v360_v0  ;;  %v8858_v14 = vcombine.low %v484_v1, %v488_v2  ;;  %v189_v62 = vld [vmem:[%s13327_s1 + $0x4d0] sm:$0xff] }
  0xea   :  { %3507 = vmatpush2.bf16.msra.mxu1 %v8914_v11  ;;  %v225_v11 = vld [vmem:[%s13327_s1 + $0x5f0] sm:$0xff] }
  0xeb   :  { %3508 = vmatprep.subr.bf16.mxu1 %v8907_v13  ;;  %v551_v13 = vsub.s32 0, %v10545_v4  ;;  %v8597_v17 = vcombine.high %v221_v10, %v225_v11  ;;  %v8596_v28 = vcombine.low %v221_v10, %v225_v11  ;;  %v193_v0 = vld [vmem:[%s13327_s1 + $0x4f0] sm:$0xff] }
  0xec   :  { %3466 = vmatpush2.bf16.msra.mxu0 %v8778_v18  ;;  %v85_v18 = vld [vmem:[%s13327_s1 + $0x190] sm:$0xff]  ;;  %v8564_v11 = vcombine.low %v189_v62, %v193_v0 }
  0xed   :  { %3467 = vmatprep.subr.bf16.mxu0 %v8771_v20  ;;  %v213_v20 = vld [vmem:[%s13327_s1 + $0x590] sm:$0xff]  ;;  %v552_v54 = vrot.slane %v10563_v15, %v551_v13 }
  0xee   :  { %3509 = vmatpush2.bf16.msra.mxu1 %v8906_v19  ;;  %v89_v19 = vld [vmem:[%s13327_s1 + $0x1b0] sm:$0xff] }
  0xef   :  { %3510 = vmatprep.subr.bf16.mxu1 %v8899_v22  ;;  %v217_v22 = vld [vmem:[%s13327_s1 + $0x5b0] sm:$0xff]  ;;  %v8461_v29 = vcombine.high %v85_v18, %v89_v19 }
  0xf0   :  { %3468 = vmatpush2.bf16.msra.mxu0 %v8770_v59  ;;  %v8589_v59 = vcombine.high %v213_v20, %v217_v22 }
  0xf1   :  { %3469 = vmatprep.subr.bf16.mxu0 %v8763_v31  ;;  %v81_v31 = vld [vmem:[%s13327_s1 + $0x170] sm:$0xff] }
  0xf2   :  { %3511 = vmatpush2.bf16.msra.mxu1 %v8898_v60  ;;  %v77_v60 = vld [vmem:[%s13327_s1 + $0x150] sm:$0xff] }
  0xf3   :  { %3512 = vmatprep.subr.bf16.mxu1 %v8891_v32  ;;  %v8452_v51 = vcombine.low %v77_v60, %v81_v31 }
  0xf4   :  { %3470 = vmatpush2.bf16.msra.mxu0 %v8762_v38  ;;  %v8460_v38 = vcombine.low %v85_v18, %v89_v19  ;;  %v173_v18 = vld [vmem:[%s13327_s1 + $0x450] sm:$0xff] }
  0xf5   :  { %3471 = vmatprep.subr.bf16.mxu0 %v8755_v40  ;;  %v8588_v40 = vcombine.low %v213_v20, %v217_v22  ;;  %v177_v19 = vld [vmem:[%s13327_s1 + $0x470] sm:$0xff]  ;;  %v8556_v22 = vcombine.low %v181_v8, %v185_v9 }
  0xf6   :  { %3513 = vmatpush2.bf16.msra.mxu1 %v8890_v39 }
  0xf7   :  { %3514 = vmatprep.subr.bf16.mxu1 %v8883_v41  ;;  %v8453_v41 = vcombine.high %v77_v60, %v81_v31  ;;  %v169_v60 = vld [vmem:[%s13327_s1 + $0x430] sm:$0xff] }
  0xf8   :  { %3472 = vmatpush2.bf16.msra.mxu0 %v8754_v48  ;;  %v73_v48 = vld [vmem:[%s13327_s1 + $0x130] sm:$0xff] }
  0xf9   :  { %3473 = vmatprep.subr.bf16.mxu0 %v8747_v50  ;;  %v197_v50 = vld [vmem:[%s13327_s1 + $0x510] sm:$0xff]  ;;  %v8444_v1 = vcombine.low %v69_v46, %v73_v48 }
  0xfa   :  { %3515 = vmatpush2.bf16.msra.mxu1 %v8882_v49 }
  0xfb   :  { %3516 = vmatprep.subr.bf16.mxu1 %v8875_v23  ;;  %v201_v23 = vld [vmem:[%s13327_s1 + $0x530] sm:$0xff] }
  0xfc   :  { %3474 = vmatpush2.bf16.msra.mxu0 %v8746_v52  ;;  %v8445_v52 = vcombine.high %v69_v46, %v73_v48  ;;  %v8572_v2 = vcombine.low %v197_v50, %v201_v23 }
  0xfd   :  { %3475 = vmatprep.subr.bf16.mxu0 %v8739_v57  ;;  %v61_v57 = vld [vmem:[%s13327_s1 + $0xd0] sm:$0xff] }
  0xfe   :  { %3517 = vmatpush2.bf16.msra.mxu1 %v8874_v56  ;;  %v8573_v56 = vcombine.high %v197_v50, %v201_v23  ;;  %v153_v50 = vld [vmem:[%s13327_s1 + $0x3b0] sm:$0xff] }
  0xff   :  { %3518 = vmatprep.subr.bf16.mxu1 %v8867_v61  ;;  %v65_v61 = vld [vmem:[%s13327_s1 + $0xf0] sm:$0xff] }
 0x100   :  { %3476 = vmatpush2.bf16.msra.mxu0 %v8738_v3  ;;  %v8437_v3 = vcombine.high %v61_v57, %v65_v61  ;;  %v8436_v10 = vcombine.low %v61_v57, %v65_v61  ;;  %v277_v23 = vld [vmem:[%s13327_s1 + $0x790] sm:$0xff] }
 0x101   :  { %3477 = vmatprep.subr.bf16.mxu0 %v8731_v6  ;;  %v53_v6 = vld [vmem:[%s13327_s1 + $0x90] sm:$0xff] }
 0x102   :  { %3519 = vmatpush2.bf16.msra.mxu1 %v8866_v5  ;;  %v8565_v5 = vcombine.high %v189_v62, %v193_v0  ;;  %v145_v57 = vld [vmem:[%s13327_s1 + $0x370] sm:$0xff] }
 0x103   :  { %3520 = vmatprep.subr.bf16.mxu1 %v8859_v7  ;;  %v57_v7 = vld [vmem:[%s13327_s1 + $0xb0] sm:$0xff] }
 0x104   :  { %3478 = vmatpush2.bf16.msra.mxu0 %v8730_v12  ;;  %v8429_v12 = vcombine.high %v53_v6, %v57_v7  ;;  %v8428_v20 = vcombine.low %v53_v6, %v57_v7  ;;  %v269_v61 = vld [vmem:[%s13327_s1 + $0x750] sm:$0xff] }
 0x105   :  { %3533 = vmatprep.subr.bf16.mxu0 %v8469_v16  ;;  %v45_v16 = vld [vmem:[%s13327_s1 + $0x50] sm:$0xff] }
 0x106   :  { %3521 = vmatpush2.bf16.msra.mxu1 %v8858_v14  ;;  %v8557_v14 = vcombine.high %v181_v8, %v185_v9  ;;  %v273_v62 = vld [vmem:[%s13327_s1 + $0x770] sm:$0xff] }
 0x107   :  { %3576 = vmatprep.subr.bf16.mxu1 %v8597_v17  ;;  %v3223_v32 = vpop.f32.mrf.mxu0  ;;  %3480 = vmatmul.mubr.bf16.vlgmr.msra.gmra.mxu0 %v10165_v44  ;;  %v49_v17 = vld [vmem:[%s13327_s1 + $0x70] sm:$0xff] }
 0x108   :  { %v3224_v36 = vadd.f32 %v3223_v32, %v552_v54  ;;  %3534 = vmatpush1.bf16.msra.mxu0 %v8468_v27  ;;  %3565 = vmatprep.mubr.bf16.mxu0 %v9793_v58  ;;  %v8549_v27 = vcombine.high %v173_v18, %v177_v19  ;;  %v8420_v31 = vcombine.low %v45_v16, %v49_v17  ;;  %v137_v6 = vld [vmem:[%s13327_s1 + $0x330] sm:$0xff] }
 0x109   :  { %v3266_v37 = vpop.f32.mrf.mxu1  ;;  %3523 = vmatmul.mubr.bf16.vlgmr.msra.gmra.mxu1 %v10175_v47  ;;  %v10594_v39 = vpop.f32.mrf.mxu0  ;;  %3535 = vmatprep.subr.bf16.mxu0 %v8461_v29  ;;  %v41_v29 = vld [vmem:[%s13327_s1 + $0x30] sm:$0xff]  ;;  %v8548_v32 = vcombine.low %v173_v18, %v177_v19 }
 0x10a   :  { %3577 = vmatpush1.bf16.msra.mxu1 %v8596_v28  ;;  %v10596_v42 = vadd.f32 %v3266_v37, %v3224_v36  ;;  %3608 = vmatprep.mubr.bf16.mxu1 %v9813_v63  ;;  %v37_v28 = vld [vmem:[%s13327_s1 + $0x10] sm:$0xff] }
 0x10b   :  { %v10598_v43 = vpop.f32.mrf.mxu1  ;;  %3578 = vmatprep.subr.bf16.mxu1 %v8589_v59  ;;  %v3227_v49 = vpop.f32.mrf.mxu0  ;;  %v165_v59 = vld [vmem:[%s13327_s1 + $0x410] sm:$0xff]  ;;  %v8413_v34 = vcombine.high %v37_v28, %v41_v29 }
 0x10c   :  { %v3228_v24 = vadd.f32 %v3227_v49, %v552_v54  ;;  %3536 = vmatpush1.bf16.msra.mxu0 %v8460_v38  ;;  %v8421_v54 = vcombine.high %v45_v16, %v49_v17  ;;  %v8541_v35 = vcombine.high %v165_v59, %v169_v60  ;;  %v157_v36 = vld [vmem:[%s13327_s1 + $0x3d0] sm:$0xff] }
 0x10d   :  { %v3270_v55 = vpop.f32.mrf.mxu1  ;;  %3537 = vmatprep.subr.bf16.mxu0 %v8453_v41  ;;  %v161_v37 = vld [vmem:[%s13327_s1 + $0x3f0] sm:$0xff]  ;;  %v8412_v41 = vcombine.low %v37_v28, %v41_v29 }
 0x10e   :  { %3579 = vmatpush1.bf16.msra.mxu1 %v8588_v40  ;;  %v10614_v53 = vadd.f32 %v3270_v55, %v3228_v24  ;;  %v285_v38 = vld [vmem:[%s13327_s1 + $0x7d0] sm:$0xff]  ;;  %v8533_v46 = vcombine.high %v157_v36, %v161_v37 }
 0x10f   :  { %3580 = vmatprep.subr.bf16.mxu1 %v8581_v45  ;;  %v289_v40 = vld [vmem:[%s13327_s1 + $0x7f0] sm:$0xff]  ;;  %v8540_v45 = vcombine.low %v165_v59, %v169_v60 }
 0x110   :  { %3538 = vmatpush1.bf16.msra.mxu0 %v8452_v51  ;;  %v8661_v48 = vcombine.high %v285_v38, %v289_v40  ;;  %v149_v49 = vld [vmem:[%s13327_s1 + $0x390] sm:$0xff]  ;;  %v8532_v51 = vcombine.low %v157_v36, %v161_v37  ;;  %v8660_v55 = vcombine.low %v285_v38, %v289_v40 }
 0x111   :  { %3539 = vmatprep.subr.bf16.mxu0 %v8445_v52  ;;  %v281_v24 = vld [vmem:[%s13327_s1 + $0x7b0] sm:$0xff]  ;;  %v8524_v0 = vcombine.low %v149_v49, %v153_v50 }
 0x112   :  { %3581 = vmatpush1.bf16.msra.mxu1 %v8580_v26  ;;  %v8525_v26 = vcombine.high %v149_v49, %v153_v50  ;;  %v8653_v52 = vcombine.high %v277_v23, %v281_v24  ;;  %v261_v7 = vld [vmem:[%s13327_s1 + $0x710] sm:$0xff] }
 0x113   :  { %3582 = vmatprep.subr.bf16.mxu1 %v8573_v56  ;;  %v141_v56 = vld [vmem:[%s13327_s1 + $0x350] sm:$0xff] }
 0x114   :  { %3540 = vmatpush1.bf16.msra.mxu0 %v8444_v1  ;;  %v8652_v1 = vcombine.low %v277_v23, %v281_v24  ;;  %v265_v8 = vld [vmem:[%s13327_s1 + $0x730] sm:$0xff]  ;;  %v8516_v9 = vcombine.low %v141_v56, %v145_v57 }
 0x115   :  { %3541 = vmatprep.subr.bf16.mxu0 %v8437_v3  ;;  %v8645_v3 = vcombine.high %v269_v61, %v273_v62  ;;  %v129_v16 = vld [vmem:[%s13327_s1 + $0x2f0] sm:$0xff] }
 0x116   :  { %3583 = vmatpush1.bf16.msra.mxu1 %v8572_v2  ;;  %v8517_v2 = vcombine.high %v141_v56, %v145_v57  ;;  %v253_v17 = vld [vmem:[%s13327_s1 + $0x6d0] sm:$0xff] }
 0x117   :  { %3584 = vmatprep.subr.bf16.mxu1 %v8565_v5  ;;  %v133_v5 = vld [vmem:[%s13327_s1 + $0x310] sm:$0xff] }
 0x118   :  { %3542 = vmatpush1.bf16.msra.mxu0 %v8436_v10  ;;  %v8644_v10 = vcombine.low %v269_v61, %v273_v62  ;;  %v257_v18 = vld [vmem:[%s13327_s1 + $0x6f0] sm:$0xff]  ;;  %v8508_v19 = vcombine.low %v133_v5, %v137_v6 }
 0x119   :  { %3543 = vmatprep.subr.bf16.mxu0 %v8429_v12  ;;  %v8637_v12 = vcombine.high %v261_v7, %v265_v8  ;;  %v121_v28 = vld [vmem:[%s13327_s1 + $0x2b0] sm:$0xff] }
 0x11a   :  { %3585 = vmatpush1.bf16.msra.mxu1 %v8564_v11  ;;  %v8509_v11 = vcombine.high %v133_v5, %v137_v6  ;;  %v245_v29 = vld [vmem:[%s13327_s1 + $0x690] sm:$0xff] }
 0x11b   :  { %3586 = vmatprep.subr.bf16.mxu1 %v8557_v14  ;;  %v125_v14 = vld [vmem:[%s13327_s1 + $0x2d0] sm:$0xff] }
 0x11c   :  { %3544 = vmatpush1.bf16.msra.mxu0 %v8428_v20  ;;  %v8636_v20 = vcombine.low %v261_v7, %v265_v8  ;;  %v249_v59 = vld [vmem:[%s13327_s1 + $0x6b0] sm:$0xff]  ;;  %v8500_v60 = vcombine.low %v125_v14, %v129_v16 }
 0x11d   :  { %3545 = vmatprep.subr.bf16.mxu0 %v8421_v54  ;;  %v8629_v54 = vcombine.high %v253_v17, %v257_v18  ;;  %v113_v36 = vld [vmem:[%s13327_s1 + $0x270] sm:$0xff] }
 0x11e   :  { %3587 = vmatpush1.bf16.msra.mxu1 %v8556_v22  ;;  %v8501_v22 = vcombine.high %v125_v14, %v129_v16  ;;  %v237_v37 = vld [vmem:[%s13327_s1 + $0x650] sm:$0xff] }
 0x11f   :  { %3588 = vmatprep.subr.bf16.mxu1 %v8549_v27  ;;  %v117_v27 = vld [vmem:[%s13327_s1 + $0x290] sm:$0xff] }
 0x120   :  { %3546 = vmatpush1.bf16.msra.mxu0 %v8420_v31  ;;  %v8628_v31 = vcombine.low %v253_v17, %v257_v18  ;;  %v241_v38 = vld [vmem:[%s13327_s1 + $0x670] sm:$0xff]  ;;  %v8492_v40 = vcombine.low %v117_v27, %v121_v28 }
 0x121   :  { %3547 = vmatprep.subr.bf16.mxu0 %v8413_v34  ;;  %v8621_v34 = vcombine.high %v245_v29, %v249_v59  ;;  %v105_v49 = vld [vmem:[%s13327_s1 + $0x230] sm:$0xff] }
 0x122   :  { %3589 = vmatpush1.bf16.msra.mxu1 %v8548_v32  ;;  %v8493_v32 = vcombine.high %v117_v27, %v121_v28  ;;  %v229_v50 = vld [vmem:[%s13327_s1 + $0x610] sm:$0xff] }
 0x123   :  { %3590 = vmatprep.subr.bf16.mxu1 %v8541_v35  ;;  %v109_v35 = vld [vmem:[%s13327_s1 + $0x250] sm:$0xff] }
 0x124   :  { %3548 = vmatpush1.bf16.msra.mxu0 %v8412_v41  ;;  %v8620_v41 = vcombine.low %v245_v29, %v249_v59  ;;  %v233_v23 = vld [vmem:[%s13327_s1 + $0x630] sm:$0xff]  ;;  %v8484_v24 = vcombine.low %v109_v35, %v113_v36 }
 0x125   :  { %3549 = vmatprep.subr.bf16.mxu0 %v8533_v46  ;;  %v8613_v46 = vcombine.high %v237_v37, %v241_v38  ;;  %v353_v56 = vld [vmem:[%s13327_s1 + $0x9f0] sm:$0xff] }
 0x126   :  { %3591 = vmatpush1.bf16.msra.mxu1 %v8540_v45  ;;  %v8485_v45 = vcombine.high %v109_v35, %v113_v36  ;;  %v477_v57 = vld [vmem:[%s13327_s1 + $0xdd0] sm:$0xff] }
 0x127   :  { %3592 = vmatprep.subr.bf16.mxu1 %v8661_v48  ;;  %v101_v48 = vld [vmem:[%s13327_s1 + $0x210] sm:$0xff] }
 0x128   :  { %3550 = vmatpush2.bf16.msra.mxu0 %v8532_v51  ;;  %v8612_v51 = vcombine.low %v237_v37, %v241_v38  ;;  %v481_v61 = vld [vmem:[%s13327_s1 + $0xdf0] sm:$0xff]  ;;  %v8476_v62 = vcombine.low %v101_v48, %v105_v49 }
 0x129   :  { %3551 = vmatprep.subr.bf16.mxu0 %v8525_v26  ;;  %v8605_v26 = vcombine.high %v229_v50, %v233_v23  ;;  %v345_v5 = vld [vmem:[%s13327_s1 + $0x9b0] sm:$0xff] }
 0x12a   :  { %3593 = vmatpush2.bf16.msra.mxu1 %v8660_v55  ;;  %v8477_v55 = vcombine.high %v101_v48, %v105_v49  ;;  %v469_v6 = vld [vmem:[%s13327_s1 + $0xd90] sm:$0xff] }
 0x12b   :  { %3594 = vmatprep.subr.bf16.mxu1 %v8653_v52  ;;  %v349_v52 = vld [vmem:[%s13327_s1 + $0x9d0] sm:$0xff] }
 0x12c   :  { %3552 = vmatpush2.bf16.msra.mxu0 %v8524_v0  ;;  %v8604_v0 = vcombine.low %v229_v50, %v233_v23  ;;  %v473_v7 = vld [vmem:[%s13327_s1 + $0xdb0] sm:$0xff]  ;;  %v8724_v8 = vcombine.low %v349_v52, %v353_v56 }
 0x12d   :  { %3553 = vmatprep.subr.bf16.mxu0 %v8517_v2  ;;  %v8853_v2 = vcombine.high %v477_v57, %v481_v61  ;;  %v8845_v14 = vcombine.high %v469_v6, %v473_v7  ;;  %v333_v16 = vld [vmem:[%s13327_s1 + $0x950] sm:$0xff]  ;;  %v8844_v29 = vcombine.low %v469_v6, %v473_v7 }
 0x12e   :  { %3595 = vmatpush2.bf16.msra.mxu1 %v8652_v1  ;;  %v8725_v1 = vcombine.high %v349_v52, %v353_v56  ;;  %v337_v17 = vld [vmem:[%s13327_s1 + $0x970] sm:$0xff] }
 0x12f   :  { %3596 = vmatprep.subr.bf16.mxu1 %v8645_v3  ;;  %v341_v3 = vld [vmem:[%s13327_s1 + $0x990] sm:$0xff]  ;;  %v8709_v59 = vcombine.high %v333_v16, %v337_v17 }
 0x130   :  { %3554 = vmatpush2.bf16.msra.mxu0 %v8516_v9  ;;  %v10784_v9 = vpop.f32.mrf.mxu0  ;;  %v8716_v27 = vcombine.low %v341_v3, %v345_v5  ;;  %v453_v36 = vld [vmem:[%s13327_s1 + $0xd10] sm:$0xff] }
 0x131   :  { %3555 = vmatprep.subr.bf16.mxu0 %v8509_v11  ;;  %v8717_v11 = vcombine.high %v341_v3, %v345_v5  ;;  %v457_v37 = vld [vmem:[%s13327_s1 + $0xd30] sm:$0xff] }
 0x132   :  { %3597 = vmatpush2.bf16.msra.mxu1 %v8644_v10  ;;  %v8852_v10 = vcombine.low %v477_v57, %v481_v61  ;;  %v8829_v49 = vcombine.high %v453_v36, %v457_v37  ;;  %v317_v50 = vld [vmem:[%s13327_s1 + $0x8d0] sm:$0xff]  ;;  %v8828_v52 = vcombine.low %v453_v36, %v457_v37 }
 0x133   :  { %3598 = vmatprep.subr.bf16.mxu1 %v8637_v12  ;;  %v10786_v12 = vpop.f32.mrf.mxu1  ;;  %v321_v23 = vld [vmem:[%s13327_s1 + $0x8f0] sm:$0xff] }
 0x134   :  { %3556 = vmatpush2.bf16.msra.mxu0 %v8508_v19  ;;  %v461_v19 = vld [vmem:[%s13327_s1 + $0xd50] sm:$0xff]  ;;  %v8693_v56 = vcombine.high %v317_v50, %v321_v23  ;;  %v8692_v3 = vcombine.low %v317_v50, %v321_v23 }
 0x135   :  { %3557 = vmatprep.subr.bf16.mxu0 %v8501_v22  ;;  %v545_v36 = vld [vmem:[%s13327_s1 + $0xff0] sm:$0xff] }
 0x136   :  { %3599 = vmatpush2.bf16.msra.mxu1 %v8636_v20  ;;  %v465_v20 = vld [vmem:[%s13327_s1 + $0xd70] sm:$0xff] }
 0x137   :  { %3600 = vmatprep.subr.bf16.mxu1 %v8629_v54 }
 0x138   :  { %3558 = vmatpush2.bf16.msra.mxu0 %v8500_v60 }
 0x139   :  { %3559 = vmatprep.subr.bf16.mxu0 %v8493_v32  ;;  %v8837_v32 = vcombine.high %v461_v19, %v465_v20 }
 0x13a   :  { %3601 = vmatpush2.bf16.msra.mxu1 %v8628_v31 }
 0x13b   :  { %3602 = vmatprep.subr.bf16.mxu1 %v8621_v34  ;;  %v329_v34 = vld [vmem:[%s13327_s1 + $0x930] sm:$0xff] }
 0x13c   :  { %3560 = vmatpush2.bf16.msra.mxu0 %v8492_v40  ;;  %v8708_v40 = vcombine.low %v333_v16, %v337_v17 }
 0x13d   :  { %3561 = vmatprep.subr.bf16.mxu0 %v8485_v45  ;;  %v8836_v45 = vcombine.low %v461_v19, %v465_v20  ;;  %v293_v20 = vld [vmem:[%s13327_s1 + $0x810] sm:$0xff] }
 0x13e   :  { %3603 = vmatpush2.bf16.msra.mxu1 %v8620_v41 }
 0x13f   :  { %3604 = vmatprep.subr.bf16.mxu1 %v8613_v46 }
 0x140   :  { %3562 = vmatpush2.bf16.msra.mxu0 %v8484_v24  ;;  %v449_v24 = vld [vmem:[%s13327_s1 + $0xcf0] sm:$0xff] }
 0x141   :  { %3563 = vmatprep.subr.bf16.mxu0 %v8477_v55 }
 0x142   :  { %3605 = vmatpush2.bf16.msra.mxu1 %v8612_v51 }
 0x143   :  { %3606 = vmatprep.subr.bf16.mxu1 %v8605_v26 }
 0x144   :  { %3564 = vmatpush2.bf16.msra.mxu0 %v8476_v62  ;;  %v309_v62 = vld [vmem:[%s13327_s1 + $0x890] sm:$0xff] }
 0x145   :  { %3619 = vmatprep.subr.bf16.mxu0 %v8725_v1  ;;  %v437_v1 = vld [vmem:[%s13327_s1 + $0xc90] sm:$0xff] }
 0x146   :  { %3607 = vmatpush2.bf16.msra.mxu1 %v8604_v0  ;;  %v313_v0 = vld [vmem:[%s13327_s1 + $0x8b0] sm:$0xff] }
 0x147   :  { %3662 = vmatprep.subr.bf16.mxu1 %v8853_v2  ;;  %v3309_v18 = vpop.f32.mrf.mxu0  ;;  %3566 = vmatmul.mubr.bf16.vlgmr.msra.gmra.mxu0 %v9936_v21  ;;  %v441_v2 = vld [vmem:[%s13327_s1 + $0xcb0] sm:$0xff]  ;;  %v8685_v6 = vcombine.high %v309_v62, %v313_v0  ;;  %v8684_v16 = vcombine.low %v309_v62, %v313_v0 }
 0x148   :  { %v3310_v22 = vadd.f32 %v3309_v18, %v10596_v42  ;;  %3620 = vmatpush1.bf16.msra.mxu0 %v8724_v8  ;;  %v325_v42 = vld [vmem:[%s13327_s1 + $0x910] sm:$0xff]  ;;  %3651 = vmatprep.mubr.bf16.mxu0 %v9973_v30  ;;  %v8813_v7 = vcombine.high %v437_v1, %v441_v2  ;;  %v8812_v17 = vcombine.low %v437_v1, %v441_v2 }
 0x149   :  { %v3352_v54 = vpop.f32.mrf.mxu1  ;;  %3609 = vmatmul.mubr.bf16.vlgmr.msra.gmra.mxu1 %v9953_v25  ;;  %v10803_v28 = vpop.f32.mrf.mxu0  ;;  %3621 = vmatprep.subr.bf16.mxu0 %v8717_v11  ;;  %v8701_v46 = vcombine.high %v325_v42, %v329_v34  ;;  %v8700_v26 = vcombine.low %v325_v42, %v329_v34  ;;  %v301_v8 = vld [vmem:[%s13327_s1 + $0x850] sm:$0xff] }
 0x14a   :  { %3663 = vmatpush1.bf16.msra.mxu1 %v8852_v10  ;;  %v3353_v60 = vadd.f32 %v3352_v54, %v3310_v22  ;;  %3694 = vmatprep.mubr.bf16.mxu1 %v9984_v33  ;;  %v305_v10 = vld [vmem:[%s13327_s1 + $0x870] sm:$0xff] }
 0x14b   :  { %v10805_v31 = vpop.f32.mrf.mxu1  ;;  %3664 = vmatprep.subr.bf16.mxu1 %v8845_v14  ;;  %v3313_v35 = vpop.f32.mrf.mxu0  ;;  %v429_v11 = vld [vmem:[%s13327_s1 + $0xc50] sm:$0xff]  ;;  %v8677_v18 = vcombine.high %v301_v8, %v305_v10 }
 0x14c   :  { %v3314_v38 = vadd.f32 %v3313_v35, %v10614_v53  ;;  %3622 = vmatpush1.bf16.msra.mxu0 %v8716_v27  ;;  %v445_v53 = vld [vmem:[%s13327_s1 + $0xcd0] sm:$0xff]  ;;  %v3877_v51 = vmax.f32 %v3353_v60, 0.0 }
 0x14d   :  { %v3356_v41 = vpop.f32.mrf.mxu1  ;;  %3623 = vmatprep.subr.bf16.mxu0 %v8709_v59  ;;  %v8821_v61 = vcombine.high %v445_v53, %v449_v24  ;;  %v8820_v5 = vcombine.low %v445_v53, %v449_v24  ;;  %v433_v14 = vld [vmem:[%s13327_s1 + $0xc70] sm:$0xff] }
 0x14e   :  { %3665 = vmatpush1.bf16.msra.mxu1 %v8844_v29  ;;  %v3357_v48 = vadd.f32 %v3356_v41, %v3314_v38  ;;  %v8805_v19 = vcombine.high %v429_v11, %v433_v14  ;;  %v297_v22 = vld [vmem:[%s13327_s1 + $0x830] sm:$0xff]  ;;  %v8676_v29 = vcombine.low %v301_v8, %v305_v10  ;;  %v8804_v59 = vcombine.low %v429_v11, %v433_v14 }
 0x14f   :  { %3666 = vmatprep.subr.bf16.mxu1 %v8837_v32  ;;  %v421_v54 = vld [vmem:[%s13327_s1 + $0xc10] sm:$0xff]  ;;  %v8669_v60 = vcombine.high %v293_v20, %v297_v22  ;;  %v8668_v37 = vcombine.low %v293_v20, %v297_v22 }
 0x150   :  { %v3885_v55 = vmax.f32 %v3357_v48, 0.0  ;;  %3624 = vmatpush1.bf16.msra.mxu0 %v8708_v40  ;;  %v425_v27 = vld [vmem:[%s13327_s1 + $0xc30] sm:$0xff] }
 0x151   :  { %3625 = vmatprep.subr.bf16.mxu0 %v8701_v46  ;;  %v8797_v32 = vcombine.high %v421_v54, %v425_v27  ;;  %v413_v42 = vld [vmem:[%s13327_s1 + $0xbd0] sm:$0xff]  ;;  %v8796_v38 = vcombine.low %v421_v54, %v425_v27 }
 0x152   :  { %3667 = vmatpush1.bf16.msra.mxu1 %v8836_v45  ;;  %v10834_v57 = vpack.c.bf16 %v3885_v55, %v3877_v51  ;;  %v417_v34 = vld [vmem:[%s13327_s1 + $0xbf0] sm:$0xff] }
 0x153   :  { %3668 = vmatprep.subr.bf16.mxu1 %v8829_v49  ;;  %v541_v35 = vld [vmem:[%s13327_s1 + $0xfd0] sm:$0xff]  ;;  %v8789_v40 = vcombine.high %v413_v42, %v417_v34  ;;  %v8788_v50 = vcombine.low %v413_v42, %v417_v34 }
 0x154   :  { %3626 = vmatpush1.bf16.msra.mxu0 %v8700_v26  ;;  %v8917_v41 = vcombine.high %v541_v35, %v545_v36  ;;  %v405_v45 = vld [vmem:[%s13327_s1 + $0xb90] sm:$0xff]  ;;  %v8916_v23 = vcombine.low %v541_v35, %v545_v36 }
 0x155   :  { %3627 = vmatprep.subr.bf16.mxu0 %v8693_v56  ;;  %v409_v46 = vld [vmem:[%s13327_s1 + $0xbb0] sm:$0xff] }
 0x156   :  { %3669 = vmatpush1.bf16.msra.mxu1 %v8828_v52  ;;  %v533_v48 = vld [vmem:[%s13327_s1 + $0xf90] sm:$0xff]  ;;  %v8781_v53 = vcombine.high %v405_v45, %v409_v46  ;;  %v8780_v56 = vcombine.low %v405_v45, %v409_v46 }
 0x157   :  { %3670 = vmatprep.subr.bf16.mxu1 %v8821_v61  ;;  %v537_v49 = vld [vmem:[%s13327_s1 + $0xfb0] sm:$0xff] }
 0x158   :  { %3628 = vmatpush1.bf16.msra.mxu0 %v8692_v3  ;;  %v8909_v24 = vcombine.high %v533_v48, %v537_v49  ;;  %v397_v51 = vld [vmem:[%s13327_s1 + $0xb50] sm:$0xff]  ;;  %v8908_v61 = vcombine.low %v533_v48, %v537_v49 }
 0x159   :  { %3629 = vmatprep.subr.bf16.mxu0 %v8685_v6  ;;  %v401_v55 = vld [vmem:[%s13327_s1 + $0xb70] sm:$0xff] }
 0x15a   :  { %3671 = vmatpush1.bf16.msra.mxu1 %v8820_v5  ;;  %v525_v26 = vld [vmem:[%s13327_s1 + $0xf50] sm:$0xff]  ;;  %v8773_v62 = vcombine.high %v397_v51, %v401_v55  ;;  %v8772_v6 = vcombine.low %v397_v51, %v401_v55 }
 0x15b   :  { %3672 = vmatprep.subr.bf16.mxu1 %v8813_v7  ;;  %v529_v52 = vld [vmem:[%s13327_s1 + $0xf70] sm:$0xff] }
 0x15c   :  { %3630 = vmatpush1.bf16.msra.mxu0 %v8684_v16  ;;  %v8901_v0 = vcombine.high %v525_v26, %v529_v52  ;;  %v389_v1 = vld [vmem:[%s13327_s1 + $0xb10] sm:$0xff]  ;;  %v8900_v7 = vcombine.low %v525_v26, %v529_v52  ;;  %v94_v26 = vld [vmem:[%s13327_s1 + $0x1d8] sm:$0xff] }
 0x15d   :  { %3631 = vmatprep.subr.bf16.mxu0 %v8677_v18  ;;  %v393_v2 = vld [vmem:[%s13327_s1 + $0xb30] sm:$0xff]  ;;  %v98_v52 = vld [vmem:[%s13327_s1 + $0x1f8] sm:$0xff] }
 0x15e   :  { %3673 = vmatpush1.bf16.msra.mxu1 %v8812_v17  ;;  %v517_v3 = vld [vmem:[%s13327_s1 + $0xf10] sm:$0xff]  ;;  %v8765_v8 = vcombine.high %v389_v1, %v393_v2  ;;  %v8764_v18 = vcombine.low %v389_v1, %v393_v2  ;;  %v8471_v2 = vcombine.high %v94_v26, %v98_v52 }
 0x15f   :  { %3674 = vmatprep.subr.bf16.mxu1 %v8805_v19  ;;  %v521_v5 = vld [vmem:[%s13327_s1 + $0xf30] sm:$0xff] }
 0x160   :  { %3632 = vmatpush1.bf16.msra.mxu0 %v8676_v29  ;;  %v8893_v10 = vcombine.high %v517_v3, %v521_v5  ;;  %v381_v11 = vld [vmem:[%s13327_s1 + $0xad0] sm:$0xff]  ;;  %v8892_v19 = vcombine.low %v517_v3, %v521_v5  ;;  %v86_v5 = vld [vmem:[%s13327_s1 + $0x198] sm:$0xff] }
 0x161   :  { %3633 = vmatprep.subr.bf16.mxu0 %v8669_v60  ;;  %v385_v14 = vld [vmem:[%s13327_s1 + $0xaf0] sm:$0xff] }
 0x162   :  { %3675 = vmatpush1.bf16.msra.mxu1 %v8804_v59  ;;  %v509_v16 = vld [vmem:[%s13327_s1 + $0xed0] sm:$0xff]  ;;  %v8757_v20 = vcombine.high %v381_v11, %v385_v14  ;;  %v8756_v60 = vcombine.low %v381_v11, %v385_v14  ;;  %v8470_v11 = vcombine.low %v94_v26, %v98_v52  ;;  %v10996_v14 = vpop.f32.mrf.mxu0  ;;  %v194_v26 = vld [vmem:[%s13327_s1 + $0x4f8] sm:$0xff] }
 0x163   :  { %3676 = vmatprep.subr.bf16.mxu1 %v8797_v32  ;;  %v513_v17 = vld [vmem:[%s13327_s1 + $0xef0] sm:$0xff] }
 0x164   :  { %3634 = vmatpush1.bf16.msra.mxu0 %v8668_v37  ;;  %v8885_v22 = vcombine.high %v509_v16, %v513_v17  ;;  %v373_v54 = vld [vmem:[%s13327_s1 + $0xa90] sm:$0xff]  ;;  %v8884_v32 = vcombine.low %v509_v16, %v513_v17 }
 0x165   :  { %3635 = vmatprep.subr.bf16.mxu0 %v8789_v40  ;;  %v377_v27 = vld [vmem:[%s13327_s1 + $0xab0] sm:$0xff] }
 0x166   :  { %3677 = vmatpush1.bf16.msra.mxu1 %v8796_v38  ;;  %v501_v29 = vld [vmem:[%s13327_s1 + $0xe90] sm:$0xff]  ;;  %v8749_v42 = vcombine.high %v373_v54, %v377_v27  ;;  %v8748_v40 = vcombine.low %v373_v54, %v377_v27  ;;  %v206_v54 = vld [vmem:[%s13327_s1 + $0x558] sm:$0xff] }
 0x167   :  { %3678 = vmatprep.subr.bf16.mxu1 %v8917_v41  ;;  %v505_v59 = vld [vmem:[%s13327_s1 + $0xeb0] sm:$0xff]  ;;  %v210_v27 = vld [vmem:[%s13327_s1 + $0x578] sm:$0xff] }
 0x168   :  { %3636 = vmatpush2.bf16.msra.mxu0 %v8788_v50  ;;  %v8877_v34 = vcombine.high %v501_v29, %v505_v59  ;;  %v365_v35 = vld [vmem:[%s13327_s1 + $0xa50] sm:$0xff]  ;;  %v8876_v41 = vcombine.low %v501_v29, %v505_v59 }
 0x169   :  { %3637 = vmatprep.subr.bf16.mxu0 %v8781_v53  ;;  %v369_v36 = vld [vmem:[%s13327_s1 + $0xa70] sm:$0xff] }
 0x16a   :  { %3679 = vmatpush2.bf16.msra.mxu1 %v8916_v23  ;;  %v493_v37 = vld [vmem:[%s13327_s1 + $0xe50] sm:$0xff]  ;;  %v8741_v45 = vcombine.high %v365_v35, %v369_v36  ;;  %v8740_v53 = vcombine.low %v365_v35, %v369_v36 }
 0x16b   :  { %3680 = vmatprep.subr.bf16.mxu1 %v8909_v24  ;;  %v497_v38 = vld [vmem:[%s13327_s1 + $0xe70] sm:$0xff] }
 0x16c   :  { %3638 = vmatpush2.bf16.msra.mxu0 %v8780_v56  ;;  %v8869_v46 = vcombine.high %v493_v37, %v497_v38  ;;  %v357_v48 = vld [vmem:[%s13327_s1 + $0xa10] sm:$0xff]  ;;  %v8868_v24 = vcombine.low %v493_v37, %v497_v38  ;;  %v222_v56 = vld [vmem:[%s13327_s1 + $0x5d8] sm:$0xff]  ;;  %v8583_v37 = vcombine.high %v206_v54, %v210_v27 }
 0x16d   :  { %3639 = vmatprep.subr.bf16.mxu0 %v8773_v62  ;;  %v361_v49 = vld [vmem:[%s13327_s1 + $0xa30] sm:$0xff]  ;;  %v70_v38 = vld [vmem:[%s13327_s1 + $0x118] sm:$0xff] }
 0x16e   :  { %3681 = vmatpush2.bf16.msra.mxu1 %v8908_v61  ;;  %v485_v50 = vld [vmem:[%s13327_s1 + $0xe10] sm:$0xff]  ;;  %v8733_v51 = vcombine.high %v357_v48, %v361_v49  ;;  %v226_v61 = vld [vmem:[%s13327_s1 + $0x5f8] sm:$0xff]  ;;  %v8732_v62 = vcombine.low %v357_v48, %v361_v49 }
 0x16f   :  { %3682 = vmatprep.subr.bf16.mxu1 %v8901_v0  ;;  %v489_v23 = vld [vmem:[%s13327_s1 + $0xe30] sm:$0xff]  ;;  %v559_v0 = vsub.s32 2, %v10545_v4  ;;  %v8599_v3 = vcombine.high %v222_v56, %v226_v61  ;;  %v8598_v16 = vcombine.low %v222_v56, %v226_v61 }
 0x170   :  { %3640 = vmatpush2.bf16.msra.mxu0 %v8772_v6  ;;  %v8861_v55 = vcombine.high %v485_v50, %v489_v23  ;;  %v8860_v1 = vcombine.low %v485_v50, %v489_v23  ;;  %v90_v6 = vld [vmem:[%s13327_s1 + $0x1b8] sm:$0xff]  ;;  %v8582_v23 = vcombine.low %v206_v54, %v210_v27 }
 0x171   :  { %3641 = vmatprep.subr.bf16.mxu0 %v8765_v8  ;;  %v218_v8 = vld [vmem:[%s13327_s1 + $0x5b8] sm:$0xff]  ;;  %v8463_v17 = vcombine.high %v86_v5, %v90_v6 }
 0x172   :  { %3683 = vmatpush2.bf16.msra.mxu1 %v8900_v7  ;;  %v214_v7 = vld [vmem:[%s13327_s1 + $0x598] sm:$0xff] }
 0x173   :  { %3684 = vmatprep.subr.bf16.mxu1 %v8893_v10  ;;  %v560_v10 = vrot.slane %v10563_v15, %v559_v0  ;;  %v38_v27 = vld [vmem:[%s13327_s1 + $0x18] sm:$0xff] }
 0x174   :  { %3642 = vmatpush2.bf16.msra.mxu0 %v8764_v18  ;;  %v10998_v18 = vpop.f32.mrf.mxu1 }
 0x175   :  { %3643 = vmatprep.subr.bf16.mxu0 %v8757_v20  ;;  %v78_v20 = vld [vmem:[%s13327_s1 + $0x158] sm:$0xff] }
 0x176   :  { %3685 = vmatpush2.bf16.msra.mxu1 %v8892_v19  ;;  %v8591_v19 = vcombine.high %v214_v7, %v218_v8 }
 0x177   :  { %3686 = vmatprep.subr.bf16.mxu1 %v8885_v22  ;;  %v82_v22 = vld [vmem:[%s13327_s1 + $0x178] sm:$0xff] }
 0x178   :  { %3644 = vmatpush2.bf16.msra.mxu0 %v8756_v60  ;;  %v8462_v60 = vcombine.low %v86_v5, %v90_v6  ;;  %v8454_v49 = vcombine.low %v78_v20, %v82_v22  ;;  %v186_v5 = vld [vmem:[%s13327_s1 + $0x4b8] sm:$0xff] }
 0x179   :  { %3645 = vmatprep.subr.bf16.mxu0 %v8749_v42  ;;  %v8590_v42 = vcombine.low %v214_v7, %v218_v8 }
 0x17a   :  { %3687 = vmatpush2.bf16.msra.mxu1 %v8884_v32 }
 0x17b   :  { %3688 = vmatprep.subr.bf16.mxu1 %v8877_v34  ;;  %v8455_v34 = vcombine.high %v78_v20, %v82_v22 }
 0x17c   :  { %3646 = vmatpush2.bf16.msra.mxu0 %v8748_v40  ;;  %v74_v40 = vld [vmem:[%s13327_s1 + $0x138] sm:$0xff] }
 0x17d   :  { %3647 = vmatprep.subr.bf16.mxu0 %v8741_v45  ;;  %v198_v45 = vld [vmem:[%s13327_s1 + $0x518] sm:$0xff]  ;;  %v8446_v52 = vcombine.low %v70_v38, %v74_v40 }
 0x17e   :  { %3689 = vmatpush2.bf16.msra.mxu1 %v8876_v41 }
 0x17f   :  { %3690 = vmatprep.subr.bf16.mxu1 %v8869_v46  ;;  %v202_v46 = vld [vmem:[%s13327_s1 + $0x538] sm:$0xff] }
 0x180   :  { %3648 = vmatpush2.bf16.msra.mxu0 %v8740_v53  ;;  %v8447_v53 = vcombine.high %v70_v38, %v74_v40  ;;  %v8574_v56 = vcombine.low %v198_v45, %v202_v46  ;;  %v158_v40 = vld [vmem:[%s13327_s1 + $0x3d8] sm:$0xff] }
 0x181   :  { %3649 = vmatprep.subr.bf16.mxu0 %v8733_v51  ;;  %v62_v51 = vld [vmem:[%s13327_s1 + $0xd8] sm:$0xff] }
 0x182   :  { %3691 = vmatpush2.bf16.msra.mxu1 %v8868_v24  ;;  %v8575_v24 = vcombine.high %v198_v45, %v202_v46  ;;  %v286_v45 = vld [vmem:[%s13327_s1 + $0x7d8] sm:$0xff] }
 0x183   :  { %3692 = vmatprep.subr.bf16.mxu1 %v8861_v55  ;;  %v190_v55 = vld [vmem:[%s13327_s1 + $0x4d8] sm:$0xff] }
 0x184   :  { %3650 = vmatpush2.bf16.msra.mxu0 %v8732_v62  ;;  %v8567_v62 = vcombine.high %v190_v55, %v194_v26  ;;  %v8566_v7 = vcombine.low %v190_v55, %v194_v26  ;;  %v290_v46 = vld [vmem:[%s13327_s1 + $0x7f8] sm:$0xff] }
 0x185   :  { %3705 = vmatprep.subr.bf16.mxu0 %v8471_v2  ;;  %v58_v2 = vld [vmem:[%s13327_s1 + $0xb8] sm:$0xff]  ;;  %v8662_v26 = vcombine.low %v286_v45, %v290_v46 }
 0x186   :  { %3693 = vmatpush2.bf16.msra.mxu1 %v8860_v1  ;;  %v54_v1 = vld [vmem:[%s13327_s1 + $0x98] sm:$0xff] }
 0x187   :  { %3748 = vmatprep.subr.bf16.mxu1 %v8599_v3  ;;  %v3395_v15 = vpop.f32.mrf.mxu0  ;;  %3652 = vmatmul.mubr.bf16.vlgmr.msra.gmra.mxu0 %v10165_v44  ;;  %v182_v3 = vld [vmem:[%s13327_s1 + $0x498] sm:$0xff]  ;;  %v8431_v8 = vcombine.high %v54_v1, %v58_v2  ;;  %v8430_v20 = vcombine.low %v54_v1, %v58_v2 }
 0x188   :  { %v3396_v29 = vadd.f32 %v3395_v15, %v560_v10  ;;  %3706 = vmatpush1.bf16.msra.mxu0 %v8470_v11  ;;  %3737 = vmatprep.mubr.bf16.mxu0 %v9793_v58  ;;  %v46_v11 = vld [vmem:[%s13327_s1 + $0x58] sm:$0xff]  ;;  %v8558_v22 = vcombine.low %v182_v3, %v186_v5 }
 0x189   :  { %v3438_v59 = vpop.f32.mrf.mxu1  ;;  %3695 = vmatmul.mubr.bf16.vlgmr.msra.gmra.mxu1 %v10175_v47  ;;  %v11014_v32 = vpop.f32.mrf.mxu0  ;;  %3707 = vmatprep.subr.bf16.mxu0 %v8463_v17  ;;  %v174_v17 = vld [vmem:[%s13327_s1 + $0x458] sm:$0xff] }
 0x18a   :  { %3749 = vmatpush1.bf16.msra.mxu1 %v8598_v16  ;;  %v11016_v35 = vadd.f32 %v3438_v59, %v3396_v29  ;;  %3780 = vmatprep.mubr.bf16.mxu1 %v9813_v63  ;;  %v66_v63 = vld [vmem:[%s13327_s1 + $0xf8] sm:$0xff] }
 0x18b   :  { %v11018_v36 = vpop.f32.mrf.mxu1  ;;  %3750 = vmatprep.subr.bf16.mxu1 %v8591_v19  ;;  %v3399_v41 = vpop.f32.mrf.mxu0  ;;  %v8439_v61 = vcombine.high %v62_v51, %v66_v63  ;;  %v8438_v6 = vcombine.low %v62_v51, %v66_v63  ;;  %v50_v16 = vld [vmem:[%s13327_s1 + $0x78] sm:$0xff] }
 0x18c   :  { %v3400_v48 = vadd.f32 %v3399_v41, %v560_v10  ;;  %3708 = vmatpush1.bf16.msra.mxu0 %v8462_v60  ;;  %v8559_v10 = vcombine.high %v182_v3, %v186_v5  ;;  %v178_v19 = vld [vmem:[%s13327_s1 + $0x478] sm:$0xff]  ;;  %v8423_v15 = vcombine.high %v46_v11, %v50_v16 }
 0x18d   :  { %v3442_v50 = vpop.f32.mrf.mxu1  ;;  %3709 = vmatprep.subr.bf16.mxu0 %v8455_v34  ;;  %v8551_v54 = vcombine.high %v174_v17, %v178_v19  ;;  %v42_v29 = vld [vmem:[%s13327_s1 + $0x38] sm:$0xff]  ;;  %v8550_v34 = vcombine.low %v174_v17, %v178_v19 }
 0x18e   :  { %3751 = vmatpush1.bf16.msra.mxu1 %v8590_v42  ;;  %v11034_v58 = vadd.f32 %v3442_v50, %v3400_v48  ;;  %v166_v59 = vld [vmem:[%s13327_s1 + $0x418] sm:$0xff]  ;;  %v8422_v42 = vcombine.low %v46_v11, %v50_v16  ;;  %v8414_v48 = vcombine.low %v38_v27, %v42_v29 }
 0x18f   :  { %3752 = vmatprep.subr.bf16.mxu1 %v8583_v37  ;;  %v170_v60 = vld [vmem:[%s13327_s1 + $0x438] sm:$0xff]  ;;  %v8415_v37 = vcombine.high %v38_v27, %v42_v29 }
 0x190   :  { %3710 = vmatpush1.bf16.msra.mxu0 %v8454_v49  ;;  %v8543_v38 = vcombine.high %v166_v59, %v170_v60  ;;  %v162_v41 = vld [vmem:[%s13327_s1 + $0x3f8] sm:$0xff]  ;;  %v8542_v49 = vcombine.low %v166_v59, %v170_v60 }
 0x191   :  { %3711 = vmatprep.subr.bf16.mxu0 %v8447_v53  ;;  %v8535_v50 = vcombine.high %v158_v40, %v162_v41  ;;  %v150_v53 = vld [vmem:[%s13327_s1 + $0x398] sm:$0xff]  ;;  %v8534_v55 = vcombine.low %v158_v40, %v162_v41 }
 0x192   :  { %3753 = vmatpush1.bf16.msra.mxu1 %v8582_v23  ;;  %v8663_v23 = vcombine.high %v286_v45, %v290_v46  ;;  %v278_v51 = vld [vmem:[%s13327_s1 + $0x798] sm:$0xff] }
 0x193   :  { %3754 = vmatprep.subr.bf16.mxu1 %v8575_v24  ;;  %v154_v24 = vld [vmem:[%s13327_s1 + $0x3b8] sm:$0xff] }
 0x194   :  { %3712 = vmatpush1.bf16.msra.mxu0 %v8446_v52  ;;  %v282_v63 = vld [vmem:[%s13327_s1 + $0x7b8] sm:$0xff]  ;;  %v8527_v52 = vcombine.high %v150_v53, %v154_v24  ;;  %v8526_v3 = vcombine.low %v150_v53, %v154_v24 }
 0x195   :  { %3713 = vmatprep.subr.bf16.mxu0 %v8439_v61  ;;  %v142_v61 = vld [vmem:[%s13327_s1 + $0x358] sm:$0xff]  ;;  %v8654_v5 = vcombine.low %v278_v51, %v282_v63 }
 0x196   :  { %3755 = vmatpush1.bf16.msra.mxu1 %v8574_v56  ;;  %v8655_v56 = vcombine.high %v278_v51, %v282_v63  ;;  %v270_v1 = vld [vmem:[%s13327_s1 + $0x758] sm:$0xff] }
 0x197   :  { %3756 = vmatprep.subr.bf16.mxu1 %v8567_v62  ;;  %v146_v62 = vld [vmem:[%s13327_s1 + $0x378] sm:$0xff] }
 0x198   :  { %3714 = vmatpush1.bf16.msra.mxu0 %v8438_v6  ;;  %v274_v2 = vld [vmem:[%s13327_s1 + $0x778] sm:$0xff]  ;;  %v8519_v6 = vcombine.high %v142_v61, %v146_v62  ;;  %v8518_v17 = vcombine.low %v142_v61, %v146_v62 }
 0x199   :  { %3715 = vmatprep.subr.bf16.mxu0 %v8431_v8  ;;  %v134_v8 = vld [vmem:[%s13327_s1 + $0x318] sm:$0xff]  ;;  %v8646_v19 = vcombine.low %v270_v1, %v274_v2 }
 0x19a   :  { %3757 = vmatpush1.bf16.msra.mxu1 %v8566_v7  ;;  %v8647_v7 = vcombine.high %v270_v1, %v274_v2  ;;  %v262_v11 = vld [vmem:[%s13327_s1 + $0x718] sm:$0xff] }
 0x19b   :  { %3758 = vmatprep.subr.bf16.mxu1 %v8559_v10  ;;  %v138_v10 = vld [vmem:[%s13327_s1 + $0x338] sm:$0xff] }
 0x19c   :  { %3716 = vmatpush1.bf16.msra.mxu0 %v8430_v20  ;;  %v266_v16 = vld [vmem:[%s13327_s1 + $0x738] sm:$0xff]  ;;  %v8511_v20 = vcombine.high %v134_v8, %v138_v10  ;;  %v8510_v59 = vcombine.low %v134_v8, %v138_v10 }
 0x19d   :  { %3717 = vmatprep.subr.bf16.mxu0 %v8423_v15  ;;  %v126_v15 = vld [vmem:[%s13327_s1 + $0x2d8] sm:$0xff]  ;;  %v8638_v60 = vcombine.low %v262_v11, %v266_v16 }
 0x19e   :  { %3759 = vmatpush1.bf16.msra.mxu1 %v8558_v22  ;;  %v8639_v22 = vcombine.high %v262_v11, %v266_v16  ;;  %v254_v27 = vld [vmem:[%s13327_s1 + $0x6d8] sm:$0xff] }
 0x19f   :  { %3760 = vmatprep.subr.bf16.mxu1 %v8551_v54  ;;  %v130_v54 = vld [vmem:[%s13327_s1 + $0x2f8] sm:$0xff] }
 0x1a0   :  { %3718 = vmatpush1.bf16.msra.mxu0 %v8422_v42  ;;  %v258_v29 = vld [vmem:[%s13327_s1 + $0x6f8] sm:$0xff]  ;;  %v8503_v42 = vcombine.high %v126_v15, %v130_v54  ;;  %v8502_v45 = vcombine.low %v126_v15, %v130_v54 }
 0x1a1   :  { %3719 = vmatprep.subr.bf16.mxu0 %v8415_v37  ;;  %v118_v37 = vld [vmem:[%s13327_s1 + $0x298] sm:$0xff]  ;;  %v8630_v46 = vcombine.low %v254_v27, %v258_v29 }
 0x1a2   :  { %3761 = vmatpush1.bf16.msra.mxu1 %v8550_v34  ;;  %v8631_v34 = vcombine.high %v254_v27, %v258_v29  ;;  %v246_v40 = vld [vmem:[%s13327_s1 + $0x698] sm:$0xff]  ;;  %v11204_v29 = vpop.f32.mrf.mxu0 }
 0x1a3   :  { %3762 = vmatprep.subr.bf16.mxu1 %v8543_v38  ;;  %v122_v38 = vld [vmem:[%s13327_s1 + $0x2b8] sm:$0xff] }
 0x1a4   :  { %3720 = vmatpush1.bf16.msra.mxu0 %v8414_v48  ;;  %v250_v41 = vld [vmem:[%s13327_s1 + $0x6b8] sm:$0xff]  ;;  %v8495_v48 = vcombine.high %v118_v37, %v122_v38  ;;  %v8494_v51 = vcombine.low %v118_v37, %v122_v38 }
 0x1a5   :  { %3721 = vmatprep.subr.bf16.mxu0 %v8535_v50  ;;  %v110_v50 = vld [vmem:[%s13327_s1 + $0x258] sm:$0xff]  ;;  %v8622_v63 = vcombine.low %v246_v40, %v250_v41 }
 0x1a6   :  { %3763 = vmatpush1.bf16.msra.mxu1 %v8542_v49  ;;  %v8623_v49 = vcombine.high %v246_v40, %v250_v41  ;;  %v238_v53 = vld [vmem:[%s13327_s1 + $0x658] sm:$0xff] }
 0x1a7   :  { %3764 = vmatprep.subr.bf16.mxu1 %v8663_v23  ;;  %v114_v23 = vld [vmem:[%s13327_s1 + $0x278] sm:$0xff] }
 0x1a8   :  { %3722 = vmatpush2.bf16.msra.mxu0 %v8534_v55  ;;  %v242_v24 = vld [vmem:[%s13327_s1 + $0x678] sm:$0xff]  ;;  %v8487_v55 = vcombine.high %v110_v50, %v114_v23  ;;  %v8486_v1 = vcombine.low %v110_v50, %v114_v23 }
 0x1a9   :  { %3723 = vmatprep.subr.bf16.mxu0 %v8527_v52  ;;  %v102_v52 = vld [vmem:[%s13327_s1 + $0x218] sm:$0xff]  ;;  %v8614_v2 = vcombine.low %v238_v53, %v242_v24 }
 0x1aa   :  { %3765 = vmatpush2.bf16.msra.mxu1 %v8662_v26  ;;  %v8615_v26 = vcombine.high %v238_v53, %v242_v24  ;;  %v230_v61 = vld [vmem:[%s13327_s1 + $0x618] sm:$0xff] }
 0x1ab   :  { %3766 = vmatprep.subr.bf16.mxu1 %v8655_v56  ;;  %v106_v56 = vld [vmem:[%s13327_s1 + $0x238] sm:$0xff] }
 0x1ac   :  { %3724 = vmatpush2.bf16.msra.mxu0 %v8526_v3  ;;  %v234_v62 = vld [vmem:[%s13327_s1 + $0x638] sm:$0xff]  ;;  %v8479_v3 = vcombine.high %v102_v52, %v106_v56  ;;  %v8478_v11 = vcombine.low %v102_v52, %v106_v56 }
 0x1ad   :  { %3725 = vmatprep.subr.bf16.mxu0 %v8519_v6  ;;  %v350_v6 = vld [vmem:[%s13327_s1 + $0x9d8] sm:$0xff]  ;;  %v8606_v16 = vcombine.low %v230_v61, %v234_v62 }
 0x1ae   :  { %3767 = vmatpush2.bf16.msra.mxu1 %v8654_v5  ;;  %v8607_v5 = vcombine.high %v230_v61, %v234_v62  ;;  %v478_v8 = vld [vmem:[%s13327_s1 + $0xdd8] sm:$0xff] }
 0x1af   :  { %3768 = vmatprep.subr.bf16.mxu1 %v8647_v7  ;;  %v354_v7 = vld [vmem:[%s13327_s1 + $0x9f8] sm:$0xff] }
 0x1b0   :  { %3726 = vmatpush2.bf16.msra.mxu0 %v8518_v17  ;;  %v482_v10 = vld [vmem:[%s13327_s1 + $0xdf8] sm:$0xff]  ;;  %v8727_v17 = vcombine.high %v350_v6, %v354_v7  ;;  %v8726_v27 = vcombine.low %v350_v6, %v354_v7 }
 0x1b1   :  { %3727 = vmatprep.subr.bf16.mxu0 %v8511_v20  ;;  %v342_v20 = vld [vmem:[%s13327_s1 + $0x998] sm:$0xff] }
 0x1b2   :  { %3769 = vmatpush2.bf16.msra.mxu1 %v8646_v19  ;;  %v8855_v19 = vcombine.high %v478_v8, %v482_v10  ;;  %v470_v15 = vld [vmem:[%s13327_s1 + $0xd98] sm:$0xff] }
 0x1b3   :  { %3770 = vmatprep.subr.bf16.mxu1 %v8639_v22  ;;  %v346_v22 = vld [vmem:[%s13327_s1 + $0x9b8] sm:$0xff] }
 0x1b4   :  { %3728 = vmatpush2.bf16.msra.mxu0 %v8510_v59  ;;  %v474_v54 = vld [vmem:[%s13327_s1 + $0xdb8] sm:$0xff]  ;;  %v8854_v59 = vcombine.low %v478_v8, %v482_v10 }
 0x1b5   :  { %3729 = vmatprep.subr.bf16.mxu0 %v8503_v42  ;;  %v11206_v42 = vpop.f32.mrf.mxu1  ;;  %v334_v37 = vld [vmem:[%s13327_s1 + $0x958] sm:$0xff] }
 0x1b6   :  { %3771 = vmatpush2.bf16.msra.mxu1 %v8638_v60  ;;  %v8719_v60 = vcombine.high %v342_v20, %v346_v22  ;;  %v338_v38 = vld [vmem:[%s13327_s1 + $0x978] sm:$0xff] }
 0x1b7   :  { %3772 = vmatprep.subr.bf16.mxu1 %v8631_v34  ;;  %v8847_v34 = vcombine.high %v470_v15, %v474_v54  ;;  %v462_v41 = vld [vmem:[%s13327_s1 + $0xd58] sm:$0xff]  ;;  %v8711_v23 = vcombine.high %v334_v37, %v338_v38  ;;  %v8710_v56 = vcombine.low %v334_v37, %v338_v38 }
 0x1b8   :  { %3730 = vmatpush2.bf16.msra.mxu0 %v8502_v45  ;;  %v466_v45 = vld [vmem:[%s13327_s1 + $0xd78] sm:$0xff] }
 0x1b9   :  { %3731 = vmatprep.subr.bf16.mxu0 %v8495_v48  ;;  %v8838_v62 = vcombine.low %v462_v41, %v466_v45  ;;  %v306_v37 = vld [vmem:[%s13327_s1 + $0x878] sm:$0xff] }
 0x1ba   :  { %3773 = vmatpush2.bf16.msra.mxu1 %v8630_v46  ;;  %v430_v38 = vld [vmem:[%s13327_s1 + $0xc58] sm:$0xff] }
 0x1bb   :  { %3774 = vmatprep.subr.bf16.mxu1 %v8623_v49  ;;  %v8718_v49 = vcombine.low %v342_v20, %v346_v22  ;;  %v314_v20 = vld [vmem:[%s13327_s1 + $0x8b8] sm:$0xff] }
 0x1bc   :  { %3732 = vmatpush2.bf16.msra.mxu0 %v8494_v51  ;;  %v8839_v51 = vcombine.high %v462_v41, %v466_v45  ;;  %v438_v22 = vld [vmem:[%s13327_s1 + $0xc98] sm:$0xff] }
 0x1bd   :  { %3733 = vmatprep.subr.bf16.mxu0 %v8487_v55  ;;  %v454_v55 = vld [vmem:[%s13327_s1 + $0xd18] sm:$0xff] }
 0x1be   :  { %3775 = vmatpush2.bf16.msra.mxu1 %v8622_v63 }
 0x1bf   :  { %3776 = vmatprep.subr.bf16.mxu1 %v8615_v26  ;;  %v458_v26 = vld [vmem:[%s13327_s1 + $0xd38] sm:$0xff] }
 0x1c0   :  { %3734 = vmatpush2.bf16.msra.mxu0 %v8486_v1  ;;  %v8830_v10 = vcombine.low %v454_v55, %v458_v26 }
 0x1c1   :  { %3735 = vmatprep.subr.bf16.mxu0 %v8479_v3  ;;  %v318_v3 = vld [vmem:[%s13327_s1 + $0x8d8] sm:$0xff] }
 0x1c2   :  { %3777 = vmatpush2.bf16.msra.mxu1 %v8614_v2  ;;  %v8831_v2 = vcombine.high %v454_v55, %v458_v26  ;;  %v414_v55 = vld [vmem:[%s13327_s1 + $0xbd8] sm:$0xff] }
 0x1c3   :  { %3778 = vmatprep.subr.bf16.mxu1 %v8607_v5  ;;  %v450_v5 = vld [vmem:[%s13327_s1 + $0xcf8] sm:$0xff] }
 0x1c4   :  { %3736 = vmatpush2.bf16.msra.mxu0 %v8478_v11  ;;  %v418_v26 = vld [vmem:[%s13327_s1 + $0xbf8] sm:$0xff] }
 0x1c5   :  { %3791 = vmatprep.subr.bf16.mxu0 %v8727_v17 }
 0x1c6   :  { %3779 = vmatpush2.bf16.msra.mxu1 %v8606_v16 }
 0x1c7   :  { %3834 = vmatprep.subr.bf16.mxu1 %v8855_v19  ;;  %v3481_v40 = vpop.f32.mrf.mxu0  ;;  %3738 = vmatmul.mubr.bf16.vlgmr.msra.gmra.mxu0 %v9936_v21  ;;  %v8846_v21 = vcombine.low %v470_v15, %v474_v54  ;;  %v310_v19 = vld [vmem:[%s13327_s1 + $0x898] sm:$0xff] }
 0x1c8   :  { %v3482_v46 = vadd.f32 %v3481_v40, %v11016_v35  ;;  %3792 = vmatpush1.bf16.msra.mxu0 %v8726_v27  ;;  %v326_v35 = vld [vmem:[%s13327_s1 + $0x918] sm:$0xff]  ;;  %3823 = vmatprep.mubr.bf16.mxu0 %v9973_v30  ;;  %v8686_v41 = vcombine.low %v310_v19, %v314_v20 }
 0x1c9   :  { %v3524_v48 = vpop.f32.mrf.mxu1  ;;  %3781 = vmatmul.mubr.bf16.vlgmr.msra.gmra.mxu1 %v9953_v25  ;;  %v11223_v50 = vpop.f32.mrf.mxu0  ;;  %3793 = vmatprep.subr.bf16.mxu0 %v8719_v60  ;;  %v330_v25 = vld [vmem:[%s13327_s1 + $0x938] sm:$0xff] }
 0x1ca   :  { %3835 = vmatpush1.bf16.msra.mxu1 %v8854_v59  ;;  %v3525_v53 = vadd.f32 %v3524_v48, %v3482_v46  ;;  %3866 = vmatprep.mubr.bf16.mxu1 %v9984_v33  ;;  %v8703_v30 = vcombine.high %v326_v35, %v330_v25  ;;  %v322_v33 = vld [vmem:[%s13327_s1 + $0x8f8] sm:$0xff]  ;;  %v8702_v8 = vcombine.low %v326_v35, %v330_v25 }
 0x1cb   :  { %v11225_v24 = vpop.f32.mrf.mxu1  ;;  %3836 = vmatprep.subr.bf16.mxu1 %v8847_v34  ;;  %v3485_v63 = vpop.f32.mrf.mxu0  ;;  %v8695_v11 = vcombine.high %v318_v3, %v322_v33  ;;  %v442_v15 = vld [vmem:[%s13327_s1 + $0xcb8] sm:$0xff]  ;;  %v8694_v54 = vcombine.low %v318_v3, %v322_v33  ;;  %v8687_v59 = vcombine.high %v310_v19, %v314_v20 }
 0x1cc   :  { %v3486_v52 = vadd.f32 %v3485_v63, %v11034_v58  ;;  %3794 = vmatpush1.bf16.msra.mxu0 %v8718_v49  ;;  %v446_v58 = vld [vmem:[%s13327_s1 + $0xcd8] sm:$0xff]  ;;  %v3879_v6 = vmax.f32 %v3525_v53, 0.0  ;;  %v8815_v60 = vcombine.high %v438_v22, %v442_v15  ;;  %v8814_v45 = vcombine.low %v438_v22, %v442_v15 }
 0x1cd   :  { %v3528_v61 = vpop.f32.mrf.mxu1  ;;  %3795 = vmatprep.subr.bf16.mxu0 %v8711_v23  ;;  %v8823_v17 = vcombine.high %v446_v58, %v450_v5  ;;  %v8822_v27 = vcombine.low %v446_v58, %v450_v5  ;;  %v302_v34 = vld [vmem:[%s13327_s1 + $0x858] sm:$0xff]  ;;  %v8790_v5 = vcombine.low %v414_v55, %v418_v26 }
 0x1ce   :  { %3837 = vmatpush1.bf16.msra.mxu1 %v8846_v21  ;;  %v3529_v1 = vadd.f32 %v3528_v61, %v3486_v52  ;;  %v434_v40 = vld [vmem:[%s13327_s1 + $0xc78] sm:$0xff]  ;;  %v8679_v46 = vcombine.high %v302_v34, %v306_v37 }
 0x1cf   :  { %3838 = vmatprep.subr.bf16.mxu1 %v8839_v51  ;;  %v8807_v48 = vcombine.high %v430_v38, %v434_v40  ;;  %v294_v49 = vld [vmem:[%s13327_s1 + $0x818] sm:$0xff]  ;;  %v8678_v51 = vcombine.low %v302_v34, %v306_v37  ;;  %v8806_v35 = vcombine.low %v430_v38, %v434_v40 }
 0x1d0   :  { %v3887_v7 = vmax.f32 %v3529_v1, 0.0  ;;  %3796 = vmatpush1.bf16.msra.mxu0 %v8710_v56  ;;  %v298_v21 = vld [vmem:[%s13327_s1 + $0x838] sm:$0xff] }
 0x1d1   :  { %3797 = vmatprep.subr.bf16.mxu0 %v8703_v30  ;;  %v422_v23 = vld [vmem:[%s13327_s1 + $0xc18] sm:$0xff]  ;;  %v8671_v25 = vcombine.high %v294_v49, %v298_v21  ;;  %v8670_v61 = vcombine.low %v294_v49, %v298_v21  ;;  %v8791_v30 = vcombine.high %v414_v55, %v418_v26  ;;  %v11363_v26 = vld [vmem:[%s13329_s2] sm:$0xff] }
 0x1d2   :  { %3839 = vmatpush1.bf16.msra.mxu1 %v8838_v62  ;;  %v11254_v16 = vpack.c.bf16 %v3887_v7, %v3879_v6  ;;  %v426_v53 = vld [vmem:[%s13327_s1 + $0xc38] sm:$0xff] }
 0x1d3   :  { %3840 = vmatprep.subr.bf16.mxu1 %v8831_v2  ;;  %v8799_v63 = vcombine.high %v422_v23, %v426_v53  ;;  %v542_v52 = vld [vmem:[%s13327_s1 + $0xfd8] sm:$0xff]  ;;  %v8798_v62 = vcombine.low %v422_v23, %v426_v53  ;;  %v563_v23 = vsub.s32 3, %v10545_v4 }
 0x1d4   :  { %3798 = vmatpush1.bf16.msra.mxu0 %v8702_v8  ;;  %v546_v56 = vld [vmem:[%s13327_s1 + $0xff8] sm:$0xff] }
 0x1d5   :  { %3799 = vmatprep.subr.bf16.mxu0 %v8695_v11  ;;  %v8919_v1 = vcombine.high %v542_v52, %v546_v56  ;;  %v406_v2 = vld [vmem:[%s13327_s1 + $0xb98] sm:$0xff]  ;;  %v8918_v6 = vcombine.low %v542_v52, %v546_v56 }
 0x1d6   :  { %3841 = vmatpush1.bf16.msra.mxu1 %v8830_v10  ;;  %v410_v3 = vld [vmem:[%s13327_s1 + $0xbb8] sm:$0xff] }
 0x1d7   :  { %3842 = vmatprep.subr.bf16.mxu1 %v8823_v17  ;;  %v534_v33 = vld [vmem:[%s13327_s1 + $0xf98] sm:$0xff]  ;;  %v8783_v7 = vcombine.high %v406_v2, %v410_v3  ;;  %v8782_v20 = vcombine.low %v406_v2, %v410_v3 }
 0x1d8   :  { %3800 = vmatpush1.bf16.msra.mxu0 %v8694_v54  ;;  %v538_v58 = vld [vmem:[%s13327_s1 + $0xfb8] sm:$0xff] }
 0x1d9   :  { %3801 = vmatprep.subr.bf16.mxu0 %v8687_v59  ;;  %v8911_v8 = vcombine.high %v534_v33, %v538_v58  ;;  %v398_v10 = vld [vmem:[%s13327_s1 + $0xb58] sm:$0xff]  ;;  %v8910_v22 = vcombine.low %v534_v33, %v538_v58 }
 0x1da   :  { %3843 = vmatpush1.bf16.msra.mxu1 %v8822_v27  ;;  %v402_v11 = vld [vmem:[%s13327_s1 + $0xb78] sm:$0xff] }
 0x1db   :  { %3844 = vmatprep.subr.bf16.mxu1 %v8815_v60  ;;  %v526_v17 = vld [vmem:[%s13327_s1 + $0xf58] sm:$0xff]  ;;  %v8775_v15 = vcombine.high %v398_v10, %v402_v11  ;;  %v8774_v37 = vcombine.low %v398_v10, %v402_v11 }
 0x1dc   :  { %3802 = vmatpush1.bf16.msra.mxu0 %v8686_v41  ;;  %v530_v19 = vld [vmem:[%s13327_s1 + $0xf78] sm:$0xff] }
 0x1dd   :  { %3803 = vmatprep.subr.bf16.mxu0 %v8679_v46  ;;  %v8903_v54 = vcombine.high %v526_v17, %v530_v19  ;;  %v390_v27 = vld [vmem:[%s13327_s1 + $0xb18] sm:$0xff]  ;;  %v8902_v38 = vcombine.low %v526_v17, %v530_v19  ;;  %v3487_v17 = vpop.f32.mrf.mxu0 }
 0x1de   :  { %3845 = vmatpush1.bf16.msra.mxu1 %v8814_v45  ;;  %v394_v59 = vld [vmem:[%s13327_s1 + $0xb38] sm:$0xff] }
 0x1df   :  { %3846 = vmatprep.subr.bf16.mxu1 %v8807_v48  ;;  %v518_v60 = vld [vmem:[%s13327_s1 + $0xf18] sm:$0xff]  ;;  %v8767_v40 = vcombine.high %v390_v27, %v394_v59  ;;  %v555_v48 = vsub.s32 1, %v10545_v4  ;;  %v8766_v53 = vcombine.low %v390_v27, %v394_v59 }
 0x1e0   :  { %3804 = vmatpush1.bf16.msra.mxu0 %v8678_v51  ;;  %v522_v34 = vld [vmem:[%s13327_s1 + $0xf38] sm:$0xff] }
 0x1e1   :  { %3805 = vmatprep.subr.bf16.mxu0 %v8671_v25  ;;  %v8895_v41 = vcombine.high %v518_v60, %v522_v34  ;;  %v382_v45 = vld [vmem:[%s13327_s1 + $0xad8] sm:$0xff]  ;;  %v8894_v51 = vcombine.low %v518_v60, %v522_v34  ;;  %v556_v52 = vrot.slane %v11363_v26, %v555_v48 }
 0x1e2   :  { %3847 = vmatpush1.bf16.msra.mxu1 %v8806_v35  ;;  %v386_v46 = vld [vmem:[%s13327_s1 + $0xaf8] sm:$0xff] }
 0x1e3   :  { %3848 = vmatprep.subr.bf16.mxu1 %v8799_v63  ;;  %v510_v49 = vld [vmem:[%s13327_s1 + $0xed8] sm:$0xff]  ;;  %v8759_v35 = vcombine.high %v382_v45, %v386_v46 }
 0x1e4   :  { %3806 = vmatpush1.bf16.msra.mxu0 %v8670_v61  ;;  %v514_v21 = vld [vmem:[%s13327_s1 + $0xef8] sm:$0xff] }
 0x1e5   :  { %3807 = vmatprep.subr.bf16.mxu0 %v8791_v30  ;;  %v8887_v25 = vcombine.high %v510_v49, %v514_v21  ;;  %v374_v63 = vld [vmem:[%s13327_s1 + $0xa98] sm:$0xff]  ;;  %v8758_v30 = vcombine.low %v382_v45, %v386_v46  ;;  %v8886_v2 = vcombine.low %v510_v49, %v514_v21  ;;  %v3530_v46 = vpop.f32.mrf.mxu1 }
 0x1e6   :  { %3849 = vmatpush1.bf16.msra.mxu1 %v8798_v62  ;;  %v378_v55 = vld [vmem:[%s13327_s1 + $0xab8] sm:$0xff]  ;;  %v564_v62 = vrot.slane %v11363_v26, %v563_v23 }
 0x1e7   :  { %3850 = vmatprep.subr.bf16.mxu1 %v8919_v1  ;;  %v502_v56 = vld [vmem:[%s13327_s1 + $0xe98] sm:$0xff]  ;;  %v3230_v1 = vadd.f32 %v10784_v9, %v556_v52  ;;  %v8751_v3 = vcombine.high %v374_v63, %v378_v55  ;;  %v8750_v10 = vcombine.low %v374_v63, %v378_v55  ;;  %v3949_v55 = vld [vmem:[%s13330_s3 + $0x180] sm:$0xff] }
 0x1e8   :  { %3808 = vmatpush2.bf16.msra.mxu0 %v8790_v5  ;;  %v506_v61 = vld [vmem:[%s13327_s1 + $0xeb8] sm:$0xff]  ;;  %v3402_v33 = vadd.f32 %v11204_v29, %v564_v62 }
 0x1e9   :  { %3809 = vmatprep.subr.bf16.mxu0 %v8783_v7  ;;  %v8879_v58 = vcombine.high %v502_v56, %v506_v61  ;;  %v366_v5 = vld [vmem:[%s13327_s1 + $0xa58] sm:$0xff]  ;;  %v3226_v7 = vadd.f32 %v10594_v39, %v556_v52  ;;  %v3273_v11 = vadd.f32 %v10786_v12, %v3230_v1  ;;  %v8878_v19 = vcombine.low %v502_v56, %v506_v61  ;;  %v3953_v52 = vld [vmem:[%s13330_s3 + $0x1a0] sm:$0xff] }
 0x1ea   :  { %3851 = vmatpush2.bf16.msra.mxu1 %v8918_v6  ;;  %v370_v6 = vld [vmem:[%s13327_s1 + $0xa78] sm:$0xff]  ;;  %v3445_v39 = vadd.f32 %v11206_v42, %v3402_v33  ;;  %v4077_v61 = vld [vmem:[%s13330_s3 + $0x580] sm:$0xff] }
 0x1eb   :  { %3852 = vmatprep.subr.bf16.mxu1 %v8911_v8  ;;  %v494_v9 = vld [vmem:[%s13327_s1 + $0xe58] sm:$0xff]  ;;  %v3398_v8 = vadd.f32 %v11014_v32, %v564_v62  ;;  %v3316_v12 = vadd.f32 %v10996_v14, %v3273_v11  ;;  %v8742_v34 = vcombine.low %v366_v5, %v370_v6  ;;  %v3945_v33 = vld [vmem:[%s13330_s3 + $0x160] sm:$0xff] }
 0x1ec   :  { %3810 = vmatpush2.bf16.msra.mxu0 %v8782_v20  ;;  %v498_v29 = vld [vmem:[%s13327_s1 + $0xe78] sm:$0xff]  ;;  %v8743_v20 = vcombine.high %v366_v5, %v370_v6  ;;  %v3488_v60 = vadd.f32 %v3487_v17, %v3445_v39  ;;  %v4069_v6 = vld [vmem:[%s13330_s3 + $0x540] sm:$0xff] }
 0x1ed   :  { %3811 = vmatprep.subr.bf16.mxu0 %v8775_v15  ;;  %v358_v15 = vld [vmem:[%s13327_s1 + $0xa18] sm:$0xff]  ;;  %v3441_v59 = vadd.f32 %v11018_v36, %v3398_v8  ;;  %v3961_v36 = vld [vmem:[%s13330_s3 + $0x1e0] sm:$0xff]  ;;  %v3359_v45 = vadd.f32 %v10998_v18, %v3316_v12 }
 0x1ee   :  { %3853 = vmatpush2.bf16.msra.mxu1 %v8910_v22  ;;  %v8871_v22 = vcombine.high %v494_v9, %v498_v29  ;;  %v362_v32 = vld [vmem:[%s13327_s1 + $0xa38] sm:$0xff]  ;;  %v3531_v49 = vadd.f32 %v3530_v46, %v3488_v60  ;;  %v3933_v11 = vld [vmem:[%s13330_s3 + $0x100] sm:$0xff] }
 0x1ef   :  { %3854 = vmatprep.subr.bf16.mxu1 %v8903_v54  ;;  %v3269_v54 = vadd.f32 %v10598_v43, %v3226_v7  ;;  %v486_v27 = vld [vmem:[%s13327_s1 + $0xe18] sm:$0xff]  ;;  %v8870_v43 = vcombine.low %v494_v9, %v498_v29  ;;  %v3484_v14 = vadd.f32 %v11223_v50, %v3441_v59  ;;  %v4089_v50 = vld [vmem:[%s13330_s3 + $0x5e0] sm:$0xff]  ;;  %v8734_v21 = vcombine.low %v358_v15, %v362_v32 }
 0x1f0   :  { %3812 = vmatpush2.bf16.msra.mxu0 %v8774_v37  ;;  %v490_v42 = vld [vmem:[%s13327_s1 + $0xe38] sm:$0xff]  ;;  %v3886_v63 = vmax.f32 %v3359_v45, 0.0  ;;  %v3888_v56 = vmax.f32 %v3531_v49, 0.0  ;;  %v4073_v7 = vld [vmem:[%s13330_s3 + $0x560] sm:$0xff]  ;;  %v8968_v29 = vcombine.low %v3949_v55, %v3953_v52 }
 0x1f1   :  { %3813 = vmatprep.subr.bf16.mxu0 %v8767_v40  ;;  %v3312_v37 = vadd.f32 %v10803_v28, %v3269_v54  ;;  %v8863_v40 = vcombine.high %v486_v27, %v490_v42  ;;  %v4085_v28 = vld [vmem:[%s13330_s3 + $0x5c0] sm:$0xff]  ;;  %v3527_v18 = vadd.f32 %v11225_v24, %v3484_v14  ;;  %v9088_v39 = vcombine.low %v4069_v6, %v4073_v7 }
 0x1f2   :  { %3855 = vmatpush2.bf16.msra.mxu1 %v8902_v38  ;;  %v8735_v38 = vcombine.high %v358_v15, %v362_v32  ;;  %v4081_v24 = vld [vmem:[%s13330_s3 + $0x5a0] sm:$0xff] }
 0x1f3   :  { %3856 = vmatprep.subr.bf16.mxu1 %v8895_v41  ;;  %v3957_v41 = vld [vmem:[%s13330_s3 + $0x1c0] sm:$0xff]  ;;  %v3880_v1 = vmax.f32 %v3527_v18, 0.0  ;;  %v9097_v5 = vcombine.high %v4077_v61, %v4081_v24  ;;  %v9096_v8 = vcombine.low %v4077_v61, %v4081_v24 }
 0x1f4   :  { %3814 = vmatpush2.bf16.msra.mxu0 %v8766_v53  ;;  %v3355_v53 = vadd.f32 %v10805_v31, %v3312_v37  ;;  %v8976_v31 = vcombine.low %v3957_v41, %v3961_v36  ;;  %v3937_v17 = vld [vmem:[%s13330_s3 + $0x120] sm:$0xff] }
 0x1f5   :  { %3815 = vmatprep.subr.bf16.mxu0 %v8759_v35  ;;  %v8977_v35 = vcombine.high %v3957_v41, %v3961_v36  ;;  %v11454_v9 = vpack.c.bf16 %v3888_v56, %v3880_v1  ;;  %v3925_v32 = vld [vmem:[%s13330_s3 + $0xc0] sm:$0xff] }
 0x1f6   :  { %3857 = vmatpush2.bf16.msra.mxu1 %v8894_v51  ;;  %v8862_v51 = vcombine.low %v486_v27, %v490_v42  ;;  %v3878_v62 = vmax.f32 %v3355_v53, 0.0  ;;  %v3929_v54 = vld [vmem:[%s13330_s3 + $0xe0] sm:$0xff]  ;;  %v8952_v42 = vcombine.low %v3933_v11, %v3937_v17 }
 0x1f7   :  { %3858 = vmatprep.subr.bf16.mxu1 %v8887_v25  ;;  %v9105_v25 = vcombine.high %v4085_v28, %v4089_v50  ;;  %v4053_v12 = vld [vmem:[%s13330_s3 + $0x4c0] sm:$0xff]  ;;  %v8945_v60 = vcombine.high %v3925_v32, %v3929_v54 }
 0x1f8   :  { %3816 = vmatpush2.bf16.msra.mxu0 %v8758_v30  ;;  %v9104_v30 = vcombine.low %v4085_v28, %v4089_v50  ;;  %v4057_v27 = vld [vmem:[%s13330_s3 + $0x4e0] sm:$0xff] }
 0x1f9   :  { %3817 = vmatprep.subr.bf16.mxu0 %v8751_v3  ;;  %v3941_v3 = vld [vmem:[%s13330_s3 + $0x140] sm:$0xff]  ;;  %v9072_v41 = vcombine.low %v4053_v12, %v4057_v27 }
 0x1fa   :  { %3859 = vmatpush2.bf16.msra.mxu1 %v8886_v2  ;;  %v8969_v2 = vcombine.high %v3949_v55, %v3953_v52  ;;  %v3917_v37 = vld [vmem:[%s13330_s3 + $0x80] sm:$0xff] }
 0x1fb   :  { %3860 = vmatprep.subr.bf16.mxu1 %v8879_v58  ;;  %v11445_v58 = vpack.c.bf16 %v3886_v63, %v3878_v62  ;;  %v4049_v14 = vld [vmem:[%s13330_s3 + $0x4a0] sm:$0xff] }
 0x1fc   :  { %3818 = vmatpush2.bf16.msra.mxu0 %v8750_v10  ;;  %v9089_v10 = vcombine.high %v4069_v6, %v4073_v7  ;;  %v3909_v46 = vld [vmem:[%s13330_s3 + $0x40] sm:$0xff] }
 0x1fd   :  { %3819 = vmatprep.subr.bf16.mxu0 %v8743_v20  ;;  %v8960_v20 = vcombine.low %v3941_v3, %v3945_v33  ;;  %v3913_v28 = vld [vmem:[%s13330_s3 + $0x60] sm:$0xff] }
 0x1fe   :  { %3861 = vmatpush2.bf16.msra.mxu1 %v8878_v19  ;;  %v4065_v19 = vld [vmem:[%s13330_s3 + $0x520] sm:$0xff]  ;;  %v8928_v52 = vcombine.low %v3909_v46, %v3913_v28 }
 0x1ff   :  { %3862 = vmatprep.subr.bf16.mxu1 %v8871_v22  ;;  %v8953_v22 = vcombine.high %v3933_v11, %v3937_v17  ;;  %v4037_v50 = vld [vmem:[%s13330_s3 + $0x440] sm:$0xff] }
 0x200   :  { %3820 = vmatpush2.bf16.msra.mxu0 %v8742_v34  ;;  %v9073_v34 = vcombine.high %v4053_v12, %v4057_v27  ;;  %v4041_v49 = vld [vmem:[%s13330_s3 + $0x460] sm:$0xff] }
 0x201   :  { %3821 = vmatprep.subr.bf16.mxu0 %v8735_v38  ;;  %v4045_v38 = vld [vmem:[%s13330_s3 + $0x480] sm:$0xff]  ;;  %v9056_v56 = vcombine.low %v4037_v50, %v4041_v49 }
 0x202   :  { %3863 = vmatpush2.bf16.msra.mxu1 %v8870_v43  ;;  %v3921_v43 = vld [vmem:[%s13330_s3 + $0xa0] sm:$0xff]  ;;  %v9065_v45 = vcombine.high %v4045_v38, %v4049_v14  ;;  %v9064_v53 = vcombine.low %v4045_v38, %v4049_v14 }
 0x203   :  { %3864 = vmatprep.subr.bf16.mxu1 %v8863_v40  ;;  %v8944_v40 = vcombine.low %v3925_v32, %v3929_v54  ;;  %v8937_v36 = vcombine.high %v3917_v37, %v3921_v43  ;;  %v3901_v18 = vld [vmem:[%s13330_s3] sm:$0xff] }
 0x204   :  { %3822 = vmatpush2.bf16.msra.mxu0 %v8734_v21  ;;  %v8936_v21 = vcombine.low %v3917_v37, %v3921_v43  ;;  %v4029_v63 = vld [vmem:[%s13330_s3 + $0x400] sm:$0xff] }
 0x205   :  { %7015 = vmatprep.subr.bf16.mxu0 %v8977_v35  ;;  %v9057_v35 = vcombine.high %v4037_v50, %v4041_v49  ;;  %v4033_v55 = vld [vmem:[%s13330_s3 + $0x420] sm:$0xff] }
 0x206   :  { %3865 = vmatpush2.bf16.msra.mxu1 %v8862_v51  ;;  %v8929_v51 = vcombine.high %v3909_v46, %v3913_v28  ;;  %v9049_v61 = vcombine.high %v4029_v63, %v4033_v55  ;;  %v4021_v24 = vld [vmem:[%s13330_s3 + $0x3c0] sm:$0xff] }
 0x207   :  { %7058 = vmatprep.subr.bf16.mxu1 %v9105_v25  ;;  %3824 = vmatmul.mubr.bf16.vlgmr.msra.gmra.mxu0 %v10165_v44  ;;  %v8961_v44 = vcombine.high %v3941_v3, %v3945_v33  ;;  %v3905_v25 = vld [vmem:[%s13330_s3 + $0x20] sm:$0xff]  ;;  %v9048_v3 = vcombine.low %v4029_v63, %v4033_v55 }
 0x208   :  { %7016 = vmatpush1.bf16.msra.mxu0 %v8976_v31  ;;  %7047 = vmatprep.mubr.bf16.mxu0 %v11445_v58  ;;  %v8921_v31 = vcombine.high %v3901_v18, %v3905_v25  ;;  %v4025_v62 = vld [vmem:[%s13330_s3 + $0x3e0] sm:$0xff] }
 0x209   :  { %3867 = vmatmul.mubr.bf16.vlgmr.msra.gmra.mxu1 %v10175_v47  ;;  %7017 = vmatprep.subr.bf16.mxu0 %v8969_v2  ;;  %v4061_v47 = vld [vmem:[%s13330_s3 + $0x500] sm:$0xff]  ;;  %v8920_v2 = vcombine.low %v3901_v18, %v3905_v25  ;;  %v9041_v33 = vcombine.high %v4021_v24, %v4025_v62 }
 0x20a   :  { %7059 = vmatpush1.bf16.msra.mxu1 %v9104_v30  ;;  %7090 = vmatprep.mubr.bf16.mxu1 %v11454_v9  ;;  %v9081_v15 = vcombine.high %v4061_v47, %v4065_v19  ;;  %v9080_v59 = vcombine.low %v4061_v47, %v4065_v19  ;;  %v4149_v30 = vld [vmem:[%s13330_s3 + $0x7c0] sm:$0xff] }
 0x20b   :  { %7060 = vmatprep.subr.bf16.mxu1 %v9097_v5  ;;  %v4153_v1 = vld [vmem:[%s13330_s3 + $0x7e0] sm:$0xff] }
 0x20c   :  { %7018 = vmatpush1.bf16.msra.mxu0 %v8968_v29  ;;  %v9169_v5 = vcombine.high %v4149_v30, %v4153_v1  ;;  %v4013_v6 = vld [vmem:[%s13330_s3 + $0x380] sm:$0xff] }
 0x20d   :  { %7019 = vmatprep.subr.bf16.mxu0 %v8961_v44  ;;  %v4017_v7 = vld [vmem:[%s13330_s3 + $0x3a0] sm:$0xff]  ;;  %v9040_v44 = vcombine.low %v4021_v24, %v4025_v62 }
 0x20e   :  { %7061 = vmatpush1.bf16.msra.mxu1 %v9096_v8  ;;  %v4141_v29 = vld [vmem:[%s13330_s3 + $0x780] sm:$0xff]  ;;  %v9033_v11 = vcombine.high %v4013_v6, %v4017_v7 }
 0x20f   :  { %7062 = vmatprep.subr.bf16.mxu1 %v9089_v10  ;;  %v4145_v8 = vld [vmem:[%s13330_s3 + $0x7a0] sm:$0xff]  ;;  %v9168_v10 = vcombine.low %v4149_v30, %v4153_v1  ;;  %v11605_v30 = vpop.f32.mrf.mxu1 }
 0x210   :  { %7020 = vmatpush1.bf16.msra.mxu0 %v8960_v20  ;;  %v9161_v17 = vcombine.high %v4141_v29, %v4145_v8  ;;  %v4005_v47 = vld [vmem:[%s13330_s3 + $0x340] sm:$0xff] }
 0x211   :  { %7021 = vmatprep.subr.bf16.mxu0 %v8953_v22  ;;  %v4009_v19 = vld [vmem:[%s13330_s3 + $0x360] sm:$0xff]  ;;  %v9032_v22 = vcombine.low %v4013_v6, %v4017_v7  ;;  %v571_v6 = vsub.s32 5, %v10545_v4 }
 0x212   :  { %7063 = vmatpush1.bf16.msra.mxu1 %v9088_v39  ;;  %v4133_v20 = vld [vmem:[%s13330_s3 + $0x740] sm:$0xff]  ;;  %v9025_v32 = vcombine.high %v4005_v47, %v4009_v19 }
 0x213   :  { %7064 = vmatprep.subr.bf16.mxu1 %v9081_v15  ;;  %v4137_v39 = vld [vmem:[%s13330_s3 + $0x760] sm:$0xff]  ;;  %v9160_v15 = vcombine.low %v4141_v29, %v4145_v8 }
 0x214   :  { %7022 = vmatpush1.bf16.msra.mxu0 %v8952_v42  ;;  %v9153_v54 = vcombine.high %v4133_v20, %v4137_v39  ;;  %v3997_v12 = vld [vmem:[%s13330_s3 + $0x300] sm:$0xff] }
 0x215   :  { %7023 = vmatprep.subr.bf16.mxu0 %v8945_v60  ;;  %v4001_v27 = vld [vmem:[%s13330_s3 + $0x320] sm:$0xff]  ;;  %v9024_v60 = vcombine.low %v4005_v47, %v4009_v19 }
 0x216   :  { %7065 = vmatpush1.bf16.msra.mxu1 %v9080_v59  ;;  %v4125_v42 = vld [vmem:[%s13330_s3 + $0x700] sm:$0xff]  ;;  %v9017_v37 = vcombine.high %v3997_v12, %v4001_v27 }
 0x217   :  { %7066 = vmatprep.subr.bf16.mxu1 %v9073_v34  ;;  %v4129_v59 = vld [vmem:[%s13330_s3 + $0x720] sm:$0xff]  ;;  %v9152_v34 = vcombine.low %v4133_v20, %v4137_v39  ;;  %v572_v39 = vrot.slane %v11363_v26, %v571_v6 }
 0x218   :  { %7024 = vmatpush1.bf16.msra.mxu0 %v8944_v40  ;;  %v9145_v43 = vcombine.high %v4125_v42, %v4129_v59  ;;  %v3989_v38 = vld [vmem:[%s13330_s3 + $0x2c0] sm:$0xff] }
 0x219   :  { %7025 = vmatprep.subr.bf16.mxu0 %v8937_v36  ;;  %v3993_v14 = vld [vmem:[%s13330_s3 + $0x2e0] sm:$0xff]  ;;  %v9016_v36 = vcombine.low %v3997_v12, %v4001_v27 }
 0x21a   :  { %7067 = vmatpush1.bf16.msra.mxu1 %v9072_v41  ;;  %v4117_v40 = vld [vmem:[%s13330_s3 + $0x6c0] sm:$0xff]  ;;  %v9009_v46 = vcombine.high %v3989_v38, %v3993_v14 }
 0x21b   :  { %7068 = vmatprep.subr.bf16.mxu1 %v9065_v45  ;;  %v4121_v41 = vld [vmem:[%s13330_s3 + $0x6e0] sm:$0xff]  ;;  %v9144_v45 = vcombine.low %v4125_v42, %v4129_v59 }
 0x21c   :  { %7026 = vmatpush1.bf16.msra.mxu0 %v8936_v21  ;;  %v9137_v28 = vcombine.high %v4117_v40, %v4121_v41  ;;  %v3981_v50 = vld [vmem:[%s13330_s3 + $0x280] sm:$0xff] }
 0x21d   :  { %7027 = vmatprep.subr.bf16.mxu0 %v8929_v51  ;;  %v3985_v49 = vld [vmem:[%s13330_s3 + $0x2a0] sm:$0xff]  ;;  %v9008_v51 = vcombine.low %v3989_v38, %v3993_v14 }
 0x21e   :  { %7069 = vmatpush1.bf16.msra.mxu1 %v9064_v53  ;;  %v4109_v21 = vld [vmem:[%s13330_s3 + $0x680] sm:$0xff]  ;;  %v9001_v18 = vcombine.high %v3981_v50, %v3985_v49 }
 0x21f   :  { %7070 = vmatprep.subr.bf16.mxu1 %v9057_v35  ;;  %v4113_v53 = vld [vmem:[%s13330_s3 + $0x6a0] sm:$0xff]  ;;  %v9136_v35 = vcombine.low %v4117_v40, %v4121_v41 }
 0x220   :  { %7028 = vmatpush1.bf16.msra.mxu0 %v8928_v52  ;;  %v9129_v25 = vcombine.high %v4109_v21, %v4113_v53  ;;  %v3973_v63 = vld [vmem:[%s13330_s3 + $0x240] sm:$0xff]  ;;  %v9128_v24 = vcombine.low %v4109_v21, %v4113_v53 }
 0x221   :  { %7029 = vmatprep.subr.bf16.mxu0 %v8921_v31  ;;  %v3977_v55 = vld [vmem:[%s13330_s3 + $0x260] sm:$0xff]  ;;  %v9000_v31 = vcombine.low %v3981_v50, %v3985_v49 }
 0x222   :  { %7071 = vmatpush1.bf16.msra.mxu1 %v9056_v56  ;;  %v4101_v52 = vld [vmem:[%s13330_s3 + $0x640] sm:$0xff]  ;;  %v8993_v62 = vcombine.high %v3973_v63, %v3977_v55  ;;  %v8992_v7 = vcombine.low %v3973_v63, %v3977_v55 }
 0x223   :  { %7072 = vmatprep.subr.bf16.mxu1 %v9049_v61  ;;  %v4105_v56 = vld [vmem:[%s13330_s3 + $0x660] sm:$0xff]  ;;  %v11603_v61 = vpop.f32.mrf.mxu0 }
 0x224   :  { %7030 = vmatpush1.bf16.msra.mxu0 %v8920_v2  ;;  %v9121_v1 = vcombine.high %v4101_v52, %v4105_v56  ;;  %v3965_v2 = vld [vmem:[%s13330_s3 + $0x200] sm:$0xff]  ;;  %v9120_v8 = vcombine.low %v4101_v52, %v4105_v56 }
 0x225   :  { %7031 = vmatprep.subr.bf16.mxu0 %v9041_v33  ;;  %v4093_v33 = vld [vmem:[%s13330_s3 + $0x600] sm:$0xff]  ;;  %v3569_v29 = vpop.f32.mrf.mxu0 }
 0x226   :  { %7073 = vmatpush1.bf16.msra.mxu1 %v9048_v3  ;;  %v3969_v3 = vld [vmem:[%s13330_s3 + $0x220] sm:$0xff] }
 0x227   :  { %7074 = vmatprep.subr.bf16.mxu1 %v9169_v5  ;;  %v4097_v5 = vld [vmem:[%s13330_s3 + $0x620] sm:$0xff] }
 0x228   :  { %7032 = vmatpush2.bf16.msra.mxu0 %v9040_v44  ;;  %v8985_v44 = vcombine.high %v3965_v2, %v3969_v3  ;;  %v4217_v47 = vld [vmem:[%s13330_s3 + $0x9e0] sm:$0xff] }
 0x229   :  { %7033 = vmatprep.subr.bf16.mxu0 %v9033_v11  ;;  %v9113_v11 = vcombine.high %v4093_v33, %v4097_v5  ;;  %v4341_v19 = vld [vmem:[%s13330_s3 + $0xdc0] sm:$0xff] }
 0x22a   :  { %7075 = vmatpush2.bf16.msra.mxu1 %v9168_v10  ;;  %v3612_v10 = vpop.f32.mrf.mxu1  ;;  %v4345_v20 = vld [vmem:[%s13330_s3 + $0xde0] sm:$0xff] }
 0x22b   :  { %7076 = vmatprep.subr.bf16.mxu1 %v9161_v17  ;;  %v4213_v17 = vld [vmem:[%s13330_s3 + $0x9c0] sm:$0xff]  ;;  %v9361_v59 = vcombine.high %v4341_v19, %v4345_v20  ;;  %v9360_v40 = vcombine.low %v4341_v19, %v4345_v20 }
 0x22c   :  { %7034 = vmatpush2.bf16.msra.mxu0 %v9032_v22  ;;  %v8984_v22 = vcombine.low %v3965_v2, %v3969_v3  ;;  %v11637_v12 = vpop.f32.mrf.mxu1  ;;  %v4205_v27 = vld [vmem:[%s13330_s3 + $0x980] sm:$0xff] }
 0x22d   :  { %7035 = vmatprep.subr.bf16.mxu0 %v9025_v32  ;;  %v9112_v32 = vcombine.low %v4093_v33, %v4097_v5  ;;  %v4209_v42 = vld [vmem:[%s13330_s3 + $0x9a0] sm:$0xff] }
 0x22e   :  { %7077 = vmatpush2.bf16.msra.mxu1 %v9160_v15  ;;  %v11635_v15 = vpop.f32.mrf.mxu0  ;;  %v9225_v14 = vcombine.high %v4205_v27, %v4209_v42  ;;  %v3616_v41 = vpop.f32.mrf.mxu1  ;;  %v4325_v50 = vld [vmem:[%s13330_s3 + $0xd40] sm:$0xff] }
 0x22f   :  { %7078 = vmatprep.subr.bf16.mxu1 %v9153_v54  ;;  %v9233_v54 = vcombine.high %v4213_v17, %v4217_v47  ;;  %v4329_v49 = vld [vmem:[%s13330_s3 + $0xd60] sm:$0xff] }
 0x230   :  { %7036 = vmatpush2.bf16.msra.mxu0 %v9024_v60  ;;  %v4333_v60 = vld [vmem:[%s13330_s3 + $0xd80] sm:$0xff]  ;;  %v3573_v38 = vpop.f32.mrf.mxu0 }
 0x231   :  { %7037 = vmatprep.subr.bf16.mxu0 %v9017_v37  ;;  %v3570_v37 = vadd.f32 %v3569_v29, %v572_v39  ;;  %v3574_v53 = vadd.f32 %v3573_v38, %v572_v39  ;;  %v4189_v56 = vld [vmem:[%s13330_s3 + $0x900] sm:$0xff] }
 0x232   :  { %7079 = vmatpush2.bf16.msra.mxu1 %v9152_v34  ;;  %v4337_v34 = vld [vmem:[%s13330_s3 + $0xda0] sm:$0xff] }
 0x233   :  { %7080 = vmatprep.subr.bf16.mxu1 %v9145_v43  ;;  %v9232_v43 = vcombine.low %v4213_v17, %v4217_v47  ;;  %v3613_v21 = vadd.f32 %v3612_v10, %v3570_v37  ;;  %v9352_v63 = vcombine.low %v4333_v60, %v4337_v34  ;;  %v4321_v2 = vld [vmem:[%s13330_s3 + $0xd20] sm:$0xff]  ;;  %v3617_v3 = vadd.f32 %v3616_v41, %v3574_v53 }
 0x234   :  { %7038 = vmatpush2.bf16.msra.mxu0 %v9016_v36  ;;  %v4197_v36 = vld [vmem:[%s13330_s3 + $0x940] sm:$0xff] }
 0x235   :  { %7039 = vmatprep.subr.bf16.mxu0 %v9009_v46  ;;  %v9353_v46 = vcombine.high %v4333_v60, %v4337_v34  ;;  %v4185_v17 = vld [vmem:[%s13330_s3 + $0x8e0] sm:$0xff] }
 0x236   :  { %7081 = vmatpush2.bf16.msra.mxu1 %v9144_v45  ;;  %v4201_v45 = vld [vmem:[%s13330_s3 + $0x960] sm:$0xff] }
 0x237   :  { %7082 = vmatprep.subr.bf16.mxu1 %v9137_v28  ;;  %v9216_v5 = vcombine.low %v4197_v36, %v4201_v45  ;;  %v4309_v20 = vld [vmem:[%s13330_s3 + $0xcc0] sm:$0xff] }
 0x238   :  { %7040 = vmatpush2.bf16.msra.mxu0 %v9008_v51  ;;  %v4313_v39 = vld [vmem:[%s13330_s3 + $0xce0] sm:$0xff] }
 0x239   :  { %7041 = vmatprep.subr.bf16.mxu0 %v9001_v18  ;;  %v4173_v60 = vld [vmem:[%s13330_s3 + $0x880] sm:$0xff]  ;;  %v9329_v37 = vcombine.high %v4309_v20, %v4313_v39 }
 0x23a   :  { %7083 = vmatpush2.bf16.msra.mxu1 %v9136_v35  ;;  %v9224_v35 = vcombine.low %v4205_v27, %v4209_v42  ;;  %v4177_v34 = vld [vmem:[%s13330_s3 + $0x8a0] sm:$0xff] }
 0x23b   :  { %7084 = vmatprep.subr.bf16.mxu1 %v9129_v25  ;;  %v9217_v25 = vcombine.high %v4197_v36, %v4201_v45  ;;  %v4305_v38 = vld [vmem:[%s13330_s3 + $0xca0] sm:$0xff]  ;;  %v9193_v41 = vcombine.high %v4173_v60, %v4177_v34  ;;  %v9328_v36 = vcombine.low %v4309_v20, %v4313_v39  ;;  %v11714_v45 = vld [vmem:[%s13330_s3 + $0x5c8] sm:$0xff] }
 0x23c   :  { %7042 = vmatpush2.bf16.msra.mxu0 %v9000_v31  ;;  %v4193_v31 = vld [vmem:[%s13330_s3 + $0x920] sm:$0xff] }
 0x23d   :  { %7043 = vmatprep.subr.bf16.mxu0 %v8993_v62  ;;  %v9209_v29 = vcombine.high %v4189_v56, %v4193_v31  ;;  %v4273_v20 = vld [vmem:[%s13330_s3 + $0xba0] sm:$0xff] }
 0x23e   :  { %7085 = vmatpush2.bf16.msra.mxu1 %v9128_v24  ;;  %v9345_v24 = vcombine.high %v4325_v50, %v4329_v49 }
 0x23f   :  { %7086 = vmatprep.subr.bf16.mxu1 %v9121_v1  ;;  %v4317_v1 = vld [vmem:[%s13330_s3 + $0xd00] sm:$0xff] }
 0x240   :  { %7044 = vmatpush2.bf16.msra.mxu0 %v8992_v7  ;;  %v9337_v47 = vcombine.high %v4317_v1, %v4321_v2  ;;  %v9336_v27 = vcombine.low %v4317_v1, %v4321_v2  ;;  %v4289_v1 = vld [vmem:[%s13330_s3 + $0xc20] sm:$0xff] }
 0x241   :  { %7045 = vmatprep.subr.bf16.mxu0 %v8985_v44 }
 0x242   :  { %7087 = vmatpush2.bf16.msra.mxu1 %v9120_v8  ;;  %v9344_v8 = vcombine.low %v4325_v50, %v4329_v49  ;;  %v4165_v50 = vld [vmem:[%s13330_s3 + $0x840] sm:$0xff] }
 0x243   :  { %7088 = vmatprep.subr.bf16.mxu1 %v9113_v11  ;;  %v4181_v11 = vld [vmem:[%s13330_s3 + $0x8c0] sm:$0xff] }
 0x244   :  { %7046 = vmatpush2.bf16.msra.mxu0 %v8984_v22  ;;  %v4169_v49 = vld [vmem:[%s13330_s3 + $0x860] sm:$0xff] }
 0x245   :  { %7101 = vmatprep.subr.bf16.mxu0 %v9233_v54  ;;  %v9201_v54 = vcombine.high %v4181_v11, %v4185_v17  ;;  %v9184_v2 = vcombine.low %v4165_v50, %v4169_v49 }
 0x246   :  { %7089 = vmatpush2.bf16.msra.mxu1 %v9112_v32  ;;  %v9208_v32 = vcombine.low %v4189_v56, %v4193_v31  ;;  %v4161_v56 = vld [vmem:[%s13330_s3 + $0x820] sm:$0xff] }
 0x247   :  { %7144 = vmatprep.subr.bf16.mxu1 %v9361_v59  ;;  %v11657_v28 = vpop.f32.mrf.mxu0  ;;  %7048 = vmatmul.mubr.bf16.vlgmr.msra.gmra.mxu0 %v10834_v57 }
 0x248   :  { %7102 = vmatpush1.bf16.msra.mxu0 %v9232_v43  ;;  %v4301_v43 = vld [vmem:[%s13330_s3 + $0xc80] sm:$0xff] }
 0x249   :  { %v11666_v51 = vpop.f32.mrf.mxu1  ;;  %7091 = vmatmul.mubr.bf16.vlgmr.msra.gmra.mxu1 %v11254_v16  ;;  %v3655_v18 = vpop.f32.mrf.mxu0  ;;  %7103 = vmatprep.subr.bf16.mxu0 %v9225_v14 }
 0x24a   :  { %7145 = vmatpush1.bf16.msra.mxu1 %v9360_v40  ;;  %v3656_v55 = vadd.f32 %v3655_v18, %v3613_v21  ;;  %v9200_v40 = vcombine.low %v4181_v11, %v4185_v17  ;;  %v9321_v21 = vcombine.high %v4301_v43, %v4305_v38  ;;  %v4297_v18 = vld [vmem:[%s13330_s3 + $0xc60] sm:$0xff] }
 0x24b   :  { %v3698_v52 = vpop.f32.mrf.mxu1  ;;  %7146 = vmatprep.subr.bf16.mxu1 %v9353_v46  ;;  %v11675_v62 = vpop.f32.mrf.mxu0  ;;  %v11719_v46 = vld [vmem:[%s13330_s3 + $0x5e8] sm:$0xff] }
 0x24c   :  { %7104 = vmatpush1.bf16.msra.mxu0 %v9224_v35  ;;  %v3699_v44 = vadd.f32 %v3698_v52, %v3656_v55  ;;  %v9106_v53 = vcombine.low %v11714_v45, %v11719_v46  ;;  %v4293_v35 = vld [vmem:[%s13330_s3 + $0xc40] sm:$0xff]  ;;  %v9320_v55 = vcombine.low %v4301_v43, %v4305_v38 }
 0x24d   :  { %v11683_v33 = vpop.f32.mrf.mxu1  ;;  %v3659_v7 = vpop.f32.mrf.mxu0  ;;  %7105 = vmatprep.subr.bf16.mxu0 %v9217_v25  ;;  %v9192_v25 = vcombine.low %v4173_v60, %v4177_v34  ;;  %v4157_v52 = vld [vmem:[%s13330_s3 + $0x800] sm:$0xff]  ;;  %v9313_v31 = vcombine.high %v4293_v35, %v4297_v18 }
 0x24e   :  { %7147 = vmatpush1.bf16.msra.mxu1 %v9352_v63  ;;  %v3660_v10 = vadd.f32 %v3659_v7, %v3617_v3  ;;  %v3882_v42 = vmax.f32 %v3699_v44, 0.0  ;;  %v9185_v63 = vcombine.high %v4165_v50, %v4169_v49  ;;  %v9177_v3 = vcombine.high %v4157_v52, %v4161_v56  ;;  %v4277_v7 = vld [vmem:[%s13330_s3 + $0xbc0] sm:$0xff] }
 0x24f   :  { %7148 = vmatprep.subr.bf16.mxu1 %v9345_v24  ;;  %v3702_v19 = vpop.f32.mrf.mxu1  ;;  %v4285_v24 = vld [vmem:[%s13330_s3 + $0xc00] sm:$0xff]  ;;  %v9176_v11 = vcombine.low %v4157_v52, %v4161_v56 }
 0x250   :  { %v3703_v22 = vadd.f32 %v3702_v19, %v3660_v10  ;;  %7106 = vmatpush1.bf16.msra.mxu0 %v9216_v5  ;;  %v9312_v5 = vcombine.low %v4293_v35, %v4297_v18  ;;  %v4405_v44 = vld [vmem:[%s13330_s3 + $0xfc0] sm:$0xff] }
 0x251   :  { %7107 = vmatprep.subr.bf16.mxu0 %v9209_v29  ;;  %v4281_v29 = vld [vmem:[%s13330_s3 + $0xbe0] sm:$0xff] }
 0x252   :  { %7149 = vmatpush1.bf16.msra.mxu1 %v9344_v8  ;;  %v3890_v59 = vmax.f32 %v3703_v22, 0.0  ;;  %v9305_v8 = vcombine.high %v4285_v24, %v4289_v1  ;;  %v4409_v10 = vld [vmem:[%s13330_s3 + $0xfe0] sm:$0xff]  ;;  %v9297_v17 = vcombine.high %v4277_v7, %v4281_v29 }
 0x253   :  { %7150 = vmatprep.subr.bf16.mxu1 %v9337_v47  ;;  %v9304_v47 = vcombine.low %v4285_v24, %v4289_v1  ;;  %v4269_v19 = vld [vmem:[%s13330_s3 + $0xb80] sm:$0xff]  ;;  %v9425_v39 = vcombine.high %v4405_v44, %v4409_v10 }
 0x254   :  { %v11709_v14 = vpack.c.bf16 %v3890_v59, %v3882_v42  ;;  %7108 = vmatpush1.bf16.msra.mxu0 %v9208_v32  ;;  %v4397_v22 = vld [vmem:[%s13330_s3 + $0xf80] sm:$0xff]  ;;  %v9424_v42 = vcombine.low %v4405_v44, %v4409_v10  ;;  %v9288_v38 = vcombine.low %v4269_v19, %v4273_v20 }
 0x255   :  { %7109 = vmatprep.subr.bf16.mxu0 %v9201_v54  ;;  %v4401_v32 = vld [vmem:[%s13330_s3 + $0xfa0] sm:$0xff]  ;;  %v9296_v54 = vcombine.low %v4277_v7, %v4281_v29 }
 0x256   :  { %7151 = vmatpush1.bf16.msra.mxu1 %v9336_v27  ;;  %7133 = vmatprep.mubr.bf16.mxu0 %v11709_v14  ;;  %v9289_v27 = vcombine.high %v4269_v19, %v4273_v20  ;;  %v4261_v59 = vld [vmem:[%s13330_s3 + $0xb40] sm:$0xff]  ;;  %v9417_v34 = vcombine.high %v4397_v22, %v4401_v32 }
 0x257   :  { %7152 = vmatprep.subr.bf16.mxu1 %v9329_v37  ;;  %v4265_v60 = vld [vmem:[%s13330_s3 + $0xb60] sm:$0xff] }
 0x258   :  { %7110 = vmatpush1.bf16.msra.mxu0 %v9200_v40  ;;  %v4389_v37 = vld [vmem:[%s13330_s3 + $0xf40] sm:$0xff]  ;;  %v9281_v40 = vcombine.high %v4261_v59, %v4265_v60  ;;  %v9280_v18 = vcombine.low %v4261_v59, %v4265_v60 }
 0x259   :  { %7111 = vmatprep.subr.bf16.mxu0 %v9193_v41  ;;  %v4393_v43 = vld [vmem:[%s13330_s3 + $0xf60] sm:$0xff]  ;;  %v9416_v41 = vcombine.low %v4397_v22, %v4401_v32 }
 0x25a   :  { %7153 = vmatpush1.bf16.msra.mxu1 %v9328_v36  ;;  %v4253_v36 = vld [vmem:[%s13330_s3 + $0xb00] sm:$0xff]  ;;  %v9409_v49 = vcombine.high %v4389_v37, %v4393_v43 }
 0x25b   :  { %7154 = vmatprep.subr.bf16.mxu1 %v9321_v21  ;;  %v4257_v50 = vld [vmem:[%s13330_s3 + $0xb20] sm:$0xff] }
 0x25c   :  { %7112 = vmatpush1.bf16.msra.mxu0 %v9192_v25  ;;  %v4381_v21 = vld [vmem:[%s13330_s3 + $0xf00] sm:$0xff]  ;;  %v567_v25 = vsub.s32 4, %v10545_v4 }
 0x25d   :  { %7113 = vmatprep.subr.bf16.mxu0 %v9185_v63  ;;  %v4385_v35 = vld [vmem:[%s13330_s3 + $0xf20] sm:$0xff]  ;;  %v9273_v63 = vcombine.high %v4253_v36, %v4257_v50 }
 0x25e   :  { %7155 = vmatpush1.bf16.msra.mxu1 %v9320_v55  ;;  %v9408_v55 = vcombine.low %v4389_v37, %v4393_v43  ;;  %v4245_v52 = vld [vmem:[%s13330_s3 + $0xac0] sm:$0xff]  ;;  %v9400_v7 = vcombine.low %v4381_v21, %v4385_v35 }
 0x25f   :  { %7156 = vmatprep.subr.bf16.mxu1 %v9313_v31  ;;  %v4249_v56 = vld [vmem:[%s13330_s3 + $0xae0] sm:$0xff]  ;;  %v9401_v31 = vcombine.high %v4381_v21, %v4385_v35 }
 0x260   :  { %7114 = vmatpush1.bf16.msra.mxu0 %v9184_v2  ;;  %v4373_v24 = vld [vmem:[%s13330_s3 + $0xec0] sm:$0xff]  ;;  %v9272_v2 = vcombine.low %v4253_v36, %v4257_v50 }
 0x261   :  { %7115 = vmatprep.subr.bf16.mxu0 %v9177_v3  ;;  %v4377_v1 = vld [vmem:[%s13330_s3 + $0xee0] sm:$0xff]  ;;  %v568_v3 = vrot.slane %v11363_v26, %v567_v25 }
 0x262   :  { %7157 = vmatpush1.bf16.msra.mxu1 %v9312_v5  ;;  %v9265_v5 = vcombine.high %v4245_v52, %v4249_v56  ;;  %v4237_v29 = vld [vmem:[%s13330_s3 + $0xa80] sm:$0xff]  ;;  %v9393_v44 = vcombine.high %v4373_v24, %v4377_v1 }
 0x263   :  { %7158 = vmatprep.subr.bf16.mxu1 %v9305_v8  ;;  %v4241_v8 = vld [vmem:[%s13330_s3 + $0xaa0] sm:$0xff]  ;;  %v3572_v10 = vadd.f32 %v11635_v15, %v568_v3 }
 0x264   :  { %7116 = vmatpush1.bf16.msra.mxu0 %v9176_v11  ;;  %v4365_v26 = vld [vmem:[%s13330_s3 + $0xe80] sm:$0xff]  ;;  %v9257_v19 = vcombine.high %v4237_v29, %v4241_v8 }
 0x265   :  { %7117 = vmatprep.subr.bf16.mxu0 %v9297_v17  ;;  %v4369_v11 = vld [vmem:[%s13330_s3 + $0xea0] sm:$0xff]  ;;  %v9264_v17 = vcombine.low %v4245_v52, %v4249_v56  ;;  %v3615_v32 = vadd.f32 %v11637_v12, %v3572_v10  ;;  %v3950_v52 = vld [vmem:[%s13330_s3 + $0x188] sm:$0xff] }
 0x266   :  { %7159 = vmatpush1.bf16.msra.mxu1 %v9304_v47  ;;  %v3568_v47 = vadd.f32 %v11603_v61, %v568_v3  ;;  %v4229_v20 = vld [vmem:[%s13330_s3 + $0xa40] sm:$0xff]  ;;  %v9385_v22 = vcombine.high %v4365_v26, %v4369_v11  ;;  %v3954_v56 = vld [vmem:[%s13330_s3 + $0x1a8] sm:$0xff] }
 0x267   :  { %7160 = vmatprep.subr.bf16.mxu1 %v9425_v39  ;;  %v4233_v15 = vld [vmem:[%s13330_s3 + $0xa60] sm:$0xff]  ;;  %v9392_v39 = vcombine.low %v4373_v24, %v4377_v1  ;;  %v3658_v60 = vadd.f32 %v11675_v62, %v3615_v32  ;;  %v3942_v3 = vld [vmem:[%s13330_s3 + $0x148] sm:$0xff] }
 0x268   :  { %7118 = vmatpush2.bf16.msra.mxu0 %v9296_v54  ;;  %v4357_v61 = vld [vmem:[%s13330_s3 + $0xe40] sm:$0xff]  ;;  %v3611_v59 = vadd.f32 %v11605_v30, %v3568_v47  ;;  %v3910_v32 = vld [vmem:[%s13330_s3 + $0x48] sm:$0xff] }
 0x269   :  { %7119 = vmatprep.subr.bf16.mxu0 %v9289_v27  ;;  %v4361_v54 = vld [vmem:[%s13330_s3 + $0xe60] sm:$0xff]  ;;  %v9256_v27 = vcombine.low %v4237_v29, %v4241_v8  ;;  %v3934_v8 = vld [vmem:[%s13330_s3 + $0x108] sm:$0xff] }
 0x26a   :  { %7161 = vmatpush2.bf16.msra.mxu1 %v9424_v42  ;;  %v9249_v42 = vcombine.high %v4229_v20, %v4233_v15  ;;  %v4221_v12 = vld [vmem:[%s13330_s3 + $0xa00] sm:$0xff]  ;;  %v9377_v43 = vcombine.high %v4357_v61, %v4361_v54  ;;  %v9376_v50 = vcombine.low %v4357_v61, %v4361_v54  ;;  %v3914_v61 = vld [vmem:[%s13330_s3 + $0x68] sm:$0xff] }
 0x26b   :  { %7162 = vmatprep.subr.bf16.mxu1 %v9417_v34  ;;  %v9384_v34 = vcombine.low %v4365_v26, %v4369_v11  ;;  %v4225_v37 = vld [vmem:[%s13330_s3 + $0xa20] sm:$0xff]  ;;  %v3926_v11 = vld [vmem:[%s13330_s3 + $0xc8] sm:$0xff] }
 0x26c   :  { %7120 = vmatpush2.bf16.msra.mxu0 %v9288_v38  ;;  %v3654_v38 = vadd.f32 %v11657_v28, %v3611_v59  ;;  %v4349_v30 = vld [vmem:[%s13330_s3 + $0xe00] sm:$0xff]  ;;  %v9241_v36 = vcombine.high %v4221_v12, %v4225_v37  ;;  %v3958_v28 = vld [vmem:[%s13330_s3 + $0x1c8] sm:$0xff] }
 0x26d   :  { %7121 = vmatprep.subr.bf16.mxu0 %v9281_v40  ;;  %v4353_v62 = vld [vmem:[%s13330_s3 + $0xe20] sm:$0xff]  ;;  %v9248_v40 = vcombine.low %v4229_v20, %v4233_v15  ;;  %v3918_v20 = vld [vmem:[%s13330_s3 + $0x88] sm:$0xff] }
 0x26e   :  { %7163 = vmatpush2.bf16.msra.mxu1 %v9416_v41  ;;  %v3701_v41 = vadd.f32 %v11683_v33, %v3658_v60  ;;  %v9369_v21 = vcombine.high %v4349_v30, %v4353_v62  ;;  %v3697_v35 = vadd.f32 %v11666_v51, %v3654_v38  ;;  %v3922_v15 = vld [vmem:[%s13330_s3 + $0xa8] sm:$0xff]  ;;  %v8930_v60 = vcombine.low %v3910_v32, %v3914_v61 }
 0x26f   :  { %7164 = vmatprep.subr.bf16.mxu1 %v9409_v49  ;;  %v3962_v49 = vld [vmem:[%s13330_s3 + $0x1e8] sm:$0xff]  ;;  %v8938_v54 = vcombine.low %v3918_v20, %v3922_v15 }
 0x270   :  { %7122 = vmatpush2.bf16.msra.mxu0 %v9280_v18  ;;  %v9240_v18 = vcombine.low %v4221_v12, %v4225_v37  ;;  %v8979_v33 = vcombine.high %v3958_v28, %v3962_v49  ;;  %v3881_v51 = vmax.f32 %v3697_v35, 0.0  ;;  %v8978_v24 = vcombine.low %v3958_v28, %v3962_v49  ;;  %v3906_v59 = vld [vmem:[%s13330_s3 + $0x28] sm:$0xff] }
 0x271   :  { %7123 = vmatprep.subr.bf16.mxu0 %v9273_v63  ;;  %v3889_v63 = vmax.f32 %v3701_v41, 0.0  ;;  %v4022_v12 = vld [vmem:[%s13330_s3 + $0x3c8] sm:$0xff] }
 0x272   :  { %7165 = vmatpush2.bf16.msra.mxu1 %v9408_v55  ;;  %v9368_v55 = vcombine.low %v4349_v30, %v4353_v62  ;;  %v4026_v37 = vld [vmem:[%s13330_s3 + $0x3e8] sm:$0xff] }
 0x273   :  { %7166 = vmatprep.subr.bf16.mxu1 %v9401_v31  ;;  %v9107_v31 = vcombine.high %v11714_v45, %v11719_v46  ;;  %v11870_v1 = vpack.c.bf16 %v3889_v63, %v3881_v51  ;;  %v9043_v38 = vcombine.high %v4022_v12, %v4026_v37  ;;  %v4014_v30 = vld [vmem:[%s13330_s3 + $0x388] sm:$0xff] }
 0x274   :  { %7124 = vmatpush2.bf16.msra.mxu0 %v9272_v2  ;;  %v8971_v2 = vcombine.high %v3950_v52, %v3954_v56  ;;  %v4018_v62 = vld [vmem:[%s13330_s3 + $0x3a8] sm:$0xff] }
 0x275   :  { %7125 = vmatprep.subr.bf16.mxu0 %v9265_v5  ;;  %v3946_v5 = vld [vmem:[%s13330_s3 + $0x168] sm:$0xff]  ;;  %v9035_v41 = vcombine.high %v4014_v30, %v4018_v62  ;;  %v9034_v28 = vcombine.low %v4014_v30, %v4018_v62 }
 0x276   :  { %7167 = vmatpush2.bf16.msra.mxu1 %v9400_v7  ;;  %v8970_v7 = vcombine.low %v3950_v52, %v3954_v56  ;;  %v8963_v29 = vcombine.high %v3942_v3, %v3946_v5  ;;  %v8962_v10 = vcombine.low %v3942_v3, %v3946_v5  ;;  %v4002_v35 = vld [vmem:[%s13330_s3 + $0x328] sm:$0xff] }
 0x277   :  { %7168 = vmatprep.subr.bf16.mxu1 %v9393_v44  ;;  %v3938_v44 = vld [vmem:[%s13330_s3 + $0x128] sm:$0xff] }
 0x278   :  { %7126 = vmatpush2.bf16.msra.mxu0 %v9264_v17  ;;  %v8955_v26 = vcombine.high %v3934_v8, %v3938_v44  ;;  %v3930_v17 = vld [vmem:[%s13330_s3 + $0xe8] sm:$0xff]  ;;  %v8954_v47 = vcombine.low %v3934_v8, %v3938_v44 }
 0x279   :  { %7127 = vmatprep.subr.bf16.mxu0 %v9257_v19  ;;  %v8947_v19 = vcombine.high %v3926_v11, %v3930_v17  ;;  %v3986_v51 = vld [vmem:[%s13330_s3 + $0x2a8] sm:$0xff] }
 0x27a   :  { %7169 = vmatpush2.bf16.msra.mxu1 %v9392_v39  ;;  %v8946_v39 = vcombine.low %v3926_v11, %v3930_v17  ;;  %v3974_v3 = vld [vmem:[%s13330_s3 + $0x248] sm:$0xff]  ;;  %v579_v11 = vsub.s32 7, %v10545_v4 }
 0x27b   :  { %7170 = vmatprep.subr.bf16.mxu1 %v9385_v22  ;;  %v8939_v22 = vcombine.high %v3918_v20, %v3922_v15  ;;  %v3978_v5 = vld [vmem:[%s13330_s3 + $0x268] sm:$0xff] }
 0x27c   :  { %7128 = vmatpush2.bf16.msra.mxu0 %v9256_v27  ;;  %v8931_v27 = vcombine.high %v3910_v32, %v3914_v61  ;;  %v8995_v8 = vcombine.high %v3974_v3, %v3978_v5  ;;  %v8994_v17 = vcombine.low %v3974_v3, %v3978_v5  ;;  %v9650_v32 = vld [vmem:[%s13329_s2] sm:$0xff]  ;;  %v4158_v45 = vld [vmem:[%s13330_s3 + $0x808] sm:$0xff] }
 0x27d   :  { %7129 = vmatprep.subr.bf16.mxu0 %v9249_v42  ;;  %v3902_v42 = vld [vmem:[%s13330_s3 + $0x8] sm:$0xff]  ;;  %v580_v61 = vrot.slane %v9650_v32, %v579_v11 }
 0x27e   :  { %7171 = vmatpush2.bf16.msra.mxu1 %v9384_v34  ;;  %v8923_v34 = vcombine.high %v3902_v42, %v3906_v59  ;;  %v4162_v46 = vld [vmem:[%s13330_s3 + $0x828] sm:$0xff] }
 0x27f   :  { %7172 = vmatprep.subr.bf16.mxu1 %v9377_v43  ;;  %v8922_v43 = vcombine.low %v3902_v42, %v3906_v59 }
 0x280   :  { %7130 = vmatpush2.bf16.msra.mxu0 %v9248_v40  ;;  %v9042_v40 = vcombine.low %v4022_v12, %v4026_v37  ;;  %v4210_v12 = vld [vmem:[%s13330_s3 + $0x9a8] sm:$0xff] }
 0x281   :  { %7131 = vmatprep.subr.bf16.mxu0 %v9241_v36  ;;  %v4006_v36 = vld [vmem:[%s13330_s3 + $0x348] sm:$0xff] }
 0x282   :  { %7173 = vmatpush2.bf16.msra.mxu1 %v9376_v50  ;;  %v4010_v50 = vld [vmem:[%s13330_s3 + $0x368] sm:$0xff] }
 0x283   :  { %7174 = vmatprep.subr.bf16.mxu1 %v9369_v21  ;;  %v9027_v49 = vcombine.high %v4006_v36, %v4010_v50  ;;  %v3998_v21 = vld [vmem:[%s13330_s3 + $0x308] sm:$0xff] }
 0x284   :  { %7132 = vmatpush2.bf16.msra.mxu0 %v9240_v18  ;;  %v9026_v18 = vcombine.low %v4006_v36, %v4010_v50  ;;  %v9019_v63 = vcombine.high %v3998_v21, %v4002_v35  ;;  %v9018_v52 = vcombine.low %v3998_v21, %v4002_v35  ;;  %v4198_v36 = vld [vmem:[%s13330_s3 + $0x948] sm:$0xff] }
 0x285   :  { %7187 = vmatprep.subr.bf16.mxu0 %v8979_v33  ;;  %v3990_v33 = vld [vmem:[%s13330_s3 + $0x2c8] sm:$0xff] }
 0x286   :  { %7175 = vmatpush2.bf16.msra.mxu1 %v9368_v55  ;;  %v3994_v55 = vld [vmem:[%s13330_s3 + $0x2e8] sm:$0xff] }
 0x287   :  { %7230 = vmatprep.subr.bf16.mxu1 %v9107_v31  ;;  %7134 = vmatmul.mubr.bf16.vlgmr.msra.gmra.mxu0 %v11870_v1  ;;  %v9011_v56 = vcombine.high %v3990_v33, %v3994_v55  ;;  %v3982_v31 = vld [vmem:[%s13330_s3 + $0x288] sm:$0xff] }
 0x288   :  { %7188 = vmatpush1.bf16.msra.mxu0 %v8978_v24  ;;  %7219 = vmatprep.mubr.bf16.mxu0 %v11445_v58  ;;  %v9010_v24 = vcombine.low %v3990_v33, %v3994_v55  ;;  %v4202_v50 = vld [vmem:[%s13330_s3 + $0x968] sm:$0xff] }
 0x289   :  { %7189 = vmatprep.subr.bf16.mxu0 %v8971_v2  ;;  %v9003_v2 = vcombine.high %v3982_v31, %v3986_v51  ;;  %v3782_v44 = vpop.f32.mrf.mxu1  ;;  %v9219_v55 = vcombine.high %v4198_v36, %v4202_v50 }
 0x28b   :  { %v3784_v15 = vpop.f32.mrf.mxu1 }
 0x28c   :  { %7190 = vmatpush1.bf16.msra.mxu0 %v8970_v7  ;;  %v9002_v7 = vcombine.low %v3982_v31, %v3986_v51  ;;  %v4190_v51 = vld [vmem:[%s13330_s3 + $0x908] sm:$0xff] }
 0x28d   :  { %7191 = vmatprep.subr.bf16.mxu0 %v8963_v29  ;;  %v3739_v29 = vpop.f32.mrf.mxu0 }
 0x290   :  { %7192 = vmatpush1.bf16.msra.mxu0 %v8962_v10  ;;  %v3966_v10 = vld [vmem:[%s13330_s3 + $0x208] sm:$0xff] }
 0x291   :  { %7193 = vmatprep.subr.bf16.mxu0 %v8955_v26  ;;  %v3970_v26 = vld [vmem:[%s13330_s3 + $0x228] sm:$0xff] }
 0x292   :  { %v8987_v20 = vcombine.high %v3966_v10, %v3970_v26 }
 0x294   :  { %7194 = vmatpush1.bf16.msra.mxu0 %v8954_v47  ;;  %v575_v47 = vsub.s32 6, %v10545_v4 }
 0x295   :  { %7195 = vmatprep.subr.bf16.mxu0 %v8947_v19  ;;  %v3741_v19 = vpop.f32.mrf.mxu0 }
 0x296   :  { %v3742_v37 = vadd.f32 %v3741_v19, %v580_v61 }
 0x297   :  { %v3743_v42 = vpop.f32.mrf.mxu0 }
 0x298   :  { %7196 = vmatpush1.bf16.msra.mxu0 %v8946_v39  ;;  %v4214_v39 = vld [vmem:[%s13330_s3 + $0x9c8] sm:$0xff] }
 0x299   :  { %7197 = vmatprep.subr.bf16.mxu0 %v8939_v22  ;;  %v4218_v22 = vld [vmem:[%s13330_s3 + $0x9e8] sm:$0xff]  ;;  %v3745_v30 = vpop.f32.mrf.mxu0 }
 0x29a   :  { %v9235_v59 = vcombine.high %v4214_v39, %v4218_v22  ;;  %v3746_v21 = vadd.f32 %v3745_v30, %v580_v61 }
 0x29c   :  { %7198 = vmatpush1.bf16.msra.mxu0 %v8938_v54  ;;  %v8986_v54 = vcombine.low %v3966_v10, %v3970_v26 }
 0x29d   :  { %7199 = vmatprep.subr.bf16.mxu0 %v8931_v27  ;;  %v576_v27 = vrot.slane %v9650_v32, %v575_v47 }
 0x2a0   :  { %7200 = vmatpush1.bf16.msra.mxu0 %v8930_v60  ;;  %v3786_v60 = vpop.f32.mrf.mxu1 }
 0x2a1   :  { %7201 = vmatprep.subr.bf16.mxu0 %v8923_v34  ;;  %v4206_v34 = vld [vmem:[%s13330_s3 + $0x988] sm:$0xff] }
 0x2a2   :  { %v9227_v62 = vcombine.high %v4206_v34, %v4210_v12 }
 0x2a4   :  { %7202 = vmatpush1.bf16.msra.mxu0 %v8922_v43  ;;  %v9234_v43 = vcombine.low %v4214_v39, %v4218_v22 }
 0x2a5   :  { %7203 = vmatprep.subr.bf16.mxu0 %v9043_v38  ;;  %v3740_v38 = vadd.f32 %v3739_v29, %v576_v27 }
 0x2a8   :  { %7204 = vmatpush2.bf16.msra.mxu0 %v9042_v40  ;;  %v3744_v40 = vadd.f32 %v3743_v42, %v576_v27 }
 0x2a9   :  { %7205 = vmatprep.subr.bf16.mxu0 %v9035_v41  ;;  %v3788_v41 = vpop.f32.mrf.mxu1 }
 0x2aa   :  { %v3789_v5 = vadd.f32 %v3788_v41, %v3746_v21 }
 0x2ac   :  { %7206 = vmatpush2.bf16.msra.mxu0 %v9034_v28 }
 0x2ad   :  { %7207 = vmatprep.subr.bf16.mxu0 %v9027_v49  ;;  %v3785_v49 = vadd.f32 %v3784_v15, %v3742_v37  ;;  %v4186_v15 = vld [vmem:[%s13330_s3 + $0x8e8] sm:$0xff] }
 0x2ae   :  { %v4174_v37 = vld [vmem:[%s13330_s3 + $0x888] sm:$0xff] }
 0x2b0   :  { %7208 = vmatpush2.bf16.msra.mxu0 %v9026_v18  ;;  %v9226_v18 = vcombine.low %v4206_v34, %v4210_v12  ;;  %v4082_v34 = vld [vmem:[%s13330_s3 + $0x5a8] sm:$0xff] }
 0x2b1   :  { %7209 = vmatprep.subr.bf16.mxu0 %v9019_v63  ;;  %v3783_v63 = vadd.f32 %v3782_v44, %v3740_v38 }
 0x2b4   :  { %7210 = vmatpush2.bf16.msra.mxu0 %v9018_v52  ;;  %v3787_v52 = vadd.f32 %v3786_v60, %v3744_v40  ;;  %v4078_v60 = vld [vmem:[%s13330_s3 + $0x588] sm:$0xff] }
 0x2b5   :  { %7211 = vmatprep.subr.bf16.mxu0 %v9011_v56  ;;  %v9099_v40 = vcombine.high %v4078_v60, %v4082_v34  ;;  %v9098_v21 = vcombine.low %v4078_v60, %v4082_v34  ;;  %v4030_v34 = vld [vmem:[%s13330_s3 + $0x408] sm:$0xff] }
 0x2b8   :  { %7212 = vmatpush2.bf16.msra.mxu0 %v9010_v24  ;;  %v4194_v24 = vld [vmem:[%s13330_s3 + $0x928] sm:$0xff] }
 0x2b9   :  { %7213 = vmatprep.subr.bf16.mxu0 %v9003_v2  ;;  %v9211_v10 = vcombine.high %v4190_v51, %v4194_v24  ;;  %v9210_v61 = vcombine.low %v4190_v51, %v4194_v24  ;;  %v4054_v51 = vld [vmem:[%s13330_s3 + $0x4c8] sm:$0xff] }
 0x2ba   :  { %v4058_v24 = vld [vmem:[%s13330_s3 + $0x4e8] sm:$0xff] }
 0x2bc   :  { %7214 = vmatpush2.bf16.msra.mxu0 %v9002_v7 }
 0x2bd   :  { %7215 = vmatprep.subr.bf16.mxu0 %v8995_v8  ;;  %v9218_v8 = vcombine.low %v4198_v36, %v4202_v50  ;;  %v4070_v36 = vld [vmem:[%s13330_s3 + $0x548] sm:$0xff] }
 0x2be   :  { %v4074_v50 = vld [vmem:[%s13330_s3 + $0x568] sm:$0xff] }
 0x2c0   :  { %7216 = vmatpush2.bf16.msra.mxu0 %v8994_v17 }
 0x2c1   :  { %7217 = vmatprep.subr.bf16.mxu0 %v8987_v20  ;;  %v4182_v20 = vld [vmem:[%s13330_s3 + $0x8c8] sm:$0xff] }
 0x2c2   :  { %v9203_v27 = vcombine.high %v4182_v20, %v4186_v15 }
 0x2c4   :  { %7218 = vmatpush2.bf16.msra.mxu0 %v8986_v54 }
 0x2c5   :  { %7273 = vmatprep.subr.bf16.mxu0 %v9235_v59 }
 0x2c7   :  { %v3825_v28 = vpop.f32.mrf.mxu0  ;;  %7220 = vmatmul.mubr.bf16.vlgmr.msra.gmra.mxu0 %v10834_v57 }
 0x2c8   :  { %7274 = vmatpush1.bf16.msra.mxu0 %v9234_v43  ;;  %7305 = vmatprep.mubr.bf16.mxu0 %v11709_v14  ;;  %v3826_v2 = vadd.f32 %v3825_v28, %v3783_v63  ;;  %v4178_v43 = vld [vmem:[%s13330_s3 + $0x8a8] sm:$0xff] }
 0x2c9   :  { %v3868_v35 = vpop.f32.mrf.mxu1  ;;  %v3827_v33 = vpop.f32.mrf.mxu0  ;;  %7275 = vmatprep.subr.bf16.mxu0 %v9227_v62  ;;  %v9202_v62 = vcombine.low %v4182_v20, %v4186_v15  ;;  %v9195_v41 = vcombine.high %v4174_v37, %v4178_v43  ;;  %v4166_v28 = vld [vmem:[%s13330_s3 + $0x848] sm:$0xff] }
 0x2ca   :  { %v3828_v56 = vadd.f32 %v3827_v33, %v3785_v49  ;;  %v3869_v39 = vadd.f32 %v3868_v35, %v3826_v2  ;;  %v4170_v49 = vld [vmem:[%s13330_s3 + $0x868] sm:$0xff]  ;;  %v9194_v35 = vcombine.low %v4174_v37, %v4178_v43 }
 0x2cb   :  { %v3870_v31 = vpop.f32.mrf.mxu1  ;;  %v3829_v3 = vpop.f32.mrf.mxu0  ;;  %v9187_v63 = vcombine.high %v4166_v28, %v4170_v49  ;;  %v4062_v33 = vld [vmem:[%s13330_s3 + $0x508] sm:$0xff] }
 0x2cc   :  { %v3830_v7 = vadd.f32 %v3829_v3, %v3787_v52  ;;  %7276 = vmatpush1.bf16.msra.mxu0 %v9226_v18  ;;  %v3871_v26 = vadd.f32 %v3870_v31, %v3828_v56  ;;  %v3883_v12 = vmax.f32 %v3869_v39, 0.0  ;;  %v9091_v18 = vcombine.high %v4070_v36, %v4074_v50  ;;  %v4278_v2 = vld [vmem:[%s13330_s3 + $0xbc8] sm:$0xff] }
 0x2cd   :  { %v3872_v29 = vpop.f32.mrf.mxu1  ;;  %v3831_v44 = vpop.f32.mrf.mxu0  ;;  %7277 = vmatprep.subr.bf16.mxu0 %v9219_v55  ;;  %v4066_v55 = vld [vmem:[%s13330_s3 + $0x528] sm:$0xff]  ;;  %v9186_v52 = vcombine.low %v4166_v28, %v4170_v49  ;;  %v9179_v31 = vcombine.high %v4158_v45, %v4162_v46 }
 0x2ce   :  { %v3873_v17 = vadd.f32 %v3872_v29, %v3830_v7  ;;  %v3832_v19 = vadd.f32 %v3831_v44, %v3789_v5  ;;  %v3884_v42 = vmax.f32 %v3871_v26, 0.0  ;;  %v9083_v56 = vcombine.high %v4062_v33, %v4066_v55  ;;  %v4282_v3 = vld [vmem:[%s13330_s3 + $0xbe8] sm:$0xff] }
 0x2cf   :  { %v3874_v22 = vpop.f32.mrf.mxu1  ;;  %v9082_v5 = vcombine.low %v4062_v33, %v4066_v55  ;;  %v9178_v7 = vcombine.low %v4158_v45, %v4162_v46  ;;  %v9075_v29 = vcombine.high %v4054_v51, %v4058_v24  ;;  %v4046_v44 = vld [vmem:[%s13330_s3 + $0x488] sm:$0xff]  ;;  %v9298_v20 = vcombine.low %v4278_v2, %v4282_v3 }
 0x2d0   :  { %v3875_v32 = vadd.f32 %v3874_v22, %v3832_v19  ;;  %7278 = vmatpush1.bf16.msra.mxu0 %v9218_v8  ;;  %v3891_v54 = vmax.f32 %v3873_v17, 0.0  ;;  %v9299_v8 = vcombine.high %v4278_v2, %v4282_v3  ;;  %v4270_v26 = vld [vmem:[%s13330_s3 + $0xb88] sm:$0xff]  ;;  %v9074_v19 = vcombine.low %v4054_v51, %v4058_v24 }
 0x2d1   :  { %7279 = vmatprep.subr.bf16.mxu0 %v9211_v10  ;;  %v4050_v10 = vld [vmem:[%s13330_s3 + $0x4a8] sm:$0xff] }
 0x2d2   :  { %v3892_v59 = vmax.f32 %v3875_v32, 0.0  ;;  %v12013_v30 = vpack.c.bf16 %v3891_v54, %v3883_v12  ;;  %v4274_v17 = vld [vmem:[%s13330_s3 + $0xba8] sm:$0xff]  ;;  %v9067_v15 = vcombine.high %v4046_v44, %v4050_v10 }
 0x2d3   :  { %v9291_v39 = vcombine.high %v4270_v26, %v4274_v17  ;;  %v4038_v22 = vld [vmem:[%s13330_s3 + $0x448] sm:$0xff] }
 0x2d4   :  { %v12011_v38 = vpack.c.bf16 %v3892_v59, %v3884_v42  ;;  %7280 = vmatpush1.bf16.msra.mxu0 %v9210_v61  ;;  %v4042_v32 = vld [vmem:[%s13330_s3 + $0x468] sm:$0xff]  ;;  %v9290_v42 = vcombine.low %v4270_v26, %v4274_v17 }
 0x2d5   :  { %7281 = vmatprep.subr.bf16.mxu0 %v9203_v27  ;;  %v4262_v61 = vld [vmem:[%s13330_s3 + $0xb48] sm:$0xff]  ;;  %v9066_v27 = vcombine.low %v4046_v44, %v4050_v10  ;;  %v9059_v59 = vcombine.high %v4038_v22, %v4042_v32 }
 0x2d6   :  { %7176 = vmatprep.mubr.bf16.mxu1 %v12011_v38  ;;  %v4266_v54 = vld [vmem:[%s13330_s3 + $0xb68] sm:$0xff] }
 0x2d7   :  { %7177 = vmatmul.mubr.bf16.vlgmr.msra.gmra.mxu1 %v12013_v30  ;;  %v9283_v60 = vcombine.high %v4262_v61, %v4266_v54  ;;  %v4034_v12 = vld [vmem:[%s13330_s3 + $0x428] sm:$0xff] }
 0x2d8   :  { %7231 = vmatpush1.bf16.msra.mxu1 %v9106_v53  ;;  %7262 = vmatprep.mubr.bf16.mxu1 %v11454_v9  ;;  %v9090_v53 = vcombine.low %v4070_v36, %v4074_v50  ;;  %v4254_v37 = vld [vmem:[%s13330_s3 + $0xb08] sm:$0xff] }
 0x2d9   :  { %7282 = vmatpush1.bf16.msra.mxu0 %v9202_v62  ;;  %7232 = vmatprep.subr.bf16.mxu1 %v9099_v40  ;;  %v4258_v43 = vld [vmem:[%s13330_s3 + $0xb28] sm:$0xff]  ;;  %v9058_v62 = vcombine.low %v4038_v22, %v4042_v32  ;;  %v9282_v40 = vcombine.low %v4262_v61, %v4266_v54  ;;  %v3959_v54 = vld [vmem:[%s13330_s3 + $0x1d0] sm:$0xff] }
 0x2da   :  { %7283 = vmatprep.subr.bf16.mxu0 %v9195_v41  ;;  %v9051_v41 = vcombine.high %v4030_v34, %v4034_v12  ;;  %v9275_v36 = vcombine.high %v4254_v37, %v4258_v43  ;;  %v4150_v50 = vld [vmem:[%s13330_s3 + $0x7c8] sm:$0xff] }
 0x2db   :  { %v4154_v28 = vld [vmem:[%s13330_s3 + $0x7e8] sm:$0xff] }
 0x2dc   :  { %7233 = vmatpush1.bf16.msra.mxu1 %v9098_v21  ;;  %v4246_v49 = vld [vmem:[%s13330_s3 + $0xac8] sm:$0xff] }
 0x2dd   :  { %7284 = vmatpush1.bf16.msra.mxu0 %v9194_v35  ;;  %7234 = vmatprep.subr.bf16.mxu1 %v9091_v18  ;;  %v4250_v21 = vld [vmem:[%s13330_s3 + $0xae8] sm:$0xff]  ;;  %v9050_v35 = vcombine.low %v4030_v34, %v4034_v12  ;;  %v9274_v18 = vcombine.low %v4254_v37, %v4258_v43  ;;  %v3951_v43 = vld [vmem:[%s13330_s3 + $0x190] sm:$0xff] }
 0x2de   :  { %7285 = vmatprep.subr.bf16.mxu0 %v9187_v63  ;;  %v9171_v63 = vcombine.high %v4150_v50, %v4154_v28  ;;  %v9267_v33 = vcombine.high %v4246_v49, %v4250_v21  ;;  %v4142_v55 = vld [vmem:[%s13330_s3 + $0x788] sm:$0xff] }
 0x2df   :  { %v4146_v45 = vld [vmem:[%s13330_s3 + $0x7a8] sm:$0xff] }
 0x2e0   :  { %7235 = vmatpush1.bf16.msra.mxu1 %v9090_v53  ;;  %v4238_v46 = vld [vmem:[%s13330_s3 + $0xa88] sm:$0xff] }
 0x2e1   :  { %7286 = vmatpush1.bf16.msra.mxu0 %v9186_v52  ;;  %7236 = vmatprep.subr.bf16.mxu1 %v9083_v56  ;;  %v4242_v53 = vld [vmem:[%s13330_s3 + $0xaa8] sm:$0xff]  ;;  %v9170_v52 = vcombine.low %v4150_v50, %v4154_v28  ;;  %v9266_v56 = vcombine.low %v4246_v49, %v4250_v21  ;;  %v3943_v21 = vld [vmem:[%s13330_s3 + $0x150] sm:$0xff] }
 0x2e2   :  { %7287 = vmatprep.subr.bf16.mxu0 %v9179_v31  ;;  %v9163_v31 = vcombine.high %v4142_v55, %v4146_v45  ;;  %v9259_v51 = vcombine.high %v4238_v46, %v4242_v53  ;;  %v4134_v24 = vld [vmem:[%s13330_s3 + $0x748] sm:$0xff] }
 0x2e3   :  { %v4138_v2 = vld [vmem:[%s13330_s3 + $0x768] sm:$0xff] }
 0x2e4   :  { %7237 = vmatpush1.bf16.msra.mxu1 %v9082_v5  ;;  %v4230_v3 = vld [vmem:[%s13330_s3 + $0xa48] sm:$0xff] }
 0x2e5   :  { %7288 = vmatpush1.bf16.msra.mxu0 %v9178_v7  ;;  %7238 = vmatprep.subr.bf16.mxu1 %v9075_v29  ;;  %v4234_v5 = vld [vmem:[%s13330_s3 + $0xa68] sm:$0xff]  ;;  %v9162_v7 = vcombine.low %v4142_v55, %v4146_v45  ;;  %v9258_v29 = vcombine.low %v4238_v46, %v4242_v53  ;;  %v3935_v53 = vld [vmem:[%s13330_s3 + $0x110] sm:$0xff] }
 0x2e6   :  { %7289 = vmatprep.subr.bf16.mxu0 %v9299_v8  ;;  %v9155_v8 = vcombine.high %v4134_v24, %v4138_v2  ;;  %v9251_v44 = vcombine.high %v4230_v3, %v4234_v5  ;;  %v4126_v10 = vld [vmem:[%s13330_s3 + $0x708] sm:$0xff] }
 0x2e7   :  { %v4130_v26 = vld [vmem:[%s13330_s3 + $0x728] sm:$0xff] }
 0x2e8   :  { %7239 = vmatpush1.bf16.msra.mxu1 %v9074_v19  ;;  %v4222_v17 = vld [vmem:[%s13330_s3 + $0xa08] sm:$0xff] }
 0x2e9   :  { %7290 = vmatpush2.bf16.msra.mxu0 %v9298_v20  ;;  %7240 = vmatprep.subr.bf16.mxu1 %v9067_v15  ;;  %v4226_v19 = vld [vmem:[%s13330_s3 + $0xa28] sm:$0xff]  ;;  %v9154_v20 = vcombine.low %v4134_v24, %v4138_v2  ;;  %v9250_v15 = vcombine.low %v4230_v3, %v4234_v5  ;;  %v3927_v5 = vld [vmem:[%s13330_s3 + $0xd0] sm:$0xff] }
 0x2ea   :  { %7291 = vmatprep.subr.bf16.mxu0 %v9291_v39  ;;  %v9147_v39 = vcombine.high %v4126_v10, %v4130_v26  ;;  %v9243_v22 = vcombine.high %v4222_v17, %v4226_v19  ;;  %v4118_v32 = vld [vmem:[%s13330_s3 + $0x6c8] sm:$0xff] }
 0x2eb   :  { %v4122_v61 = vld [vmem:[%s13330_s3 + $0x6e8] sm:$0xff] }
 0x2ec   :  { %7241 = vmatpush1.bf16.msra.mxu1 %v9066_v27  ;;  %v3963_v27 = vld [vmem:[%s13330_s3 + $0x1f0] sm:$0xff]  ;;  %v4110_v12 = vld [vmem:[%s13330_s3 + $0x688] sm:$0xff] }
 0x2ed   :  { %7292 = vmatpush2.bf16.msra.mxu0 %v9290_v42  ;;  %7242 = vmatprep.subr.bf16.mxu1 %v9059_v59  ;;  %v9146_v42 = vcombine.low %v4126_v10, %v4130_v26  ;;  %v9242_v59 = vcombine.low %v4222_v17, %v4226_v19  ;;  %v8981_v34 = vcombine.high %v3959_v54, %v3963_v27  ;;  %v4114_v37 = vld [vmem:[%s13330_s3 + $0x6a8] sm:$0xff]  ;;  %v3919_v19 = vld [vmem:[%s13330_s3 + $0x90] sm:$0xff] }
 0x2ee   :  { %7293 = vmatprep.subr.bf16.mxu0 %v9283_v60  ;;  %v9139_v60 = vcombine.high %v4118_v32, %v4122_v61  ;;  %v4102_v28 = vld [vmem:[%s13330_s3 + $0x648] sm:$0xff] }
 0x2ef   :  { %v4106_v49 = vld [vmem:[%s13330_s3 + $0x668] sm:$0xff] }
 0x2f0   :  { %7243 = vmatpush1.bf16.msra.mxu1 %v9058_v62  ;;  %v3955_v62 = vld [vmem:[%s13330_s3 + $0x1b0] sm:$0xff]  ;;  %v4094_v45 = vld [vmem:[%s13330_s3 + $0x608] sm:$0xff] }
 0x2f1   :  { %7294 = vmatpush2.bf16.msra.mxu0 %v9282_v40  ;;  %7244 = vmatprep.subr.bf16.mxu1 %v9051_v41  ;;  %v9138_v40 = vcombine.low %v4118_v32, %v4122_v61  ;;  %v8980_v41 = vcombine.low %v3959_v54, %v3963_v27  ;;  %v8973_v50 = vcombine.high %v3951_v43, %v3955_v62  ;;  %v4098_v46 = vld [vmem:[%s13330_s3 + $0x628] sm:$0xff]  ;;  %v3911_v27 = vld [vmem:[%s13330_s3 + $0x50] sm:$0xff] }
 0x2f2   :  { %7295 = vmatprep.subr.bf16.mxu0 %v9275_v36  ;;  %v9131_v36 = vcombine.high %v4110_v12, %v4114_v37  ;;  %v4342_v2 = vld [vmem:[%s13330_s3 + $0xdc8] sm:$0xff] }
 0x2f3   :  { %v4346_v3 = vld [vmem:[%s13330_s3 + $0xde8] sm:$0xff] }
 0x2f4   :  { %7245 = vmatpush1.bf16.msra.mxu1 %v9050_v35  ;;  %v3947_v35 = vld [vmem:[%s13330_s3 + $0x170] sm:$0xff]  ;;  %v4334_v26 = vld [vmem:[%s13330_s3 + $0xd88] sm:$0xff] }
 0x2f5   :  { %7296 = vmatpush2.bf16.msra.mxu0 %v9274_v18  ;;  %7246 = vmatprep.subr.bf16.mxu1 %v9171_v63  ;;  %v9130_v18 = vcombine.low %v4110_v12, %v4114_v37  ;;  %v8972_v63 = vcombine.low %v3951_v43, %v3955_v62  ;;  %v8965_v55 = vcombine.high %v3943_v21, %v3947_v35  ;;  %v4338_v17 = vld [vmem:[%s13330_s3 + $0xda8] sm:$0xff]  ;;  %v3903_v62 = vld [vmem:[%s13330_s3 + $0x10] sm:$0xff] }
 0x2f6   :  { %7297 = vmatprep.subr.bf16.mxu0 %v9267_v33  ;;  %v9123_v33 = vcombine.high %v4102_v28, %v4106_v49  ;;  %v4326_v61 = vld [vmem:[%s13330_s3 + $0xd48] sm:$0xff] }
 0x2f7   :  { %v4330_v54 = vld [vmem:[%s13330_s3 + $0xd68] sm:$0xff] }
 0x2f8   :  { %7247 = vmatpush2.bf16.msra.mxu1 %v9170_v52  ;;  %v3939_v52 = vld [vmem:[%s13330_s3 + $0x130] sm:$0xff]  ;;  %v4318_v37 = vld [vmem:[%s13330_s3 + $0xd08] sm:$0xff] }
 0x2f9   :  { %7298 = vmatpush2.bf16.msra.mxu0 %v9266_v56  ;;  %7248 = vmatprep.subr.bf16.mxu1 %v9163_v31  ;;  %v9122_v56 = vcombine.low %v4102_v28, %v4106_v49  ;;  %v8964_v31 = vcombine.low %v3943_v21, %v3947_v35  ;;  %v8957_v24 = vcombine.high %v3935_v53, %v3939_v52  ;;  %v4322_v43 = vld [vmem:[%s13330_s3 + $0xd28] sm:$0xff]  ;;  %v4023_v35 = vld [vmem:[%s13330_s3 + $0x3d0] sm:$0xff] }
 0x2fa   :  { %7299 = vmatprep.subr.bf16.mxu0 %v9259_v51  ;;  %v9115_v51 = vcombine.high %v4094_v45, %v4098_v46  ;;  %v4310_v49 = vld [vmem:[%s13330_s3 + $0xcc8] sm:$0xff] }
 0x2fb   :  { %v4314_v21 = vld [vmem:[%s13330_s3 + $0xce8] sm:$0xff] }
 0x2fc   :  { %7249 = vmatpush2.bf16.msra.mxu1 %v9162_v7  ;;  %v3931_v7 = vld [vmem:[%s13330_s3 + $0xf0] sm:$0xff] }
 0x2fd   :  { %7300 = vmatpush2.bf16.msra.mxu0 %v9258_v29  ;;  %7250 = vmatprep.subr.bf16.mxu1 %v9155_v8  ;;  %v9114_v29 = vcombine.low %v4094_v45, %v4098_v46  ;;  %v8956_v8 = vcombine.low %v3935_v53, %v3939_v52  ;;  %v8949_v10 = vcombine.high %v3927_v5, %v3931_v7  ;;  %v4302_v46 = vld [vmem:[%s13330_s3 + $0xc88] sm:$0xff]  ;;  %v4015_v52 = vld [vmem:[%s13330_s3 + $0x390] sm:$0xff] }
 0x2fe   :  { %7301 = vmatprep.subr.bf16.mxu0 %v9251_v44  ;;  %v9363_v44 = vcombine.high %v4342_v2, %v4346_v3  ;;  %v4306_v53 = vld [vmem:[%s13330_s3 + $0xca8] sm:$0xff] }
 0x300   :  { %7251 = vmatpush2.bf16.msra.mxu1 %v9154_v20  ;;  %v3923_v20 = vld [vmem:[%s13330_s3 + $0xb0] sm:$0xff] }
 0x301   :  { %7302 = vmatpush2.bf16.msra.mxu0 %v9250_v15  ;;  %7252 = vmatprep.subr.bf16.mxu1 %v9147_v39  ;;  %v9362_v15 = vcombine.low %v4342_v2, %v4346_v3  ;;  %v8948_v39 = vcombine.low %v3927_v5, %v3931_v7  ;;  %v8941_v32 = vcombine.high %v3919_v19, %v3923_v20  ;;  %v4294_v3 = vld [vmem:[%s13330_s3 + $0xc48] sm:$0xff]  ;;  %v4007_v7 = vld [vmem:[%s13330_s3 + $0x350] sm:$0xff] }
 0x302   :  { %7303 = vmatprep.subr.bf16.mxu0 %v9243_v22  ;;  %v9355_v22 = vcombine.high %v4334_v26, %v4338_v17  ;;  %v4298_v5 = vld [vmem:[%s13330_s3 + $0xc68] sm:$0xff] }
 0x304   :  { %7253 = vmatpush2.bf16.msra.mxu1 %v9146_v42  ;;  %v3915_v42 = vld [vmem:[%s13330_s3 + $0x70] sm:$0xff] }
 0x305   :  { %7304 = vmatpush2.bf16.msra.mxu0 %v9242_v59  ;;  %7254 = vmatprep.subr.bf16.mxu1 %v9139_v60  ;;  %v9354_v59 = vcombine.low %v4334_v26, %v4338_v17  ;;  %v8940_v60 = vcombine.low %v3919_v19, %v3923_v20  ;;  %v8933_v12 = vcombine.high %v3911_v27, %v3915_v42  ;;  %v4286_v17 = vld [vmem:[%s13330_s3 + $0xc08] sm:$0xff]  ;;  %v3999_v20 = vld [vmem:[%s13330_s3 + $0x310] sm:$0xff] }
 0x306   :  { %7359 = vmatprep.subr.bf16.mxu0 %v8981_v34  ;;  %v9347_v34 = vcombine.high %v4326_v61, %v4330_v54  ;;  %v4290_v19 = vld [vmem:[%s13330_s3 + $0xc28] sm:$0xff] }
 0x308   :  { %7255 = vmatpush2.bf16.msra.mxu1 %v9138_v40  ;;  %7306 = vmatmul.mubr.bf16.vlgmr.msra.gmra.mxu0 %v11870_v1  ;;  %v3907_v40 = vld [vmem:[%s13330_s3 + $0x30] sm:$0xff] }
 0x309   :  { %7360 = vmatpush1.bf16.msra.mxu0 %v8980_v41  ;;  %7391 = vmatprep.mubr.bf16.mxu0 %v11445_v58  ;;  %v9346_v41 = vcombine.low %v4326_v61, %v4330_v54  ;;  %v8925_v28 = vcombine.high %v3903_v62, %v3907_v40  ;;  %v4406_v54 = vld [vmem:[%s13330_s3 + $0xfc8] sm:$0xff] }
 0x30a   :  { %7256 = vmatprep.subr.bf16.mxu1 %v9131_v36  ;;  %7361 = vmatprep.subr.bf16.mxu0 %v8973_v50  ;;  %v8932_v36 = vcombine.low %v3911_v27, %v3915_v42  ;;  %v9339_v50 = vcombine.high %v4318_v37, %v4322_v43  ;;  %v4410_v27 = vld [vmem:[%s13330_s3 + $0xfe8] sm:$0xff]  ;;  %v3991_v42 = vld [vmem:[%s13330_s3 + $0x2d0] sm:$0xff] }
 0x30c   :  { %7257 = vmatpush2.bf16.msra.mxu1 %v9130_v18  ;;  %v4027_v18 = vld [vmem:[%s13330_s3 + $0x3f0] sm:$0xff] }
 0x30d   :  { %7362 = vmatpush1.bf16.msra.mxu0 %v8972_v63  ;;  %7258 = vmatprep.subr.bf16.mxu1 %v9123_v33  ;;  %v9338_v63 = vcombine.low %v4318_v37, %v4322_v43  ;;  %v8924_v33 = vcombine.low %v3903_v62, %v3907_v40  ;;  %v9045_v45 = vcombine.high %v4023_v35, %v4027_v18  ;;  %v4398_v43 = vld [vmem:[%s13330_s3 + $0xf88] sm:$0xff]  ;;  %v3983_v40 = vld [vmem:[%s13330_s3 + $0x290] sm:$0xff] }
 0x30e   :  { %7363 = vmatprep.subr.bf16.mxu0 %v8965_v55  ;;  %v9331_v55 = vcombine.high %v4310_v49, %v4314_v21  ;;  %v4402_v62 = vld [vmem:[%s13330_s3 + $0xfa8] sm:$0xff] }
 0x310   :  { %7259 = vmatpush2.bf16.msra.mxu1 %v9122_v56  ;;  %v4019_v56 = vld [vmem:[%s13330_s3 + $0x3b0] sm:$0xff] }
 0x311   :  { %7364 = vmatpush1.bf16.msra.mxu0 %v8964_v31  ;;  %7260 = vmatprep.subr.bf16.mxu1 %v9115_v51  ;;  %v9330_v31 = vcombine.low %v4310_v49, %v4314_v21  ;;  %v9044_v51 = vcombine.low %v4023_v35, %v4027_v18  ;;  %v9037_v2 = vcombine.high %v4015_v52, %v4019_v56  ;;  %v4390_v21 = vld [vmem:[%s13330_s3 + $0xf48] sm:$0xff]  ;;  %v3975_v18 = vld [vmem:[%s13330_s3 + $0x250] sm:$0xff] }
 0x312   :  { %7365 = vmatprep.subr.bf16.mxu0 %v8957_v24  ;;  %v9323_v24 = vcombine.high %v4302_v46, %v4306_v53  ;;  %v4394_v35 = vld [vmem:[%s13330_s3 + $0xf68] sm:$0xff] }
 0x314   :  { %7261 = vmatpush2.bf16.msra.mxu1 %v9114_v29  ;;  %v4011_v29 = vld [vmem:[%s13330_s3 + $0x370] sm:$0xff] }
 0x315   :  { %7366 = vmatpush1.bf16.msra.mxu0 %v8956_v8  ;;  %7316 = vmatprep.subr.bf16.mxu1 %v9363_v44  ;;  %v9322_v8 = vcombine.low %v4302_v46, %v4306_v53  ;;  %v9036_v44 = vcombine.low %v4015_v52, %v4019_v56  ;;  %v9029_v26 = vcombine.high %v4007_v7, %v4011_v29  ;;  %v4382_v53 = vld [vmem:[%s13330_s3 + $0xf08] sm:$0xff]  ;;  %v3967_v56 = vld [vmem:[%s13330_s3 + $0x210] sm:$0xff] }
 0x316   :  { %7367 = vmatprep.subr.bf16.mxu0 %v8949_v10  ;;  %v9315_v10 = vcombine.high %v4294_v3, %v4298_v5  ;;  %v4386_v52 = vld [vmem:[%s13330_s3 + $0xf28] sm:$0xff] }
 0x317   :  { %7263 = vmatmul.mubr.bf16.vlgmr.msra.gmra.mxu1 %v11254_v16 }
 0x318   :  { %7317 = vmatpush1.bf16.msra.mxu1 %v9362_v15  ;;  %7348 = vmatprep.mubr.bf16.mxu1 %v12011_v38  ;;  %v4003_v15 = vld [vmem:[%s13330_s3 + $0x330] sm:$0xff] }
 0x319   :  { %7368 = vmatpush1.bf16.msra.mxu0 %v8948_v39  ;;  %7318 = vmatprep.subr.bf16.mxu1 %v9355_v22  ;;  %v9314_v39 = vcombine.low %v4294_v3, %v4298_v5  ;;  %v9028_v22 = vcombine.low %v4007_v7, %v4011_v29  ;;  %v9021_v61 = vcombine.high %v3999_v20, %v4003_v15  ;;  %v4374_v5 = vld [vmem:[%s13330_s3 + $0xec8] sm:$0xff]  ;;  %v4215_v29 = vld [vmem:[%s13330_s3 + $0x9d0] sm:$0xff] }
 0x31a   :  { %7369 = vmatprep.subr.bf16.mxu0 %v8941_v32  ;;  %v9307_v32 = vcombine.high %v4286_v17, %v4290_v19  ;;  %v4378_v7 = vld [vmem:[%s13330_s3 + $0xee8] sm:$0xff] }
 0x31c   :  { %7319 = vmatpush1.bf16.msra.mxu1 %v9354_v59  ;;  %v3995_v59 = vld [vmem:[%s13330_s3 + $0x2f0] sm:$0xff] }
 0x31d   :  { %7370 = vmatpush1.bf16.msra.mxu0 %v8940_v60  ;;  %7320 = vmatprep.subr.bf16.mxu1 %v9347_v34  ;;  %v9306_v60 = vcombine.low %v4286_v17, %v4290_v19  ;;  %v9020_v34 = vcombine.low %v3999_v20, %v4003_v15  ;;  %v9013_v37 = vcombine.high %v3991_v42, %v3995_v59  ;;  %v4366_v19 = vld [vmem:[%s13330_s3 + $0xe88] sm:$0xff]  ;;  %v4207_v15 = vld [vmem:[%s13330_s3 + $0x990] sm:$0xff] }
 0x31e   :  { %7371 = vmatprep.subr.bf16.mxu0 %v8933_v12  ;;  %v9427_v12 = vcombine.high %v4406_v54, %v4410_v27  ;;  %v4370_v20 = vld [vmem:[%s13330_s3 + $0xea8] sm:$0xff] }
 0x320   :  { %7321 = vmatpush1.bf16.msra.mxu1 %v9346_v41  ;;  %v3987_v41 = vld [vmem:[%s13330_s3 + $0x2b0] sm:$0xff] }
 0x321   :  { %7372 = vmatpush1.bf16.msra.mxu0 %v8932_v36  ;;  %7322 = vmatprep.subr.bf16.mxu1 %v9339_v50  ;;  %v9426_v36 = vcombine.low %v4406_v54, %v4410_v27  ;;  %v9012_v50 = vcombine.low %v3991_v42, %v3995_v59  ;;  %v9005_v49 = vcombine.high %v3983_v40, %v3987_v41  ;;  %v4358_v27 = vld [vmem:[%s13330_s3 + $0xe48] sm:$0xff]  ;;  %v4199_v59 = vld [vmem:[%s13330_s3 + $0x950] sm:$0xff] }
 0x322   :  { %7373 = vmatprep.subr.bf16.mxu0 %v8925_v28  ;;  %v9419_v28 = vcombine.high %v4398_v43, %v4402_v62  ;;  %v4362_v42 = vld [vmem:[%s13330_s3 + $0xe68] sm:$0xff] }
 0x324   :  { %7323 = vmatpush1.bf16.msra.mxu1 %v9338_v63  ;;  %v3979_v63 = vld [vmem:[%s13330_s3 + $0x270] sm:$0xff] }
 0x325   :  { %7374 = vmatpush1.bf16.msra.mxu0 %v8924_v33  ;;  %7324 = vmatprep.subr.bf16.mxu1 %v9331_v55  ;;  %v9418_v33 = vcombine.low %v4398_v43, %v4402_v62  ;;  %v9004_v55 = vcombine.low %v3983_v40, %v3987_v41  ;;  %v8997_v46 = vcombine.high %v3975_v18, %v3979_v63  ;;  %v4350_v62 = vld [vmem:[%s13330_s3 + $0xe08] sm:$0xff]  ;;  %v4191_v41 = vld [vmem:[%s13330_s3 + $0x910] sm:$0xff] }
 0x326   :  { %7375 = vmatprep.subr.bf16.mxu0 %v9045_v45  ;;  %v9411_v45 = vcombine.high %v4390_v21, %v4394_v35  ;;  %v4354_v40 = vld [vmem:[%s13330_s3 + $0xe28] sm:$0xff] }
 0x328   :  { %7325 = vmatpush1.bf16.msra.mxu1 %v9330_v31  ;;  %v3971_v31 = vld [vmem:[%s13330_s3 + $0x230] sm:$0xff] }
 0x329   :  { %7376 = vmatpush2.bf16.msra.mxu0 %v9044_v51  ;;  %7326 = vmatprep.subr.bf16.mxu1 %v9323_v24  ;;  %v9410_v51 = vcombine.low %v4390_v21, %v4394_v35  ;;  %v8996_v24 = vcombine.low %v3975_v18, %v3979_v63  ;;  %v8989_v3 = vcombine.high %v3967_v56, %v3971_v31  ;;  %v4087_v35 = vld [vmem:[%s13330_s3 + $0x5d0] sm:$0xff] }
 0x32a   :  { %7377 = vmatprep.subr.bf16.mxu0 %v9037_v2  ;;  %v9403_v2 = vcombine.high %v4382_v53, %v4386_v52  ;;  %v4091_v18 = vld [vmem:[%s13330_s3 + $0x5f0] sm:$0xff] }
 0x32b   :  { %v4183_v63 = vld [vmem:[%s13330_s3 + $0x8d0] sm:$0xff] }
 0x32c   :  { %7327 = vmatpush1.bf16.msra.mxu1 %v9322_v8  ;;  %v4219_v8 = vld [vmem:[%s13330_s3 + $0x9f0] sm:$0xff] }
 0x32d   :  { %7378 = vmatpush2.bf16.msra.mxu0 %v9036_v44  ;;  %7328 = vmatprep.subr.bf16.mxu1 %v9315_v10  ;;  %v9402_v44 = vcombine.low %v4382_v53, %v4386_v52  ;;  %v8988_v10 = vcombine.low %v3967_v56, %v3971_v31  ;;  %v9237_v17 = vcombine.high %v4215_v29, %v4219_v8  ;;  %v4079_v52 = vld [vmem:[%s13330_s3 + $0x590] sm:$0xff] }
 0x32e   :  { %7379 = vmatprep.subr.bf16.mxu0 %v9029_v26  ;;  %v9395_v26 = vcombine.high %v4374_v5, %v4378_v7  ;;  %v4083_v56 = vld [vmem:[%s13330_s3 + $0x5b0] sm:$0xff] }
 0x32f   :  { %v4175_v31 = vld [vmem:[%s13330_s3 + $0x890] sm:$0xff] }
 0x330   :  { %7329 = vmatpush1.bf16.msra.mxu1 %v9314_v39  ;;  %v4211_v39 = vld [vmem:[%s13330_s3 + $0x9b0] sm:$0xff] }
 0x331   :  { %7380 = vmatpush2.bf16.msra.mxu0 %v9028_v22  ;;  %7330 = vmatprep.subr.bf16.mxu1 %v9307_v32  ;;  %v9394_v22 = vcombine.low %v4374_v5, %v4378_v7  ;;  %v9236_v32 = vcombine.low %v4215_v29, %v4219_v8  ;;  %v9229_v54 = vcombine.high %v4207_v15, %v4211_v39  ;;  %v4071_v7 = vld [vmem:[%s13330_s3 + $0x550] sm:$0xff] }
 0x332   :  { %7381 = vmatprep.subr.bf16.mxu0 %v9021_v61  ;;  %v9387_v61 = vcombine.high %v4366_v19, %v4370_v20  ;;  %v4075_v29 = vld [vmem:[%s13330_s3 + $0x570] sm:$0xff] }
 0x333   :  { %v4167_v8 = vld [vmem:[%s13330_s3 + $0x850] sm:$0xff] }
 0x334   :  { %7331 = vmatpush1.bf16.msra.mxu1 %v9306_v60  ;;  %v4203_v60 = vld [vmem:[%s13330_s3 + $0x970] sm:$0xff] }
 0x335   :  { %7382 = vmatpush2.bf16.msra.mxu0 %v9020_v34  ;;  %7332 = vmatprep.subr.bf16.mxu1 %v9427_v12  ;;  %v9386_v34 = vcombine.low %v4366_v19, %v4370_v20  ;;  %v9228_v12 = vcombine.low %v4207_v15, %v4211_v39  ;;  %v9221_v43 = vcombine.high %v4199_v59, %v4203_v60  ;;  %v4063_v20 = vld [vmem:[%s13330_s3 + $0x510] sm:$0xff] }
 0x336   :  { %7383 = vmatprep.subr.bf16.mxu0 %v9013_v37  ;;  %v9379_v37 = vcombine.high %v4358_v27, %v4362_v42  ;;  %v4067_v15 = vld [vmem:[%s13330_s3 + $0x530] sm:$0xff] }
 0x337   :  { %v4159_v39 = vld [vmem:[%s13330_s3 + $0x810] sm:$0xff] }
 0x338   :  { %7333 = vmatpush2.bf16.msra.mxu1 %v9426_v36  ;;  %v4195_v36 = vld [vmem:[%s13330_s3 + $0x930] sm:$0xff] }
 0x339   :  { %7384 = vmatpush2.bf16.msra.mxu0 %v9012_v50  ;;  %7334 = vmatprep.subr.bf16.mxu1 %v9419_v28  ;;  %v9378_v50 = vcombine.low %v4358_v27, %v4362_v42  ;;  %v9220_v28 = vcombine.low %v4199_v59, %v4203_v60  ;;  %v9213_v21 = vcombine.high %v4191_v41, %v4195_v36  ;;  %v4055_v42 = vld [vmem:[%s13330_s3 + $0x4d0] sm:$0xff] }
 0x33a   :  { %7385 = vmatprep.subr.bf16.mxu0 %v9005_v49  ;;  %v9371_v49 = vcombine.high %v4350_v62, %v4354_v40  ;;  %v4059_v59 = vld [vmem:[%s13330_s3 + $0x4f0] sm:$0xff] }
 0x33b   :  { %v4279_v60 = vld [vmem:[%s13330_s3 + $0xbd0] sm:$0xff] }
 0x33c   :  { %7335 = vmatpush2.bf16.msra.mxu1 %v9418_v33  ;;  %v4187_v33 = vld [vmem:[%s13330_s3 + $0x8f0] sm:$0xff] }
 0x33d   :  { %7386 = vmatpush2.bf16.msra.mxu0 %v9004_v55  ;;  %7336 = vmatprep.subr.bf16.mxu1 %v9411_v45  ;;  %v9370_v55 = vcombine.low %v4350_v62, %v4354_v40  ;;  %v9212_v45 = vcombine.low %v4191_v41, %v4195_v36  ;;  %v9205_v53 = vcombine.high %v4183_v63, %v4187_v33  ;;  %v4047_v40 = vld [vmem:[%s13330_s3 + $0x490] sm:$0xff] }
 0x33e   :  { %7387 = vmatprep.subr.bf16.mxu0 %v8997_v46  ;;  %v9109_v46 = vcombine.high %v4087_v35, %v4091_v18  ;;  %v4051_v41 = vld [vmem:[%s13330_s3 + $0x4b0] sm:$0xff] }
 0x33f   :  { %v4271_v36 = vld [vmem:[%s13330_s3 + $0xb90] sm:$0xff] }
 0x340   :  { %7337 = vmatpush2.bf16.msra.mxu1 %v9410_v51  ;;  %v4179_v51 = vld [vmem:[%s13330_s3 + $0x8b0] sm:$0xff] }
 0x341   :  { %7388 = vmatpush2.bf16.msra.mxu0 %v8996_v24  ;;  %7338 = vmatprep.subr.bf16.mxu1 %v9403_v2  ;;  %v9108_v24 = vcombine.low %v4087_v35, %v4091_v18  ;;  %v9204_v2 = vcombine.low %v4183_v63, %v4187_v33  ;;  %v9197_v5 = vcombine.high %v4175_v31, %v4179_v51  ;;  %v4039_v18 = vld [vmem:[%s13330_s3 + $0x450] sm:$0xff] }
 0x342   :  { %7389 = vmatprep.subr.bf16.mxu0 %v8989_v3  ;;  %v9101_v3 = vcombine.high %v4079_v52, %v4083_v56  ;;  %v4043_v63 = vld [vmem:[%s13330_s3 + $0x470] sm:$0xff] }
 0x343   :  { %v4263_v33 = vld [vmem:[%s13330_s3 + $0xb50] sm:$0xff] }
 0x344   :  { %7339 = vmatpush2.bf16.msra.mxu1 %v9402_v44  ;;  %v4171_v44 = vld [vmem:[%s13330_s3 + $0x870] sm:$0xff] }
 0x345   :  { %7390 = vmatpush2.bf16.msra.mxu0 %v8988_v10  ;;  %7340 = vmatprep.subr.bf16.mxu1 %v9395_v26  ;;  %v9100_v10 = vcombine.low %v4079_v52, %v4083_v56  ;;  %v9196_v26 = vcombine.low %v4175_v31, %v4179_v51  ;;  %v9189_v19 = vcombine.high %v4167_v8, %v4171_v44  ;;  %v4031_v56 = vld [vmem:[%s13330_s3 + $0x410] sm:$0xff] }
 0x346   :  { %7445 = vmatprep.subr.bf16.mxu0 %v9237_v17  ;;  %v9093_v17 = vcombine.high %v4071_v7, %v4075_v29  ;;  %v4035_v31 = vld [vmem:[%s13330_s3 + $0x430] sm:$0xff] }
 0x347   :  { %v4255_v51 = vld [vmem:[%s13330_s3 + $0xb10] sm:$0xff] }
 0x348   :  { %7341 = vmatpush2.bf16.msra.mxu1 %v9394_v22  ;;  %7392 = vmatmul.mubr.bf16.vlgmr.msra.gmra.mxu0 %v10834_v57  ;;  %v4163_v22 = vld [vmem:[%s13330_s3 + $0x830] sm:$0xff] }
 0x349   :  { %7446 = vmatpush1.bf16.msra.mxu0 %v9236_v32  ;;  %7477 = vmatprep.mubr.bf16.mxu0 %v11709_v14  ;;  %v9092_v32 = vcombine.low %v4071_v7, %v4075_v29  ;;  %v9181_v27 = vcombine.high %v4159_v39, %v4163_v22  ;;  %v4151_v29 = vld [vmem:[%s13330_s3 + $0x7d0] sm:$0xff] }
 0x34a   :  { %7342 = vmatprep.subr.bf16.mxu1 %v9387_v61  ;;  %7447 = vmatprep.subr.bf16.mxu0 %v9229_v54  ;;  %v9188_v61 = vcombine.low %v4167_v8, %v4171_v44  ;;  %v9085_v54 = vcombine.high %v4063_v20, %v4067_v15  ;;  %v4155_v8 = vld [vmem:[%s13330_s3 + $0x7f0] sm:$0xff] }
 0x34b   :  { %v4247_v44 = vld [vmem:[%s13330_s3 + $0xad0] sm:$0xff] }
 0x34c   :  { %7343 = vmatpush2.bf16.msra.mxu1 %v9386_v34  ;;  %v4283_v34 = vld [vmem:[%s13330_s3 + $0xbf0] sm:$0xff] }
 0x34d   :  { %7448 = vmatpush1.bf16.msra.mxu0 %v9228_v12  ;;  %7344 = vmatprep.subr.bf16.mxu1 %v9379_v37  ;;  %v9084_v12 = vcombine.low %v4063_v20, %v4067_v15  ;;  %v9180_v37 = vcombine.low %v4159_v39, %v4163_v22  ;;  %v9301_v62 = vcombine.high %v4279_v60, %v4283_v34  ;;  %v4143_v15 = vld [vmem:[%s13330_s3 + $0x790] sm:$0xff] }
 0x34e   :  { %7449 = vmatprep.subr.bf16.mxu0 %v9221_v43  ;;  %v9077_v43 = vcombine.high %v4055_v42, %v4059_v59  ;;  %v4147_v39 = vld [vmem:[%s13330_s3 + $0x7b0] sm:$0xff] }
 0x34f   :  { %v4239_v22 = vld [vmem:[%s13330_s3 + $0xa90] sm:$0xff] }
 0x350   :  { %7345 = vmatpush2.bf16.msra.mxu1 %v9378_v50  ;;  %v4275_v50 = vld [vmem:[%s13330_s3 + $0xbb0] sm:$0xff] }
 0x351   :  { %7450 = vmatpush1.bf16.msra.mxu0 %v9220_v28  ;;  %7346 = vmatprep.subr.bf16.mxu1 %v9371_v49  ;;  %v9076_v28 = vcombine.low %v4055_v42, %v4059_v59  ;;  %v9300_v49 = vcombine.low %v4279_v60, %v4283_v34  ;;  %v9293_v35 = vcombine.high %v4271_v36, %v4275_v50  ;;  %v4135_v59 = vld [vmem:[%s13330_s3 + $0x750] sm:$0xff] }
 0x352   :  { %7451 = vmatprep.subr.bf16.mxu0 %v9213_v21  ;;  %v9069_v21 = vcombine.high %v4047_v40, %v4051_v41  ;;  %v4139_v60 = vld [vmem:[%s13330_s3 + $0x770] sm:$0xff] }
 0x353   :  { %v4231_v34 = vld [vmem:[%s13330_s3 + $0xa50] sm:$0xff] }
 0x354   :  { %7347 = vmatpush2.bf16.msra.mxu1 %v9370_v55  ;;  %v4267_v55 = vld [vmem:[%s13330_s3 + $0xb70] sm:$0xff] }
 0x355   :  { %7452 = vmatpush1.bf16.msra.mxu0 %v9212_v45  ;;  %7402 = vmatprep.subr.bf16.mxu1 %v9109_v46  ;;  %v9068_v45 = vcombine.low %v4047_v40, %v4051_v41  ;;  %v9292_v46 = vcombine.low %v4271_v36, %v4275_v50  ;;  %v9285_v52 = vcombine.high %v4263_v33, %v4267_v55  ;;  %v4127_v41 = vld [vmem:[%s13330_s3 + $0x710] sm:$0xff] }
 0x356   :  { %7453 = vmatprep.subr.bf16.mxu0 %v9205_v53  ;;  %v9061_v53 = vcombine.high %v4039_v18, %v4043_v63  ;;  %v4131_v36 = vld [vmem:[%s13330_s3 + $0x730] sm:$0xff] }
 0x357   :  { %7349 = vmatmul.mubr.bf16.vlgmr.msra.gmra.mxu1 %v12013_v30  ;;  %v4223_v50 = vld [vmem:[%s13330_s3 + $0xa10] sm:$0xff] }
 0x358   :  { %7403 = vmatpush1.bf16.msra.mxu1 %v9108_v24  ;;  %7434 = vmatprep.mubr.bf16.mxu1 %v11454_v9  ;;  %v4259_v24 = vld [vmem:[%s13330_s3 + $0xb30] sm:$0xff] }
 0x359   :  { %7454 = vmatpush1.bf16.msra.mxu0 %v9204_v2  ;;  %7404 = vmatprep.subr.bf16.mxu1 %v9101_v3  ;;  %v9060_v2 = vcombine.low %v4039_v18, %v4043_v63  ;;  %v9284_v3 = vcombine.low %v4263_v33, %v4267_v55  ;;  %v9277_v7 = vcombine.high %v4255_v51, %v4259_v24  ;;  %v4119_v63 = vld [vmem:[%s13330_s3 + $0x6d0] sm:$0xff]  ;;  %v3960_v55 = vld [vmem:[%s13330_s3 + $0x1d8] sm:$0xff] }
 0x35a   :  { %7455 = vmatprep.subr.bf16.mxu0 %v9197_v5  ;;  %v9053_v5 = vcombine.high %v4031_v56, %v4035_v31  ;;  %v4123_v33 = vld [vmem:[%s13330_s3 + $0x6f0] sm:$0xff] }
 0x35c   :  { %7405 = vmatpush1.bf16.msra.mxu1 %v9100_v10  ;;  %v4251_v10 = vld [vmem:[%s13330_s3 + $0xaf0] sm:$0xff] }
 0x35d   :  { %7456 = vmatpush1.bf16.msra.mxu0 %v9196_v26  ;;  %7406 = vmatprep.subr.bf16.mxu1 %v9093_v17  ;;  %v9052_v26 = vcombine.low %v4031_v56, %v4035_v31  ;;  %v9276_v17 = vcombine.low %v4255_v51, %v4259_v24  ;;  %v9269_v20 = vcombine.high %v4247_v44, %v4251_v10  ;;  %v4111_v31 = vld [vmem:[%s13330_s3 + $0x690] sm:$0xff]  ;;  %v3952_v24 = vld [vmem:[%s13330_s3 + $0x198] sm:$0xff] }
 0x35e   :  { %7457 = vmatprep.subr.bf16.mxu0 %v9189_v19  ;;  %v9173_v19 = vcombine.high %v4151_v29, %v4155_v8  ;;  %v4115_v51 = vld [vmem:[%s13330_s3 + $0x6b0] sm:$0xff] }
 0x360   :  { %7407 = vmatpush1.bf16.msra.mxu1 %v9092_v32  ;;  %v4243_v32 = vld [vmem:[%s13330_s3 + $0xab0] sm:$0xff] }
 0x361   :  { %7458 = vmatpush1.bf16.msra.mxu0 %v9188_v61  ;;  %7408 = vmatprep.subr.bf16.mxu1 %v9085_v54  ;;  %v9172_v61 = vcombine.low %v4151_v29, %v4155_v8  ;;  %v9268_v54 = vcombine.low %v4247_v44, %v4251_v10  ;;  %v9261_v42 = vcombine.high %v4239_v22, %v4243_v32  ;;  %v4103_v8 = vld [vmem:[%s13330_s3 + $0x650] sm:$0xff]  ;;  %v3944_v10 = vld [vmem:[%s13330_s3 + $0x158] sm:$0xff] }
 0x362   :  { %7459 = vmatprep.subr.bf16.mxu0 %v9181_v27  ;;  %v9165_v27 = vcombine.high %v4143_v15, %v4147_v39  ;;  %v4107_v44 = vld [vmem:[%s13330_s3 + $0x670] sm:$0xff] }
 0x364   :  { %7409 = vmatpush1.bf16.msra.mxu1 %v9084_v12  ;;  %v4235_v12 = vld [vmem:[%s13330_s3 + $0xa70] sm:$0xff] }
 0x365   :  { %7460 = vmatpush1.bf16.msra.mxu0 %v9180_v37  ;;  %7410 = vmatprep.subr.bf16.mxu1 %v9077_v43  ;;  %v9164_v37 = vcombine.low %v4143_v15, %v4147_v39  ;;  %v9260_v43 = vcombine.low %v4239_v22, %v4243_v32  ;;  %v9253_v40 = vcombine.high %v4231_v34, %v4235_v12  ;;  %v4099_v39 = vld [vmem:[%s13330_s3 + $0x630] sm:$0xff]  ;;  %v3936_v22 = vld [vmem:[%s13330_s3 + $0x118] sm:$0xff] }
 0x366   :  { %7461 = vmatprep.subr.bf16.mxu0 %v9301_v62  ;;  %v9157_v62 = vcombine.high %v4135_v59, %v4139_v60  ;;  %v9125_v15 = vcombine.high %v4103_v8, %v4107_v44 }
 0x368   :  { %7411 = vmatpush1.bf16.msra.mxu1 %v9076_v28  ;;  %v4227_v28 = vld [vmem:[%s13330_s3 + $0xa30] sm:$0xff] }
 0x369   :  { %7462 = vmatpush2.bf16.msra.mxu0 %v9300_v49  ;;  %7412 = vmatprep.subr.bf16.mxu1 %v9069_v21  ;;  %v9156_v49 = vcombine.low %v4135_v59, %v4139_v60  ;;  %v9252_v21 = vcombine.low %v4231_v34, %v4235_v12  ;;  %v9245_v18 = vcombine.high %v4223_v50, %v4227_v28  ;;  %v4347_v59 = vld [vmem:[%s13330_s3 + $0xdf0] sm:$0xff]  ;;  %v3928_v60 = vld [vmem:[%s13330_s3 + $0xd8] sm:$0xff] }
 0x36a   :  { %7463 = vmatprep.subr.bf16.mxu0 %v9293_v35  ;;  %v9149_v35 = vcombine.high %v4127_v41, %v4131_v36  ;;  %v3932_v12 = vld [vmem:[%s13330_s3 + $0xf8] sm:$0xff] }
 0x36c   :  { %7413 = vmatpush1.bf16.msra.mxu1 %v9068_v45  ;;  %v3964_v45 = vld [vmem:[%s13330_s3 + $0x1f8] sm:$0xff] }
 0x36d   :  { %7464 = vmatpush2.bf16.msra.mxu0 %v9292_v46  ;;  %7414 = vmatprep.subr.bf16.mxu1 %v9061_v53  ;;  %v9148_v46 = vcombine.low %v4127_v41, %v4131_v36  ;;  %v9244_v53 = vcombine.low %v4223_v50, %v4227_v28  ;;  %v8983_v56 = vcombine.high %v3960_v55, %v3964_v45  ;;  %v4339_v41 = vld [vmem:[%s13330_s3 + $0xdb0] sm:$0xff]  ;;  %v3920_v36 = vld [vmem:[%s13330_s3 + $0x98] sm:$0xff] }
 0x36e   :  { %7465 = vmatprep.subr.bf16.mxu0 %v9285_v52  ;;  %v9141_v52 = vcombine.high %v4119_v63, %v4123_v33  ;;  %v8951_v50 = vcombine.high %v3928_v60, %v3932_v12  ;;  %v3924_v28 = vld [vmem:[%s13330_s3 + $0xb8] sm:$0xff] }
 0x370   :  { %7415 = vmatpush1.bf16.msra.mxu1 %v9060_v2  ;;  %v3956_v2 = vld [vmem:[%s13330_s3 + $0x1b8] sm:$0xff] }
 0x371   :  { %7466 = vmatpush2.bf16.msra.mxu0 %v9284_v3  ;;  %7416 = vmatprep.subr.bf16.mxu1 %v9053_v5  ;;  %v9140_v3 = vcombine.low %v4119_v63, %v4123_v33  ;;  %v8982_v5 = vcombine.low %v3960_v55, %v3964_v45  ;;  %v8975_v29 = vcombine.high %v3952_v24, %v3956_v2  ;;  %v4331_v63 = vld [vmem:[%s13330_s3 + $0xd70] sm:$0xff]  ;;  %v3912_v33 = vld [vmem:[%s13330_s3 + $0x58] sm:$0xff] }
 0x372   :  { %7467 = vmatprep.subr.bf16.mxu0 %v9277_v7  ;;  %v9133_v7 = vcombine.high %v4111_v31, %v4115_v51  ;;  %v8943_v55 = vcombine.high %v3920_v36, %v3924_v28  ;;  %v3916_v45 = vld [vmem:[%s13330_s3 + $0x78] sm:$0xff] }
 0x374   :  { %7417 = vmatpush1.bf16.msra.mxu1 %v9052_v26  ;;  %v3948_v26 = vld [vmem:[%s13330_s3 + $0x178] sm:$0xff] }
 0x375   :  { %7468 = vmatpush2.bf16.msra.mxu0 %v9276_v17  ;;  %7418 = vmatprep.subr.bf16.mxu1 %v9173_v19  ;;  %v9132_v17 = vcombine.low %v4111_v31, %v4115_v51  ;;  %v4095_v19 = vld [vmem:[%s13330_s3 + $0x610] sm:$0xff]  ;;  %v8967_v32 = vcombine.high %v3944_v10, %v3948_v26  ;;  %v3904_v51 = vld [vmem:[%s13330_s3 + $0x18] sm:$0xff] }
 0x376   :  { %7469 = vmatprep.subr.bf16.mxu0 %v9269_v20  ;;  %v8974_v20 = vcombine.low %v3952_v24, %v3956_v2  ;;  %v4323_v31 = vld [vmem:[%s13330_s3 + $0xd30] sm:$0xff]  ;;  %v8935_v24 = vcombine.high %v3912_v33, %v3916_v45  ;;  %v3908_v2 = vld [vmem:[%s13330_s3 + $0x38] sm:$0xff] }
 0x378   :  { %7419 = vmatpush2.bf16.msra.mxu1 %v9172_v61  ;;  %v3940_v61 = vld [vmem:[%s13330_s3 + $0x138] sm:$0xff] }
 0x379   :  { %7470 = vmatpush2.bf16.msra.mxu0 %v9268_v54  ;;  %7420 = vmatprep.subr.bf16.mxu1 %v9165_v27  ;;  %v9124_v54 = vcombine.low %v4103_v8, %v4107_v44  ;;  %v8966_v27 = vcombine.low %v3944_v10, %v3948_v26  ;;  %v8959_v34 = vcombine.high %v3936_v22, %v3940_v61  ;;  %v4315_v8 = vld [vmem:[%s13330_s3 + $0xcf0] sm:$0xff]  ;;  %v4024_v44 = vld [vmem:[%s13330_s3 + $0x3d8] sm:$0xff] }
 0x37a   :  { %7471 = vmatprep.subr.bf16.mxu0 %v9261_v42  ;;  %v9117_v42 = vcombine.high %v4095_v19, %v4099_v39  ;;  %v8927_v10 = vcombine.high %v3904_v51, %v3908_v2  ;;  %v4028_v26 = vld [vmem:[%s13330_s3 + $0x3f8] sm:$0xff] }
 0x37c   :  { %7421 = vmatpush2.bf16.msra.mxu1 %v9164_v37  ;;  %v9116_v37 = vcombine.low %v4095_v19, %v4099_v39  ;;  %v4303_v19 = vld [vmem:[%s13330_s3 + $0xc90] sm:$0xff] }
 0x37d   :  { %7472 = vmatpush2.bf16.msra.mxu0 %v9260_v43  ;;  %7422 = vmatprep.subr.bf16.mxu1 %v9157_v62  ;;  %v4335_v43 = vld [vmem:[%s13330_s3 + $0xd90] sm:$0xff]  ;;  %v8958_v62 = vcombine.low %v3936_v22, %v3940_v61  ;;  %v4016_v22 = vld [vmem:[%s13330_s3 + $0x398] sm:$0xff] }
 0x37e   :  { %7473 = vmatprep.subr.bf16.mxu0 %v9253_v40  ;;  %v4307_v39 = vld [vmem:[%s13330_s3 + $0xcb0] sm:$0xff]  ;;  %v4020_v61 = vld [vmem:[%s13330_s3 + $0x3b8] sm:$0xff] }
 0x380   :  { %7423 = vmatpush2.bf16.msra.mxu1 %v9156_v49 }
 0x381   :  { %7474 = vmatpush2.bf16.msra.mxu0 %v9252_v21  ;;  %7424 = vmatprep.subr.bf16.mxu1 %v9149_v35  ;;  %v4327_v21 = vld [vmem:[%s13330_s3 + $0xd50] sm:$0xff]  ;;  %v8950_v35 = vcombine.low %v3928_v60, %v3932_v12  ;;  %v4008_v60 = vld [vmem:[%s13330_s3 + $0x358] sm:$0xff]  ;;  %v9039_v12 = vcombine.high %v4016_v22, %v4020_v61 }
 0x382   :  { %7475 = vmatprep.subr.bf16.mxu0 %v9245_v18  ;;  %v9357_v18 = vcombine.high %v4335_v43, %v4339_v41 }
 0x384   :  { %7425 = vmatpush2.bf16.msra.mxu1 %v9148_v46  ;;  %v9356_v46 = vcombine.low %v4335_v43, %v4339_v41  ;;  %v4287_v43 = vld [vmem:[%s13330_s3 + $0xc10] sm:$0xff] }
 0x385   :  { %7476 = vmatpush2.bf16.msra.mxu0 %v9244_v53  ;;  %7426 = vmatprep.subr.bf16.mxu1 %v9141_v52  ;;  %v4319_v53 = vld [vmem:[%s13330_s3 + $0xd10] sm:$0xff]  ;;  %v8942_v52 = vcombine.low %v3920_v36, %v3924_v28  ;;  %v4000_v36 = vld [vmem:[%s13330_s3 + $0x318] sm:$0xff] }
 0x386   :  { %7531 = vmatprep.subr.bf16.mxu0 %v8983_v56  ;;  %v9349_v56 = vcombine.high %v4327_v21, %v4331_v63 }
 0x388   :  { %7427 = vmatpush2.bf16.msra.mxu1 %v9140_v3  ;;  %7478 = vmatmul.mubr.bf16.vlgmr.msra.gmra.mxu0 %v11870_v1  ;;  %v9348_v3 = vcombine.low %v4327_v21, %v4331_v63  ;;  %v4407_v21 = vld [vmem:[%s13330_s3 + $0xfd0] sm:$0xff] }
 0x389   :  { %7532 = vmatpush1.bf16.msra.mxu0 %v8982_v5  ;;  %7563 = vmatprep.mubr.bf16.mxu0 %v11445_v58  ;;  %v4343_v58 = vld [vmem:[%s13330_s3 + $0xdd0] sm:$0xff] }
 0x38a   :  { %7428 = vmatprep.subr.bf16.mxu1 %v9133_v7  ;;  %7533 = vmatprep.subr.bf16.mxu0 %v8975_v29  ;;  %v9365_v40 = vcombine.high %v4343_v58, %v4347_v59  ;;  %v9364_v49 = vcombine.low %v4343_v58, %v4347_v59  ;;  %v4311_v5 = vld [vmem:[%s13330_s3 + $0xcd0] sm:$0xff]  ;;  %v8934_v7 = vcombine.low %v3912_v33, %v3916_v45  ;;  %v3992_v33 = vld [vmem:[%s13330_s3 + $0x2d8] sm:$0xff] }
 0x38b   :  { %v9341_v29 = vcombine.high %v4319_v53, %v4323_v31  ;;  %v4295_v58 = vld [vmem:[%s13330_s3 + $0xc50] sm:$0xff]  ;;  %v9325_v59 = vcombine.high %v4303_v19, %v4307_v39 }
 0x38c   :  { %7429 = vmatpush2.bf16.msra.mxu1 %v9132_v17  ;;  %v9340_v17 = vcombine.low %v4319_v53, %v4323_v31  ;;  %v4399_v53 = vld [vmem:[%s13330_s3 + $0xf90] sm:$0xff] }
 0x38d   :  { %7534 = vmatpush1.bf16.msra.mxu0 %v8974_v20  ;;  %7430 = vmatprep.subr.bf16.mxu1 %v9125_v15  ;;  %v8926_v20 = vcombine.low %v3904_v51, %v3908_v2  ;;  %v9333_v15 = vcombine.high %v4311_v5, %v4315_v8  ;;  %v3984_v51 = vld [vmem:[%s13330_s3 + $0x298] sm:$0xff] }
 0x38e   :  { %7535 = vmatprep.subr.bf16.mxu0 %v8967_v32  ;;  %v9047_v32 = vcombine.high %v4024_v44, %v4028_v26 }
 0x390   :  { %7431 = vmatpush2.bf16.msra.mxu1 %v9124_v54  ;;  %v9332_v54 = vcombine.low %v4311_v5, %v4315_v8  ;;  %v4391_v5 = vld [vmem:[%s13330_s3 + $0xf50] sm:$0xff] }
 0x391   :  { %7536 = vmatpush1.bf16.msra.mxu0 %v8966_v27  ;;  %7432 = vmatprep.subr.bf16.mxu1 %v9117_v42  ;;  %v4299_v27 = vld [vmem:[%s13330_s3 + $0xc70] sm:$0xff]  ;;  %v9046_v42 = vcombine.low %v4024_v44, %v4028_v26  ;;  %v3976_v44 = vld [vmem:[%s13330_s3 + $0x258] sm:$0xff] }
 0x392   :  { %7537 = vmatprep.subr.bf16.mxu0 %v8959_v34  ;;  %v4012_v34 = vld [vmem:[%s13330_s3 + $0x378] sm:$0xff]  ;;  %v9317_v41 = vcombine.high %v4295_v58, %v4299_v27 }
 0x393   :  { %v9031_v28 = vcombine.high %v4008_v60, %v4012_v34 }
 0x394   :  { %7433 = vmatpush2.bf16.msra.mxu1 %v9116_v37  ;;  %v9324_v37 = vcombine.low %v4303_v19, %v4307_v39  ;;  %v4383_v19 = vld [vmem:[%s13330_s3 + $0xf10] sm:$0xff] }
 0x395   :  { %7538 = vmatpush1.bf16.msra.mxu0 %v8958_v62  ;;  %7488 = vmatprep.subr.bf16.mxu1 %v9365_v40  ;;  %v4291_v62 = vld [vmem:[%s13330_s3 + $0xc30] sm:$0xff]  ;;  %v9038_v40 = vcombine.low %v4016_v22, %v4020_v61  ;;  %v3968_v22 = vld [vmem:[%s13330_s3 + $0x218] sm:$0xff] }
 0x396   :  { %7539 = vmatprep.subr.bf16.mxu0 %v8951_v50  ;;  %v4004_v50 = vld [vmem:[%s13330_s3 + $0x338] sm:$0xff]  ;;  %v9309_v63 = vcombine.high %v4287_v43, %v4291_v62 }
 0x397   :  { %7435 = vmatmul.mubr.bf16.vlgmr.msra.gmra.mxu1 %v11254_v16  ;;  %v9023_v45 = vcombine.high %v4000_v36, %v4004_v50 }
 0x398   :  { %7489 = vmatpush1.bf16.msra.mxu1 %v9364_v49  ;;  %7520 = vmatprep.mubr.bf16.mxu1 %v12011_v38  ;;  %v9316_v49 = vcombine.low %v4295_v58, %v4299_v27  ;;  %v4375_v58 = vld [vmem:[%s13330_s3 + $0xed0] sm:$0xff] }
 0x399   :  { %7540 = vmatpush1.bf16.msra.mxu0 %v8950_v35  ;;  %7490 = vmatprep.subr.bf16.mxu1 %v9357_v18  ;;  %v4411_v35 = vld [vmem:[%s13330_s3 + $0xff0] sm:$0xff]  ;;  %v9030_v18 = vcombine.low %v4008_v60, %v4012_v34  ;;  %v4216_v60 = vld [vmem:[%s13330_s3 + $0x9d8] sm:$0xff] }
 0x39a   :  { %7541 = vmatprep.subr.bf16.mxu0 %v8943_v55  ;;  %v3996_v55 = vld [vmem:[%s13330_s3 + $0x2f8] sm:$0xff]  ;;  %v9429_v31 = vcombine.high %v4407_v21, %v4411_v35  ;;  %v4379_v27 = vld [vmem:[%s13330_s3 + $0xef0] sm:$0xff] }
 0x39b   :  { %v9015_v2 = vcombine.high %v3992_v33, %v3996_v55  ;;  %v4220_v34 = vld [vmem:[%s13330_s3 + $0x9f8] sm:$0xff] }
 0x39c   :  { %7491 = vmatpush1.bf16.msra.mxu1 %v9356_v46  ;;  %v9308_v46 = vcombine.low %v4287_v43, %v4291_v62  ;;  %v9397_v62 = vcombine.high %v4375_v58, %v4379_v27 }
 0x39d   :  { %7542 = vmatpush1.bf16.msra.mxu0 %v8942_v52  ;;  %7492 = vmatprep.subr.bf16.mxu1 %v9349_v56  ;;  %v4403_v52 = vld [vmem:[%s13330_s3 + $0xfb0] sm:$0xff]  ;;  %v9022_v56 = vcombine.low %v4000_v36, %v4004_v50  ;;  %v4208_v50 = vld [vmem:[%s13330_s3 + $0x998] sm:$0xff] }
 0x39e   :  { %7543 = vmatprep.subr.bf16.mxu0 %v8935_v24  ;;  %v3988_v24 = vld [vmem:[%s13330_s3 + $0x2b8] sm:$0xff]  ;;  %v9421_v8 = vcombine.high %v4399_v53, %v4403_v52  ;;  %v4371_v36 = vld [vmem:[%s13330_s3 + $0xeb0] sm:$0xff] }
 0x39f   :  { %v9007_v26 = vcombine.high %v3984_v51, %v3988_v24 }
 0x3a0   :  { %7493 = vmatpush1.bf16.msra.mxu1 %v9348_v3  ;;  %v9428_v3 = vcombine.low %v4407_v21, %v4411_v35  ;;  %v9238_v21 = vcombine.low %v4216_v60, %v4220_v34 }
 0x3a1   :  { %7544 = vmatpush1.bf16.msra.mxu0 %v8934_v7  ;;  %7494 = vmatprep.subr.bf16.mxu1 %v9341_v29  ;;  %v4395_v7 = vld [vmem:[%s13330_s3 + $0xf70] sm:$0xff]  ;;  %v9014_v29 = vcombine.low %v3992_v33, %v3996_v55  ;;  %v4200_v55 = vld [vmem:[%s13330_s3 + $0x958] sm:$0xff] }
 0x3a2   :  { %7545 = vmatprep.subr.bf16.mxu0 %v8927_v10  ;;  %v3980_v10 = vld [vmem:[%s13330_s3 + $0x278] sm:$0xff]  ;;  %v9413_v39 = vcombine.high %v4391_v5, %v4395_v7  ;;  %v4363_v33 = vld [vmem:[%s13330_s3 + $0xe70] sm:$0xff] }
 0x3a3   :  { %v8999_v61 = vcombine.high %v3976_v44, %v3980_v10 }
 0x3a4   :  { %7495 = vmatpush1.bf16.msra.mxu1 %v9340_v17  ;;  %v9420_v17 = vcombine.low %v4399_v53, %v4403_v52 }
 0x3a5   :  { %7546 = vmatpush1.bf16.msra.mxu0 %v8926_v20  ;;  %7496 = vmatprep.subr.bf16.mxu1 %v9333_v15  ;;  %v4387_v20 = vld [vmem:[%s13330_s3 + $0xf30] sm:$0xff]  ;;  %v9006_v15 = vcombine.low %v3984_v51, %v3988_v24 }
 0x3a6   :  { %7547 = vmatprep.subr.bf16.mxu0 %v9047_v32  ;;  %v3972_v32 = vld [vmem:[%s13330_s3 + $0x238] sm:$0xff]  ;;  %v4355_v51 = vld [vmem:[%s13330_s3 + $0xe30] sm:$0xff] }
 0x3a7   :  { %v8990_v43 = vcombine.low %v3968_v22, %v3972_v32 }
 0x3a8   :  { %7497 = vmatpush1.bf16.msra.mxu1 %v9332_v54  ;;  %v9412_v54 = vcombine.low %v4391_v5, %v4395_v7  ;;  %v4088_v7 = vld [vmem:[%s13330_s3 + $0x5d8] sm:$0xff] }
 0x3a9   :  { %7548 = vmatpush2.bf16.msra.mxu0 %v9046_v42  ;;  %7498 = vmatprep.subr.bf16.mxu1 %v9325_v59  ;;  %v8998_v42 = vcombine.low %v3976_v44, %v3980_v10  ;;  %v9405_v59 = vcombine.high %v4383_v19, %v4387_v20  ;;  %v4188_v44 = vld [vmem:[%s13330_s3 + $0x8f8] sm:$0xff] }
 0x3aa   :  { %7549 = vmatprep.subr.bf16.mxu0 %v9039_v12  ;;  %v8991_v12 = vcombine.high %v3968_v22, %v3972_v32  ;;  %v4180_v22 = vld [vmem:[%s13330_s3 + $0x8b8] sm:$0xff] }
 0x3ac   :  { %7499 = vmatpush1.bf16.msra.mxu1 %v9324_v37  ;;  %v9404_v37 = vcombine.low %v4383_v19, %v4387_v20  ;;  %v4080_v20 = vld [vmem:[%s13330_s3 + $0x598] sm:$0xff] }
 0x3ad   :  { %7550 = vmatpush2.bf16.msra.mxu0 %v9038_v40  ;;  %7500 = vmatprep.subr.bf16.mxu1 %v9317_v41  ;;  %v9239_v40 = vcombine.high %v4216_v60, %v4220_v34  ;;  %v4367_v41 = vld [vmem:[%s13330_s3 + $0xe90] sm:$0xff]  ;;  %v4172_v60 = vld [vmem:[%s13330_s3 + $0x878] sm:$0xff] }
 0x3ae   :  { %7551 = vmatprep.subr.bf16.mxu0 %v9031_v28  ;;  %v4212_v28 = vld [vmem:[%s13330_s3 + $0x9b8] sm:$0xff]  ;;  %v9389_v35 = vcombine.high %v4367_v41, %v4371_v36 }
 0x3af   :  { %v9230_v53 = vcombine.low %v4208_v50, %v4212_v28 }
 0x3b0   :  { %7501 = vmatpush1.bf16.msra.mxu1 %v9316_v49  ;;  %v9396_v49 = vcombine.low %v4375_v58, %v4379_v27  ;;  %v4072_v27 = vld [vmem:[%s13330_s3 + $0x558] sm:$0xff] }
 0x3b1   :  { %7552 = vmatpush2.bf16.msra.mxu0 %v9030_v18  ;;  %7502 = vmatprep.subr.bf16.mxu1 %v9309_v63  ;;  %v9231_v18 = vcombine.high %v4208_v50, %v4212_v28  ;;  %v4359_v63 = vld [vmem:[%s13330_s3 + $0xe50] sm:$0xff] }
 0x3b2   :  { %7553 = vmatprep.subr.bf16.mxu0 %v9023_v45  ;;  %v4204_v45 = vld [vmem:[%s13330_s3 + $0x978] sm:$0xff]  ;;  %v9381_v52 = vcombine.high %v4359_v63, %v4363_v33  ;;  %v9380_v24 = vcombine.low %v4359_v63, %v4363_v33 }
 0x3b3   :  { %v4284_v63 = vld [vmem:[%s13330_s3 + $0xbf8] sm:$0xff] }
 0x3b4   :  { %7503 = vmatpush1.bf16.msra.mxu1 %v9308_v46  ;;  %v9388_v46 = vcombine.low %v4367_v41, %v4371_v36  ;;  %v4160_v41 = vld [vmem:[%s13330_s3 + $0x818] sm:$0xff] }
 0x3b5   :  { %7554 = vmatpush2.bf16.msra.mxu0 %v9022_v56  ;;  %7504 = vmatprep.subr.bf16.mxu1 %v9429_v31  ;;  %v9223_v56 = vcombine.high %v4200_v55, %v4204_v45  ;;  %v4351_v31 = vld [vmem:[%s13330_s3 + $0xe10] sm:$0xff] }
 0x3b6   :  { %7555 = vmatprep.subr.bf16.mxu0 %v9015_v2  ;;  %v9222_v2 = vcombine.low %v4200_v55, %v4204_v45  ;;  %v9372_v10 = vcombine.low %v4351_v31, %v4355_v51 }
 0x3b8   :  { %7505 = vmatpush2.bf16.msra.mxu1 %v9428_v3  ;;  %v9373_v3 = vcombine.high %v4351_v31, %v4355_v51  ;;  %v4276_v31 = vld [vmem:[%s13330_s3 + $0xbb8] sm:$0xff]  ;;  %v12853_v51 = vpop.f32.mrf.mxu0 }
 0x3b9   :  { %7556 = vmatpush2.bf16.msra.mxu0 %v9014_v29  ;;  %7506 = vmatprep.subr.bf16.mxu1 %v9421_v8  ;;  %v4092_v29 = vld [vmem:[%s13330_s3 + $0x5f8] sm:$0xff] }
 0x3ba   :  { %7557 = vmatprep.subr.bf16.mxu0 %v9007_v26  ;;  %v4184_v8 = vld [vmem:[%s13330_s3 + $0x8d8] sm:$0xff]  ;;  %v9110_v32 = vcombine.low %v4088_v7, %v4092_v29 }
 0x3bb   :  { %v9207_v19 = vcombine.high %v4184_v8, %v4188_v44 }
 0x3bc   :  { %7507 = vmatpush2.bf16.msra.mxu1 %v9420_v17  ;;  %v9111_v17 = vcombine.high %v4088_v7, %v4092_v29  ;;  %v4044_v7 = vld [vmem:[%s13330_s3 + $0x478] sm:$0xff] }
 0x3bd   :  { %7558 = vmatpush2.bf16.msra.mxu0 %v9006_v15  ;;  %7508 = vmatprep.subr.bf16.mxu1 %v9413_v39  ;;  %v4084_v15 = vld [vmem:[%s13330_s3 + $0x5b8] sm:$0xff] }
 0x3be   :  { %7559 = vmatprep.subr.bf16.mxu0 %v8999_v61  ;;  %v4176_v39 = vld [vmem:[%s13330_s3 + $0x898] sm:$0xff]  ;;  %v9206_v61 = vcombine.low %v4184_v8, %v4188_v44  ;;  %v9102_v34 = vcombine.low %v4080_v20, %v4084_v15  ;;  %v12869_v44 = vpop.f32.mrf.mxu0 }
 0x3bf   :  { %v9199_v58 = vcombine.high %v4176_v39, %v4180_v22  ;;  %v4264_v29 = vld [vmem:[%s13330_s3 + $0xb58] sm:$0xff] }
 0x3c0   :  { %7509 = vmatpush2.bf16.msra.mxu1 %v9412_v54  ;;  %v9103_v54 = vcombine.high %v4080_v20, %v4084_v15  ;;  %v4268_v8 = vld [vmem:[%s13330_s3 + $0xb78] sm:$0xff] }
 0x3c1   :  { %7560 = vmatpush2.bf16.msra.mxu0 %v8998_v42  ;;  %7510 = vmatprep.subr.bf16.mxu1 %v9405_v59  ;;  %v4076_v42 = vld [vmem:[%s13330_s3 + $0x578] sm:$0xff]  ;;  %v9287_v20 = vcombine.high %v4264_v29, %v4268_v8 }
 0x3c2   :  { %7561 = vmatprep.subr.bf16.mxu0 %v8991_v12  ;;  %v4168_v59 = vld [vmem:[%s13330_s3 + $0x858] sm:$0xff]  ;;  %v9198_v12 = vcombine.low %v4176_v39, %v4180_v22  ;;  %v9094_v36 = vcombine.low %v4072_v27, %v4076_v42 }
 0x3c3   :  { %v9190_v50 = vcombine.low %v4168_v59, %v4172_v60  ;;  %v4032_v15 = vld [vmem:[%s13330_s3 + $0x418] sm:$0xff] }
 0x3c4   :  { %7511 = vmatpush2.bf16.msra.mxu1 %v9404_v37  ;;  %v9095_v37 = vcombine.high %v4072_v27, %v4076_v42  ;;  %v4036_v39 = vld [vmem:[%s13330_s3 + $0x438] sm:$0xff] }
 0x3c5   :  { %7562 = vmatpush2.bf16.msra.mxu0 %v8990_v43  ;;  %7512 = vmatprep.subr.bf16.mxu1 %v9397_v62  ;;  %v9191_v43 = vcombine.high %v4168_v59, %v4172_v60  ;;  %v4064_v62 = vld [vmem:[%s13330_s3 + $0x518] sm:$0xff]  ;;  %v9055_v27 = vcombine.high %v4032_v15, %v4036_v39 }
 0x3c6   :  { %7617 = vmatprep.subr.bf16.mxu0 %v9239_v40  ;;  %v4068_v40 = vld [vmem:[%s13330_s3 + $0x538] sm:$0xff] }
 0x3c7   :  { %v9087_v28 = vcombine.high %v4064_v62, %v4068_v40  ;;  %v9086_v33 = vcombine.low %v4064_v62, %v4068_v40  ;;  %v4256_v22 = vld [vmem:[%s13330_s3 + $0xb18] sm:$0xff]  ;;  %v9054_v62 = vcombine.low %v4032_v15, %v4036_v39 }
 0x3c8   :  { %7513 = vmatpush2.bf16.msra.mxu1 %v9396_v49  ;;  %7564 = vmatmul.mubr.bf16.vlgmr.msra.gmra.mxu0 %v10834_v57  ;;  %v4192_v57 = vld [vmem:[%s13330_s3 + $0x918] sm:$0xff] }
 0x3c9   :  { %7618 = vmatpush1.bf16.msra.mxu0 %v9238_v21  ;;  %7649 = vmatprep.mubr.bf16.mxu0 %v11709_v14  ;;  %v4196_v14 = vld [vmem:[%s13330_s3 + $0x938] sm:$0xff] }
 0x3ca   :  { %7514 = vmatprep.subr.bf16.mxu1 %v9389_v35  ;;  %7619 = vmatprep.subr.bf16.mxu0 %v9231_v18  ;;  %v9215_v5 = vcombine.high %v4192_v57, %v4196_v14  ;;  %v9214_v26 = vcombine.low %v4192_v57, %v4196_v14  ;;  %v4056_v21 = vld [vmem:[%s13330_s3 + $0x4d8] sm:$0xff] }
 0x3cb   :  { %v4060_v35 = vld [vmem:[%s13330_s3 + $0x4f8] sm:$0xff] }
 0x3cc   :  { %7515 = vmatpush2.bf16.msra.mxu1 %v9388_v46  ;;  %v4280_v18 = vld [vmem:[%s13330_s3 + $0xbd8] sm:$0xff]  ;;  %v9079_v45 = vcombine.high %v4056_v21, %v4060_v35  ;;  %v9078_v57 = vcombine.low %v4056_v21, %v4060_v35 }
 0x3cd   :  { %7620 = vmatpush1.bf16.msra.mxu0 %v9230_v53  ;;  %7516 = vmatprep.subr.bf16.mxu1 %v9381_v52  ;;  %v9303_v46 = vcombine.high %v4280_v18, %v4284_v63  ;;  %v4048_v53 = vld [vmem:[%s13330_s3 + $0x498] sm:$0xff]  ;;  %v9302_v14 = vcombine.low %v4280_v18, %v4284_v63 }
 0x3ce   :  { %7621 = vmatprep.subr.bf16.mxu0 %v9223_v56  ;;  %v4052_v52 = vld [vmem:[%s13330_s3 + $0x4b8] sm:$0xff] }
 0x3cf   :  { %v4272_v56 = vld [vmem:[%s13330_s3 + $0xb98] sm:$0xff] }
 0x3d0   :  { %7517 = vmatpush2.bf16.msra.mxu1 %v9380_v24  ;;  %v9071_v24 = vcombine.high %v4048_v53, %v4052_v52  ;;  %v4152_v60 = vld [vmem:[%s13330_s3 + $0x7d8] sm:$0xff] }
 0x3d1   :  { %7622 = vmatpush1.bf16.msra.mxu0 %v9222_v2  ;;  %7518 = vmatprep.subr.bf16.mxu1 %v9373_v3  ;;  %v12855_v2 = vpop.f32.mrf.mxu1  ;;  %v9295_v3 = vcombine.high %v4272_v56, %v4276_v31  ;;  %v4240_v21 = vld [vmem:[%s13330_s3 + $0xa98] sm:$0xff] }
 0x3d2   :  { %7623 = vmatprep.subr.bf16.mxu0 %v9215_v5  ;;  %v4040_v5 = vld [vmem:[%s13330_s3 + $0x458] sm:$0xff] }
 0x3d3   :  { %v4244_v35 = vld [vmem:[%s13330_s3 + $0xab8] sm:$0xff] }
 0x3d4   :  { %7519 = vmatpush2.bf16.msra.mxu1 %v9372_v10  ;;  %v9070_v10 = vcombine.low %v4048_v53, %v4052_v52  ;;  %v4136_v53 = vld [vmem:[%s13330_s3 + $0x758] sm:$0xff] }
 0x3d5   :  { %7624 = vmatpush1.bf16.msra.mxu0 %v9214_v26  ;;  %7574 = vmatprep.subr.bf16.mxu1 %v9111_v17  ;;  %v9294_v26 = vcombine.low %v4272_v56, %v4276_v31  ;;  %v9063_v17 = vcombine.high %v4040_v5, %v4044_v7  ;;  %v4140_v52 = vld [vmem:[%s13330_s3 + $0x778] sm:$0xff]  ;;  %v12926_v56 = vld [vmem:[%s13332_s4] sm:$0xff] }
 0x3d6   :  { %7625 = vmatprep.subr.bf16.mxu0 %v9207_v19  ;;  %v12871_v19 = vpop.f32.mrf.mxu1  ;;  %v4232_v31 = vld [vmem:[%s13330_s3 + $0xa58] sm:$0xff] }
 0x3d7   :  { %7521 = vmatmul.mubr.bf16.vlgmr.msra.gmra.mxu1 %v12013_v30 }
 0x3d8   :  { %7575 = vmatpush1.bf16.msra.mxu1 %v9110_v32  ;;  %7606 = vmatprep.mubr.bf16.mxu1 %v11454_v9  ;;  %v4164_v9 = vld [vmem:[%s13330_s3 + $0x838] sm:$0xff]  ;;  %v12887_v42 = vpop.f32.mrf.mxu1 }
 0x3d9   :  { %7626 = vmatpush1.bf16.msra.mxu0 %v9206_v61  ;;  %7576 = vmatprep.subr.bf16.mxu1 %v9103_v54  ;;  %v9183_v49 = vcombine.high %v4160_v41, %v4164_v9  ;;  %v9182_v55 = vcombine.low %v4160_v41, %v4164_v9  ;;  %v4260_v32 = vld [vmem:[%s13330_s3 + $0xb38] sm:$0xff]  ;;  %v12885_v61 = vpop.f32.mrf.mxu0  ;;  %v9062_v54 = vcombine.low %v4040_v5, %v4044_v7 }
 0x3da   :  { %7627 = vmatprep.subr.bf16.mxu0 %v9199_v58  ;;  %v9286_v58 = vcombine.low %v4264_v29, %v4268_v8  ;;  %v9279_v59 = vcombine.high %v4256_v22, %v4260_v32  ;;  %v9278_v40 = vcombine.low %v4256_v22, %v4260_v32  ;;  %v7098_v9 = vpop.f32.mrf.mxu1  ;;  %v9262_v5 = vcombine.low %v4240_v21, %v4244_v35 }
 0x3db   :  { %v9159_v7 = vcombine.high %v4136_v53, %v4140_v52  ;;  %v9158_v22 = vcombine.low %v4136_v53, %v4140_v52  ;;  %v9588_v52 = vld [vmem:[%s13331_s5 + $0x30] sm:$0xff]  }
 0x3dc   :  { %7577 = vmatpush1.bf16.msra.mxu1 %v9102_v34  ;;  %v4156_v34 = vld [vmem:[%s13330_s3 + $0x7f8] sm:$0xff]  ;;  %v12915_v18 = vpop.f32.mrf.mxu1 }
 0x3dd   :  { %7628 = vmatpush1.bf16.msra.mxu0 %v9198_v12  ;;  %7578 = vmatprep.subr.bf16.mxu1 %v9095_v37  ;;  %v4248_v12 = vld [vmem:[%s13330_s3 + $0xad8] sm:$0xff]  ;;  %v9175_v41 = vcombine.high %v4152_v60, %v4156_v34  ;;  %v9174_v63 = vcombine.low %v4152_v60, %v4156_v34 }
 0x3de   :  { %7629 = vmatprep.subr.bf16.mxu0 %v9191_v43  ;;  %v4252_v37 = vld [vmem:[%s13330_s3 + $0xaf8] sm:$0xff]  ;;  %v7055_v43 = vpop.f32.mrf.mxu0 }
 0x3df   :  { %v4124_v60 = vld [vmem:[%s13330_s3 + $0x6f8] sm:$0xff] }
 0x3e0   :  { %7579 = vmatpush1.bf16.msra.mxu1 %v9094_v36  ;;  %v12901_v36 = vpop.f32.mrf.mxu0 }
 0x3e1   :  { %7630 = vmatpush1.bf16.msra.mxu0 %v9190_v50  ;;  %7580 = vmatprep.subr.bf16.mxu1 %v9087_v28  ;;  %v9271_v50 = vcombine.high %v4248_v12, %v4252_v37  ;;  %v4144_v28 = vld [vmem:[%s13330_s3 + $0x798] sm:$0xff] }
 0x3e2   :  { %7631 = vmatprep.subr.bf16.mxu0 %v9183_v49  ;;  %v4148_v49 = vld [vmem:[%s13330_s3 + $0x7b8] sm:$0xff] }
 0x3e4   :  { %7581 = vmatpush1.bf16.msra.mxu1 %v9086_v33  ;;  %v9270_v33 = vcombine.low %v4248_v12, %v4252_v37 }
 0x3e5   :  { %7632 = vmatpush1.bf16.msra.mxu0 %v9182_v55  ;;  %7582 = vmatprep.subr.bf16.mxu1 %v9079_v45  ;;  %v9167_v55 = vcombine.high %v4144_v28, %v4148_v49  ;;  %v7137_v45 = vpop.f32.mrf.mxu0 }
 0x3e6   :  { %7633 = vmatprep.subr.bf16.mxu0 %v9303_v46  ;;  %v9263_v46 = vcombine.high %v4240_v21, %v4244_v35  ;;  %v9586_v35 = vld [vmem:[%s13331_s5 + $0x38] sm:$0xff]  }
 0x3e7   :  { %v12937_v29 = vpop.f32.mrf.mxu0 }
 0x3e8   :  { %7583 = vmatpush1.bf16.msra.mxu1 %v9078_v57  ;;  %v4236_v57 = vld [vmem:[%s13330_s3 + $0xa78] sm:$0xff] }
 0x3e9   :  { %7634 = vmatpush2.bf16.msra.mxu0 %v9302_v14  ;;  %7584 = vmatprep.subr.bf16.mxu1 %v9071_v24  ;;  %v4422_v14 = vrot.slane %v12926_v56, %v555_v48  ;;  %v7180_v24 = vpop.f32.mrf.mxu1  ;;  %v9255_v8 = vcombine.high %v4232_v31, %v4236_v57  ;;  %v9254_v32 = vcombine.low %v4232_v31, %v4236_v57  ;;  %v9589_v57 = vld [vmem:[%s13331_s5 + $0x68] sm:$0xff]  }
 0x3ea   :  { %7635 = vmatprep.subr.bf16.mxu0 %v9295_v3  ;;  %v9166_v3 = vcombine.low %v4144_v28, %v4148_v49 }
 0x3eb   :  { %v7056_v48 = vadd.f32 %v7055_v43, %v4422_v14  ;;  %v7052_v15 = vadd.f32 %v12869_v44, %v4422_v14  ;;  %v12952_v39 = vpop.f32.mrf.mxu1  ;;  %v4096_v14 = vld [vmem:[%s13330_s3 + $0x618] sm:$0xff] }
 0x3ec   :  { %7585 = vmatpush1.bf16.msra.mxu1 %v9070_v10  ;;  %v4128_v10 = vld [vmem:[%s13330_s3 + $0x718] sm:$0xff] }
 0x3ed   :  { %7636 = vmatpush2.bf16.msra.mxu0 %v9294_v26  ;;  %7586 = vmatprep.subr.bf16.mxu1 %v9063_v17  ;;  %v4132_v26 = vld [vmem:[%s13330_s3 + $0x738] sm:$0xff]  ;;  %v7099_v44 = vadd.f32 %v7098_v9, %v7056_v48  ;;  %v7095_v34 = vadd.f32 %v12871_v19, %v7052_v15  ;;  %v7184_v12 = vpop.f32.mrf.mxu1  ;;  %v9592_v48 = vld [vmem:[%s13331_s5 + $0x20] sm:$0xff]  }
 0x3ee   :  { %7637 = vmatprep.subr.bf16.mxu0 %v9287_v20  ;;  %v4224_v17 = vld [vmem:[%s13330_s3 + $0xa18] sm:$0xff]  ;;  %v9150_v37 = vcombine.low %v4128_v10, %v4132_v26 }
 0x3ef   :  { %v4228_v20 = vld [vmem:[%s13330_s3 + $0xa38] sm:$0xff] }
 0x3f0   :  { %7587 = vmatpush1.bf16.msra.mxu1 %v9062_v54  ;;  %v9151_v54 = vcombine.high %v4128_v10, %v4132_v26  ;;  %v4112_v9 = vld [vmem:[%s13330_s3 + $0x698] sm:$0xff] }
 0x3f1   :  { %7638 = vmatpush2.bf16.msra.mxu0 %v9286_v58  ;;  %7588 = vmatprep.subr.bf16.mxu1 %v9055_v27  ;;  %v7141_v58 = vpop.f32.mrf.mxu0  ;;  %v9247_v27 = vcombine.high %v4224_v17, %v4228_v20  ;;  %v4116_v19 = vld [vmem:[%s13330_s3 + $0x6b8] sm:$0xff] }
 0x3f2   :  { %7639 = vmatprep.subr.bf16.mxu0 %v9279_v59  ;;  %v4120_v59 = vld [vmem:[%s13330_s3 + $0x6d8] sm:$0xff]  ;;  %v7142_v43 = vadd.f32 %v7141_v58, %v7099_v44  ;;  %v9134_v53 = vcombine.low %v4112_v9, %v4116_v19  ;;  %v4418_v44 = vrot.slane %v12926_v56, %v551_v13 }
 0x3f3   :  { %v9142_v49 = vcombine.low %v4120_v59, %v4124_v60  ;;  %v4348_v10 = vld [vmem:[%s13330_s3 + $0xdf8] sm:$0xff] }
 0x3f4   :  { %7589 = vmatpush1.bf16.msra.mxu1 %v9054_v62  ;;  %v9246_v62 = vcombine.low %v4224_v17, %v4228_v20  ;;  %v7185_v28 = vadd.f32 %v7184_v12, %v7142_v43  ;;  %v9593_v20 = vld [vmem:[%s13331_s5 + $0x58] sm:$0xff]   ;;  %v9596_v12 = vld [vmem:[%s13331_s5 + $0x10] sm:$0xff]   ;;  %v7054_v43 = vadd.f32 %v12885_v61, %v4418_v44  ;;  %v9598_v61 = vld [vmem:[%s13331_s5 + $0x8] sm:$0xff]  }
 0x3f5   :  { %7640 = vmatpush2.bf16.msra.mxu0 %v9278_v40  ;;  %7590 = vmatprep.subr.bf16.mxu1 %v9175_v41  ;;  %v9143_v40 = vcombine.high %v4120_v59, %v4124_v60  ;;  %v9585_v41 = vld [vmem:[%s13331_s5 + $0x78] sm:$0xff]  }
 0x3f6   :  { %7641 = vmatprep.subr.bf16.mxu0 %v9271_v50  ;;  %v7138_v50 = vadd.f32 %v7137_v45, %v7095_v34  ;;  %v4108_v45 = vld [vmem:[%s13330_s3 + $0x678] sm:$0xff] }
 0x3f7   :  { %v4336_v15 = vld [vmem:[%s13330_s3 + $0xd98] sm:$0xff] }
 0x3f8   :  { %7591 = vmatpush2.bf16.msra.mxu1 %v9174_v63  ;;  %v7181_v21 = vadd.f32 %v7180_v24, %v7138_v50  ;;  %v9135_v63 = vcombine.high %v4112_v9, %v4116_v19  ;;  %v4328_v59 = vld [vmem:[%s13330_s3 + $0xd58] sm:$0xff]  ;;  %v7097_v50 = vadd.f32 %v12887_v42, %v7054_v43  ;;  %v9600_v42 = vld [vmem:[%s13331_s5] sm:$0xff]   ;;  %v9627_v43 = vld [vmem:[%s13331_s5 + $0x150] sm:$0xff]  }
 0x3f9   :  { %7642 = vmatpush2.bf16.msra.mxu0 %v9270_v33  ;;  %7592 = vmatprep.subr.bf16.mxu1 %v9167_v55  ;;  %v9587_v33 = vld [vmem:[%s13331_s5 + $0x70] sm:$0xff]   ;;  %v4104_v55 = vld [vmem:[%s13330_s3 + $0x658] sm:$0xff] }
 0x3fa   :  { %7643 = vmatprep.subr.bf16.mxu0 %v9263_v46  ;;  %v7704_v46 = vpack.c.bf16 %v7185_v28, %v7181_v21  ;;  %v9127_v31 = vcombine.high %v4104_v55, %v4108_v45  ;;  %v9126_v24 = vcombine.low %v4104_v55, %v4108_v45  ;;  %v4332_v60 = vld [vmem:[%s13330_s3 + $0xd78] sm:$0xff]  ;;  %v9599_v28 = vld [vmem:[%s13331_s5 + $0x40] sm:$0xff]  }
 0x3fb   :  { %v4320_v13 = vld [vmem:[%s13330_s3 + $0xd18] sm:$0xff] }
 0x3fc   :  { %7593 = vmatpush2.bf16.msra.mxu1 %v9166_v3  ;;  %v9590_v3 = vld [vmem:[%s13331_s5 + $0x28] sm:$0xff]   ;;  %v4316_v9 = vld [vmem:[%s13330_s3 + $0xcf8] sm:$0xff] }
 0x3fd   :  { %7644 = vmatpush2.bf16.msra.mxu0 %v9262_v5  ;;  %7594 = vmatprep.subr.bf16.mxu1 %v9159_v7  ;;  %v9591_v7 = vld [vmem:[%s13331_s5 + $0x60] sm:$0xff]   ;;  %v9617_v55 = vld [vmem:[%s13331_s5 + $0x178] sm:$0xff]  }
 0x3fe   :  { %7645 = vmatprep.subr.bf16.mxu0 %v9255_v8  ;;  %v4344_v8 = vld [vmem:[%s13330_s3 + $0xdd8] sm:$0xff] }
 0x3ff   :  { %v9367_v17 = vcombine.high %v4344_v8, %v4348_v10 }
 0x400   :  { %7595 = vmatpush2.bf16.msra.mxu1 %v9158_v22  ;;  %v4340_v22 = vld [vmem:[%s13330_s3 + $0xdb8] sm:$0xff] }
 0x401   :  { %7646 = vmatpush2.bf16.msra.mxu0 %v9254_v32  ;;  %7596 = vmatprep.subr.bf16.mxu1 %v9151_v54  ;;  %v9366_v32 = vcombine.low %v4344_v8, %v4348_v10  ;;  %v9594_v54 = vld [vmem:[%s13331_s5 + $0x18] sm:$0xff]   ;;  %v9359_v58 = vcombine.high %v4336_v15, %v4340_v22  ;;  %v9358_v34 = vcombine.low %v4336_v15, %v4340_v22  ;;  %v9622_v10 = vld [vmem:[%s13331_s5 + $0x128] sm:$0xff]   ;;  %v9624_v22 = vld [vmem:[%s13331_s5 + $0x120] sm:$0xff]  }
 0x402   :  { %7647 = vmatprep.subr.bf16.mxu0 %v9247_v27  ;;  %v9595_v27 = vld [vmem:[%s13331_s5 + $0x50] sm:$0xff]  }
 0x404   :  { %7597 = vmatpush2.bf16.msra.mxu1 %v9150_v37  ;;  %v9351_v37 = vcombine.high %v4328_v59, %v4332_v60 }
 0x405   :  { %7648 = vmatpush2.bf16.msra.mxu0 %v9246_v62  ;;  %7598 = vmatprep.subr.bf16.mxu1 %v9143_v40  ;;  %v7050_v62 = vadd.f32 %v12853_v51, %v4418_v44  ;;  %v9350_v40 = vcombine.low %v4328_v59, %v4332_v60  ;;  %v4312_v51 = vld [vmem:[%s13330_s3 + $0xcd8] sm:$0xff]  ;;  %v13128_v59 = vpop.f32.mrf.mxu0  ;;  %v13130_v60 = vpop.f32.mrf.mxu1 }
 0x406   :  { %9497 = vmatprep.subr.bf16.mxu0 %v9585_v41 }
 0x407   :  { %v7093_v19 = vadd.f32 %v12855_v2, %v7050_v62  ;;  %v4304_v2 = vld [vmem:[%s13330_s3 + $0xc98] sm:$0xff] }
 0x408   :  { %7599 = vmatpush2.bf16.msra.mxu1 %v9142_v49  ;;  %7650 = vmatmul.mubr.bf16.vlgmr.msra.gmra.mxu0 %v11870_v1  ;;  %v4100_v1 = vld [vmem:[%s13330_s3 + $0x638] sm:$0xff]  ;;  %v7140_v49 = vadd.f32 %v12937_v29, %v7097_v50  ;;  %v9629_v50 = vld [vmem:[%s13331_s5 + $0x148] sm:$0xff]  }
 0x409   :  { %9498 = vmatpush3.bf16.msra.mxu0 %v9586_v35  ;;  %8262 = vmatprep.mubr.bf16.mxu0 %v7704_v46  ;;  %v9119_v5 = vcombine.high %v4096_v14, %v4100_v1  ;;  %v9118_v26 = vcombine.low %v4096_v14, %v4100_v1  ;;  %v9335_v35 = vcombine.high %v4312_v51, %v4316_v9  ;;  %v4308_v29 = vld [vmem:[%s13330_s3 + $0xcb8] sm:$0xff]  ;;  %v9620_v1 = vld [vmem:[%s13331_s5 + $0x130] sm:$0xff]  }
 0x40a   :  { %7600 = vmatprep.subr.bf16.mxu1 %v9135_v63  ;;  %9499 = vmatprep.subr.bf16.mxu0 %v9587_v33  ;;  %v7136_v63 = vadd.f32 %v12901_v36, %v7093_v19  ;;  %v7183_v33 = vadd.f32 %v12952_v39, %v7140_v49  ;;  %v9334_v46 = vcombine.low %v4312_v51, %v4316_v9  ;;  %v9618_v39 = vld [vmem:[%s13331_s5 + $0x138] sm:$0xff]   ;;  %v9630_v49 = vld [vmem:[%s13331_s5 + $0x108] sm:$0xff]  }
 0x40b   :  { %v9327_v36 = vcombine.high %v4304_v2, %v4308_v29 }
 0x40c   :  { %7601 = vmatpush2.bf16.msra.mxu1 %v9134_v53  ;;  %v7179_v45 = vadd.f32 %v12915_v18, %v7136_v63  ;;  %v9619_v18 = vld [vmem:[%s13331_s5 + $0x170] sm:$0xff]  }
 0x40d   :  { %9500 = vmatpush3.bf16.msra.mxu0 %v9588_v52  ;;  %7602 = vmatprep.subr.bf16.mxu1 %v9127_v31  ;;  %v4296_v52 = vld [vmem:[%s13330_s3 + $0xc58] sm:$0xff] }
 0x40e   :  { %9501 = vmatprep.subr.bf16.mxu0 %v9589_v57  ;;  %v7703_v53 = vpack.c.bf16 %v7183_v33, %v7179_v45  ;;  %v4300_v31 = vld [vmem:[%s13330_s3 + $0xc78] sm:$0xff]  ;;  %v9326_v57 = vcombine.low %v4304_v2, %v4308_v29 }
 0x40f   :  { %v9319_v14 = vcombine.high %v4296_v52, %v4300_v31  ;;  %v4368_v45 = vld [vmem:[%s13330_s3 + $0xe98] sm:$0xff] }
 0x410   :  { %7603 = vmatpush2.bf16.msra.mxu1 %v9126_v24  ;;  %v4288_v24 = vld [vmem:[%s13330_s3 + $0xc18] sm:$0xff] }
 0x411   :  { %9502 = vmatpush3.bf16.msra.mxu0 %v9590_v3  ;;  %7604 = vmatprep.subr.bf16.mxu1 %v9119_v5  ;;  %v4292_v3 = vld [vmem:[%s13330_s3 + $0xc38] sm:$0xff]  ;;  %v9621_v5 = vld [vmem:[%s13331_s5 + $0x168] sm:$0xff]  }
 0x412   :  { %9503 = vmatprep.subr.bf16.mxu0 %v9591_v7  ;;  %v9318_v7 = vcombine.low %v4296_v52, %v4300_v31  ;;  %v9311_v8 = vcombine.high %v4288_v24, %v4292_v3  ;;  %v4360_v31 = vld [vmem:[%s13330_s3 + $0xe58] sm:$0xff] }
 0x414   :  { %7605 = vmatpush2.bf16.msra.mxu1 %v9118_v26  ;;  %v4408_v26 = vld [vmem:[%s13330_s3 + $0xfd8] sm:$0xff] }
 0x415   :  { %9504 = vmatpush3.bf16.msra.mxu0 %v9592_v48  ;;  %7660 = vmatprep.subr.bf16.mxu1 %v9367_v17  ;;  %v4412_v48 = vld [vmem:[%s13330_s3 + $0xff8] sm:$0xff]  ;;  %v9623_v17 = vld [vmem:[%s13331_s5 + $0x160] sm:$0xff]  }
 0x416   :  { %9505 = vmatprep.subr.bf16.mxu0 %v9593_v20  ;;  %v9310_v20 = vcombine.low %v4288_v24, %v4292_v3  ;;  %v9431_v15 = vcombine.high %v4408_v26, %v4412_v48 }
 0x417   :  { %7607 = vmatmul.mubr.bf16.vlgmr.msra.gmra.mxu1 %v11254_v16  ;;  %v9597_v16 = vld [vmem:[%s13331_s5 + $0x48] sm:$0xff]  }
 0x418   :  { %7661 = vmatpush1.bf16.msra.mxu1 %v9366_v32  ;;  %7692 = vmatprep.mubr.bf16.mxu1 %v12011_v38  ;;  %v4324_v38 = vld [vmem:[%s13330_s3 + $0xd38] sm:$0xff] }
 0x419   :  { %9506 = vmatpush3.bf16.msra.mxu0 %v9594_v54  ;;  %7662 = vmatprep.subr.bf16.mxu1 %v9359_v58  ;;  %v9343_v41 = vcombine.high %v4320_v13, %v4324_v38  ;;  %v9342_v21 = vcombine.low %v4320_v13, %v4324_v38  ;;  %v4400_v32 = vld [vmem:[%s13330_s3 + $0xf98] sm:$0xff]  ;;  %v7223_v13 = vpop.f32.mrf.mxu0  ;;  %v7266_v38 = vpop.f32.mrf.mxu1 }
 0x41a   :  { %9507 = vmatprep.subr.bf16.mxu0 %v9595_v27  ;;  %v4404_v54 = vld [vmem:[%s13330_s3 + $0xfb8] sm:$0xff]  ;;  %v9430_v27 = vcombine.low %v4408_v26, %v4412_v48 }
 0x41b   :  { %v9625_v58 = vld [vmem:[%s13331_s5 + $0x158] sm:$0xff]   ;;  %v9423_v44 = vcombine.high %v4400_v32, %v4404_v54  ;;  %v13156_v51 = vpop.f32.mrf.mxu0  ;;  %v13158_v9 = vpop.f32.mrf.mxu1 }
 0x41c   :  { %7663 = vmatpush1.bf16.msra.mxu1 %v9358_v34  ;;  %v9626_v34 = vld [vmem:[%s13331_s5 + $0x118] sm:$0xff]  }
 0x41d   :  { %9508 = vmatpush3.bf16.msra.mxu0 %v9596_v12  ;;  %7664 = vmatprep.subr.bf16.mxu1 %v9351_v37  ;;  %v4392_v12 = vld [vmem:[%s13330_s3 + $0xf58] sm:$0xff]  ;;  %v7227_v33 = vpop.f32.mrf.mxu0  ;;  %v7270_v2 = vpop.f32.mrf.mxu1 }
 0x41e   :  { %9509 = vmatprep.subr.bf16.mxu0 %v9597_v16  ;;  %v4396_v37 = vld [vmem:[%s13330_s3 + $0xf78] sm:$0xff]  ;;  %v9422_v16 = vcombine.low %v4400_v32, %v4404_v54 }
 0x41f   :  { %v9415_v62 = vcombine.high %v4392_v12, %v4396_v37 }
 0x420   :  { %7665 = vmatpush1.bf16.msra.mxu1 %v9350_v40  ;;  %v9628_v40 = vld [vmem:[%s13331_s5 + $0x110] sm:$0xff]  }
 0x421   :  { %9510 = vmatpush3.bf16.msra.mxu0 %v9598_v61  ;;  %7666 = vmatprep.subr.bf16.mxu1 %v9343_v41  ;;  %v4384_v61 = vld [vmem:[%s13330_s3 + $0xf18] sm:$0xff] }
 0x422   :  { %9511 = vmatprep.subr.bf16.mxu0 %v9599_v28  ;;  %v4388_v41 = vld [vmem:[%s13330_s3 + $0xf38] sm:$0xff]  ;;  %v9414_v28 = vcombine.low %v4392_v12, %v4396_v37 }
 0x423   :  { %v9407_v19 = vcombine.high %v4384_v61, %v4388_v41  ;;  %v9406_v63 = vcombine.low %v4384_v61, %v4388_v41  ;;  %v9602_v37 = vld [vmem:[%s13331_s5 + $0xb8] sm:$0xff]  }
 0x424   :  { %7667 = vmatpush1.bf16.msra.mxu1 %v9342_v21  ;;  %v4376_v21 = vld [vmem:[%s13330_s3 + $0xed8] sm:$0xff] }
 0x425   :  { %9512 = vmatpush3.bf16.msra.mxu0 %v9600_v42  ;;  %7668 = vmatprep.subr.bf16.mxu1 %v9335_v35  ;;  %v4380_v42 = vld [vmem:[%s13330_s3 + $0xef8] sm:$0xff]  ;;  %v9631_v35 = vld [vmem:[%s13331_s5 + $0x140] sm:$0xff]  }
 0x426   :  { %9541 = vmatprep.subr.bf16.mxu0 %v9617_v55  ;;  %v9399_v29 = vcombine.high %v4376_v21, %v4380_v42  ;;  %v9632_v55 = vld [vmem:[%s13331_s5 + $0x100] sm:$0xff]   ;;  %v9609_v61 = vld [vmem:[%s13331_s5 + $0xd8] sm:$0xff]  }
 0x427   :  { %v9610_v41 = vld [vmem:[%s13331_s5 + $0x98] sm:$0xff]  }
 0x428   :  { %7669 = vmatpush1.bf16.msra.mxu1 %v9334_v46  ;;  %8263 = vmatmul.mubr.bf16.vlgmr.msra.gmra.mxu0 %v7703_v53  ;;  %v4372_v46 = vld [vmem:[%s13330_s3 + $0xeb8] sm:$0xff]  ;;  %v9398_v53 = vcombine.low %v4376_v21, %v4380_v42  ;;  %v9613_v21 = vld [vmem:[%s13331_s5 + $0xc8] sm:$0xff]  }
 0x429   :  { %7670 = vmatprep.subr.bf16.mxu1 %v9327_v36  ;;  %9542 = vmatpush3.bf16.msra.mxu0 %v9618_v39  ;;  %v13181_v36 = vpop.f32.mrf.mxu0  ;;  %v13183_v39 = vpop.f32.mrf.mxu1  ;;  %v9391_v52 = vcombine.high %v4368_v45, %v4372_v46  ;;  %v9390_v24 = vcombine.low %v4368_v45, %v4372_v46  ;;  %v9635_v46 = vld [vmem:[%s13331_s5 + $0x1f0] sm:$0xff]  }
 0x42a   :  { %9543 = vmatprep.subr.bf16.mxu0 %v9619_v18  ;;  %v4364_v18 = vld [vmem:[%s13330_s3 + $0xe78] sm:$0xff] }
 0x42b   :  { %v9383_v3 = vcombine.high %v4360_v31, %v4364_v18 }
 0x42c   :  { %7671 = vmatpush1.bf16.msra.mxu1 %v9326_v57  ;;  %v7309_v57 = vpop.f32.mrf.mxu0 }
 0x42d   :  { %7672 = vmatprep.subr.bf16.mxu1 %v9319_v14  ;;  %9544 = vmatpush3.bf16.msra.mxu0 %v9620_v1  ;;  %v7352_v14 = vpop.f32.mrf.mxu1  ;;  %v4430_v1 = vrot.slane %v12926_v56, %v563_v23 }
 0x42e   :  { %9545 = vmatprep.subr.bf16.mxu0 %v9621_v5 }
 0x42f   :  { %v7228_v5 = vadd.f32 %v7227_v33, %v4430_v1  ;;  %v7354_v26 = vpop.f32.mrf.mxu1  ;;  %v7224_v48 = vadd.f32 %v7223_v13, %v4430_v1  ;;  %v9604_v13 = vld [vmem:[%s13331_s5 + $0xb0] sm:$0xff]  }
 0x430   :  { %7673 = vmatpush1.bf16.msra.mxu1 %v9318_v7  ;;  %v4352_v7 = vld [vmem:[%s13330_s3 + $0xe18] sm:$0xff] }
 0x431   :  { %7674 = vmatprep.subr.bf16.mxu1 %v9311_v8  ;;  %9546 = vmatpush3.bf16.msra.mxu0 %v9622_v10  ;;  %v4356_v8 = vld [vmem:[%s13330_s3 + $0xe38] sm:$0xff]  ;;  %v7311_v10 = vpop.f32.mrf.mxu0  ;;  %v7356_v32 = vpop.f32.mrf.mxu1 }
 0x432   :  { %9547 = vmatprep.subr.bf16.mxu0 %v9623_v17  ;;  %v7271_v17 = vadd.f32 %v7270_v2, %v7228_v5  ;;  %v9375_v23 = vcombine.high %v4352_v7, %v4356_v8 }
 0x434   :  { %7675 = vmatpush1.bf16.msra.mxu1 %v9310_v20  ;;  %v9382_v20 = vcombine.low %v4360_v31, %v4364_v18  ;;  %v9640_v31 = vld [vmem:[%s13331_s5 + $0x1a0] sm:$0xff]  }
 0x435   :  { %7676 = vmatprep.subr.bf16.mxu1 %v9431_v15  ;;  %9548 = vmatpush3.bf16.msra.mxu0 %v9624_v22  ;;  %v7267_v15 = vadd.f32 %v7266_v38, %v7224_v48  ;;  %v7313_v22 = vpop.f32.mrf.mxu0  ;;  %v9605_v38 = vld [vmem:[%s13331_s5 + $0xe8] sm:$0xff]   ;;  %v4434_v48 = vrot.slane %v12926_v56, %v567_v25 }
 0x436   :  { %9549 = vmatprep.subr.bf16.mxu0 %v9625_v58  ;;  %v7314_v54 = vadd.f32 %v7313_v22, %v7271_v17  ;;  %v9374_v58 = vcombine.low %v4352_v7, %v4356_v8 }
 0x437   :  { %v7393_v18 = vpop.f32.mrf.mxu0 }
 0x438   :  { %7677 = vmatpush2.bf16.msra.mxu1 %v9430_v27  ;;  %v9601_v27 = vld [vmem:[%s13331_s5 + $0xf8] sm:$0xff]  }
 0x439   :  { %7678 = vmatprep.subr.bf16.mxu1 %v9423_v44  ;;  %9550 = vmatpush3.bf16.msra.mxu0 %v9626_v34  ;;  %v7310_v44 = vadd.f32 %v7309_v57, %v7267_v15  ;;  %v7357_v34 = vadd.f32 %v7356_v32, %v7314_v54  ;;  %v9641_v57 = vld [vmem:[%s13331_s5 + $0x1d8] sm:$0xff]   ;;  %v7395_v1 = vpop.f32.mrf.mxu0  ;;  %v9643_v32 = vld [vmem:[%s13331_s5 + $0x1d0] sm:$0xff]   ;;  %v7394_v54 = vadd.f32 %v7393_v18, %v4434_v48 }
 0x43a   :  { %9551 = vmatprep.subr.bf16.mxu0 %v9627_v43  ;;  %v9603_v43 = vld [vmem:[%s13331_s5 + $0xf0] sm:$0xff]  }
 0x43b   :  { %v7353_v12 = vadd.f32 %v7352_v14, %v7310_v44  ;;  %v9642_v14 = vld [vmem:[%s13331_s5 + $0x198] sm:$0xff]  }
 0x43c   :  { %7679 = vmatpush2.bf16.msra.mxu1 %v9422_v16 }
 0x43d   :  { %7680 = vmatprep.subr.bf16.mxu1 %v9415_v62  ;;  %9552 = vmatpush3.bf16.msra.mxu0 %v9628_v40  ;;  %v7706_v16 = vpack.c.bf16 %v7357_v34, %v7353_v12  ;;  %v9606_v62 = vld [vmem:[%s13331_s5 + $0xa8] sm:$0xff]   ;;  %v9608_v40 = vld [vmem:[%s13331_s5 + $0xa0] sm:$0xff]  }
 0x43e   :  { %9553 = vmatprep.subr.bf16.mxu0 %v9629_v50  ;;  %v9611_v50 = vld [vmem:[%s13331_s5 + $0xd0] sm:$0xff]  }
 0x440   :  { %7681 = vmatpush2.bf16.msra.mxu1 %v9414_v28  ;;  %v4426_v28 = vrot.slane %v12926_v56, %v559_v0  ;;  %v9614_v0 = vld [vmem:[%s13331_s5 + $0x88] sm:$0xff]  }
 0x441   :  { %7682 = vmatprep.subr.bf16.mxu1 %v9407_v19  ;;  %9554 = vmatpush3.bf16.msra.mxu0 %v9630_v49  ;;  %v9612_v19 = vld [vmem:[%s13331_s5 + $0x90] sm:$0xff]  }
 0x442   :  { %9555 = vmatprep.subr.bf16.mxu0 %v9631_v35  ;;  %v7226_v49 = vadd.f32 %v13156_v51, %v4426_v28  ;;  %v7222_v42 = vadd.f32 %v13128_v59, %v4426_v28  ;;  %v9615_v51 = vld [vmem:[%s13331_s5 + $0xc0] sm:$0xff]  }
 0x443   :  { %v9616_v59 = vld [vmem:[%s13331_s5 + $0x80] sm:$0xff]  }
 0x444   :  { %7683 = vmatpush2.bf16.msra.mxu1 %v9406_v63  ;;  %v7269_v35 = vadd.f32 %v13158_v9, %v7226_v49  ;;  %v7265_v63 = vadd.f32 %v13130_v60, %v7222_v42  ;;  %v9647_v49 = vld [vmem:[%s13331_s5 + $0x1c0] sm:$0xff]  }
 0x445   :  { %7684 = vmatprep.subr.bf16.mxu1 %v9399_v29  ;;  %9556 = vmatpush3.bf16.msra.mxu0 %v9632_v55  ;;  %v9633_v29 = vld [vmem:[%s13331_s5 + $0x1f8] sm:$0xff]   ;;  %v9648_v42 = vld [vmem:[%s13331_s5 + $0x180] sm:$0xff]  }
 0x446   :  { %v7312_v33 = vadd.f32 %v7311_v10, %v7269_v35  ;;  %v7308_v9 = vadd.f32 %v13181_v36, %v7265_v63  ;;  %v9634_v55 = vld [vmem:[%s13331_s5 + $0x1b8] sm:$0xff]   ;;  %v9636_v36 = vld [vmem:[%s13331_s5 + $0x1b0] sm:$0xff]  }
 0x448   :  { %7685 = vmatpush2.bf16.msra.mxu1 %v9398_v53  ;;  %v7355_v2 = vadd.f32 %v7354_v26, %v7312_v33  ;;  %v7351_v60 = vadd.f32 %v13183_v39, %v7308_v9  ;;  %v9637_v39 = vld [vmem:[%s13331_s5 + $0x1e8] sm:$0xff]   ;;  %v4438_v26 = vrot.slane %v12926_v56, %v571_v6  ;;  %v9644_v6 = vld [vmem:[%s13331_s5 + $0x190] sm:$0xff]  }
 0x449   :  { %7686 = vmatprep.subr.bf16.mxu1 %v9391_v52  ;;  %v9638_v53 = vld [vmem:[%s13331_s5 + $0x1a8] sm:$0xff]   ;;  %v9639_v52 = vld [vmem:[%s13331_s5 + $0x1e0] sm:$0xff]  }
 0x44a   :  { %v7705_v45 = vpack.c.bf16 %v7355_v2, %v7351_v60  ;;  %v7396_v15 = vadd.f32 %v7395_v1, %v4438_v26 }
 0x44c   :  { %7687 = vmatpush2.bf16.msra.mxu1 %v9390_v24  ;;  %v7397_v24 = vpop.f32.mrf.mxu0 }
 0x44d   :  { %7688 = vmatprep.subr.bf16.mxu1 %v9383_v3 }
 0x44e   :  { %v7399_v5 = vpop.f32.mrf.mxu0 }
 0x44f   :  { %v7400_v22 = vadd.f32 %v7399_v5, %v4438_v26 }
 0x450   :  { %7689 = vmatpush2.bf16.msra.mxu1 %v9382_v20  ;;  %v7479_v8 = vpop.f32.mrf.mxu0  ;;  %v7398_v20 = vadd.f32 %v7397_v24, %v4434_v48 }
 0x451   :  { %7690 = vmatprep.subr.bf16.mxu1 %v9375_v23 }
 0x452   :  { %v7481_v17 = vpop.f32.mrf.mxu0 }
 0x454   :  { %7691 = vmatpush2.bf16.msra.mxu1 %v9374_v58  ;;  %v7483_v58 = vpop.f32.mrf.mxu0 }
 0x455   :  { %9519 = vmatprep.subr.bf16.mxu1 %v9601_v27 }
 0x457   :  { %7693 = vmatmul.mubr.bf16.vlgmr.msra.gmra.mxu1 %v12013_v30  ;;  %v9607_v30 = vld [vmem:[%s13331_s5 + $0xe0] sm:$0xff]   ;;  %v7436_v3 = vpop.f32.mrf.mxu1 }
 0x458   :  { %9520 = vmatpush3.bf16.msra.mxu1 %v9602_v37  ;;  %8303 = vmatprep.mubr.bf16.mxu1 %v7706_v16  ;;  %v7437_v25 = vadd.f32 %v7436_v3, %v7394_v54  ;;  %v7485_v16 = vpop.f32.mrf.mxu0 }
 0x459   :  { %9521 = vmatprep.subr.bf16.mxu1 %v9603_v43  ;;  %v7438_v7 = vpop.f32.mrf.mxu1  ;;  %v9645_v43 = vld [vmem:[%s13331_s5 + $0x1c8] sm:$0xff]  }
 0x45a   :  { %v7439_v34 = vadd.f32 %v7438_v7, %v7396_v15 }
 0x45b   :  { %v7440_v10 = vpop.f32.mrf.mxu1 }
 0x45c   :  { %9522 = vmatpush3.bf16.msra.mxu1 %v9604_v13  ;;  %v7441_v27 = vadd.f32 %v7440_v10, %v7398_v20 }
 0x45d   :  { %9523 = vmatprep.subr.bf16.mxu1 %v9605_v38  ;;  %v7442_v23 = vpop.f32.mrf.mxu1 }
 0x45e   :  { %v7443_v12 = vadd.f32 %v7442_v23, %v7400_v22  ;;  %v7484_v13 = vadd.f32 %v7483_v58, %v7441_v27 }
 0x460   :  { %9524 = vmatpush3.bf16.msra.mxu1 %v9606_v62  ;;  %v9646_v62 = vld [vmem:[%s13331_s5 + $0x188] sm:$0xff]  }
 0x461   :  { %9525 = vmatprep.subr.bf16.mxu1 %v9607_v30  ;;  %v7482_v30 = vadd.f32 %v7481_v17, %v7439_v34 }
 0x464   :  { %9526 = vmatpush3.bf16.msra.mxu1 %v9608_v40  ;;  %v7486_v40 = vadd.f32 %v7485_v16, %v7443_v12 }
 0x465   :  { %9527 = vmatprep.subr.bf16.mxu1 %v9609_v61  ;;  %v7480_v61 = vadd.f32 %v7479_v8, %v7437_v25 }
 0x468   :  { %9528 = vmatpush3.bf16.msra.mxu1 %v9610_v41 }
 0x469   :  { %9529 = vmatprep.subr.bf16.mxu1 %v9611_v50 }
 0x46c   :  { %9530 = vmatpush3.bf16.msra.mxu1 %v9612_v19 }
 0x46d   :  { %9531 = vmatprep.subr.bf16.mxu1 %v9613_v21 }
 0x470   :  { %9532 = vmatpush3.bf16.msra.mxu1 %v9614_v0 }
 0x471   :  { %9533 = vmatprep.subr.bf16.mxu1 %v9615_v51 }
 0x474   :  { %9534 = vmatpush3.bf16.msra.mxu1 %v9616_v59 }
 0x475   :  { %9563 = vmatprep.subr.bf16.mxu1 %v9633_v29 }
 0x477   :  { %8304 = vmatmul.mubr.bf16.vlgmr.msra.gmra.mxu1 %v7705_v45  ;;  %v4442_v45 = vrot.slane %v12926_v56, %v575_v47 }
 0x478   :  { %9564 = vmatpush3.bf16.msra.mxu1 %v9634_v55  ;;  %v4446_v55 = vrot.slane %v12926_v56, %v579_v11 }
 0x479   :  { %9565 = vmatprep.subr.bf16.mxu1 %v9635_v46 }
 0x47c   :  { %9566 = vmatpush3.bf16.msra.mxu1 %v9636_v36 }
 0x47d   :  { %9567 = vmatprep.subr.bf16.mxu1 %v9637_v39 }
 0x480   :  { %9568 = vmatpush3.bf16.msra.mxu1 %v9638_v53 }
 0x481   :  { %9569 = vmatprep.subr.bf16.mxu1 %v9639_v52 }
 0x484   :  { %9570 = vmatpush3.bf16.msra.mxu1 %v9640_v31 }
 0x485   :  { %9571 = vmatprep.subr.bf16.mxu1 %v9641_v57 }
 0x488   :  { %9572 = vmatpush3.bf16.msra.mxu1 %v9642_v14  ;;  %v7565_v63 = vpop.f32.mrf.mxu0 }
 0x489   :  { %9573 = vmatprep.subr.bf16.mxu1 %v9643_v32  ;;  %v7566_v31 = vadd.f32 %v7565_v63, %v4442_v45 }
 0x48a   :  { %v7567_v51 = vpop.f32.mrf.mxu0 }
 0x48b   :  { %v7568_v53 = vadd.f32 %v7567_v51, %v4446_v55 }
 0x48c   :  { %9574 = vmatpush3.bf16.msra.mxu1 %v9644_v6  ;;  %v7569_v33 = vpop.f32.mrf.mxu0 }
 0x48d   :  { %9575 = vmatprep.subr.bf16.mxu1 %v9645_v43  ;;  %v7570_v36 = vadd.f32 %v7569_v33, %v4442_v45 }
 0x48e   :  { %v7571_v9 = vpop.f32.mrf.mxu0 }
 0x48f   :  { %v7572_v52 = vadd.f32 %v7571_v9, %v4446_v55 }
 0x490   :  { %9576 = vmatpush3.bf16.msra.mxu1 %v9646_v62 }
 0x491   :  { %9577 = vmatprep.subr.bf16.mxu1 %v9647_v49 }
 0x494   :  { %9578 = vmatpush3.bf16.msra.mxu1 %v9648_v42 }
 0x497   :  { %v7522_v44 = vpop.f32.mrf.mxu1 }
 0x498   :  { %v7523_v21 = vadd.f32 %v7522_v44, %v7480_v61 }
 0x499   :  { %v7524_v37 = vpop.f32.mrf.mxu1 }
 0x49a   :  { %v7525_v28 = vadd.f32 %v7524_v37, %v7482_v30  ;;  %v9432_v37 = vld [vmem:[%s13333_s6] ss:$0 sm:$0xff] }
 0x49b   :  { %v7526_v38 = vpop.f32.mrf.mxu1 }
 0x49c   :  { %v7527_v41 = vadd.f32 %v7526_v38, %v7484_v13 }
 0x49d   :  { %v7528_v50 = vpop.f32.mrf.mxu1 }
 0x49e   :  { %v7529_v19 = vadd.f32 %v7528_v50, %v7486_v40  ;;  %v7707_v0 = vpack.c.bf16 %v7527_v41, %v7523_v21 }
 0x4a0   :  { %v7708_v35 = vpack.c.bf16 %v7529_v19, %v7525_v28 }
 0x4a2   :  { %8344 = vmatprep.mubr.bf16.mxu0 %v7708_v35 }
 0x4a3   :  { %8345 = vmatmul.mubr.bf16.vlgmr.msra.gmra.mxu0 %v7707_v0 }
 0x4c8   :  { %v7651_v29 = vpop.f32.mrf.mxu0 }
 0x4ca   :  { %v7653_v46 = vpop.f32.mrf.mxu0 }
 0x4cc   :  { %v7655_v18 = vpop.f32.mrf.mxu0 }
 0x4ce   :  { %v7657_v7 = vpop.f32.mrf.mxu0 }
 0x4d7   :  { %v7608_v59 = vpop.f32.mrf.mxu1 }
 0x4d8   :  { %v7609_v3 = vadd.f32 %v7608_v59, %v7566_v31 }
 0x4d9   :  { %v7610_v2 = vpop.f32.mrf.mxu1 }
 0x4da   :  { %v7611_v1 = vadd.f32 %v7610_v2, %v7568_v53  ;;  %v7652_v26 = vadd.f32 %v7651_v29, %v7609_v3 }
 0x4db   :  { %v7612_v60 = vpop.f32.mrf.mxu1 }
 0x4dc   :  { %v7613_v57 = vadd.f32 %v7612_v60, %v7570_v36  ;;  %v7654_v10 = vadd.f32 %v7653_v46, %v7611_v1 }
 0x4dd   :  { %v7614_v39 = vpop.f32.mrf.mxu1 }
 0x4de   :  { %v7615_v24 = vadd.f32 %v7614_v39, %v7572_v52  ;;  %v7656_v8 = vadd.f32 %v7655_v18, %v7613_v57 }
 0x4e0   :  { %v7658_v4 = vadd.f32 %v7657_v7, %v7615_v24 }
 0x4e8   :  { %v9513_v22 = vpop.f32.mrf.mxu0 }
 0x4ea   :  { %v9514_v32 = vpop.f32.mrf.mxu0 }
 0x4eb   :  { %v9515_v25 = vadd.f32 %v9514_v32, %v9513_v22 }
 0x4ec   :  { %v9516_v54 = vpop.f32.mrf.mxu0 }
 0x4ed   :  { %v8265_v38 = vadd.f32 %v9515_v25, %v9432_v37 }
 0x4ee   :  { %v9517_v58 = vpop.f32.mrf.mxu0 }
 0x4ef   :  { %v9518_v62 = vadd.f32 %v9517_v58, %v9516_v54 }
 0x4f1   :  { %v8268_v19 = vadd.f32 %v9518_v62, %v9432_v37 }
 0x517   :  { %v7694_v14 = vpop.f32.mrf.mxu1 }
 0x518   :  { %v7695_v20 = vadd.f32 %v7694_v14, %v7652_v26 }
 0x519   :  { %v7696_v5 = vpop.f32.mrf.mxu1 }
 0x51a   :  { %v7697_v48 = vadd.f32 %v7696_v5, %v7654_v10 }
 0x51b   :  { %v7698_v11 = vpop.f32.mrf.mxu1 }
 0x51c   :  { %v7699_v47 = vadd.f32 %v7698_v11, %v7656_v8 }
 0x51d   :  { %v7700_v56 = vpop.f32.mrf.mxu1 }
 0x51e   :  { %v7701_v17 = vadd.f32 %v7700_v56, %v7658_v4  ;;  %v7709_v15 = vpack.c.bf16 %v7699_v47, %v7695_v20 }
 0x520   :  { %v7710_v23 = vpack.c.bf16 %v7701_v17, %v7697_v48 }
 0x522   :  { %8385 = vmatprep.mubr.bf16.mxu1 %v7710_v23 }
 0x523   :  { %8386 = vmatmul.mubr.bf16.vlgmr.msra.gmra.mxu1 %v7709_v15 }
 0x537   :  { %v9535_v27 = vpop.f32.mrf.mxu1 }
 0x539   :  { %v9536_v6 = vpop.f32.mrf.mxu1 }
 0x53a   :  { %v9537_v16 = vadd.f32 %v9536_v6, %v9535_v27 }
 0x53b   :  { %v9538_v12 = vpop.f32.mrf.mxu1 }
 0x53c   :  { %v8306_v41 = vadd.f32 %v9537_v16, %v8265_v38 }
 0x53d   :  { %v9539_v13 = vpop.f32.mrf.mxu1 }
 0x53e   :  { %v9540_v50 = vadd.f32 %v9539_v13, %v9538_v12 }
 0x540   :  { %v8309_v0 = vadd.f32 %v9540_v50, %v8268_v19 }
 0x563   :  { %v9557_v44 = vpop.f32.mrf.mxu0 }
 0x565   :  { %v9558_v34 = vpop.f32.mrf.mxu0 }
 0x566   :  { %v9559_v30 = vadd.f32 %v9558_v34, %v9557_v44 }
 0x567   :  { %v9560_v43 = vpop.f32.mrf.mxu0 }
 0x568   :  { %v8347_v49 = vadd.f32 %v9559_v30, %v8306_v41 }
 0x569   :  { %v9561_v40 = vpop.f32.mrf.mxu0 }
 0x56a   :  { %v9562_v21 = vadd.f32 %v9561_v40, %v9560_v43 }
 0x56c   :  { %v8350_v33 = vadd.f32 %v9562_v21, %v8309_v0 }
 0x5e3   :  { %v9579_v61 = vpop.f32.mrf.mxu1 }
 0x5e5   :  { %v9580_v28 = vpop.f32.mrf.mxu1 }
 0x5e6   :  { %v9581_v42 = vadd.f32 %v9580_v28, %v9579_v61 }
 0x5e7   :  { %v9582_v35 = vpop.f32.mrf.mxu1 }
 0x5e8   :  { %v8388_v63 = vadd.f32 %v9581_v42, %v8347_v49 }
 0x5e9   :  { %v9583_v51 = vpop.f32.mrf.mxu1 }
 0x5ea   :  { %8394 = vst [vmem:[%s13334_s7] sm:$0xff] %v8388_v63  ;;  %v9584_v59 = vadd.f32 %v9583_v51, %v9582_v35 }
 0x5ec   :  { %v8391_v9 = vadd.f32 %v9584_v59, %v8350_v33 }
 0x5ee   :  { %8395 = vst [vmem:[%s13334_s7 + $0x8] sm:$0xff] %v8391_v9 }

</bundles_post_ra>
